<compile_context>
chip_gen: v6e
topology: v6e:2x2x1
jax: 0.10.0
libtpu: 0.0.40
codegen_flags: <defaults>
</compile_context>

<pallas_src>
import jax
import jax.numpy as jnp
import numpy as np
from jax import lax
from jax.experimental import pallas as pl
from jax.experimental.pallas import tpu as pltpu

EPS = 1e-5
LANES = 128
HIGHEST = lax.Precision.HIGHEST   # reference only


# ------------------------------------------------------------ kernel helpers
def _pad_hw_into(scratch_ref, x):
    """Write `x` into the interior of a (H+2, W+2, C) VMEM scratch.

    Only the 1-pixel border is zeroed (the interior is fully overwritten every
    grid step); re-zeroing the border each step keeps this correct regardless
    of how the "parallel" grid axis is sharded across TensorCores.
    """
    H, W = x.shape[0], x.shape[1]
    W2, C = scratch_ref.shape[1], scratch_ref.shape[2]
    zrow = jnp.zeros((1, W2, C), scratch_ref.dtype)
    zcol = jnp.zeros((H, 1, C), scratch_ref.dtype)
    scratch_ref[0:1, :, :] = zrow
    scratch_ref[H + 1:H + 2, :, :] = zrow
    scratch_ref[1:H + 1, 0:1, :] = zcol
    scratch_ref[1:H + 1, W + 1:W + 2, :] = zcol
    scratch_ref[1:H + 1, 1:W + 1, :] = x.astype(scratch_ref.dtype)


def _conv3x3(xpad, wmat):
    """3x3 stride-1 'SAME' conv of a zero-padded bf16 activation.

    xpad: (H+2, W+2, C) bf16.
    wmat: (9*C, CP) bf16, rows ordered (kh, kw, c).
    Returns (H*W, CP) f32 (f32 MXU accumulation).

    Small C: one im2col matmul. C >= 128: nine accumulated K=C dots (skips
    building / re-reading the 9x-wide im2col matrix; each tap already fills
    the MXU contraction).
    """
    H, W, C = xpad.shape[0] - 2, xpad.shape[1] - 2, xpad.shape[2]
    HW = H * W
    taps = [(dy, dx) for dy in range(3) for dx in range(3)]
    if C < 128:
        cols = [xpad[dy:dy + H, dx:dx + W, :].reshape(HW, C) for dy, dx in taps]
        im2col = jnp.concatenate(cols, axis=-1)               # (HW, 9*C) bf16
        return jnp.dot(im2col, wmat, preferred_element_type=jnp.float32)
    acc = jnp.zeros((HW, wmat.shape[1]), jnp.float32)
    for t, (dy, dx) in enumerate(taps):
        win = xpad[dy:dy + H, dx:dx + W, :].reshape(HW, C)
        acc = acc + jnp.dot(win, wmat[t * C:(t + 1) * C, :],
                            preferred_element_type=jnp.float32)
    return acc


# --------------- pass 1: per-image BatchNorm partial sums (both BN layers) --
def _stats_kernel(x_ref, w1m_ref, b1_ref, wsm_ref, bs_ref, sums_ref, xpad_ref):
    x = x_ref[0]                                               # (H, W, Cin) bf16
    H, W, Cin = x.shape

    # conv1 pre-BN output for this image (bf16 MXU, f32 accumulation).
    _pad_hw_into(xpad_ref, x)
    y1 = _conv3x3(xpad_ref[...], w1m_ref[...]) + b1_ref[...]   # (HW, CP) f32
    # shortcut 1x1 conv output.
    ys = jnp.dot(x.reshape(H * W, Cin), wsm_ref[...],
                 preferred_element_type=jnp.float32) + bs_ref[...]

    sums_ref[0] = jnp.concatenate(
        [jnp.sum(y1, axis=0, keepdims=True),
         jnp.sum(y1 * y1, axis=0, keepdims=True),
         jnp.sum(ys, axis=0, keepdims=True),
         jnp.sum(ys * ys, axis=0, keepdims=True)], axis=0)     # (4, CP)


# -------- pass 2: fused conv1+BN+ReLU -> conv2+ReLU -> shortcut(1x1+BN) -----
def _apply_kernel(stats_ref, x_ref, w1m_ref, b1_ref, g1_ref, be1_ref,
                  w2m_ref, b2_ref, wsm_ref, bs_ref, gs_ref, bes_ref,
                  out_ref, xpad_ref, ypad_ref):
    x = x_ref[0]                                               # (H, W, Cin) bf16
    H, W, Cin = x.shape
    HW = H * W
    CP = ypad_ref.shape[2]

    # conv1 + BatchNorm(batch stats) + ReLU  (f32 math on the MXU output)
    _pad_hw_into(xpad_ref, x)
    y1 = _conv3x3(xpad_ref[...], w1m_ref[...]) + b1_ref[...]   # (HW, CP)
    y1 = (y1 - stats_ref[0:1, :]) * stats_ref[1:2, :] * g1_ref[...] + be1_ref[...]
    y1 = jnp.maximum(y1, 0.0)

    # conv2 + ReLU, lane-dense at CP (w2m has zero K-rows for pad channels)
    _pad_hw_into(ypad_ref, y1.reshape(H, W, CP))
    y2 = _conv3x3(ypad_ref[...], w2m_ref[...]) + b2_ref[...]
    y2 = jnp.maximum(y2, 0.0)

    # shortcut: 1x1 conv + BatchNorm(batch stats)
    xs = jnp.dot(x.reshape(HW, Cin), wsm_ref[...],
                 preferred_element_type=jnp.float32) + bs_ref[...]
    xs = (xs - stats_ref[2:3, :]) * stats_ref[3:4, :] * gs_ref[...] + bes_ref[...]

    out_ref[0] = (xs + y2).astype(out_ref.dtype)               # dense (HW, CP)


# ------------------------------------------------------------------ wrapper
@jax.jit
def resblock_forward(x, params):
    """x: NHWC (N, H, W, Cin) f32; params in PyTorch layouts. Returns NHWC f32."""
    # TODO(synk): stride != 1 is not implemented (the PyTorch module's residual
    # add has mismatched shapes for stride != 1, so only stride=1 is supported).
    N, H, W, Cin = x.shape
    Cout = params["w1"].shape[0]
    CP = ((Cout + LANES - 1) // LANES) * LANES   # lane-dense channel padding
    f32, bf16 = jnp.float32, jnp.bfloat16

    xb = x.astype(bf16)   # x is read by both passes; halve its DMA bytes.

    def conv_mat(w, pad_in=False):
        # OIHW -> (9*I[pad CP], O pad CP), rows ordered (kh, kw, cin), bf16.
        o, i = w.shape[0], w.shape[1]
        ip = CP if pad_in else i
        m = jnp.transpose(w, (2, 3, 1, 0))                     # (3, 3, I, O)
        m = jnp.pad(m, ((0, 0), (0, 0), (0, ip - i), (0, CP - o)))
        return m.reshape(9 * ip, CP).astype(bf16)

    def vec(v, fill=0.0):  # (C,) -> (1, CP) f32
        return jnp.pad(v.astype(f32), (0, CP - v.shape[0]),
                       constant_values=fill).reshape(1, CP)

    w1m = conv_mat(params["w1"])                               # (9*Cin, CP)
    w2m = conv_mat(params["w2"], pad_in=True)                  # (9*CP,  CP)
    wsm = jnp.pad(params["ws"].reshape(Cout, Cin).T,
                  ((0, 0), (0, CP - Cout))).astype(bf16)       # (Cin, CP)
    b1, b2, bs = vec(params["b1"]), vec(params["b2"]), vec(params["bs"])
    g1, be1 = vec(params["g1"], 1.0), vec(params["be1"])
    gs, bes = vec(params["gs"], 1.0), vec(params["bes"])

    full = lambda a: pl.BlockSpec(a.shape, lambda n: (0,) * a.ndim)
    x_spec = pl.BlockSpec((1, H, W, Cin), lambda n: (n, 0, 0, 0))
    cparams = pltpu.CompilerParams(
        dimension_semantics=("parallel",), vmem_limit_bytes=32 * 1024 * 1024)

    # Pass 1: per-image partial sum/sumsq for both BatchNorms. "parallel" grid
    # (both TensorCores on v7x); the tiny (4, CP) reduce + mean/rsqrt finalize
    # (variance clamped >= 0) stays in XLA between the two pallas_calls.
    psums = pl.pallas_call(
        _stats_kernel,
        out_shape=jax.ShapeDtypeStruct((N, 4, CP), f32),
        grid=(N,),
        in_specs=[x_spec, full(w1m), full(b1), full(wsm), full(bs)],
        out_specs=pl.BlockSpec((1, 4, CP), lambda n: (n, 0, 0)),
        scratch_shapes=[pltpu.VMEM((H + 2, W + 2, Cin), bf16)],
        compiler_params=cparams,
    )(xb, w1m, b1, wsm, bs)

    s = jnp.sum(psums, axis=0)                                 # (4, CP)
    inv = 1.0 / float(N * H * W)
    m1, ms = s[0] * inv, s[2] * inv
    v1 = jnp.maximum(s[1] * inv - m1 * m1, 0.0)                # biased var, clamped
    vs = jnp.maximum(s[3] * inv - ms * ms, 0.0)
    stats = jnp.stack([m1, lax.rsqrt(v1 + EPS),
                       ms, lax.rsqrt(vs + EPS)], axis=0)       # (4, CP) f32

    # Pass 2: fully fused residual block, one image per grid step; output is
    # bf16 / lane-dense CP (half the HBM writeback of the previous f32 version).
    # TODO(synk): for production H, W and Cout >= 128, add spatial row tiling
    # (1-row halo) and single-buffer the grid-invariant weight blocks so the
    # per-step working set fits v7x's 64 MiB VMEM.
    out = pl.pallas_call(
        _apply_kernel,
        out_shape=jax.ShapeDtypeStruct((N, H * W, CP), bf16),
        grid=(N,),
        in_specs=[full(stats), x_spec, full(w1m), full(b1), full(g1), full(be1),
                  full(w2m), full(b2), full(wsm), full(bs), full(gs), full(bes)],
        out_specs=pl.BlockSpec((1, H * W, CP), lambda n: (n, 0, 0)),
        scratch_shapes=[pltpu.VMEM((H + 2, W + 2, Cin), bf16),
                        pltpu.VMEM((H + 2, W + 2, CP), bf16)],
        compiler_params=cparams,
    )(stats, xb, w1m, b1, g1, be1, w2m, b2, wsm, bs, gs, bes)

    # Wrapper-side layout plumbing (fuses under jit): unflatten spatial dims,
    # strip lane padding, cast back to the module's f32 output dtype.
    return out.reshape(N, H, W, CP)[..., :Cout].astype(f32)


# --------------------------- pure-JAX reference (f32 / HIGHEST) -------------
def resblock_reference(x, p):
    dn = ("NHWC", "HWIO", "NHWC")
    hwio = lambda w: jnp.transpose(w, (2, 3, 1, 0))

    def bn(y, g, b):
        mu = jnp.mean(y, axis=(0, 1, 2))
        var = jnp.mean((y - mu) ** 2, axis=(0, 1, 2))
        return (y - mu) * lax.rsqrt(var + EPS) * g + b

    y = lax.conv_general_dilated(x, hwio(p["w1"]), (1, 1), "SAME",
                                 dimension_numbers=dn, precision=HIGHEST) + p["b1"]
    y = jnp.maximum(bn(y, p["g1"], p["be1"]), 0.0)
    y = lax.conv_general_dilated(y, hwio(p["w2"]), (1, 1), "SAME",
                                 dimension_numbers=dn, precision=HIGHEST) + p["b2"]
    y = jnp.maximum(y, 0.0)
    s = lax.conv_general_dilated(x, hwio(p["ws"]), (1, 1), "VALID",
                                 dimension_numbers=dn, precision=HIGHEST) + p["bs"]
    return bn(s, p["gs"], p["bes"]) + y


# ----------------------------------- main ------------------------------------
if __name__ == "__main__":
    N, H, W = 2, 16, 16
    Cin, Cout = 4, 8        # Cin != Cout => shortcut = Conv1x1 + BN (active)

    key = jax.random.PRNGKey(0)
    ks = jax.random.split(key, 7)
    params = {  # PyTorch-layout parameters (Conv2d OIHW weights, (C,) vectors)
        "w1": jax.random.normal(ks[0], (Cout, Cin, 3, 3), jnp.float32) * 0.2,
        "b1": jax.random.normal(ks[1], (Cout,), jnp.float32) * 0.1,
        "g1": jnp.ones((Cout,), jnp.float32),       # BatchNorm default init
        "be1": jnp.zeros((Cout,), jnp.float32),
        "w2": jax.random.normal(ks[2], (Cout, Cout, 3, 3), jnp.float32) * 0.2,
        "b2": jax.random.normal(ks[3], (Cout,), jnp.float32) * 0.1,
        "ws": jax.random.normal(ks[4], (Cout, Cin, 1, 1), jnp.float32) * 0.3,
        "bs": jax.random.normal(ks[5], (Cout,), jnp.float32) * 0.1,
        "gs": jnp.ones((Cout,), jnp.float32),
        "bes": jnp.zeros((Cout,), jnp.float32),
    }
    x = jax.random.normal(ks[6], (N, H, W, Cin), jnp.float32)

    out = jax.block_until_ready(resblock_forward(x, params))
    ref = jax.block_until_ready(resblock_reference(x, params))

    # Tolerance reflects bf16 MXU inputs / bf16 output (f32 accumulation and
    # BN math) vs an f32/HIGHEST reference — a conscious choice for
    # training-mode BN; structural errors would be orders of magnitude larger.
    np.testing.assert_allclose(np.asarray(out), np.asarray(ref),
                               atol=3e-2, rtol=3e-2)
    print("KERNEL_OK")
</pallas_src>

<mosaic_0001>
module attributes {stable_mosaic.version = 11 : i64} {
  func.func @_stats_kernel(%arg0: i32, %arg1: memref<1x16x16x4xbf16, #tpu.memory_space<vmem>>, %arg2: memref<36x128xbf16, #tpu.memory_space<vmem>>, %arg3: memref<1x128xf32, #tpu.memory_space<vmem>>, %arg4: memref<4x128xbf16, #tpu.memory_space<vmem>>, %arg5: memref<1x128xf32, #tpu.memory_space<vmem>>, %arg6: memref<1x4x128xf32, #tpu.memory_space<vmem>>, %arg7: memref<18x18x4xbf16, #tpu.memory_space<vmem>>) attributes {dimension_semantics = [#tpu.dimension_semantics<parallel>], iteration_bounds = array<i64: 2>, scalar_prefetch = 0 : i64, scratch_operands = 1 : i64, tpu.core_type = #tpu.core_type<tc>, window_params = [{transform_indices = @transform_0, window_bounds = array<i64: 1, 16, 16, 4>}, {pipeline_mode = #tpu.pipeline_mode<synchronous>, transform_indices = @transform_1, window_bounds = array<i64: 36, 128>}, {pipeline_mode = #tpu.pipeline_mode<synchronous>, transform_indices = @transform_2, window_bounds = array<i64: 1, 128>}, {pipeline_mode = #tpu.pipeline_mode<synchronous>, transform_indices = @transform_3, window_bounds = array<i64: 4, 128>}, {pipeline_mode = #tpu.pipeline_mode<synchronous>, transform_indices = @transform_4, window_bounds = array<i64: 1, 128>}, {transform_indices = @transform_5, window_bounds = array<i64: 1, 4, 128>}]} {
    %c0 = arith.constant 0 : index
    %c0_0 = arith.constant 0 : index
    %c0_1 = arith.constant 0 : index
    %c0_2 = arith.constant 0 : index
    %0 = vector.load %arg1[%c0, %c0_0, %c0_1, %c0_2] : memref<1x16x16x4xbf16, #tpu.memory_space<vmem>>, vector<1x16x16x4xbf16>
    %1 = vector.shape_cast %0 : vector<1x16x16x4xbf16> to vector<16x16x4xbf16>
    %cst = arith.constant 0.000000e+00 : bf16
    %2 = vector.broadcast %cst : bf16 to vector<1x18x4xbf16>
    %cst_3 = arith.constant 0.000000e+00 : bf16
    %3 = vector.broadcast %cst_3 : bf16 to vector<16x1x4xbf16>
    %c0_4 = arith.constant 0 : index
    %c0_5 = arith.constant 0 : index
    %c0_6 = arith.constant 0 : index
    %4 = vector.load %arg7[%c0_4, %c0_5, %c0_6] : memref<18x18x4xbf16, #tpu.memory_space<vmem>>, vector<1x18x4xbf16>
    tpu.vector_store %arg7[%c0_4, %c0_5, %c0_6], %2 {strides = array<i32>} : memref<18x18x4xbf16, #tpu.memory_space<vmem>>, vector<1x18x4xbf16>,
    %c17 = arith.constant 17 : index
    %c0_7 = arith.constant 0 : index
    %c0_8 = arith.constant 0 : index
    %5 = vector.load %arg7[%c17, %c0_7, %c0_8] : memref<18x18x4xbf16, #tpu.memory_space<vmem>>, vector<1x18x4xbf16>
    tpu.vector_store %arg7[%c17, %c0_7, %c0_8], %2 {strides = array<i32>} : memref<18x18x4xbf16, #tpu.memory_space<vmem>>, vector<1x18x4xbf16>,
    %c1 = arith.constant 1 : index
    %c0_9 = arith.constant 0 : index
    %c0_10 = arith.constant 0 : index
    %6 = vector.load %arg7[%c1, %c0_9, %c0_10] : memref<18x18x4xbf16, #tpu.memory_space<vmem>>, vector<16x1x4xbf16>
    tpu.vector_store %arg7[%c1, %c0_9, %c0_10], %3 {strides = array<i32>} : memref<18x18x4xbf16, #tpu.memory_space<vmem>>, vector<16x1x4xbf16>,
    %c1_11 = arith.constant 1 : index
    %c17_12 = arith.constant 17 : index
    %c0_13 = arith.constant 0 : index
    %7 = vector.load %arg7[%c1_11, %c17_12, %c0_13] : memref<18x18x4xbf16, #tpu.memory_space<vmem>>, vector<16x1x4xbf16>
    tpu.vector_store %arg7[%c1_11, %c17_12, %c0_13], %3 {strides = array<i32>} : memref<18x18x4xbf16, #tpu.memory_space<vmem>>, vector<16x1x4xbf16>,
    %c1_14 = arith.constant 1 : index
    %c1_15 = arith.constant 1 : index
    %c0_16 = arith.constant 0 : index
    %8 = vector.load %arg7[%c1_14, %c1_15, %c0_16] : memref<18x18x4xbf16, #tpu.memory_space<vmem>>, vector<16x16x4xbf16>
    tpu.vector_store %arg7[%c1_14, %c1_15, %c0_16], %1 {strides = array<i32>} : memref<18x18x4xbf16, #tpu.memory_space<vmem>>, vector<16x16x4xbf16>,
    %c0_17 = arith.constant 0 : index
    %c0_18 = arith.constant 0 : index
    %c0_19 = arith.constant 0 : index
    %9 = vector.load %arg7[%c0_17, %c0_18, %c0_19] : memref<18x18x4xbf16, #tpu.memory_space<vmem>>, vector<18x18x4xbf16>
    %c0_20 = arith.constant 0 : index
    %c0_21 = arith.constant 0 : index
    %10 = vector.load %arg2[%c0_20, %c0_21] : memref<36x128xbf16, #tpu.memory_space<vmem>>, vector<36x128xbf16>
    %11 = vector.extract_strided_slice %9 {offsets = [0, 0, 0], sizes = [16, 16, 4], strides = [1, 1, 1]} : vector<18x18x4xbf16> to vector<16x16x4xbf16>
    %12 = vector.shape_cast %11 : vector<16x16x4xbf16> to vector<256x4xbf16>
    %13 = vector.extract_strided_slice %9 {offsets = [0, 1, 0], sizes = [16, 16, 4], strides = [1, 1, 1]} : vector<18x18x4xbf16> to vector<16x16x4xbf16>
    %14 = vector.shape_cast %13 : vector<16x16x4xbf16> to vector<256x4xbf16>
    %15 = vector.extract_strided_slice %9 {offsets = [0, 2, 0], sizes = [16, 16, 4], strides = [1, 1, 1]} : vector<18x18x4xbf16> to vector<16x16x4xbf16>
    %16 = vector.shape_cast %15 : vector<16x16x4xbf16> to vector<256x4xbf16>
    %17 = vector.extract_strided_slice %9 {offsets = [1, 0, 0], sizes = [16, 16, 4], strides = [1, 1, 1]} : vector<18x18x4xbf16> to vector<16x16x4xbf16>
    %18 = vector.shape_cast %17 : vector<16x16x4xbf16> to vector<256x4xbf16>
    %19 = vector.extract_strided_slice %9 {offsets = [1, 1, 0], sizes = [16, 16, 4], strides = [1, 1, 1]} : vector<18x18x4xbf16> to vector<16x16x4xbf16>
    %20 = vector.shape_cast %19 : vector<16x16x4xbf16> to vector<256x4xbf16>
    %21 = vector.extract_strided_slice %9 {offsets = [1, 2, 0], sizes = [16, 16, 4], strides = [1, 1, 1]} : vector<18x18x4xbf16> to vector<16x16x4xbf16>
    %22 = vector.shape_cast %21 : vector<16x16x4xbf16> to vector<256x4xbf16>
    %23 = vector.extract_strided_slice %9 {offsets = [2, 0, 0], sizes = [16, 16, 4], strides = [1, 1, 1]} : vector<18x18x4xbf16> to vector<16x16x4xbf16>
    %24 = vector.shape_cast %23 : vector<16x16x4xbf16> to vector<256x4xbf16>
    %25 = vector.extract_strided_slice %9 {offsets = [2, 1, 0], sizes = [16, 16, 4], strides = [1, 1, 1]} : vector<18x18x4xbf16> to vector<16x16x4xbf16>
    %26 = vector.shape_cast %25 : vector<16x16x4xbf16> to vector<256x4xbf16>
    %27 = vector.extract_strided_slice %9 {offsets = [2, 2, 0], sizes = [16, 16, 4], strides = [1, 1, 1]} : vector<18x18x4xbf16> to vector<16x16x4xbf16>
    %28 = vector.shape_cast %27 : vector<16x16x4xbf16> to vector<256x4xbf16>
    %29 = tpu.concatenate %12, %14, %16, %18, %20, %22, %24, %26, %28 in 1 : vector<256x4xbf16>, vector<256x4xbf16>, vector<256x4xbf16>, vector<256x4xbf16>, vector<256x4xbf16>, vector<256x4xbf16>, vector<256x4xbf16>, vector<256x4xbf16>, vector<256x4xbf16> -> vector<256x36xbf16>
    %cst_22 = arith.constant dense<0.000000e+00> : vector<256x128xf32>
    %30 = tpu.matmul %29, %10, %cst_22 {dimension_numbers = #tpu.dot_dimension_numbers<[1], [0], [0], [1], [0, 0, 1, 1], [], []>} : vector<256x36xbf16>, vector<36x128xbf16>, vector<256x128xf32> -> vector<256x128xf32>
    %c0_23 = arith.constant 0 : index
    %c0_24 = arith.constant 0 : index
    %31 = vector.load %arg3[%c0_23, %c0_24] : memref<1x128xf32, #tpu.memory_space<vmem>>, vector<1x128xf32>
    %32 = vector.broadcast %31 : vector<1x128xf32> to vector<256x128xf32>
    %33 = arith.addf %30, %32 : vector<256x128xf32>
    %34 = vector.shape_cast %1 : vector<16x16x4xbf16> to vector<256x4xbf16>
    %c0_25 = arith.constant 0 : index
    %c0_26 = arith.constant 0 : index
    %35 = vector.load %arg4[%c0_25, %c0_26] : memref<4x128xbf16, #tpu.memory_space<vmem>>, vector<4x128xbf16>
    %cst_27 = arith.constant dense<0.000000e+00> : vector<256x128xf32>
    %36 = tpu.matmul %34, %35, %cst_27 {dimension_numbers = #tpu.dot_dimension_numbers<[1], [0], [0], [1], [0, 0, 1, 1], [], []>} : vector<256x4xbf16>, vector<4x128xbf16>, vector<256x128xf32> -> vector<256x128xf32>
    %c0_28 = arith.constant 0 : index
    %c0_29 = arith.constant 0 : index
    %37 = vector.load %arg5[%c0_28, %c0_29] : memref<1x128xf32, #tpu.memory_space<vmem>>, vector<1x128xf32>
    %38 = vector.broadcast %37 : vector<1x128xf32> to vector<256x128xf32>
    %39 = arith.addf %36, %38 : vector<256x128xf32>
    %cst_30 = arith.constant dense<0.000000e+00> : vector<128xf32>
    %40 = vector.multi_reduction <add>, %33, %cst_30 [0] : vector<256x128xf32> to vector<128xf32>
    %41 = vector.shape_cast %40 : vector<128xf32> to vector<1x128xf32>
    %42 = arith.mulf %33, %33 : vector<256x128xf32>
    %cst_31 = arith.constant dense<0.000000e+00> : vector<128xf32>
    %43 = vector.multi_reduction <add>, %42, %cst_31 [0] : vector<256x128xf32> to vector<128xf32>
    %44 = vector.shape_cast %43 : vector<128xf32> to vector<1x128xf32>
    %cst_32 = arith.constant dense<0.000000e+00> : vector<128xf32>
    %45 = vector.multi_reduction <add>, %39, %cst_32 [0] : vector<256x128xf32> to vector<128xf32>
    %46 = vector.shape_cast %45 : vector<128xf32> to vector<1x128xf32>
    %47 = arith.mulf %39, %39 : vector<256x128xf32>
    %cst_33 = arith.constant dense<0.000000e+00> : vector<128xf32>
    %48 = vector.multi_reduction <add>, %47, %cst_33 [0] : vector<256x128xf32> to vector<128xf32>
    %49 = vector.shape_cast %48 : vector<128xf32> to vector<1x128xf32>
    %50 = tpu.concatenate %41, %44, %46, %49 in 0 : vector<1x128xf32>, vector<1x128xf32>, vector<1x128xf32>, vector<1x128xf32> -> vector<4x128xf32>
    %c0_34 = arith.constant 0 : index
    %c0_35 = arith.constant 0 : index
    %c0_36 = arith.constant 0 : index
    %51 = vector.load %arg6[%c0_34, %c0_35, %c0_36] : memref<1x4x128xf32, #tpu.memory_space<vmem>>, vector<1x4x128xf32>
    %52 = vector.shape_cast %51 : vector<1x4x128xf32> to vector<4x128xf32>
    %53 = vector.shape_cast %50 : vector<4x128xf32> to vector<1x4x128xf32>
    tpu.vector_store %arg6[%c0_34, %c0_35, %c0_36], %53 {strides = array<i32>} : memref<1x4x128xf32, #tpu.memory_space<vmem>>, vector<1x4x128xf32>,
    return
  }
  func.func @transform_0(%arg0: i32) -> (i32, i32, i32, i32) {
    %c0_i32 = arith.constant 0 : i32
    %c0_i32_0 = arith.constant 0 : i32
    %c0_i32_1 = arith.constant 0 : i32
    %c0_i32_2 = arith.constant 0 : i32
    return %arg0, %c0_i32, %c0_i32_0, %c0_i32_1 : i32, i32, i32, i32
  }
  func.func @transform_1(%arg0: i32) -> (i32, i32) {
    %c0_i32 = arith.constant 0 : i32
    %c0_i32_0 = arith.constant 0 : i32
    %c0_i32_1 = arith.constant 0 : i32
    return %c0_i32, %c0_i32_0 : i32, i32
  }
  func.func @transform_2(%arg0: i32) -> (i32, i32) {
    %c0_i32 = arith.constant 0 : i32
    %c0_i32_0 = arith.constant 0 : i32
    %c0_i32_1 = arith.constant 0 : i32
    return %c0_i32, %c0_i32_0 : i32, i32
  }
  func.func @transform_3(%arg0: i32) -> (i32, i32) {
    %c0_i32 = arith.constant 0 : i32
    %c0_i32_0 = arith.constant 0 : i32
    %c0_i32_1 = arith.constant 0 : i32
    return %c0_i32, %c0_i32_0 : i32, i32
  }
  func.func @transform_4(%arg0: i32) -> (i32, i32) {
    %c0_i32 = arith.constant 0 : i32
    %c0_i32_0 = arith.constant 0 : i32
    %c0_i32_1 = arith.constant 0 : i32
    return %c0_i32, %c0_i32_0 : i32, i32
  }
  func.func @transform_5(%arg0: i32) -> (i32, i32, i32) {
    %c0_i32 = arith.constant 0 : i32
    %c0_i32_0 = arith.constant 0 : i32
    %c0_i32_1 = arith.constant 0 : i32
    return %arg0, %c0_i32, %c0_i32_0 : i32, i32, i32
  }
}

module attributes {stable_mosaic.version = 11 : i64} {
  func.func @_apply_kernel(%arg0: i32, %arg1: memref<4x128xf32, #tpu.memory_space<vmem>>, %arg2: memref<1x16x16x4xbf16, #tpu.memory_space<vmem>>, %arg3: memref<36x128xbf16, #tpu.memory_space<vmem>>, %arg4: memref<1x128xf32, #tpu.memory_space<vmem>>, %arg5: memref<1x128xf32, #tpu.memory_space<vmem>>, %arg6: memref<1x128xf32, #tpu.memory_space<vmem>>, %arg7: memref<1152x128xbf16, #tpu.memory_space<vmem>>, %arg8: memref<1x128xf32, #tpu.memory_space<vmem>>, %arg9: memref<4x128xbf16, #tpu.memory_space<vmem>>, %arg10: memref<1x128xf32, #tpu.memory_space<vmem>>, %arg11: memref<1x128xf32, #tpu.memory_space<vmem>>, %arg12: memref<1x128xf32, #tpu.memory_space<vmem>>, %arg13: memref<1x256x128xbf16, #tpu.memory_space<vmem>>, %arg14: memref<18x18x4xbf16, #tpu.memory_space<vmem>>, %arg15: memref<18x18x128xbf16, #tpu.memory_space<vmem>>) attributes {dimension_semantics = [#tpu.dimension_semantics<parallel>], iteration_bounds = array<i64: 2>, scalar_prefetch = 0 : i64, scratch_operands = 2 : i64, tpu.core_type = #tpu.core_type<tc>, window_params = [{pipeline_mode = #tpu.pipeline_mode<synchronous>, transform_indices = @transform_0, window_bounds = array<i64: 4, 128>}, {transform_indices = @transform_1, window_bounds = array<i64: 1, 16, 16, 4>}, {pipeline_mode = #tpu.pipeline_mode<synchronous>, transform_indices = @transform_2, window_bounds = array<i64: 36, 128>}, {pipeline_mode = #tpu.pipeline_mode<synchronous>, transform_indices = @transform_3, window_bounds = array<i64: 1, 128>}, {pipeline_mode = #tpu.pipeline_mode<synchronous>, transform_indices = @transform_4, window_bounds = array<i64: 1, 128>}, {pipeline_mode = #tpu.pipeline_mode<synchronous>, transform_indices = @transform_5, window_bounds = array<i64: 1, 128>}, {pipeline_mode = #tpu.pipeline_mode<synchronous>, transform_indices = @transform_6, window_bounds = array<i64: 1152, 128>}, {pipeline_mode = #tpu.pipeline_mode<synchronous>, transform_indices = @transform_7, window_bounds = array<i64: 1, 128>}, {pipeline_mode = #tpu.pipeline_mode<synchronous>, transform_indices = @transform_8, window_bounds = array<i64: 4, 128>}, {pipeline_mode = #tpu.pipeline_mode<synchronous>, transform_indices = @transform_9, window_bounds = array<i64: 1, 128>}, {pipeline_mode = #tpu.pipeline_mode<synchronous>, transform_indices = @transform_10, window_bounds = array<i64: 1, 128>}, {pipeline_mode = #tpu.pipeline_mode<synchronous>, transform_indices = @transform_11, window_bounds = array<i64: 1, 128>}, {transform_indices = @transform_12, window_bounds = array<i64: 1, 256, 128>}]} {
    %c0 = arith.constant 0 : index
    %c0_0 = arith.constant 0 : index
    %c0_1 = arith.constant 0 : index
    %c0_2 = arith.constant 0 : index
    %0 = vector.load %arg2[%c0, %c0_0, %c0_1, %c0_2] : memref<1x16x16x4xbf16, #tpu.memory_space<vmem>>, vector<1x16x16x4xbf16>
    %1 = vector.shape_cast %0 : vector<1x16x16x4xbf16> to vector<16x16x4xbf16>
    %cst = arith.constant 0.000000e+00 : bf16
    %2 = vector.broadcast %cst : bf16 to vector<1x18x4xbf16>
    %cst_3 = arith.constant 0.000000e+00 : bf16
    %3 = vector.broadcast %cst_3 : bf16 to vector<16x1x4xbf16>
    %c0_4 = arith.constant 0 : index
    %c0_5 = arith.constant 0 : index
    %c0_6 = arith.constant 0 : index
    %4 = vector.load %arg14[%c0_4, %c0_5, %c0_6] : memref<18x18x4xbf16, #tpu.memory_space<vmem>>, vector<1x18x4xbf16>
    tpu.vector_store %arg14[%c0_4, %c0_5, %c0_6], %2 {strides = array<i32>} : memref<18x18x4xbf16, #tpu.memory_space<vmem>>, vector<1x18x4xbf16>,
    %c17 = arith.constant 17 : index
    %c0_7 = arith.constant 0 : index
    %c0_8 = arith.constant 0 : index
    %5 = vector.load %arg14[%c17, %c0_7, %c0_8] : memref<18x18x4xbf16, #tpu.memory_space<vmem>>, vector<1x18x4xbf16>
    tpu.vector_store %arg14[%c17, %c0_7, %c0_8], %2 {strides = array<i32>} : memref<18x18x4xbf16, #tpu.memory_space<vmem>>, vector<1x18x4xbf16>,
    %c1 = arith.constant 1 : index
    %c0_9 = arith.constant 0 : index
    %c0_10 = arith.constant 0 : index
    %6 = vector.load %arg14[%c1, %c0_9, %c0_10] : memref<18x18x4xbf16, #tpu.memory_space<vmem>>, vector<16x1x4xbf16>
    tpu.vector_store %arg14[%c1, %c0_9, %c0_10], %3 {strides = array<i32>} : memref<18x18x4xbf16, #tpu.memory_space<vmem>>, vector<16x1x4xbf16>,
    %c1_11 = arith.constant 1 : index
    %c17_12 = arith.constant 17 : index
    %c0_13 = arith.constant 0 : index
    %7 = vector.load %arg14[%c1_11, %c17_12, %c0_13] : memref<18x18x4xbf16, #tpu.memory_space<vmem>>, vector<16x1x4xbf16>
    tpu.vector_store %arg14[%c1_11, %c17_12, %c0_13], %3 {strides = array<i32>} : memref<18x18x4xbf16, #tpu.memory_space<vmem>>, vector<16x1x4xbf16>,
    %c1_14 = arith.constant 1 : index
    %c1_15 = arith.constant 1 : index
    %c0_16 = arith.constant 0 : index
    %8 = vector.load %arg14[%c1_14, %c1_15, %c0_16] : memref<18x18x4xbf16, #tpu.memory_space<vmem>>, vector<16x16x4xbf16>
    tpu.vector_store %arg14[%c1_14, %c1_15, %c0_16], %1 {strides = array<i32>} : memref<18x18x4xbf16, #tpu.memory_space<vmem>>, vector<16x16x4xbf16>,
    %c0_17 = arith.constant 0 : index
    %c0_18 = arith.constant 0 : index
    %c0_19 = arith.constant 0 : index
    %9 = vector.load %arg14[%c0_17, %c0_18, %c0_19] : memref<18x18x4xbf16, #tpu.memory_space<vmem>>, vector<18x18x4xbf16>
    %c0_20 = arith.constant 0 : index
    %c0_21 = arith.constant 0 : index
    %10 = vector.load %arg3[%c0_20, %c0_21] : memref<36x128xbf16, #tpu.memory_space<vmem>>, vector<36x128xbf16>
    %11 = vector.extract_strided_slice %9 {offsets = [0, 0, 0], sizes = [16, 16, 4], strides = [1, 1, 1]} : vector<18x18x4xbf16> to vector<16x16x4xbf16>
    %12 = vector.shape_cast %11 : vector<16x16x4xbf16> to vector<256x4xbf16>
    %13 = vector.extract_strided_slice %9 {offsets = [0, 1, 0], sizes = [16, 16, 4], strides = [1, 1, 1]} : vector<18x18x4xbf16> to vector<16x16x4xbf16>
    %14 = vector.shape_cast %13 : vector<16x16x4xbf16> to vector<256x4xbf16>
    %15 = vector.extract_strided_slice %9 {offsets = [0, 2, 0], sizes = [16, 16, 4], strides = [1, 1, 1]} : vector<18x18x4xbf16> to vector<16x16x4xbf16>
    %16 = vector.shape_cast %15 : vector<16x16x4xbf16> to vector<256x4xbf16>
    %17 = vector.extract_strided_slice %9 {offsets = [1, 0, 0], sizes = [16, 16, 4], strides = [1, 1, 1]} : vector<18x18x4xbf16> to vector<16x16x4xbf16>
    %18 = vector.shape_cast %17 : vector<16x16x4xbf16> to vector<256x4xbf16>
    %19 = vector.extract_strided_slice %9 {offsets = [1, 1, 0], sizes = [16, 16, 4], strides = [1, 1, 1]} : vector<18x18x4xbf16> to vector<16x16x4xbf16>
    %20 = vector.shape_cast %19 : vector<16x16x4xbf16> to vector<256x4xbf16>
    %21 = vector.extract_strided_slice %9 {offsets = [1, 2, 0], sizes = [16, 16, 4], strides = [1, 1, 1]} : vector<18x18x4xbf16> to vector<16x16x4xbf16>
    %22 = vector.shape_cast %21 : vector<16x16x4xbf16> to vector<256x4xbf16>
    %23 = vector.extract_strided_slice %9 {offsets = [2, 0, 0], sizes = [16, 16, 4], strides = [1, 1, 1]} : vector<18x18x4xbf16> to vector<16x16x4xbf16>
    %24 = vector.shape_cast %23 : vector<16x16x4xbf16> to vector<256x4xbf16>
    %25 = vector.extract_strided_slice %9 {offsets = [2, 1, 0], sizes = [16, 16, 4], strides = [1, 1, 1]} : vector<18x18x4xbf16> to vector<16x16x4xbf16>
    %26 = vector.shape_cast %25 : vector<16x16x4xbf16> to vector<256x4xbf16>
    %27 = vector.extract_strided_slice %9 {offsets = [2, 2, 0], sizes = [16, 16, 4], strides = [1, 1, 1]} : vector<18x18x4xbf16> to vector<16x16x4xbf16>
    %28 = vector.shape_cast %27 : vector<16x16x4xbf16> to vector<256x4xbf16>
    %29 = tpu.concatenate %12, %14, %16, %18, %20, %22, %24, %26, %28 in 1 : vector<256x4xbf16>, vector<256x4xbf16>, vector<256x4xbf16>, vector<256x4xbf16>, vector<256x4xbf16>, vector<256x4xbf16>, vector<256x4xbf16>, vector<256x4xbf16>, vector<256x4xbf16> -> vector<256x36xbf16>
    %cst_22 = arith.constant dense<0.000000e+00> : vector<256x128xf32>
    %30 = tpu.matmul %29, %10, %cst_22 {dimension_numbers = #tpu.dot_dimension_numbers<[1], [0], [0], [1], [0, 0, 1, 1], [], []>} : vector<256x36xbf16>, vector<36x128xbf16>, vector<256x128xf32> -> vector<256x128xf32>
    %c0_23 = arith.constant 0 : index
    %c0_24 = arith.constant 0 : index
    %31 = vector.load %arg4[%c0_23, %c0_24] : memref<1x128xf32, #tpu.memory_space<vmem>>, vector<1x128xf32>
    %32 = vector.broadcast %31 : vector<1x128xf32> to vector<256x128xf32>
    %33 = arith.addf %30, %32 : vector<256x128xf32>
    %c0_25 = arith.constant 0 : index
    %c0_26 = arith.constant 0 : index
    %34 = vector.load %arg1[%c0_25, %c0_26] : memref<4x128xf32, #tpu.memory_space<vmem>>, vector<1x128xf32>
    %35 = vector.broadcast %34 : vector<1x128xf32> to vector<256x128xf32>
    %36 = arith.subf %33, %35 : vector<256x128xf32>
    %c1_27 = arith.constant 1 : index
    %c0_28 = arith.constant 0 : index
    %37 = vector.load %arg1[%c1_27, %c0_28] : memref<4x128xf32, #tpu.memory_space<vmem>>, vector<1x128xf32>
    %38 = vector.broadcast %37 : vector<1x128xf32> to vector<256x128xf32>
    %39 = arith.mulf %36, %38 : vector<256x128xf32>
    %c0_29 = arith.constant 0 : index
    %c0_30 = arith.constant 0 : index
    %40 = vector.load %arg5[%c0_29, %c0_30] : memref<1x128xf32, #tpu.memory_space<vmem>>, vector<1x128xf32>
    %41 = vector.broadcast %40 : vector<1x128xf32> to vector<256x128xf32>
    %42 = arith.mulf %39, %41 : vector<256x128xf32>
    %c0_31 = arith.constant 0 : index
    %c0_32 = arith.constant 0 : index
    %43 = vector.load %arg6[%c0_31, %c0_32] : memref<1x128xf32, #tpu.memory_space<vmem>>, vector<1x128xf32>
    %44 = vector.broadcast %43 : vector<1x128xf32> to vector<256x128xf32>
    %45 = arith.addf %42, %44 : vector<256x128xf32>
    %cst_33 = arith.constant 0.000000e+00 : f32
    %46 = vector.broadcast %cst_33 : f32 to vector<256x128xf32>
    %47 = arith.maximumf %45, %46 : vector<256x128xf32>
    %48 = vector.shape_cast %47 : vector<256x128xf32> to vector<16x16x128xf32>
    %cst_34 = arith.constant 0.000000e+00 : bf16
    %49 = vector.broadcast %cst_34 : bf16 to vector<1x18x128xbf16>
    %cst_35 = arith.constant 0.000000e+00 : bf16
    %50 = vector.broadcast %cst_35 : bf16 to vector<16x1x128xbf16>
    %c0_36 = arith.constant 0 : index
    %c0_37 = arith.constant 0 : index
    %c0_38 = arith.constant 0 : index
    %51 = vector.load %arg15[%c0_36, %c0_37, %c0_38] : memref<18x18x128xbf16, #tpu.memory_space<vmem>>, vector<1x18x128xbf16>
    tpu.vector_store %arg15[%c0_36, %c0_37, %c0_38], %49 {strides = array<i32>} : memref<18x18x128xbf16, #tpu.memory_space<vmem>>, vector<1x18x128xbf16>,
    %c17_39 = arith.constant 17 : index
    %c0_40 = arith.constant 0 : index
    %c0_41 = arith.constant 0 : index
    %52 = vector.load %arg15[%c17_39, %c0_40, %c0_41] : memref<18x18x128xbf16, #tpu.memory_space<vmem>>, vector<1x18x128xbf16>
    tpu.vector_store %arg15[%c17_39, %c0_40, %c0_41], %49 {strides = array<i32>} : memref<18x18x128xbf16, #tpu.memory_space<vmem>>, vector<1x18x128xbf16>,
    %c1_42 = arith.constant 1 : index
    %c0_43 = arith.constant 0 : index
    %c0_44 = arith.constant 0 : index
    %53 = vector.load %arg15[%c1_42, %c0_43, %c0_44] : memref<18x18x128xbf16, #tpu.memory_space<vmem>>, vector<16x1x128xbf16>
    tpu.vector_store %arg15[%c1_42, %c0_43, %c0_44], %50 {strides = array<i32>} : memref<18x18x128xbf16, #tpu.memory_space<vmem>>, vector<16x1x128xbf16>,
    %c1_45 = arith.constant 1 : index
    %c17_46 = arith.constant 17 : index
    %c0_47 = arith.constant 0 : index
    %54 = vector.load %arg15[%c1_45, %c17_46, %c0_47] : memref<18x18x128xbf16, #tpu.memory_space<vmem>>, vector<16x1x128xbf16>
    tpu.vector_store %arg15[%c1_45, %c17_46, %c0_47], %50 {strides = array<i32>} : memref<18x18x128xbf16, #tpu.memory_space<vmem>>, vector<16x1x128xbf16>,
    %55 = arith.truncf %48 : vector<16x16x128xf32> to vector<16x16x128xbf16>
    %c1_48 = arith.constant 1 : index
    %c1_49 = arith.constant 1 : index
    %c0_50 = arith.constant 0 : index
    %56 = vector.load %arg15[%c1_48, %c1_49, %c0_50] : memref<18x18x128xbf16, #tpu.memory_space<vmem>>, vector<16x16x128xbf16>
    tpu.vector_store %arg15[%c1_48, %c1_49, %c0_50], %55 {strides = array<i32>} : memref<18x18x128xbf16, #tpu.memory_space<vmem>>, vector<16x16x128xbf16>,
    %c0_51 = arith.constant 0 : index
    %c0_52 = arith.constant 0 : index
    %c0_53 = arith.constant 0 : index
    %57 = vector.load %arg15[%c0_51, %c0_52, %c0_53] : memref<18x18x128xbf16, #tpu.memory_space<vmem>>, vector<18x18x128xbf16>
    %c0_54 = arith.constant 0 : index
    %c0_55 = arith.constant 0 : index
    %58 = vector.load %arg7[%c0_54, %c0_55] : memref<1152x128xbf16, #tpu.memory_space<vmem>>, vector<1152x128xbf16>
    %cst_56 = arith.constant 0.000000e+00 : f32
    %59 = vector.broadcast %cst_56 : f32 to vector<256x128xf32>
    %60 = vector.extract_strided_slice %57 {offsets = [0, 0, 0], sizes = [16, 16, 128], strides = [1, 1, 1]} : vector<18x18x128xbf16> to vector<16x16x128xbf16>
    %61 = vector.shape_cast %60 : vector<16x16x128xbf16> to vector<256x128xbf16>
    %62 = vector.extract_strided_slice %58 {offsets = [0, 0], sizes = [128, 128], strides = [1, 1]} : vector<1152x128xbf16> to vector<128x128xbf16>
    %cst_57 = arith.constant dense<0.000000e+00> : vector<256x128xf32>
    %63 = tpu.matmul %61, %62, %cst_57 {dimension_numbers = #tpu.dot_dimension_numbers<[1], [0], [0], [1], [0, 0, 1, 1], [], []>} : vector<256x128xbf16>, vector<128x128xbf16>, vector<256x128xf32> -> vector<256x128xf32>
    %64 = arith.addf %59, %63 : vector<256x128xf32>
    %65 = vector.extract_strided_slice %57 {offsets = [0, 1, 0], sizes = [16, 16, 128], strides = [1, 1, 1]} : vector<18x18x128xbf16> to vector<16x16x128xbf16>
    %66 = vector.shape_cast %65 : vector<16x16x128xbf16> to vector<256x128xbf16>
    %67 = vector.extract_strided_slice %58 {offsets = [128, 0], sizes = [128, 128], strides = [1, 1]} : vector<1152x128xbf16> to vector<128x128xbf16>
    %cst_58 = arith.constant dense<0.000000e+00> : vector<256x128xf32>
    %68 = tpu.matmul %66, %67, %cst_58 {dimension_numbers = #tpu.dot_dimension_numbers<[1], [0], [0], [1], [0, 0, 1, 1], [], []>} : vector<256x128xbf16>, vector<128x128xbf16>, vector<256x128xf32> -> vector<256x128xf32>
    %69 = arith.addf %64, %68 : vector<256x128xf32>
    %70 = vector.extract_strided_slice %57 {offsets = [0, 2, 0], sizes = [16, 16, 128], strides = [1, 1, 1]} : vector<18x18x128xbf16> to vector<16x16x128xbf16>
    %71 = vector.shape_cast %70 : vector<16x16x128xbf16> to vector<256x128xbf16>
    %72 = vector.extract_strided_slice %58 {offsets = [256, 0], sizes = [128, 128], strides = [1, 1]} : vector<1152x128xbf16> to vector<128x128xbf16>
    %cst_59 = arith.constant dense<0.000000e+00> : vector<256x128xf32>
    %73 = tpu.matmul %71, %72, %cst_59 {dimension_numbers = #tpu.dot_dimension_numbers<[1], [0], [0], [1], [0, 0, 1, 1], [], []>} : vector<256x128xbf16>, vector<128x128xbf16>, vector<256x128xf32> -> vector<256x128xf32>
    %74 = arith.addf %69, %73 : vector<256x128xf32>
    %75 = vector.extract_strided_slice %57 {offsets = [1, 0, 0], sizes = [16, 16, 128], strides = [1, 1, 1]} : vector<18x18x128xbf16> to vector<16x16x128xbf16>
    %76 = vector.shape_cast %75 : vector<16x16x128xbf16> to vector<256x128xbf16>
    %77 = vector.extract_strided_slice %58 {offsets = [384, 0], sizes = [128, 128], strides = [1, 1]} : vector<1152x128xbf16> to vector<128x128xbf16>
    %cst_60 = arith.constant dense<0.000000e+00> : vector<256x128xf32>
    %78 = tpu.matmul %76, %77, %cst_60 {dimension_numbers = #tpu.dot_dimension_numbers<[1], [0], [0], [1], [0, 0, 1, 1], [], []>} : vector<256x128xbf16>, vector<128x128xbf16>, vector<256x128xf32> -> vector<256x128xf32>
    %79 = arith.addf %74, %78 : vector<256x128xf32>
    %80 = vector.extract_strided_slice %57 {offsets = [1, 1, 0], sizes = [16, 16, 128], strides = [1, 1, 1]} : vector<18x18x128xbf16> to vector<16x16x128xbf16>
    %81 = vector.shape_cast %80 : vector<16x16x128xbf16> to vector<256x128xbf16>
    %82 = vector.extract_strided_slice %58 {offsets = [512, 0], sizes = [128, 128], strides = [1, 1]} : vector<1152x128xbf16> to vector<128x128xbf16>
    %cst_61 = arith.constant dense<0.000000e+00> : vector<256x128xf32>
    %83 = tpu.matmul %81, %82, %cst_61 {dimension_numbers = #tpu.dot_dimension_numbers<[1], [0], [0], [1], [0, 0, 1, 1], [], []>} : vector<256x128xbf16>, vector<128x128xbf16>, vector<256x128xf32> -> vector<256x128xf32>
    %84 = arith.addf %79, %83 : vector<256x128xf32>
    %85 = vector.extract_strided_slice %57 {offsets = [1, 2, 0], sizes = [16, 16, 128], strides = [1, 1, 1]} : vector<18x18x128xbf16> to vector<16x16x128xbf16>
    %86 = vector.shape_cast %85 : vector<16x16x128xbf16> to vector<256x128xbf16>
    %87 = vector.extract_strided_slice %58 {offsets = [640, 0], sizes = [128, 128], strides = [1, 1]} : vector<1152x128xbf16> to vector<128x128xbf16>
    %cst_62 = arith.constant dense<0.000000e+00> : vector<256x128xf32>
    %88 = tpu.matmul %86, %87, %cst_62 {dimension_numbers = #tpu.dot_dimension_numbers<[1], [0], [0], [1], [0, 0, 1, 1], [], []>} : vector<256x128xbf16>, vector<128x128xbf16>, vector<256x128xf32> -> vector<256x128xf32>
    %89 = arith.addf %84, %88 : vector<256x128xf32>
    %90 = vector.extract_strided_slice %57 {offsets = [2, 0, 0], sizes = [16, 16, 128], strides = [1, 1, 1]} : vector<18x18x128xbf16> to vector<16x16x128xbf16>
    %91 = vector.shape_cast %90 : vector<16x16x128xbf16> to vector<256x128xbf16>
    %92 = vector.extract_strided_slice %58 {offsets = [768, 0], sizes = [128, 128], strides = [1, 1]} : vector<1152x128xbf16> to vector<128x128xbf16>
    %cst_63 = arith.constant dense<0.000000e+00> : vector<256x128xf32>
    %93 = tpu.matmul %91, %92, %cst_63 {dimension_numbers = #tpu.dot_dimension_numbers<[1], [0], [0], [1], [0, 0, 1, 1], [], []>} : vector<256x128xbf16>, vector<128x128xbf16>, vector<256x128xf32> -> vector<256x128xf32>
    %94 = arith.addf %89, %93 : vector<256x128xf32>
    %95 = vector.extract_strided_slice %57 {offsets = [2, 1, 0], sizes = [16, 16, 128], strides = [1, 1, 1]} : vector<18x18x128xbf16> to vector<16x16x128xbf16>
    %96 = vector.shape_cast %95 : vector<16x16x128xbf16> to vector<256x128xbf16>
    %97 = vector.extract_strided_slice %58 {offsets = [896, 0], sizes = [128, 128], strides = [1, 1]} : vector<1152x128xbf16> to vector<128x128xbf16>
    %cst_64 = arith.constant dense<0.000000e+00> : vector<256x128xf32>
    %98 = tpu.matmul %96, %97, %cst_64 {dimension_numbers = #tpu.dot_dimension_numbers<[1], [0], [0], [1], [0, 0, 1, 1], [], []>} : vector<256x128xbf16>, vector<128x128xbf16>, vector<256x128xf32> -> vector<256x128xf32>
    %99 = arith.addf %94, %98 : vector<256x128xf32>
    %100 = vector.extract_strided_slice %57 {offsets = [2, 2, 0], sizes = [16, 16, 128], strides = [1, 1, 1]} : vector<18x18x128xbf16> to vector<16x16x128xbf16>
    %101 = vector.shape_cast %100 : vector<16x16x128xbf16> to vector<256x128xbf16>
    %102 = vector.extract_strided_slice %58 {offsets = [1024, 0], sizes = [128, 128], strides = [1, 1]} : vector<1152x128xbf16> to vector<128x128xbf16>
    %cst_65 = arith.constant dense<0.000000e+00> : vector<256x128xf32>
    %103 = tpu.matmul %101, %102, %cst_65 {dimension_numbers = #tpu.dot_dimension_numbers<[1], [0], [0], [1], [0, 0, 1, 1], [], []>} : vector<256x128xbf16>, vector<128x128xbf16>, vector<256x128xf32> -> vector<256x128xf32>
    %104 = arith.addf %99, %103 : vector<256x128xf32>
    %c0_66 = arith.constant 0 : index
    %c0_67 = arith.constant 0 : index
    %105 = vector.load %arg8[%c0_66, %c0_67] : memref<1x128xf32, #tpu.memory_space<vmem>>, vector<1x128xf32>
    %106 = vector.broadcast %105 : vector<1x128xf32> to vector<256x128xf32>
    %107 = arith.addf %104, %106 : vector<256x128xf32>
    %cst_68 = arith.constant 0.000000e+00 : f32
    %108 = vector.broadcast %cst_68 : f32 to vector<256x128xf32>
    %109 = arith.maximumf %107, %108 : vector<256x128xf32>
    %110 = vector.shape_cast %1 : vector<16x16x4xbf16> to vector<256x4xbf16>
    %c0_69 = arith.constant 0 : index
    %c0_70 = arith.constant 0 : index
    %111 = vector.load %arg9[%c0_69, %c0_70] : memref<4x128xbf16, #tpu.memory_space<vmem>>, vector<4x128xbf16>
    %cst_71 = arith.constant dense<0.000000e+00> : vector<256x128xf32>
    %112 = tpu.matmul %110, %111, %cst_71 {dimension_numbers = #tpu.dot_dimension_numbers<[1], [0], [0], [1], [0, 0, 1, 1], [], []>} : vector<256x4xbf16>, vector<4x128xbf16>, vector<256x128xf32> -> vector<256x128xf32>
    %c0_72 = arith.constant 0 : index
    %c0_73 = arith.constant 0 : index
    %113 = vector.load %arg10[%c0_72, %c0_73] : memref<1x128xf32, #tpu.memory_space<vmem>>, vector<1x128xf32>
    %114 = vector.broadcast %113 : vector<1x128xf32> to vector<256x128xf32>
    %115 = arith.addf %112, %114 : vector<256x128xf32>
    %c2 = arith.constant 2 : index
    %c0_74 = arith.constant 0 : index
    %116 = vector.load %arg1[%c2, %c0_74] : memref<4x128xf32, #tpu.memory_space<vmem>>, vector<1x128xf32>
    %117 = vector.broadcast %116 : vector<1x128xf32> to vector<256x128xf32>
    %118 = arith.subf %115, %117 : vector<256x128xf32>
    %c3 = arith.constant 3 : index
    %c0_75 = arith.constant 0 : index
    %119 = vector.load %arg1[%c3, %c0_75] : memref<4x128xf32, #tpu.memory_space<vmem>>, vector<1x128xf32>
    %120 = vector.broadcast %119 : vector<1x128xf32> to vector<256x128xf32>
    %121 = arith.mulf %118, %120 : vector<256x128xf32>
    %c0_76 = arith.constant 0 : index
    %c0_77 = arith.constant 0 : index
    %122 = vector.load %arg11[%c0_76, %c0_77] : memref<1x128xf32, #tpu.memory_space<vmem>>, vector<1x128xf32>
    %123 = vector.broadcast %122 : vector<1x128xf32> to vector<256x128xf32>
    %124 = arith.mulf %121, %123 : vector<256x128xf32>
    %c0_78 = arith.constant 0 : index
    %c0_79 = arith.constant 0 : index
    %125 = vector.load %arg12[%c0_78, %c0_79] : memref<1x128xf32, #tpu.memory_space<vmem>>, vector<1x128xf32>
    %126 = vector.broadcast %125 : vector<1x128xf32> to vector<256x128xf32>
    %127 = arith.addf %124, %126 : vector<256x128xf32>
    %128 = arith.addf %127, %109 : vector<256x128xf32>
    %129 = arith.truncf %128 : vector<256x128xf32> to vector<256x128xbf16>
    %c0_80 = arith.constant 0 : index
    %c0_81 = arith.constant 0 : index
    %c0_82 = arith.constant 0 : index
    %130 = vector.load %arg13[%c0_80, %c0_81, %c0_82] : memref<1x256x128xbf16, #tpu.memory_space<vmem>>, vector<1x256x128xbf16>
    %131 = vector.shape_cast %130 : vector<1x256x128xbf16> to vector<256x128xbf16>
    %132 = vector.shape_cast %129 : vector<256x128xbf16> to vector<1x256x128xbf16>
    tpu.vector_store %arg13[%c0_80, %c0_81, %c0_82], %132 {strides = array<i32>} : memref<1x256x128xbf16, #tpu.memory_space<vmem>>, vector<1x256x128xbf16>,
    return
  }
  func.func @transform_0(%arg0: i32) -> (i32, i32) {
    %c0_i32 = arith.constant 0 : i32
    %c0_i32_0 = arith.constant 0 : i32
    %c0_i32_1 = arith.constant 0 : i32
    return %c0_i32, %c0_i32_0 : i32, i32
  }
  func.func @transform_1(%arg0: i32) -> (i32, i32, i32, i32) {
    %c0_i32 = arith.constant 0 : i32
    %c0_i32_0 = arith.constant 0 : i32
    %c0_i32_1 = arith.constant 0 : i32
    %c0_i32_2 = arith.constant 0 : i32
    return %arg0, %c0_i32, %c0_i32_0, %c0_i32_1 : i32, i32, i32, i32
  }
  func.func @transform_2(%arg0: i32) -> (i32, i32) {
    %c0_i32 = arith.constant 0 : i32
    %c0_i32_0 = arith.constant 0 : i32
    %c0_i32_1 = arith.constant 0 : i32
    return %c0_i32, %c0_i32_0 : i32, i32
  }
  func.func @transform_3(%arg0: i32) -> (i32, i32) {
    %c0_i32 = arith.constant 0 : i32
    %c0_i32_0 = arith.constant 0 : i32
    %c0_i32_1 = arith.constant 0 : i32
    return %c0_i32, %c0_i32_0 : i32, i32
  }
  func.func @transform_4(%arg0: i32) -> (i32, i32) {
    %c0_i32 = arith.constant 0 : i32
    %c0_i32_0 = arith.constant 0 : i32
    %c0_i32_1 = arith.constant 0 : i32
    return %c0_i32, %c0_i32_0 : i32, i32
  }
  func.func @transform_5(%arg0: i32) -> (i32, i32) {
    %c0_i32 = arith.constant 0 : i32
    %c0_i32_0 = arith.constant 0 : i32
    %c0_i32_1 = arith.constant 0 : i32
    return %c0_i32, %c0_i32_0 : i32, i32
  }
  func.func @transform_6(%arg0: i32) -> (i32, i32) {
    %c0_i32 = arith.constant 0 : i32
    %c0_i32_0 = arith.constant 0 : i32
    %c0_i32_1 = arith.constant 0 : i32
    return %c0_i32, %c0_i32_0 : i32, i32
  }
  func.func @transform_7(%arg0: i32) -> (i32, i32) {
    %c0_i32 = arith.constant 0 : i32
    %c0_i32_0 = arith.constant 0 : i32
    %c0_i32_1 = arith.constant 0 : i32
    return %c0_i32, %c0_i32_0 : i32, i32
  }
  func.func @transform_8(%arg0: i32) -> (i32, i32) {
    %c0_i32 = arith.constant 0 : i32
    %c0_i32_0 = arith.constant 0 : i32
    %c0_i32_1 = arith.constant 0 : i32
    return %c0_i32, %c0_i32_0 : i32, i32
  }
  func.func @transform_9(%arg0: i32) -> (i32, i32) {
    %c0_i32 = arith.constant 0 : i32
    %c0_i32_0 = arith.constant 0 : i32
    %c0_i32_1 = arith.constant 0 : i32
    return %c0_i32, %c0_i32_0 : i32, i32
  }
  func.func @transform_10(%arg0: i32) -> (i32, i32) {
    %c0_i32 = arith.constant 0 : i32
    %c0_i32_0 = arith.constant 0 : i32
    %c0_i32_1 = arith.constant 0 : i32
    return %c0_i32, %c0_i32_0 : i32, i32
  }
  func.func @transform_11(%arg0: i32) -> (i32, i32) {
    %c0_i32 = arith.constant 0 : i32
    %c0_i32_0 = arith.constant 0 : i32
    %c0_i32_1 = arith.constant 0 : i32
    return %c0_i32, %c0_i32_0 : i32, i32
  }
  func.func @transform_12(%arg0: i32) -> (i32, i32, i32) {
    %c0_i32 = arith.constant 0 : i32
    %c0_i32_0 = arith.constant 0 : i32
    %c0_i32_1 = arith.constant 0 : i32
    return %arg0, %c0_i32, %c0_i32_0 : i32, i32, i32
  }
}

</mosaic_0001>

<bundles_post_ra>
// kernel: resblock_forward.2
= control target key start
LH: loop header
LB: loop body
LE: loop exit
PB: predicated region body
PF: predicated region fallthrough
CT: control target
= control target key end

     0   :  { %s3325_s18 = smov 0   ;;  %s4838_s0 = inlined_call_operand.vmem [shape: bf16[2,16,16,4], index: 0, kind: input, shape index: {}]   ;;  %s4839_s1 = inlined_call_operand.vmem [shape: bf16[36,128], index: 1, kind: input, shape index: {}]   ;;  %s4840_s2 = inlined_call_operand.vmem [shape: f32[1,128], index: 2, kind: input, shape index: {}]   ;;  %s4841_s3 = inlined_call_operand.vmem [shape: bf16[4,128], index: 3, kind: input, shape index: {}]   ;;  %s4842_s4 = inlined_call_operand.vmem [shape: f32[1,128], index: 4, kind: input, shape index: {}]   ;;  %s4843_s5 = inlined_call_operand.vmem [shape: f32[2,4,128], index: 5, kind: output, shape index: {}]  }
   0x1 LB: > { %s2969_s19 = sadd.s32 4294967295, %s3284_s18   ;;  %p2973_p0 = scmp.ge.s32.totalorder %s3284_s18, 1  ;;  %s3284_s18 = sphi %s3325_s18, %s15_s18  }
   0x2   : > { %p187_p1 = scmp.lt.s32.totalorder %s3284_s18, 3 }
   0x4   : > { %p188_p2 = pnand %p2973_p0, %p187_p1 }
   0x6   : > { %191 = sbr.rel (%p188_p2) target bundleno = 637 (0x27d), region = 40 }
   0xb   : > { %vm256_vm0 = vcmask 27648   ;;  %vm259_vm1 = vcmask 24576   ;;  %vm267_vm2 = vsmask.f32 256  ;;  %v3286_v0 = vmov 0   ;;  %p214_p3 = scmp.lt.s32.totalorder %s2969_s19, 1 }
   0xc   : > { %257 = vst.msk [vmem:[#allocation2] sm:$0xf] %vm256_vm0, %v3286_v0  ;;  %258 = vst.msk [vmem:[#allocation2 + $0x4] sm:$0xf] %vm256_vm0, %v3286_v0  ;;  %vm317_vm4 = vsmask.f32 7938 }
   0xd   : > { %260 = vst.msk [vmem:[#allocation2 + $0x8] sm:$0x1] %vm259_vm1, %v3286_v0  ;;  %vm3336_vm3 = vmand %vm259_vm1, %vm267_vm2  ;;  %v272_v3 = vld [vmem:[#allocation2 + $0x18] sm:$0x1]  ;;  %vm1297_vm6 = vcmask 1042432   ;;  %vm1298_vm7 = vcmask 1046532  }
   0xe   : > { %262 = vst.msk [vmem:[#allocation2 + $0xcc] sm:$0xf] %vm256_vm0, %v3286_v0  ;;  %263 = vst.msk [vmem:[#allocation2 + $0xd0] sm:$0xf] %vm256_vm0, %v3286_v0  ;;  %v273_v4 = vsel %vm3336_vm3, 0, %v272_v3  ;;  %s4864_s19 = smov (!%p214_p3, %s2969_s19), 1 }
   0xf   : > { %264 = vst.msk [vmem:[#allocation2 + $0xd4] sm:$0x1] %vm259_vm1, %v3286_v0  ;;  %vm3343_vm5 = vmand %vm259_vm1, %vm317_vm4  ;;  %v269_v5 = vld [vmem:[#allocation2 + $0xc] sm:$0x1]  ;;  %v275_v7 = vld [vmem:[#allocation2 + $0x24] sm:$0x1] }
  0x10   : > { %274 = vst [vmem:[#allocation2 + $0x18] sm:$0x1] %v273_v4  ;;  %v270_v6 = vsel %vm3336_vm3, 0, %v269_v5  ;;  %v319_v8 = vld [vmem:[#allocation2 + $0x14] sm:$0x1]  ;;  %v276_v9 = vsel %vm3336_vm3, 0, %v275_v7  ;;  %vm3362_vm9 = vmor %vm1297_vm6, %vm1298_vm7 }
  0x11   : > { %271 = vst [vmem:[#allocation2 + $0xc] sm:$0x1] %v270_v6  ;;  %v320_v10 = vsel %vm3343_vm5, 0, %v319_v8  ;;  %v322_v11 = vld [vmem:[#allocation2 + $0x20] sm:$0x1]  ;;  %s3104_s20 = sshll.u32 %s4864_s19, 7  ;;  %vm3393_vm12 = vmand %vm256_vm0, %vm317_vm4 }
  0x12   : > { %vm862_vm8 = vsmask.f32 3328  ;;  %277 = vst [vmem:[#allocation2 + $0x24] sm:$0x1] %v276_v9  ;;  %321 = vst [vmem:[#allocation2 + $0x14] sm:$0x1] %v320_v10  ;;  %s3369_s23 = scalar_lea.vmem %s4838_s0, %s3104_s20 }
  0x13   : > { %v323_v12 = vsel %vm3343_vm5, 0, %v322_v11  ;;  %v325_v13 = vld [vmem:[#allocation2 + $0x2c] sm:$0x1]  ;;  %vm863_vm10 = vsmask.f32 7440  ;;  %s3287_s24 = smov 8  }
  0x14   : > { %vm367_vm11 = vsmask.f32 4368  ;;  %324 = vst [vmem:[#allocation2 + $0x20] sm:$0x1] %v323_v12  ;;  %v326_v15 = vsel %vm3343_vm5, 0, %v325_v13  ;;  %vm3399_vm13 = vmor %vm862_vm8, %vm863_vm10  ;;  %s3288_s25 = smov 4  }
  0x15   : > { %v3373_v16 = vld [vmem:[#allocation2] sm:$0xf]  ;;  %v3375_v17 = vld [vmem:[#allocation2 + $0x4] sm:$0xf]  ;;  %v805_v18 = vld [vmem:[#allocation2 + $0x8] sm:$0x1] }
  0x16   : > { %327 = vst [vmem:[#allocation2 + $0x2c] sm:$0x1] %v326_v15  ;;  %v2977_v19 = vrot.slane %v3373_v16, 9  ;;  %v1302_v20 = vrot.slane %v3375_v17, 5  ;;  %v1305_v21 = vrot.slane %v805_v18, 5  ;;  %v866_v22 = vshrl.u32 %v3373_v16, 16  ;;  %vm3406_vm14 = vmor %vm267_vm2, %vm367_vm11 }
  0x17   : > { %v226_v23 = vld [vmem:[%s3369_s23 + $0x8] sm:$0xf]  ;;  %v869_v24 = vshll.u32 %v3373_v16, 16  ;;  %v875_v25 = vshll.u32 %v3375_v17, 16  ;;  %v879_v26 = vshrl.u32 %v3375_v17, 16  ;;  %v885_v27 = vshll.u32 %v805_v18, 16 }
  0x18   : > { %v227_v28 = vld [vmem:[%s3369_s23 + $0xc] sm:$0xf]  ;;  %v1303_v29 = vsel %vm3362_vm9, %v2977_v19, %v1302_v20  ;;  %v1304_v30 = vrot.slane %v1302_v20, 4  ;;  %v868_v31 = vrot.slane %v866_v22, 4  ;;  %v387_v32 = vshrl.u32 %v226_v23, 16  ;;  %s3289_s26 = smov 12  }
  0x19   : > { %v871_v33 = vrot.slane %v869_v24, 5  ;;  %v877_v34 = vrot.slane %v875_v25, 5  ;;  %v881_v35 = vrot.slane %v879_v26, 4  ;;  %v887_v36 = vrot.slane %v885_v27, 5  ;;  %v224_v37 = vld [vmem:[%s3369_s23] sm:$0xf] }
  0x1a   : > { %v1306_v38 = vsel %vm3362_vm9, %v1304_v30, %v1305_v21  ;;  %v389_v39 = vrot.slane %v387_v32, 7  ;;  %v390_v40 = vshll.u32 %v226_v23, 16  ;;  %v395_v41 = vshrl.u32 %v227_v28, 16  ;;  %v225_v42 = vld [vmem:[%s3369_s23 + $0x4] sm:$0xf]  ;;  %s3290_s27 = smov 24  }
  0x1b   : > { %v3027_v44 = vcombine.low %v1303_v29, %v1306_v38  ;;  %v872_v45 = vor.u32 %v871_v33, %v868_v31  ;;  %v882_v46 = vor.u32 %v881_v35, %v877_v34  ;;  %v398_v47 = vshll.u32 %v227_v28, 16  ;;  %v698_v48 = vld [vmem:[#allocation2 + $0x18] sm:$0xf]  ;;  %v691_v63 = vld [vmem:[#allocation2 + $0xc] sm:$0xf]  ;;  %s3291_s28 = smov 20  }
  0x1c   : > { %v392_v50 = vor.u32 %v390_v40, %v389_v39  ;;  %v393_v51 = vrot.slane %v389_v39, 4  ;;  %v397_v52 = vrot.slane %v395_v41, 7  ;;  %v370_v53 = vshrl.u32 %v224_v37, 16  ;;  %v228_v0 = vld [vmem:[%s3369_s23 + $0x10] sm:$0xf]  ;;  %s3292_s29 = smov 32  }
  0x1d   : > { %1656 = vrot.lane.b32.xlu1 %v3027_v44, %s3287_s24  ;;  %v873_v54 = vrot.slane %v872_v45, 4  ;;  %v883_v55 = vrot.slane %v882_v46, 4  ;;  %v373_v57 = vshll.u32 %v224_v37, 16  ;;  %v378_v58 = vshrl.u32 %v225_v42, 16  ;;  %v278_v3 = vld [vmem:[#allocation2 + $0x30] sm:$0x1] }
  0x1e   : > { %v400_v59 = vor.u32 %v398_v47, %v397_v52  ;;  %v402_v60 = vrot.slane %v397_v52, 4  ;;  %v699_v61 = vsel %vm3393_vm12, %v392_v50, %v698_v48  ;;  %v372_v62 = vrot.slane %v370_v53, 7  ;;  %v229_v8 = vld [vmem:[%s3369_s23 + $0x14] sm:$0xf]  ;;  %v702_v9 = vld [vmem:[#allocation2 + $0x20] sm:$0x1] }
  0x1f   : > { %v878_v4 = vsel %vm3399_vm13, %v873_v54, %v877_v34  ;;  %v888_v5 = vsel %vm3399_vm13, %v883_v55, %v887_v36  ;;  %700 = vst [vmem:[#allocation2 + $0x18] sm:$0xf] %v699_v61  ;;  %v380_v6 = vrot.slane %v378_v58, 7  ;;  %v381_v7 = vshll.u32 %v225_v42, 16  ;;  %v695_v15 = vld [vmem:[#allocation2 + $0x14] sm:$0x1] }
  0x20   : > { %v3011_v10 = vcombine.low %v878_v4, %v888_v5  ;;  %v401_v11 = vsel %vm3406_vm14, %v393_v51, %v400_v59  ;;  %v375_v12 = vor.u32 %v373_v57, %v372_v62  ;;  %v376_v13 = vrot.slane %v372_v62, 4  ;;  %v3421_v18 = vld [vmem:[%s3369_s23 + $0x18] sm:$0xf]  ;;  %v231_v23 = vld [vmem:[%s3369_s23 + $0x1c] sm:$0xf]  ;;  %s3293_s30 = smov 16  }
  0x21   : > { %701 = vst.msk [vmem:[#allocation2 + $0x1c] sm:$0xf] %vm256_vm0, %v401_v11  ;;  %v383_v19 = vor.u32 %v381_v7, %v380_v6  ;;  %v385_v20 = vrot.slane %v380_v6, 4  ;;  %v404_v21 = vshrl.u32 %v228_v0, 16  ;;  %v407_v22 = vshll.u32 %v228_v0, 16  ;;  %s3294_s6 = smov 28  }
  0x22   : > { %1576 = vrot.lane.b32.xlu0 %v3011_v10, %s3288_s25  ;;  %v692_v24 = vsel %vm3393_vm12, %v375_v12, %v691_v63  ;;  %v412_v25 = vshrl.u32 %v229_v8, 16  ;;  %v415_v26 = vshll.u32 %v229_v8, 16  ;;  %v703_v27 = vsel %vm3336_vm3, %v402_v60, %v702_v9  ;;  %v328_v28 = vld [vmem:[#allocation2 + $0x38] sm:$0x1]  ;;  %v705_v34 = vld [vmem:[#allocation2 + $0x24] sm:$0xf] }
  0x23   : > { %v384_v29 = vsel %vm3406_vm14, %v376_v13, %v383_v19  ;;  %693 = vst [vmem:[#allocation2 + $0xc] sm:$0xf] %v692_v24  ;;  %v406_v30 = vrot.slane %v404_v21, 7  ;;  %v696_v31 = vsel %vm3336_vm3, %v385_v20, %v695_v15  ;;  %704 = vst [vmem:[#allocation2 + $0x20] sm:$0x1] %v703_v27  ;;  %v279_v32 = vsel %vm3336_vm3, 0, %v278_v3 }
  0x24   : > { %694 = vst.msk [vmem:[#allocation2 + $0x10] sm:$0xf] %vm256_vm0, %v384_v29  ;;  %v414_v33 = vrot.slane %v412_v25, 7  ;;  %697 = vst [vmem:[#allocation2 + $0x14] sm:$0x1] %v696_v31  ;;  %v421_v35 = vshrl.u32 %v3421_v18, 16 }
  0x25   : > { %280 = vst [vmem:[#allocation2 + $0x30] sm:$0x1] %v279_v32  ;;  %v429_v36 = vshrl.u32 %v231_v23, 16  ;;  %v409_v37 = vor.u32 %v407_v22, %v406_v30  ;;  %v410_v38 = vrot.slane %v406_v30, 4  ;;  %v709_v39 = vld [vmem:[#allocation2 + $0x2c] sm:$0x1] }
  0x26   : > { %v424_v40 = vshll.u32 %v3421_v18, 16  ;;  %v329_v41 = vsel %vm3343_vm5, 0, %v328_v28  ;;  %v809_v42 = vld [vmem:[#allocation2 + $0x18] sm:$0xf]  ;;  %v417_v44 = vor.u32 %v415_v26, %v414_v33  ;;  %v419_v45 = vrot.slane %v414_v33, 4  ;;  %s2976_s21 = sshll.u32 %s4864_s19, 2 }
  0x27   : > { %v3441_v46 = vrot.slane %v421_v35, 7  ;;  %v432_v47 = vshll.u32 %v231_v23, 16  ;;  %330 = vst [vmem:[#allocation2 + $0x38] sm:$0x1] %v329_v41  ;;  %v914_v48 = vshrl.u32 %v809_v42, 16  ;;  %v917_v50 = vshll.u32 %v809_v42, 16 }
  0x28   : > { %v706_v51 = vsel %vm3393_vm12, %v409_v37, %v705_v34  ;;  %v3445_v52 = vrot.slane %v429_v36, 7  ;;  %v810_v53 = vld [vmem:[#allocation2 + $0x1c] sm:$0xf]  ;;  %v418_v54 = vsel %vm3406_vm14, %v410_v38, %v417_v44  ;;  %v2979_v55 = vrot.slane %v809_v42, 9 }
  0x29   : > { %707 = vst [vmem:[#allocation2 + $0x24] sm:$0xf] %v706_v51  ;;  %v710_v57 = vsel %vm3336_vm3, %v419_v45, %v709_v39  ;;  %v927_v58 = vshrl.u32 %v810_v53, 16  ;;  %v3451_v59 = vcombine.low %v809_v42, %v810_v53  ;;  %708 = vst.msk [vmem:[#allocation2 + $0x28] sm:$0xf] %vm256_vm0, %v418_v54  ;;  %v1316_v60 = vrot.slane %v810_v53, 5 }
  0x2a   : > { %711 = vst [vmem:[#allocation2 + $0x2c] sm:$0x1] %v710_v57  ;;  %v916_v61 = vrot.slane %v914_v48, 4  ;;  %v806_v62 = vld [vmem:[#allocation2 + $0xc] sm:$0xf]  ;;  %v919_v0 = vrot.slane %v917_v50, 5  ;;  %v3463_v8 = vor.u32 %v424_v40, %v3441_v46  ;;  %v3467_v10 = vor.u32 %v432_v47, %v3445_v52 }
  0x2b   : > { %v811_v63 = vld [vmem:[#allocation2 + $0x20] sm:$0x1]  ;;  %v923_v3 = vshll.u32 %v810_v53, 16  ;;  %1693 = vrot.lane.b32.xlu1 %v3451_v59, %s3289_s26  ;;  %v3458_v5 = vld [vmem:[#allocation2 + $0x10] sm:$0xf]  ;;  %v890_v6 = vshrl.u32 %v806_v62, 16  ;;  %v1317_v28 = vsel %vm3362_vm9, %v2979_v55, %v1316_v60 }
  0x2c   : > { %v3460_v7 = vld [vmem:[#allocation2 + $0x14] sm:$0x1]  ;;  %v427_v9 = vrot.slane %v3441_v46, 4  ;;  %v3470_v11 = vcombine.low %v806_v62, %v3458_v5  ;;  %v893_v12 = vshll.u32 %v806_v62, 16  ;;  %v2978_v13 = vrot.slane %v806_v62, 9 }
  0x2d   : > { %v1309_v15 = vrot.slane %v3458_v5, 5  ;;  %v1312_v18 = vrot.slane %v3460_v7, 5  ;;  %v1318_v19 = vrot.slane %v1316_v60, 4  ;;  %v1319_v20 = vrot.slane %v811_v63, 5  ;;  %v284_v46 = vld [vmem:[#allocation2 + $0x48] sm:$0x1] }
  0x2e   : > { %v920_v21 = vor.u32 %v919_v0, %v916_v61  ;;  %1691 = vrot.lane.b32.xlu0 %v3470_v11, %s3289_s26  ;;  %v3478_v24 = vrot.slane %v923_v3, 5  ;;  %v929_v25 = vrot.slane %v927_v58, 4  ;;  %v903_v26 = vshrl.u32 %v3458_v5, 16 }
  0x2f   : > { %v1310_v22 = vsel %vm3362_vm9, %v2978_v13, %v1309_v15  ;;  %v1311_v23 = vrot.slane %v1309_v15, 4  ;;  %v933_v30 = vshll.u32 %v811_v63, 16  ;;  %v1320_v35 = vsel %vm3362_vm9, %v1318_v19, %v1319_v20  ;;  %v3507_v13 = vld [vmem:[%s3369_s23 + $0x20] sm:$0xf]  ;;  %v281_v15 = vld [vmem:[#allocation2 + $0x3c] sm:$0x1] }
  0x30   : > { %v812_v27 = vld [vmem:[#allocation2 + $0x24] sm:$0xf]  ;;  %v3483_v29 = vrot.slane %v920_v21, 4  ;;  %v813_v31 = vld [vmem:[#allocation2 + $0x28] sm:$0xf]  ;;  %v892_v40 = vrot.slane %v890_v6, 4  ;;  %v930_v45 = vor.u32 %v929_v25, %v3478_v24  ;;  %v3496_v53 = vcombine.low %v1317_v28, %v1320_v35 }
  0x31   : > { %v938_v32 = vshrl.u32 %v812_v27, 16  ;;  %v941_v33 = vshll.u32 %v812_v27, 16  ;;  %v1313_v34 = vsel %vm3362_vm9, %v1311_v23, %v1312_v18  ;;  %v814_v36 = vld [vmem:[#allocation2 + $0x2c] sm:$0x1]  ;;  %v951_v37 = vshrl.u32 %v813_v31, 16 }
  0x32   : > { %v3489_v38 = vcombine.low %v812_v27, %v813_v31  ;;  %v3028_v39 = vcombine.low %v1310_v22, %v1313_v34  ;;  %1796 = vrot.lane.b32.xlu0 %v3451_v59, %s3290_s27  ;;  %v2980_v41 = vrot.slane %v812_v27, 9  ;;  %v1323_v42 = vrot.slane %v813_v31, 5  ;;  %v712_v21 = vld [vmem:[#allocation2 + $0x30] sm:$0xf]  ;;  %v233_v27 = vld [vmem:[%s3369_s23 + $0x24] sm:$0xf] }
  0x33   : > { %v1326_v44 = vrot.slane %v814_v36, 5  ;;  %v935_v47 = vrot.slane %v933_v30, 5  ;;  %v940_v48 = vrot.slane %v938_v32, 4  ;;  %v943_v50 = vrot.slane %v941_v33, 5  ;;  %v3528_v32 = vld [vmem:[%s3369_s23 + $0x28] sm:$0xf] }
  0x34   : > { %1798 = vrot.lane.b32.xlu1 %v3489_v38, %s3290_s27  ;;  %v947_v51 = vshll.u32 %v813_v31, 16  ;;  %v1325_v54 = vrot.slane %v1323_v42, 4  ;;  %v931_v55 = vrot.slane %v930_v45, 4  ;;  %v953_v57 = vrot.slane %v951_v37, 4  ;;  %v331_v31 = vld [vmem:[#allocation2 + $0x44] sm:$0x1] }
  0x35   : > { %v944_v58 = vor.u32 %v943_v50, %v940_v48  ;;  %v957_v61 = vshll.u32 %v814_v36, 16  ;;  %v895_v62 = vrot.slane %v893_v12, 5  ;;  %v1324_v63 = vsel %vm3362_vm9, %v2980_v41, %v1323_v42 }
  0x36   : > { %v3498_v60 = vrot.slane %v947_v51, 5  ;;  %1761 = vrot.lane.b32.xlu0 %v3028_v39, %s3291_s28  ;;  %v1327_v0 = vsel %vm3362_vm9, %v1325_v54, %v1326_v44  ;;  %v899_v3 = vshll.u32 %v3458_v5, 16  ;;  %v905_v6 = vrot.slane %v903_v26, 4  ;;  %v716_v5 = vld [vmem:[#allocation2 + $0x38] sm:$0x1] }
  0x37   : > { %v926_v12 = vsel %vm3399_vm13, %v3483_v29, %v3478_v24  ;;  %v936_v18 = vsel %vm3399_vm13, %v931_v55, %v935_v47  ;;  %v945_v19 = vrot.slane %v944_v58, 4  ;;  %v959_v22 = vrot.slane %v957_v61, 5  ;;  %v334_v47 = vld [vmem:[#allocation2 + $0x50] sm:$0x1]  ;;  %v287_v55 = vld [vmem:[#allocation2 + $0x54] sm:$0x1] }
  0x38   : > { %1658 = vrot.lane.b32.xlu1 %v3028_v39, %s3287_s24  ;;  %v954_v20 = vor.u32 %v953_v57, %v3498_v60  ;;  %v896_v23 = vor.u32 %v895_v62, %v892_v40  ;;  %v901_v25 = vrot.slane %v899_v3, 5  ;;  %v909_v26 = vshll.u32 %v3460_v7, 16  ;;  %v235_v61 = vld [vmem:[%s3369_s23 + $0x2c] sm:$0xf] }
  0x39   : > { %v3519_v28 = vcombine.low %v1324_v63, %v1327_v0  ;;  %v435_v24 = vsel %vm3406_vm14, %v427_v9, %v3467_v10  ;;  %v436_v29 = vrot.slane %v3445_v52, 4  ;;  %v713_v35 = vsel %vm3393_vm12, %v3463_v8, %v712_v21 }
  0x3a   : > { %v955_v30 = vrot.slane %v954_v20, 4  ;;  %1866 = vrot.lane.b32.xlu0 %v3496_v53, %s3292_s29  ;;  %v897_v7 = vrot.slane %v896_v23, 4  ;;  %v906_v33 = vor.u32 %v905_v6, %v901_v25  ;;  %v911_v34 = vrot.slane %v909_v26, 5  ;;  %715 = vst.msk [vmem:[#allocation2 + $0x34] sm:$0xf] %vm256_vm0, %v435_v24 }
  0x3b   : > { %v3538_v52 = vcombine.low %v926_v12, %v936_v18  ;;  %714 = vst [vmem:[#allocation2 + $0x30] sm:$0xf] %v713_v35  ;;  %v717_v9 = vsel %vm3336_vm3, %v436_v29, %v716_v5  ;;  %v282_v10 = vsel %vm3336_vm3, 0, %v281_v15  ;;  %v438_v36 = vshrl.u32 %v3507_v13, 16 }
  0x3c   : > { %1763 = vrot.lane.b32.xlu1 %v3496_v53, %s3291_s28  ;;  %v950_v8 = vsel %vm3399_vm13, %v945_v19, %v3498_v60  ;;  %v960_v37 = vsel %vm3399_vm13, %v955_v30, %v959_v22  ;;  %v902_v39 = vsel %vm3399_vm13, %v897_v7, %v901_v25  ;;  %v907_v40 = vrot.slane %v906_v33, 4  ;;  %718 = vst [vmem:[#allocation2 + $0x38] sm:$0x1] %v717_v9 }
  0x3d   : > { %283 = vst [vmem:[#allocation2 + $0x3c] sm:$0x1] %v282_v10  ;;  %v440_v41 = vrot.slane %v438_v36, 7  ;;  %v441_v42 = vshll.u32 %v3507_v13, 16  ;;  %v446_v44 = vshrl.u32 %v233_v27, 16  ;;  %v332_v45 = vsel %vm3343_vm5, 0, %v331_v31 }
  0x3e   : > { %1868 = vrot.lane.b32.xlu0 %v3519_v28, %s3292_s29  ;;  %v912_v48 = vsel %vm3399_vm13, %v907_v40, %v911_v34  ;;  %v449_v50 = vshll.u32 %v233_v27, 16  ;;  %333 = vst [vmem:[#allocation2 + $0x44] sm:$0x1] %v332_v45  ;;  %v285_v51 = vsel %vm3336_vm3, 0, %v284_v46  ;;  %v455_v54 = vshrl.u32 %v3528_v32, 16 }
  0x3f   : > { %v3564_v57 = vcombine.low %v950_v8, %v960_v37  ;;  %v3012_v58 = vcombine.low %v902_v39, %v912_v48  ;;  %v448_v60 = vrot.slane %v446_v44, 7  ;;  %286 = vst [vmem:[#allocation2 + $0x48] sm:$0x1] %v285_v51  ;;  %v458_v63 = vshll.u32 %v3528_v32, 16  ;;  %v236_v13 = vld [vmem:[%s3369_s23 + $0x30] sm:$0xf] }
  0x40   : > { %1728 = vrot.lane.b32.xlu1 %v3538_v52, %s3293_s30  ;;  %v3567_v62 = vrot.slane %v455_v54, 7  ;;  %v335_v0 = vsel %vm3343_vm5, 0, %v334_v47  ;;  %v443_v6 = vor.u32 %v441_v42, %v440_v41  ;;  %v288_v15 = vsel %vm3336_vm3, 0, %v287_v55  ;;  %v237_v36 = vld [vmem:[%s3369_s23 + $0x34] sm:$0xf] }
  0x41   : > { %v3572_v3 = vld [vmem:[#allocation2 + $0x34] sm:$0xf]  ;;  %336 = vst [vmem:[#allocation2 + $0x50] sm:$0x1] %v335_v0  ;;  %v444_v20 = vrot.slane %v440_v41, 4  ;;  %v451_v21 = vor.u32 %v449_v50, %v448_v60  ;;  %v453_v25 = vrot.slane %v448_v60, 4 }
  0x42   : > { %1578 = vrot.lane.b32.xlu0 %v3012_v58, %s3288_s25  ;;  %v3578_v12 = vld [vmem:[#allocation2 + $0x30] sm:$0xf]  ;;  %v975_v18 = vshrl.u32 %v3572_v3, 16  ;;  %v971_v19 = vshll.u32 %v3572_v3, 16  ;;  %289 = vst [vmem:[#allocation2 + $0x54] sm:$0x1] %v288_v15  ;;  %v460_v24 = vor.u32 %v458_v63, %v3567_v62 }
  0x43   : > { %v962_v5 = vshrl.u32 %v3578_v12, 16  ;;  %v965_v22 = vshll.u32 %v3578_v12, 16  ;;  %v3586_v23 = vld [vmem:[#allocation2 + $0x38] sm:$0x1]  ;;  %v463_v29 = vshrl.u32 %v235_v61, 16  ;;  %v472_v33 = vshrl.u32 %v236_v13, 16 }
  0x44   : > { %1833 = vrot.lane.b32.xlu1 %v3564_v57, %s3294_s6  ;;  %v3588_v26 = vrot.slane %v971_v19, 5  ;;  %v977_v27 = vrot.slane %v975_v18, 4  ;;  %v719_v30 = vld [vmem:[#allocation2 + $0x3c] sm:$0xf]  ;;  %v981_v34 = vshll.u32 %v3586_v23, 16  ;;  %v452_v35 = vsel %vm3406_vm14, %v444_v20, %v451_v21 }
  0x45   : > { %v964_v31 = vrot.slane %v962_v5, 4  ;;  %v967_v32 = vrot.slane %v965_v22, 5  ;;  %v723_v7 = vld [vmem:[#allocation2 + $0x44] sm:$0x1]  ;;  %v720_v46 = vsel %vm3393_vm12, %v443_v6, %v719_v30  ;;  %v466_v9 = vshll.u32 %v235_v61, 16 }
  0x46   : > { %1726 = vrot.lane.b32.xlu0 %v3012_v58, %s3293_s30  ;;  %v726_v10 = vld [vmem:[#allocation2 + $0x48] sm:$0xf]  ;;  %v978_v37 = vor.u32 %v977_v27, %v3588_v26  ;;  %721 = vst [vmem:[#allocation2 + $0x3c] sm:$0xf] %v720_v46  ;;  %722 = vst.msk [vmem:[#allocation2 + $0x40] sm:$0xf] %vm256_vm0, %v452_v35  ;;  %v724_v39 = vsel %vm3336_vm3, %v453_v25, %v723_v7  ;;  %v3628_v5 = vcombine.low %v3578_v12, %v3572_v3 }
  0x47   : > { %v968_v8 = vor.u32 %v967_v32, %v964_v31  ;;  %725 = vst [vmem:[#allocation2 + $0x44] sm:$0x1] %v724_v39  ;;  %v461_v40 = vrot.slane %v3567_v62, 4  ;;  %v465_v41 = vrot.slane %v463_v29, 7  ;;  %v727_v42 = vsel %vm3393_vm12, %v460_v24, %v726_v10  ;;  %v337_v44 = vld [vmem:[#allocation2 + $0x5c] sm:$0x1] }
  0x48   : > { %1580 = vrot.lane.b32.xlu1 %v3538_v52, %s3288_s25  ;;  %v290_v45 = vld [vmem:[#allocation2 + $0x60] sm:$0x1]  ;;  %728 = vst [vmem:[#allocation2 + $0x48] sm:$0xf] %v727_v42  ;;  %v730_v47 = vld [vmem:[#allocation2 + $0x50] sm:$0x1] }
  0x49   : > { %v474_v48 = vrot.slane %v472_v33, 7  ;;  %v475_v50 = vshll.u32 %v236_v13, 16  ;;  %v480_v51 = vshrl.u32 %v237_v36, 16  ;;  %v983_v54 = vrot.slane %v981_v34, 5  ;;  %v733_v61 = vld [vmem:[#allocation2 + $0x54] sm:$0xf] }
  0x4a   : > { %1831 = vrot.lane.b32.xlu0 %v3538_v52, %s3294_s6  ;;  %v1330_v55 = vrot.slane %v3572_v3, 5  ;;  %v468_v58 = vor.u32 %v466_v9, %v465_v41  ;;  %v470_v60 = vrot.slane %v465_v41, 4  ;;  %v969_v62 = vrot.slane %v968_v8, 4 }
  0x4b   : > { %v979_v63 = vrot.slane %v978_v37, 4  ;;  %v477_v0 = vor.u32 %v475_v50, %v474_v48  ;;  %v483_v6 = vshll.u32 %v237_v36, 16  ;;  %v482_v52 = vrot.slane %v480_v51, 7 }
  0x4c   : > { %1582 = vrot.lane.b32.xlu1 %v3564_v57, %s3288_s25  ;;  %v469_v13 = vsel %vm3406_vm14, %v461_v40, %v468_v58  ;;  %v731_v15 = vsel %vm3336_vm3, %v470_v60, %v730_v47  ;;  %v338_v18 = vsel %vm3343_vm5, 0, %v337_v44  ;;  %v2981_v19 = vrot.slane %v3578_v12, 9  ;;  %v238_v40 = vld [vmem:[%s3369_s23 + $0x38] sm:$0xf] }
  0x4d   : > { %729 = vst.msk [vmem:[#allocation2 + $0x4c] sm:$0xf] %vm256_vm0, %v469_v13  ;;  %732 = vst [vmem:[#allocation2 + $0x50] sm:$0x1] %v731_v15  ;;  %v734_v20 = vsel %vm3393_vm12, %v477_v0, %v733_v61  ;;  %v291_v21 = vsel %vm3336_vm3, 0, %v290_v45  ;;  %v1332_v22 = vrot.slane %v1330_v55, 4  ;;  %v984_v24 = vsel %vm3399_vm13, %v979_v63, %v983_v54 }
  0x4e   : > { %339 = vst [vmem:[#allocation2 + $0x5c] sm:$0x1] %v338_v18  ;;  %1660 = vrot.lane.b32.xlu0 %v3496_v53, %s3287_s24  ;;  %v1333_v25 = vrot.slane %v3586_v23, 5  ;;  %v3631_v27 = vld [vmem:[#allocation2 + $0x3c] sm:$0xf]  ;;  %v974_v23 = vsel %vm3399_vm13, %v969_v62, %v3588_v26  ;;  %v478_v31 = vrot.slane %v474_v48, 4  ;;  %v485_v32 = vor.u32 %v483_v6, %v482_v52 }
  0x4f   : > { %v3633_v30 = vld [vmem:[#allocation2 + $0x40] sm:$0xf]  ;;  %735 = vst [vmem:[#allocation2 + $0x54] sm:$0xf] %v734_v20  ;;  %292 = vst [vmem:[#allocation2 + $0x60] sm:$0x1] %v291_v21  ;;  %v3650_v9 = vcombine.low %v974_v23, %v984_v24  ;;  %v1331_v26 = vsel %vm3362_vm9, %v2981_v19, %v1330_v55 }
  0x50   : > { %1662 = vrot.lane.b32.xlu1 %v3519_v28, %s3287_s24  ;;  %v986_v53 = vshrl.u32 %v3631_v27, 16  ;;  %v989_v3 = vshll.u32 %v3631_v27, 16  ;;  %v999_v12 = vshrl.u32 %v3633_v30, 16  ;;  %v995_v29 = vshll.u32 %v3633_v30, 16  ;;  %v820_v7 = vld [vmem:[#allocation2 + $0x44] sm:$0x1] }
  0x51   : > { %v1334_v10 = vsel %vm3362_vm9, %v1332_v22, %v1333_v25  ;;  %v1005_v37 = vshll.u32 %v820_v7, 16  ;;  %v486_v39 = vsel %vm3406_vm14, %v478_v31, %v485_v32  ;;  %v1337_v42 = vrot.slane %v3633_v30, 5  ;;  %v3667_v54 = vld [vmem:[#allocation2 + $0x48] sm:$0xf]  ;;  %v239_v19 = vld [vmem:[%s3369_s23 + $0x3c] sm:$0xf] }
  0x52   : > { %v988_v33 = vrot.slane %v986_v53, 4  ;;  %v991_v34 = vrot.slane %v989_v3, 5  ;;  %v1001_v35 = vrot.slane %v999_v12, 4  ;;  %1695 = vrot.lane.b32.xlu0 %v3489_v38, %s3289_s26  ;;  %v997_v46 = vrot.slane %v995_v29, 5  ;;  %736 = vst.msk [vmem:[#allocation2 + $0x58] sm:$0xf] %vm256_vm0, %v486_v39 }
  0x53   : > { %v3664_v41 = vcombine.low %v1331_v26, %v1334_v10  ;;  %v487_v44 = vrot.slane %v482_v52, 4  ;;  %v489_v45 = vshrl.u32 %v238_v40, 16  ;;  %v1007_v50 = vrot.slane %v1005_v37, 5  ;;  %v340_v22 = vld [vmem:[#allocation2 + $0x68] sm:$0x1] }
  0x54   : > { %1697 = vrot.lane.b32.xlu1 %v3628_v5, %s3289_s26  ;;  %v992_v36 = vor.u32 %v991_v34, %v988_v33  ;;  %v1002_v8 = vor.u32 %v1001_v35, %v997_v46  ;;  %v2982_v55 = vrot.slane %v3631_v27, 9  ;;  %v3676_v58 = vld [vmem:[#allocation2 + $0x4c] sm:$0xf]  ;;  %v492_v60 = vshll.u32 %v238_v40, 16  ;;  %v240_v24 = vld [vmem:[%s3369_s23 + $0x40] sm:$0xf] }
  0x55   : > { %v737_v51 = vld [vmem:[#allocation2 + $0x5c] sm:$0x1]  ;;  %v1339_v61 = vrot.slane %v1337_v42, 4  ;;  %v1340_v62 = vrot.slane %v820_v7, 5  ;;  %v491_v0 = vrot.slane %v489_v45, 7  ;;  %v1010_v13 = vshrl.u32 %v3667_v54, 16 }
  0x56   : > { %1730 = vrot.lane.b32.xlu0 %v3564_v57, %s3293_s30  ;;  %v993_v47 = vrot.slane %v992_v36, 4  ;;  %v1003_v48 = vrot.slane %v1002_v8, 4  ;;  %v3673_v57 = vcombine.low %v3631_v27, %v3633_v30  ;;  %v738_v63 = vsel %vm3336_vm3, %v487_v44, %v737_v51  ;;  %v740_v21 = vld [vmem:[#allocation2 + $0x60] sm:$0xf]  ;;  %v293_v53 = vld [vmem:[#allocation2 + $0x6c] sm:$0x1] }
  0x57   : > { %v1013_v15 = vshll.u32 %v3667_v54, 16  ;;  %739 = vst [vmem:[#allocation2 + $0x5c] sm:$0x1] %v738_v63  ;;  %v1023_v52 = vshrl.u32 %v3676_v58, 16  ;;  %v1019_v18 = vshll.u32 %v3676_v58, 16  ;;  %v494_v20 = vor.u32 %v492_v60, %v491_v0 }
  0x58   : > { %1732 = vrot.lane.b32.xlu1 %v3650_v9, %s3293_s30  ;;  %v1008_v6 = vsel %vm3399_vm13, %v1003_v48, %v1007_v50  ;;  %v1338_v27 = vsel %vm3362_vm9, %v2982_v55, %v1337_v42  ;;  %v1341_v30 = vsel %vm3362_vm9, %v1339_v61, %v1340_v62  ;;  %v1012_v3 = vrot.slane %v1010_v13, 4  ;;  %v241_v31 = vld [vmem:[%s3369_s23 + $0x44] sm:$0xf]  ;;  %v3715_v36 = vld [vmem:[#allocation2 + $0x50] sm:$0x1] }
  0x59   : > { %v1015_v12 = vrot.slane %v1013_v15, 5  ;;  %v497_v23 = vshrl.u32 %v239_v19, 16  ;;  %v500_v29 = vshll.u32 %v239_v19, 16  ;;  %v3703_v32 = vrot.slane %v1019_v18, 5  ;;  %v343_v42 = vld [vmem:[#allocation2 + $0x74] sm:$0x1] }
  0x5a   : > { %1765 = vrot.lane.b32.xlu0 %v3519_v28, %s3291_s28  ;;  %v998_v28 = vsel %vm3399_vm13, %v993_v47, %v997_v46  ;;  %v1025_v7 = vrot.slane %v1023_v52, 4  ;;  %v741_v33 = vsel %vm3393_vm12, %v494_v20, %v740_v21  ;;  %v341_v34 = vsel %vm3343_vm5, 0, %v340_v22  ;;  %v296_v50 = vld [vmem:[#allocation2 + $0x78] sm:$0x1]  ;;  %v3725_v60 = vld [vmem:[#allocation2 + $0x54] sm:$0xf] }
  0x5b   : > { %v3695_v25 = vcombine.low %v998_v28, %v1008_v6  ;;  %v495_v35 = vrot.slane %v491_v0, 4  ;;  %v499_v46 = vrot.slane %v497_v23, 7  ;;  %742 = vst [vmem:[#allocation2 + $0x60] sm:$0xf] %v741_v33  ;;  %342 = vst [vmem:[#allocation2 + $0x68] sm:$0x1] %v341_v34  ;;  %v3717_v39 = vcombine.low %v1338_v27, %v1341_v30 }
  0x5c   : > { %1767 = vrot.lane.b32.xlu1 %v3664_v41, %s3291_s28  ;;  %v294_v26 = vsel %vm3336_vm3, 0, %v293_v53  ;;  %v506_v10 = vshrl.u32 %v240_v24, 16  ;;  %v509_v8 = vshll.u32 %v240_v24, 16  ;;  %v514_v37 = vshrl.u32 %v241_v31, 16  ;;  %v3730_v63 = vld [vmem:[%s3369_s23 + $0x48] sm:$0xf] }
  0x5d   : > { %295 = vst [vmem:[#allocation2 + $0x6c] sm:$0x1] %v294_v26  ;;  %v502_v40 = vor.u32 %v500_v29, %v499_v46  ;;  %v1016_v44 = vor.u32 %v1015_v12, %v1012_v3  ;;  %v517_v48 = vshll.u32 %v241_v31, 16  ;;  %v1026_v51 = vor.u32 %v1025_v7, %v3703_v32  ;;  %v3734_v0 = vld [vmem:[#allocation2 + $0x58] sm:$0xf] }
  0x5e   : > { %1800 = vrot.lane.b32.xlu0 %v3628_v5, %s3290_s27  ;;  %v508_v45 = vrot.slane %v506_v10, 7  ;;  %v3719_v47 = vrot.slane %v514_v37, 7  ;;  %v1029_v55 = vshll.u32 %v3715_v36, 16  ;;  %v504_v62 = vrot.slane %v499_v46, 4  ;;  %v3243_v46 = vld [vmem:[%s4839_s1 + $0x8] sm:$0xff]  }
  0x5f   : > { %v503_v61 = vsel %vm3406_vm14, %v495_v35, %v502_v40  ;;  %v3242_v15 = vld [vmem:[%s4839_s1 + $0x10] ss:$0 sps:$4 sm:$0x33]   ;;  %v2983_v52 = vrot.slane %v3667_v54, 9  ;;  %v1344_v18 = vrot.slane %v3676_v58, 5  ;;  %v344_v19 = vsel %vm3343_vm5, 0, %v343_v42 }
  0x60   : > { %1802 = vrot.lane.b32.xlu1 %v3673_v57, %s3290_s27  ;;  %743 = vst.msk [vmem:[#allocation2 + $0x64] sm:$0xf] %vm256_vm0, %v503_v61  ;;  %v511_v28 = vor.u32 %v509_v8, %v508_v45  ;;  %v512_v6 = vrot.slane %v508_v45, 4  ;;  %v519_v13 = vor.u32 %v517_v48, %v3719_v47  ;;  %v297_v20 = vsel %vm3336_vm3, 0, %v296_v50  ;;  %345 = vst [vmem:[#allocation2 + $0x74] sm:$0x1] %v344_v19 }
  0x61   : > { %v1017_v21 = vrot.slane %v1016_v44, 4  ;;  %v1034_v22 = vshrl.u32 %v3725_v60, 16  ;;  %v1037_v27 = vshll.u32 %v3725_v60, 16  ;;  %298 = vst [vmem:[#allocation2 + $0x78] sm:$0x1] %v297_v20  ;;  %v1027_v53 = vrot.slane %v1026_v51, 4 }
  0x62   : > { %1835 = vrot.lane.b32.xlu0 %v3650_v9, %s3294_s6  ;;  %v744_v30 = vld [vmem:[#allocation2 + $0x68] sm:$0x1]  ;;  %v520_v24 = vsel %vm3406_vm14, %v512_v6, %v519_v13  ;;  %v1031_v3 = vrot.slane %v1029_v55, 5  ;;  %v1043_v12 = vshll.u32 %v3734_v0, 16  ;;  %v1047_v31 = vshrl.u32 %v3734_v0, 16 }
  0x63   : > { %v745_v23 = vsel %vm3336_vm3, %v504_v62, %v744_v30  ;;  %750 = vst.msk [vmem:[#allocation2 + $0x70] sm:$0xf] %vm256_vm0, %v520_v24  ;;  %v523_v33 = vshrl.u32 %v3730_v63, 16  ;;  %v346_v35 = vld [vmem:[#allocation2 + $0x80] sm:$0x1]  ;;  %v3772_v26 = vcombine.low %v3667_v54, %v3676_v58  ;;  %v1346_v10 = vrot.slane %v1344_v18, 4 }
  0x64   : > { %1837 = vrot.lane.b32.xlu1 %v3695_v25, %s3294_s6  ;;  %v747_v29 = vld [vmem:[#allocation2 + $0x6c] sm:$0xf]  ;;  %746 = vst [vmem:[#allocation2 + $0x68] sm:$0x1] %v745_v23  ;;  %v1347_v8 = vrot.slane %v3715_v36, 5  ;;  %vm2233_vm15 = vcmask 1041408   ;;  %v1022_v37 = vsel %vm3399_vm13, %v1017_v21, %v3703_v32  ;;  %v1032_v54 = vsel %vm3399_vm13, %v1027_v53, %v1031_v3 }
  0x65   : > { %v748_v7 = vsel %vm3393_vm12, %v511_v28, %v747_v29  ;;  %v1036_v40 = vrot.slane %v1034_v22, 4  ;;  %v1039_v42 = vrot.slane %v1037_v27, 5  ;;  %3213 = vmatprep.subr.msk.bf16.mxu0 %vm2233_vm15, %v3242_v15  ;;  %v2235_v44 = vsel %vm2233_vm15, %v3242_v15, 0  ;;  %v3795_v55 = vld [vmem:[#allocation2 + $0x5c] sm:$0x1] }
  0x66   : > { %1870 = vrot.lane.b32.xlu0 %v3664_v41, %s3292_s29  ;;  %749 = vst [vmem:[#allocation2 + $0x6c] sm:$0xf] %v748_v7  ;;  %v3784_v58 = vrot.slane %v1043_v12, 5  ;;  %v521_v36 = vrot.slane %v3719_v47, 4  ;;  %3142 = vmatpush3.bf16.msra.mxu0 %v2235_v44  ;;  %v347_v32 = vsel %vm3343_vm5, 0, %v346_v35  ;;  %v1049_v45 = vrot.slane %v1047_v31, 4 }
  0x67   : > { %v525_v48 = vrot.slane %v523_v33, 7  ;;  %348 = vst [vmem:[#allocation2 + $0x80] sm:$0x1] %v347_v32  ;;  %3143 = vmatprep.subr.bf16.mxu0 %v3243_v46  ;;  %v751_v47 = vld [vmem:[#allocation2 + $0x74] sm:$0x1]  ;;  %v526_v61 = vshll.u32 %v3730_v63, 16  ;;  %v1345_v62 = vsel %vm3362_vm9, %v2983_v52, %v1344_v18  ;;  %v1348_v28 = vsel %vm3362_vm9, %v1346_v10, %v1347_v8 }
  0x68   : > { %1584 = vrot.lane.b32.xlu1 %v3650_v9, %s3288_s25  ;;  %v3746_v9 = vld [vmem:[%s3369_s23 + $0x4c] sm:$0xf]  ;;  %v3804_v6 = vcombine.low %v1022_v37, %v1032_v54  ;;  %v1040_v13 = vor.u32 %v1039_v42, %v1036_v40  ;;  %v752_v15 = vsel %vm3336_vm3, %v521_v36, %v751_v47  ;;  %v1050_v63 = vor.u32 %v1049_v45, %v3784_v58  ;;  %v754_v21 = vld [vmem:[#allocation2 + $0x78] sm:$0xf]  ;;  %v244_v30 = vld [vmem:[%s3369_s23 + $0x50] sm:$0xf] }
  0x69   : > { %v531_v34 = vshrl.u32 %v3746_v9, 16  ;;  %v534_v51 = vshll.u32 %v3746_v9, 16  ;;  %v1053_v52 = vshll.u32 %v3795_v55, 16  ;;  %753 = vst [vmem:[#allocation2 + $0x74] sm:$0x1] %v752_v15  ;;  %v529_v18 = vrot.slane %v525_v48, 4 }
  0x6a   : > { %1872 = vrot.lane.b32.xlu0 %v3717_v39, %s3292_s29  ;;  %3144 = vmatpush3.bf16.msra.mxu0 %v3243_v46  ;;  %v528_v9 = vor.u32 %v526_v61, %v525_v48  ;;  %v3814_v22 = vcombine.low %v1345_v62, %v1348_v28  ;;  %v299_v24 = vld [vmem:[#allocation2 + $0x84] sm:$0x1]  ;;  %v1041_v53 = vrot.slane %v1040_v13, 4  ;;  %v1051_v3 = vrot.slane %v1050_v63, 4  ;;  %v245_v29 = vld [vmem:[%s3369_s23 + $0x54] sm:$0xf] }
  0x6b   : > { %v533_v50 = vrot.slane %v531_v34, 7  ;;  %v1055_v12 = vrot.slane %v1053_v52, 5  ;;  %v300_v7 = vsel %vm3336_vm3, 0, %v299_v24  ;;  %v349_v33 = vld [vmem:[#allocation2 + $0x8c] sm:$0x1]  ;;  %v1351_v35 = vrot.slane %v3734_v0, 5 }
  0x6c   : > { %1586 = vrot.lane.b32.xlu1 %v3695_v25, %s3288_s25  ;;  %v755_v31 = vsel %vm3393_vm12, %v528_v9, %v754_v21  ;;  %v302_v34 = vld [vmem:[#allocation2 + $0x90] sm:$0x1]  ;;  %v3832_v46 = vld [vmem:[#allocation2 + $0x60] sm:$0xf]  ;;  %301 = vst [vmem:[#allocation2 + $0x84] sm:$0x1] %v300_v7  ;;  %v3838_v37 = vcombine.low %v3725_v60, %v3734_v0 }
  0x6d   : > { %v536_v19 = vor.u32 %v534_v51, %v533_v50  ;;  %v538_v20 = vrot.slane %v533_v50, 4  ;;  %756 = vst [vmem:[#allocation2 + $0x78] sm:$0xf] %v755_v31  ;;  %v540_v10 = vshrl.u32 %v244_v30, 16  ;;  %v548_v8 = vshrl.u32 %v245_v29, 16 }
  0x6e   : > { %1664 = vrot.lane.b32.xlu0 %v3664_v41, %s3287_s24  ;;  %v3244_v41 = vld [vmem:[%s4839_s1] sm:$0xff]   ;;  %4858 = vst [vmem:[#allocation3_spill] sm:$0xff] %v3838_v37  ;;  %v1056_v40 = vsel %vm3399_vm13, %v1051_v3, %v1055_v12  ;;  %v543_v54 = vshll.u32 %v244_v30, 16  ;;  %v551_v32 = vshll.u32 %v245_v29, 16  ;;  %v1058_v45 = vshrl.u32 %v3832_v46, 16 }
  0x6f   : > { %3145 = vmatprep.subr.bf16.mxu0 %v3244_v41  ;;  %v758_v27 = vld [vmem:[#allocation2 + $0x80] sm:$0x1]  ;;  %v537_v23 = vsel %vm3406_vm14, %v529_v18, %v536_v19  ;;  %v3845_v42 = vld [vmem:[#allocation2 + $0x64] sm:$0xf]  ;;  %v542_v44 = vrot.slane %v540_v10, 7  ;;  %v550_v36 = vrot.slane %v548_v8, 7 }
  0x70   : > { %1666 = vrot.lane.b32.xlu1 %v3717_v39, %s3287_s24  ;;  %3146 = vmatpush3.bf16.msra.mxu0 %v3244_v41  ;;  %757 = vst.msk [vmem:[#allocation2 + $0x7c] sm:$0xf] %vm256_vm0, %v537_v23  ;;  %v1061_v48 = vshll.u32 %v3832_v46, 16  ;;  %v350_v0 = vsel %vm3343_vm5, 0, %v349_v33  ;;  %v303_v50 = vsel %vm3336_vm3, 0, %v302_v34  ;;  %v1353_v51 = vrot.slane %v1351_v35, 4 }
  0x71   : > { %351 = vst [vmem:[#allocation2 + $0x8c] sm:$0x1] %v350_v0  ;;  %v246_v41 = vld [vmem:[%s3369_s23 + $0x58] sm:$0xf]  ;;  %304 = vst [vmem:[#allocation2 + $0x90] sm:$0x1] %v303_v50  ;;  %v545_v13 = vor.u32 %v543_v54, %v542_v44  ;;  %v553_v63 = vor.u32 %v551_v32, %v550_v36 }
  0x72   : > { %1699 = vrot.lane.b32.xlu0 %v3673_v57, %s3289_s26  ;;  %v1354_v61 = vrot.slane %v3795_v55, 5  ;;  %v1071_v62 = vshrl.u32 %v3845_v42, 16  ;;  %v1067_v28 = vshll.u32 %v3845_v42, 16  ;;  %v546_v15 = vrot.slane %v542_v44, 4  ;;  %v247_v55 = vld [vmem:[%s3369_s23 + $0x5c] sm:$0xf] }
  0x73   : > { %v1063_v52 = vrot.slane %v1061_v48, 5  ;;  %v557_v18 = vshrl.u32 %v246_v41, 16  ;;  %v555_v9 = vrot.slane %v550_v36, 4  ;;  %v560_v24 = vshll.u32 %v246_v41, 16  ;;  %v352_v12 = vld [vmem:[#allocation2 + $0x98] sm:$0x1] }
  0x74   : > { %1701 = vrot.lane.b32.xlu1 %v3772_v26, %s3289_s26  ;;  %v1355_v21 = vsel %vm3362_vm9, %v1353_v51, %v1354_v61  ;;  %v1073_v30 = vrot.slane %v1071_v62, 4  ;;  %v3880_v23 = vld [vmem:[%s3369_s23 + $0x60] sm:$0xf]  ;;  %v305_v29 = vld [vmem:[#allocation2 + $0x9c] sm:$0x1]  ;;  %v565_v34 = vshrl.u32 %v247_v55, 16 }
  0x75   : > { %v3882_v31 = vld [vmem:[#allocation2 + $0x68] sm:$0x1]  ;;  %v559_v33 = vrot.slane %v557_v18, 7  ;;  %v1358_v8 = vrot.slane %v3845_v42, 5  ;;  %v568_v44 = vshll.u32 %v247_v55, 16  ;;  %v353_v51 = vsel %vm3343_vm5, 0, %v352_v12 }
  0x76   : > { %1734 = vrot.lane.b32.xlu0 %v3695_v25, %s3293_s30  ;;  %v759_v25 = vsel %vm3336_vm3, %v538_v20, %v758_v27  ;;  %v761_v20 = vld [vmem:[#allocation2 + $0x84] sm:$0xf]  ;;  %v3873_v27 = vrot.slane %v1067_v28, 5  ;;  %v3898_v32 = vld [vmem:[#allocation2 + $0x6c] sm:$0xf]  ;;  %v567_v0 = vrot.slane %v565_v34, 7 }
  0x77   : > { %760 = vst [vmem:[#allocation2 + $0x80] sm:$0x1] %v759_v25  ;;  %v762_v3 = vsel %vm3393_vm12, %v545_v13, %v761_v20  ;;  %v563_v48 = vrot.slane %v559_v33, 4  ;;  %v355_v50 = vld [vmem:[#allocation2 + $0xa4] sm:$0x1]  ;;  %v306_v41 = vsel %vm3336_vm3, 0, %v305_v29  ;;  %v3927_v29 = vcombine.low %v3832_v46, %v3845_v42 }
  0x78   : > { %1736 = vrot.lane.b32.xlu1 %v3804_v6, %s3293_s30  ;;  %763 = vst [vmem:[#allocation2 + $0x84] sm:$0xf] %v762_v3  ;;  %v765_v7 = vld [vmem:[#allocation2 + $0x8c] sm:$0x1]  ;;  %v768_v54 = vld [vmem:[#allocation2 + $0x90] sm:$0xf]  ;;  %v1074_v36 = vor.u32 %v1073_v30, %v3873_v27  ;;  %v570_v13 = vor.u32 %v568_v44, %v567_v0 }
  0x79   : > { %v574_v61 = vshrl.u32 %v3880_v23, 16  ;;  %354 = vst [vmem:[#allocation2 + $0x98] sm:$0x1] %v353_v51  ;;  %307 = vst [vmem:[#allocation2 + $0x9c] sm:$0x1] %v306_v41  ;;  %v356_v20 = vsel %vm3343_vm5, 0, %v355_v50 }
  0x7a   : > { %1769 = vrot.lane.b32.xlu0 %v3717_v39, %s3291_s28  ;;  %v1046_v39 = vsel %vm3399_vm13, %v1041_v53, %v3784_v58  ;;  %v2984_v58 = vrot.slane %v3725_v60, 9  ;;  %v1060_v60 = vrot.slane %v1058_v45, 4  ;;  %v554_v53 = vsel %vm3406_vm14, %v546_v15, %v553_v63  ;;  %357 = vst [vmem:[#allocation2 + $0xa4] sm:$0x1] %v356_v20  ;;  %4859 = vst [vmem:[#allocation4_spill] sm:$0xff] %v3927_v29 }
  0x7b   : > { %v3859_v47 = vcombine.low %v1046_v39, %v1056_v40  ;;  %764 = vst.msk [vmem:[#allocation2 + $0x88] sm:$0xf] %vm256_vm0, %v554_v53  ;;  %v3891_v39 = vld [vmem:[#allocation2 + $0x70] sm:$0xf]  ;;  %v766_v40 = vsel %vm3336_vm3, %v555_v9, %v765_v7  ;;  %v562_v45 = vor.u32 %v560_v24, %v559_v33  ;;  %v1082_v63 = vshrl.u32 %v3898_v32, 16 }
  0x7c   : > { %1771 = vrot.lane.b32.xlu1 %v3814_v22, %s3291_s28  ;;  %v1352_v19 = vsel %vm3362_vm9, %v2984_v58, %v1351_v35  ;;  %v1064_v25 = vor.u32 %v1063_v52, %v1060_v60  ;;  %v249_v35 = vld [vmem:[%s3369_s23 + $0x64] sm:$0xf]  ;;  %767 = vst [vmem:[#allocation2 + $0x8c] sm:$0x1] %v766_v40  ;;  %v1077_v58 = vshll.u32 %v3882_v31, 16  ;;  %v1095_v28 = vshrl.u32 %v3891_v39, 16 }
  0x7d   : > { %v3888_v10 = vcombine.low %v1352_v19, %v1355_v21  ;;  %v769_v15 = vsel %vm3393_vm12, %v562_v45, %v768_v54  ;;  %v1091_v60 = vshll.u32 %v3891_v39, 16  ;;  %v576_v52 = vrot.slane %v574_v61, 7 }
  0x7e   : > { %1804 = vrot.lane.b32.xlu0 %v3772_v26, %s3290_s27  ;;  %v1065_v62 = vrot.slane %v1064_v25, 4  ;;  %770 = vst [vmem:[#allocation2 + $0x90] sm:$0xf] %v769_v15  ;;  %v582_v18 = vshrl.u32 %v249_v35, 16  ;;  %v571_v19 = vsel %vm3406_vm14, %v563_v48, %v570_v13  ;;  %v585_v9 = vshll.u32 %v249_v35, 16 }
  0x7f   : > { %v1075_v21 = vrot.slane %v1074_v36, 4  ;;  %v1079_v30 = vrot.slane %v1077_v58, 5  ;;  %v1085_v24 = vshll.u32 %v3898_v32, 16  ;;  %771 = vst.msk [vmem:[#allocation2 + $0x94] sm:$0xf] %vm256_vm0, %v571_v19  ;;  %v572_v3 = vrot.slane %v567_v0, 4 }
  0x80   : > { %1806 = vrot.lane.b32.xlu1 %v3838_v37, %s3290_s27  ;;  %v584_v53 = vrot.slane %v582_v18, 7  ;;  %v580_v12 = vrot.slane %v576_v52, 4  ;;  %v2985_v25 = vrot.slane %v3832_v46, 9  ;;  %v1360_v7 = vrot.slane %v1358_v8, 4  ;;  %v772_v45 = vld [vmem:[#allocation2 + $0x98] sm:$0x1] }
  0x81   : > { %v1070_v34 = vsel %vm3399_vm13, %v1065_v62, %v3873_v27  ;;  %v3937_v35 = vrot.slane %v1091_v60, 5  ;;  %v577_v40 = vshll.u32 %v3880_v23, 16  ;;  %v1080_v44 = vsel %vm3399_vm13, %v1075_v21, %v1079_v30  ;;  %v3943_v48 = vld [vmem:[#allocation2 + $0x74] sm:$0x1]  ;;  %v775_v62 = vld [vmem:[#allocation2 + $0x9c] sm:$0xf] }
  0x82   : > { %1839 = vrot.lane.b32.xlu0 %v3804_v6, %s3294_s6  ;;  %v587_v33 = vor.u32 %v585_v9, %v584_v53  ;;  %v1361_v46 = vrot.slane %v3882_v31, 5  ;;  %v1084_v54 = vrot.slane %v1082_v63, 4  ;;  %v1087_v36 = vrot.slane %v1085_v24, 5  ;;  %v3965_v13 = vld [vmem:[%s3369_s23 + $0x68] sm:$0xf]  ;;  %v4862_v14 = vld [vmem:[#allocation4_spill] sm:$0xff] }
  0x83   : > { %v773_v0 = vsel %vm3336_vm3, %v572_v3, %v772_v45  ;;  %v3954_v23 = vcombine.low %v1070_v34, %v1080_v44  ;;  %v1359_v31 = vsel %vm3362_vm9, %v2985_v25, %v1358_v8  ;;  %v579_v58 = vor.u32 %v577_v40, %v576_v52  ;;  %v3988_v21 = vld [vmem:[#allocation2 + $0x78] sm:$0xf]  ;;  %v3997_v24 = vld [vmem:[%s3369_s23 + $0x6c] sm:$0xf]  ;;  %v358_v3 = vld [vmem:[#allocation2 + $0xb0] sm:$0x1] }
  0x84   : > { %1841 = vrot.lane.b32.xlu1 %v3859_v47, %s3294_s6  ;;  %v588_v27 = vsel %vm3406_vm14, %v580_v12, %v587_v33  ;;  %774 = vst [vmem:[#allocation2 + $0x98] sm:$0x1] %v773_v0  ;;  %v1362_v51 = vsel %vm3362_vm9, %v1360_v7, %v1361_v46  ;;  %v1088_v41 = vor.u32 %v1087_v36, %v1084_v54  ;;  %v1101_v61 = vshll.u32 %v3943_v48, 16  ;;  %v311_v34 = vld [vmem:[#allocation2 + $0xb4] sm:$0x1] }
  0x85   : > { %778 = vst.msk [vmem:[#allocation2 + $0xa0] sm:$0xf] %vm256_vm0, %v588_v27  ;;  %v3971_v42 = vcombine.low %v1359_v31, %v1362_v51  ;;  %v776_v15 = vsel %vm3393_vm12, %v579_v58, %v775_v62  ;;  %v591_v18 = vshrl.u32 %v3965_v13, 16  ;;  %v594_v9 = vshll.u32 %v3965_v13, 16 }
  0x86   : > { %1874 = vrot.lane.b32.xlu0 %v3814_v22, %s3292_s29  ;;  %v1089_v63 = vrot.slane %v1088_v41, 4  ;;  %v1103_v60 = vrot.slane %v1101_v61, 5  ;;  %777 = vst [vmem:[#allocation2 + $0x9c] sm:$0xf] %v776_v15  ;;  %v3994_v30 = vcombine.low %v3898_v32, %v3891_v39  ;;  %v1368_v46 = vrot.slane %v3943_v48, 5 }
  0x87   : > { %v599_v54 = vshrl.u32 %v3997_v24, 16  ;;  %v359_v27 = vsel %vm3343_vm5, 0, %v358_v3  ;;  %v312_v48 = vsel %vm3336_vm3, 0, %v311_v34  ;;  %v602_v51 = vshll.u32 %v3997_v24, 16  ;;  %v4033_v41 = vld [vmem:[#allocation2 + $0x80] sm:$0x1] }
  0x88   : > { %1588 = vrot.lane.b32.xlu1 %v3804_v6, %s3288_s25  ;;  %v308_v6 = vld [vmem:[#allocation2 + $0xa8] sm:$0x1]  ;;  %360 = vst [vmem:[#allocation2 + $0xb0] sm:$0x1] %v359_v27  ;;  %313 = vst [vmem:[#allocation2 + $0xb4] sm:$0x1] %v312_v48 }
  0x89   : > { %v309_v55 = vsel %vm3336_vm3, 0, %v308_v6  ;;  %v589_v6 = vrot.slane %v584_v53, 4  ;;  %v593_v53 = vrot.slane %v591_v18, 7  ;;  %v361_v18 = vld [vmem:[#allocation2 + $0xbc] sm:$0x1]  ;;  %v1375_v2 = vrot.slane %v4033_v41, 5 }
  0x8a   : > { %1876 = vrot.lane.b32.xlu0 %v3888_v10, %s3292_s29  ;;  %310 = vst [vmem:[#allocation2 + $0xa8] sm:$0x1] %v309_v55  ;;  %v1365_v55 = vrot.slane %v3891_v39, 5  ;;  %v1106_v39 = vshrl.u32 %v3988_v21, 16  ;;  %vm1898_vm1 = vcmask 31744   ;;  %vm1947_vm2 = vcmask 64512  }
  0x8b   : > { %v596_v40 = vor.u32 %v594_v9, %v593_v53  ;;  %v597_v62 = vrot.slane %v593_v53, 4  ;;  %v314_v9 = vld [vmem:[#allocation2 + $0xc0] sm:$0x1]  ;;  %vm1980_vm4 = vcmask 97280   ;;  %vm2079_vm7 = vcmask 195584  }
  0x8c   : > { %1590 = vrot.lane.b32.xlu1 %v3859_v47, %s3288_s25  ;;  %v1367_v44 = vrot.slane %v1365_v55, 4  ;;  %v1108_v61 = vrot.slane %v1106_v39, 4  ;;  %vm2112_vm8 = vcmask 228352   ;;  %vm2145_vm10 = vcmask 261120  }
  0x8d   : > { %vm2200_vm11 = vcmask 293888  }
  0x8e   : > { %1668 = vrot.lane.b32.xlu0 %v3814_v22, %s3287_s24  ;;  %v1097_v22 = vrot.slane %v1095_v28, 4  ;;  %v779_v28 = vld [vmem:[#allocation2 + $0xa4] sm:$0x1] }
  0x8f   : > { %v780_v52 = vsel %vm3336_vm3, %v589_v6, %v779_v28  ;;  %v3978_v19 = vpop.permute.xlu1 %1656  ;;  %v601_v28 = vrot.slane %v599_v54, 7  ;;  %v315_v54 = vsel %vm3336_vm3, 0, %v314_v9  ;;  %v786_v27 = vld [vmem:[#allocation2 + $0xb0] sm:$0x1] }
  0x90   : > { %1670 = vrot.lane.b32.xlu1 %v3888_v10, %s3287_s24  ;;  %v1098_v50 = vor.u32 %v1097_v22, %v3937_v35  ;;  %781 = vst [vmem:[#allocation2 + $0xa4] sm:$0x1] %v780_v52  ;;  %v1109_v22 = vshll.u32 %v3988_v21, 16  ;;  %316 = vst [vmem:[#allocation2 + $0xc0] sm:$0x1] %v315_v54 }
  0x91   : > { %v782_v33 = vld [vmem:[#allocation2 + $0xa8] sm:$0xf] }
  0x92   : > { %1703 = vrot.lane.b32.xlu0 %v3838_v37, %s3289_s26  ;;  %v1099_v8 = vrot.slane %v1098_v50, 4  ;;  %v783_v0 = vsel %vm3393_vm12, %v596_v40, %v782_v33  ;;  %v1111_v6 = vrot.slane %v1109_v22, 5  ;;  %v4060_v40 = vld [vmem:[#allocation2 + $0x84] sm:$0xf]  ;;  %v4128_v37 = vld [vmem:[#allocation2 + $0x8c] sm:$0x1] }
  0x93   : > { %784 = vst [vmem:[#allocation2 + $0xa8] sm:$0xf] %v783_v0  ;;  %v4073_v0 = vld [vmem:[#allocation2 + $0x88] sm:$0xf] }
  0x94   : > { %1705 = vrot.lane.b32.xlu1 %v3927_v29, %s3289_s26  ;;  %v3985_v20 = vpop.permute.xlu0 %1576  ;;  %v1104_v12 = vsel %vm3399_vm13, %v1099_v8, %v1103_v60  ;;  %v4038_v8 = vld [vmem:[%s3369_s23 + $0x74] sm:$0xf]  ;;  %v1369_v60 = vsel %vm3362_vm9, %v1367_v44, %v1368_v46  ;;  %v1112_v33 = vor.u32 %v1111_v6, %v1108_v61  ;;  %v362_v44 = vsel %vm3343_vm5, 0, %v361_v18  ;;  %v4067_v46 = vld [vmem:[%s3369_s23 + $0x78] sm:$0xf] }
  0x95   : > { %v616_v34 = vshrl.u32 %v4038_v8, 16  ;;  %v619_v39 = vshll.u32 %v4038_v8, 16  ;;  %363 = vst [vmem:[#allocation2 + $0xbc] sm:$0x1] %v362_v44 }
  0x96   : > { %1738 = vrot.lane.b32.xlu0 %v3859_v47, %s3293_s30  ;;  %v3980_v47 = vld [vmem:[#allocation2 + $0x7c] sm:$0xf] }
  0x97   : > { %v1119_v25 = vshrl.u32 %v3980_v47, 16  ;;  %v1115_v7 = vshll.u32 %v3980_v47, 16 }
  0x98   : > { %1740 = vrot.lane.b32.xlu1 %v3954_v23, %s3293_s30 }
  0x99   : > { %v4030_v50 = vrot.slane %v1115_v7, 5  ;;  %v1121_v58 = vrot.slane %v1119_v25, 4  ;;  %v606_v25 = vrot.slane %v601_v28, 4 }
  0x9a   : > { %1773 = vrot.lane.b32.xlu0 %v3888_v10, %s3291_s28  ;;  %v1094_v10 = vsel %vm3399_vm13, %v1089_v63, %v3937_v35  ;;  %v2986_v35 = vrot.slane %v3898_v32, 9  ;;  %v4024_v32 = vld [vmem:[%s3369_s23 + $0x70] sm:$0xf] }
  0x9b   : > { %v4017_v45 = vcombine.low %v1094_v10, %v1104_v12  ;;  %v608_v15 = vshrl.u32 %v4024_v32, 16  ;;  %v611_v52 = vshll.u32 %v4024_v32, 16  ;;  %v1122_v3 = vor.u32 %v1121_v58, %v4030_v50 }
  0x9c   : > { %1775 = vrot.lane.b32.xlu1 %v3971_v42, %s3291_s28  ;;  %v1366_v63 = vsel %vm3362_vm9, %v2986_v35, %v1365_v55  ;;  %v1125_v10 = vshll.u32 %v4033_v41, 16  ;;  %v604_v12 = vor.u32 %v602_v51, %v601_v28  ;;  %v618_v51 = vrot.slane %v616_v34, 7 }
  0x9d   : > { %v4015_v36 = vpop.permute.xlu1 %1693  ;;  %v610_v55 = vrot.slane %v608_v15, 7  ;;  %v4058_v22 = vcombine.low %v1366_v63, %v1369_v60  ;;  %v787_v28 = vsel %vm3336_vm3, %v606_v25, %v786_v27  ;;  %v789_v15 = vld [vmem:[#allocation2 + $0xb4] sm:$0xf]  ;;  %v1113_v60 = vrot.slane %v1112_v33, 4 }
  0x9e   : > { %1808 = vrot.lane.b32.xlu0 %v3927_v29, %s3290_s27  ;;  %v605_v35 = vsel %vm3406_vm14, %v597_v62, %v604_v12  ;;  %v1127_v6 = vrot.slane %v1125_v10, 5  ;;  %v1372_v62 = vrot.slane %v3980_v47, 5  ;;  %v1123_v18 = vrot.slane %v1122_v3, 4  ;;  %788 = vst [vmem:[#allocation2 + $0xb0] sm:$0x1] %v787_v28 }
  0x9f   : > { %785 = vst.msk [vmem:[#allocation2 + $0xac] sm:$0xf] %vm256_vm0, %v605_v35  ;;  %v613_v48 = vor.u32 %v611_v52, %v610_v55  ;;  %v614_v58 = vrot.slane %v610_v55, 4  ;;  %v1130_v52 = vshrl.u32 %v4060_v40, 16  ;;  %v621_v9 = vor.u32 %v619_v39, %v618_v51  ;;  %v364_v12 = vld [vmem:[#allocation2 + $0xc8] sm:$0x1] }
  0xa0   : > { %1810 = vrot.lane.b32.xlu1 %v3994_v30, %s3290_s27  ;;  %v4028_v31 = vpop.permute.xlu0 %1691  ;;  %v1133_v10 = vshll.u32 %v4060_v40, 16  ;;  %v1143_v55 = vshrl.u32 %v4073_v0, 16  ;;  %v625_v34 = vshrl.u32 %v4067_v46, 16  ;;  %v1139_v3 = vshll.u32 %v4073_v0, 16  ;;  %v796_v29 = vld [vmem:[#allocation2 + $0xc0] sm:$0xf] }
  0xa1   : > { %v790_v25 = vsel %vm3393_vm12, %v613_v48, %v789_v15  ;;  %v622_v33 = vsel %vm3406_vm14, %v614_v58, %v621_v9  ;;  %v628_v39 = vshll.u32 %v4067_v46, 16  ;;  %v623_v54 = vrot.slane %v618_v51, 4 }
  0xa2   : > { %1843 = vrot.lane.b32.xlu0 %v3954_v23, %s3294_s6  ;;  %791 = vst [vmem:[#allocation2 + $0xb4] sm:$0xf] %v790_v25  ;;  %792 = vst.msk [vmem:[#allocation2 + $0xb8] sm:$0xf] %vm256_vm0, %v622_v33  ;;  %v627_v27 = vrot.slane %v625_v34, 7  ;;  %v365_v28 = vsel %vm3343_vm5, 0, %v364_v12  ;;  %v4111_v58 = vcombine.low %v3988_v21, %v3980_v47  ;;  %v1128_v51 = vsel %vm3399_vm13, %v1123_v18, %v1127_v6 }
  0xa3   : > { %v2987_v9 = vrot.slane %v3988_v21, 9  ;;  %v1374_v25 = vrot.slane %v1372_v62, 4  ;;  %366 = vst [vmem:[#allocation2 + $0xc8] sm:$0x1] %v365_v28  ;;  %v793_v12 = vld [vmem:[#allocation2 + $0xbc] sm:$0x1]  ;;  %v1118_v47 = vsel %vm3399_vm13, %v1113_v60, %v4030_v50 }
  0xa4   : > { %1845 = vrot.lane.b32.xlu1 %v4017_v45, %s3294_s6  ;;  %v4048_v53 = vpop.permute.xlu0 %1796  ;;  %v630_v34 = vor.u32 %v628_v39, %v627_v27  ;;  %v631_v33 = vrot.slane %v627_v27, 4  ;;  %v1132_v21 = vrot.slane %v1130_v52, 4  ;;  %v1145_v28 = vrot.slane %v1143_v55, 4 }
  0xa5   : > { %v4130_v6 = vrot.slane %v1139_v3, 5  ;;  %v794_v41 = vsel %vm3336_vm3, %v623_v54, %v793_v12  ;;  %v4143_v52 = vcombine.low %v1118_v47, %v1128_v51  ;;  %v1373_v43 = vsel %vm3362_vm9, %v2987_v9, %v1372_v62 }
  0xa6   : > { %v4052_v7 = vpop.permute.xlu1 %1798  ;;  %1878 = vrot.lane.b32.xlu0 %v3971_v42, %s3292_s29  ;;  %v797_v39 = vsel %vm3393_vm12, %v630_v34, %v796_v29  ;;  %795 = vst [vmem:[#allocation2 + $0xbc] sm:$0x1] %v794_v41  ;;  %v1149_v29 = vshll.u32 %v4128_v37, 16  ;;  %v1376_v3 = vsel %vm3362_vm9, %v1374_v25, %v1375_v2  ;;  %vm2013_vm5 = vcmask 130048   ;;  %v4206_v41 = vld [vmem:[#allocation2 + $0x94] sm:$0xf] }
  0xa7   : > { %798 = vst [vmem:[#allocation2 + $0xc0] sm:$0xf] %v797_v39  ;;  %v1146_v27 = vor.u32 %v1145_v28, %v4130_v6  ;;  %v2988_v39 = vrot.slane %v4060_v40, 9 }
  0xa8   : > { %1592 = vrot.lane.b32.xlu1 %v3954_v23, %s3288_s25  ;;  %v4076_v61 = vpop.permute.xlu0 %1761  ;;  %v4082_v23 = vld [vmem:[%s3369_s23 + $0x7c] sm:$0xf] }
  0xa9   : > { %v633_v35 = vshrl.u32 %v4082_v23, 16  ;;  %v636_v48 = vshll.u32 %v4082_v23, 16  ;;  %v1147_v2 = vrot.slane %v1146_v27, 4 }
  0xaa   : > { %v4084_v63 = vpop.permute.xlu1 %1658  ;;  %1880 = vrot.lane.b32.xlu0 %v4058_v22, %s3292_s29 }
  0xab   : > { %v4114_v4 = vrot.slane %v633_v35, 7  ;;  %v1135_v35 = vrot.slane %v1133_v10, 5  ;;  %v4860_v10 = vcombine.low %v3373_v16, %v3375_v17 }
  0xac   : > { %1594 = vrot.lane.b32.xlu1 %v4017_v45, %s3288_s25  ;;  %v4101_v44 = vpop.permute.xlu0 %1866 }
  0xad   : > { %v638_v18 = vor.u32 %v636_v48, %v4114_v4  ;;  %v1901_v56 = vsel %vm1898_vm1, %v4860_v10, %v3985_v20  ;;  %v1136_v54 = vor.u32 %v1135_v35, %v1132_v21  ;;  %v4169_v20 = vcombine.low %v1373_v43, %v1376_v3  ;;  %v4200_v35 = vld [vmem:[#allocation2 + $0x90] sm:$0xf] }
  0xae   : > { %v4107_v15 = vpop.permute.xlu1 %1763  ;;  %1672 = vrot.lane.b32.xlu0 %v3971_v42, %s3287_s24  ;;  %v1949_v16 = vsel %vm1947_vm2, %v1901_v56, %v3978_v19  ;;  %v1157_v10 = vshll.u32 %v4200_v35, 16 }
  0xaf   : > { %v639_v60 = vsel %vm3406_vm14, %v631_v33, %v638_v18  ;;  %v1137_v51 = vrot.slane %v1136_v54, 4  ;;  %v1379_v33 = vrot.slane %v4073_v0, 5  ;;  %v800_v18 = vld [vmem:[#allocation2 + $0xc8] sm:$0x1] }
  0xb0   : > { %1674 = vrot.lane.b32.xlu1 %v4058_v22, %s3287_s24  ;;  %v4126_v42 = vpop.permute.xlu0 %1868  ;;  %799 = vst.msk [vmem:[#allocation2 + $0xc4] sm:$0xf] %vm256_vm0, %v639_v60  ;;  %vm2046_vm0 = vcmask 162816   ;;  %v1382_v60 = vrot.slane %v4128_v37, 5  ;;  %v1167_v37 = vshrl.u32 %v4206_v41, 16  ;;  %v1159_v27 = vrot.slane %v1157_v10, 5 }
  0xb2   : > { %v1729_v50 = vpop.permute.xlu1 %1728  ;;  %1707 = vrot.lane.b32.xlu0 %v3994_v30, %s3289_s26 }
  0xb4   : > { %1709 = vrot.lane.b32.xlu1 %v4111_v58, %s3289_s26  ;;  %v1579_v55 = vpop.permute.xlu0 %1578 }
  0xb5   : > { %v1904_v62 = vsel %vm1898_vm1, %v3470_v11, %v1579_v55  ;;  %v1151_v11 = vrot.slane %v1149_v29, 5  ;;  %v1154_v29 = vshrl.u32 %v4200_v35, 16 }
  0xb6   : > { %v1834_v48 = vpop.permute.xlu1 %1833  ;;  %v1951_v9 = vsel %vm1947_vm2, %v1904_v62, %v4084_v63  ;;  %1742 = vrot.lane.b32.xlu0 %v4017_v45, %s3293_s30  ;;  %v1982_v63 = vsel %vm1980_vm4, %v1949_v16, %v4028_v31  ;;  %v1169_v62 = vrot.slane %v1167_v37, 4  ;;  %v841_v16 = vld [vmem:[#allocation2 + $0x98] sm:$0x1] }
  0xb7   : > { %v1984_v17 = vsel %vm1980_vm4, %v1951_v9, %v4015_v36  ;;  %v1152_v21 = vsel %vm3399_vm13, %v1147_v2, %v1151_v11  ;;  %v1156_v54 = vrot.slane %v1154_v29, 4 }
  0xb8   : > { %1744 = vrot.lane.b32.xlu1 %v4143_v52, %s3293_s30  ;;  %v2017_v25 = vsel %vm2013_vm5, %v1984_v17, %v1729_v50  ;;  %v1727_v45 = vpop.permute.xlu0 %1726  ;;  %v1381_v50 = vrot.slane %v1379_v33, 4 }
  0xb9   : > { %v2015_v19 = vsel %vm2013_vm5, %v1982_v63, %v1727_v45  ;;  %v2050_v36 = vsel %vm2046_vm0, %v2017_v25, %v4107_v15  ;;  %v4192_v15 = vcombine.low %v4060_v40, %v4073_v0  ;;  %v1160_v11 = vor.u32 %v1159_v27, %v1156_v54  ;;  %v3252_v54 = vld [vmem:[%s3369_s23] sm:$0xf]  ;;  %v3253_v27 = vld [vmem:[%s3369_s23 + $0x4] sm:$0xf] }
  0xba   : > { %v4174_v12 = vpop.permute.xlu1 %1580  ;;  %v2048_v34 = vsel %vm2046_vm0, %v2015_v19, %v4076_v61  ;;  %1777 = vrot.lane.b32.xlu0 %v4058_v22, %s3291_s28  ;;  %v2083_v31 = vsel %vm2079_vm7, %v2050_v36, %v4052_v7  ;;  %v1142_v7 = vsel %vm3399_vm13, %v1137_v51, %v4130_v6  ;;  %v1383_v3 = vsel %vm3362_vm9, %v1381_v50, %v1382_v60  ;;  %v4248_v51 = vld [vmem:[#allocation2 + $0xa0] sm:$0xf]  ;;  %v4252_v19 = vld [vmem:[#allocation2 + $0x9c] sm:$0xf] }
  0xbb   : > { %v2081_v47 = vsel %vm2079_vm7, %v2048_v34, %v4048_v53  ;;  %v2116_v22 = vsel %vm2112_vm8, %v2083_v31, %v1834_v48  ;;  %v640_v53 = vrot.slane %v4114_v4, 4  ;;  %v4219_v43 = vcombine.low %v1142_v7, %v1152_v21 }
  0xbc   : > { %1779 = vrot.lane.b32.xlu1 %v4169_v20, %s3291_s28  ;;  %v1832_v61 = vpop.permute.xlu0 %1831  ;;  %v2149_v4 = vsel %vm2145_vm10, %v2116_v22, %v4126_v42  ;;  %v1380_v42 = vsel %vm3362_vm9, %v2988_v39, %v1379_v33  ;;  %v1173_v45 = vshll.u32 %v841_v16, 16  ;;  %v1386_v36 = vrot.slane %v4206_v41, 5 }
  0xbd   : > { %v2114_v0 = vsel %vm2112_vm8, %v2081_v47, %v1832_v61  ;;  %v801_v56 = vsel %vm3336_vm3, %v640_v53, %v800_v18  ;;  %v4244_v17 = vcombine.low %v1380_v42, %v1383_v3  ;;  %v1161_v34 = vrot.slane %v1160_v11, 4 }
  0xbe   : > { %v4203_v28 = vpop.permute.xlu1 %1582  ;;  %1812 = vrot.lane.b32.xlu0 %v4111_v58, %s3290_s27  ;;  %v2147_v6 = vsel %vm2145_vm10, %v2114_v0, %v4101_v44  ;;  %v1163_v44 = vshll.u32 %v4206_v41, 16  ;;  %802 = vst [vmem:[#allocation2 + $0xc8] sm:$0x1] %v801_v56  ;;  %v1187_v31 = vshll.u32 %v4248_v51, 16  ;;  %v1175_v61 = vrot.slane %v1173_v45, 5 }
  0xbf   : > { %3147 = vmatprep.mubr.msk.bf16.mxu0 %vm2200_vm11, %v2147_v6  ;;  %v1178_v22 = vshrl.u32 %v4252_v19, 16  ;;  %v1181_v7 = vshll.u32 %v4252_v19, 16  ;;  %v2989_v53 = vrot.slane %v4200_v35, 9  ;;  %v1388_v0 = vrot.slane %v1386_v36, 4 }
  0xc0   : > { %1814 = vrot.lane.b32.xlu1 %v4192_v15, %s3290_s27  ;;  %3148 = vmatmul.mubr.msk.bf16.vlgmr.msra.gmra.mxu0 %vm2200_vm11, %v2149_v4  ;;  %v4224_v40 = vpop.permute.xlu0 %1660  ;;  %v1165_v1 = vrot.slane %v1163_v44, 5  ;;  %v1389_v18 = vrot.slane %v841_v16, 5  ;;  %v4270_v6 = vcombine.low %v4200_v35, %v4206_v41  ;;  %v4272_v39 = vrot.slane %v1187_v31, 5  ;;  %v4280_v35 = vld [vmem:[#allocation2 + $0xa4] sm:$0x1] }
  0xc1   : > { %v1180_v29 = vrot.slane %v1178_v22, 4  ;;  %v1183_v10 = vrot.slane %v1181_v7, 5  ;;  %v1387_v44 = vsel %vm3362_vm9, %v2989_v53, %v1386_v36  ;;  %v2398_v41 = vld [vmem:[%s4841_s3] sm:$0x3]  ;;  %v1907_v56 = vsel %vm1898_vm1, %v3451_v59, %v4174_v12  ;;  %v3254_v36 = vld [vmem:[%s3369_s23 + $0x8] sm:$0xf] }
  0xc2   : > { %v4230_v55 = vpop.permute.xlu1 %1662  ;;  %1847 = vrot.lane.b32.xlu0 %v4143_v52, %s3294_s6  ;;  %v1170_v25 = vor.u32 %v1169_v62, %v1165_v1  ;;  %v1166_v4 = vsel %vm3399_vm13, %v1161_v34, %v1165_v1  ;;  %v1390_v42 = vsel %vm3362_vm9, %v1388_v0, %v1389_v18  ;;  %3214 = vmatprep.subr.msk.bf16.mxu1 %vm2233_vm15, %v2398_v41  ;;  %v2535_v3 = vsel %vm2233_vm15, %v2398_v41, 0  ;;  %v3255_v34 = vld [vmem:[%s3369_s23 + $0xc] sm:$0xf]  ;;  %v3258_v41 = vld [vmem:[%s3369_s23 + $0x18] sm:$0xf] }
  0xc3   : > { %v3070_v1 = vcombine.low %v3252_v54, %v3253_v27  ;;  %v1953_v62 = vsel %vm1947_vm2, %v1907_v56, %v4224_v40  ;;  %3180 = vmatpush3.bf16.msra.mxu1 %v2535_v3  ;;  %v1197_v45 = vshll.u32 %v4280_v35, 16  ;;  %v3259_v56 = vld [vmem:[%s3369_s23 + $0x1c] sm:$0xf]  ;;  %v4359_v54 = vld [vmem:[#allocation2 + $0xac] sm:$0xf]  ;;  %vm2910_vm3 = vcmask 1040384  }
  0xc4   : > { %1849 = vrot.lane.b32.xlu1 %v4219_v43, %s3294_s6  ;;  %v1696_v48 = vpop.permute.xlu0 %1695  ;;  %v1171_v47 = vrot.slane %v1170_v25, 4  ;;  %v1184_v25 = vor.u32 %v1183_v10, %v1180_v29  ;;  %v4345_v29 = vld [vmem:[#allocation2 + $0xa8] sm:$0xf] }
  0xc5   : > { %v1986_v16 = vsel %vm1980_vm4, %v1953_v62, %v1696_v48  ;;  %3181 = vmatprep.mubr.msk.bf16.mxu1 %vm1898_vm1, %v3070_v1  ;;  %v1199_v53 = vrot.slane %v1197_v45, 5  ;;  %v1205_v27 = vshll.u32 %v4345_v29, 16  ;;  %v2990_v62 = vrot.slane %v4252_v19, 9 }
  0xc6   : > { %v4240_v9 = vpop.permute.xlu1 %1697  ;;  %1882 = vrot.lane.b32.xlu0 %v4169_v20, %s3292_s29  ;;  %v1185_v7 = vrot.slane %v1184_v25, 4  ;;  %v1215_v25 = vshrl.u32 %v4359_v54, 16  ;;  %v1211_v45 = vshll.u32 %v4359_v54, 16 }
  0xc8   : > { %1596 = vrot.lane.b32.xlu1 %v4143_v52, %s3288_s25  ;;  %v1731_v63 = vpop.permute.xlu0 %1730  ;;  %v1191_v52 = vshrl.u32 %v4248_v51, 16 }
  0xc9   : > { %v2019_v40 = vsel %vm2013_vm5, %v1986_v16, %v1731_v63  ;;  %v4321_v63 = vcombine.low %v1387_v44, %v1390_v42  ;;  %v1190_v44 = vsel %vm3399_vm13, %v1185_v7, %v4272_v39  ;;  %v3073_v42 = vcombine.low %v3258_v41, %v3259_v56 }
  0xca   : > { %v4250_v2 = vpop.permute.xlu1 %1732  ;;  %1884 = vrot.lane.b32.xlu0 %v4244_v17, %s3292_s29  ;;  %v1193_v50 = vrot.slane %v1191_v52, 4  ;;  %v3071_v52 = vcombine.low %v3254_v36, %v3255_v34  ;;  %v1396_v16 = vrot.slane %v4280_v35, 5 }
  0xcc   : > { %1598 = vrot.lane.b32.xlu1 %v4219_v43, %s3288_s25  ;;  %v1766_v33 = vpop.permute.xlu0 %1765  ;;  %v1194_v12 = vor.u32 %v1193_v50, %v4272_v39  ;;  %3182 = vmatmul.mubr.msk.bf16.vlgmr.msra.gmra.mxu1 %vm1898_vm1, %v3071_v52  ;;  %v1202_v39 = vshrl.u32 %v4345_v29, 16  ;;  %v3260_v52 = vld [vmem:[%s3369_s23 + $0x20] sm:$0xf] }
  0xce   : > { %v1768_v21 = vpop.permute.xlu1 %1767  ;;  %1676 = vrot.lane.b32.xlu0 %v4169_v20, %s3287_s24  ;;  %v1176_v20 = vsel %vm3399_vm13, %v1171_v47, %v1175_v61  ;;  %v1910_v47 = vsel %vm1898_vm1, %v3489_v38, %v4203_v28  ;;  %v2052_v61 = vsel %vm2046_vm0, %v2019_v40, %v1766_v33  ;;  %v1195_v38 = vrot.slane %v1194_v12, 4  ;;  %v3261_v40 = vld [vmem:[%s3369_s23 + $0x24] sm:$0xf] }
  0xcf   : > { %v4300_v59 = vcombine.low %v1166_v4, %v1176_v20  ;;  %v1955_v48 = vsel %vm1947_vm2, %v1910_v47, %v4230_v55  ;;  %v1204_v34 = vrot.slane %v1202_v39, 4  ;;  %v3074_v35 = vcombine.low %v3260_v52, %v3261_v40 }
  0xd0   : > { %1678 = vrot.lane.b32.xlu1 %v4244_v17, %s3287_s24  ;;  %v1801_v60 = vpop.permute.xlu0 %1800  ;;  %v1988_v28 = vsel %vm1980_vm4, %v1955_v48, %v4240_v9  ;;  %v3256_v9 = vld [vmem:[%s3369_s23 + $0x10] sm:$0xf] }
  0xd1   : > { %v2085_v22 = vsel %vm2079_vm7, %v2052_v61, %v1801_v60  ;;  %v2021_v55 = vsel %vm2013_vm5, %v1988_v28, %v4250_v2  ;;  %v3257_v60 = vld [vmem:[%s3369_s23 + $0x14] sm:$0xf]  ;;  %v4342_v2 = vcombine.low %v4252_v19, %v4248_v51  ;;  %v1207_v19 = vrot.slane %v1205_v27, 5  ;;  %v4391_v48 = vld [vmem:[#allocation2 + $0xb0] sm:$0x1] }
  0xd2   : > { %v1803_v37 = vpop.permute.xlu1 %1802  ;;  %1711 = vrot.lane.b32.xlu0 %v4192_v15, %s3289_s26  ;;  %v2054_v50 = vsel %vm2046_vm0, %v2021_v55, %v1768_v21  ;;  %v3072_v4 = vcombine.low %v3256_v9, %v3257_v60  ;;  %v1393_v21 = vrot.slane %v4248_v51, 5  ;;  %v3262_v28 = vld [vmem:[%s3369_s23 + $0x28] sm:$0xf]  ;;  %v4406_v60 = vld [vmem:[#allocation2 + $0xb4] sm:$0xf]  ;;  %v1403_v52 = vrot.slane %v4391_v48, 5 }
  0xd3   : > { %v2087_v20 = vsel %vm2079_vm7, %v2054_v50, %v1803_v37  ;;  %v1200_v37 = vsel %vm3399_vm13, %v1195_v38, %v1199_v53  ;;  %v1217_v38 = vrot.slane %v1215_v25, 4  ;;  %v1208_v55 = vor.u32 %v1207_v19, %v1204_v34 }
  0xd4   : > { %1713 = vrot.lane.b32.xlu1 %v4270_v6, %s3289_s26  ;;  %v1836_v11 = vpop.permute.xlu0 %1835  ;;  %3185 = vmatprep.mubr.msk.bf16.mxu1 %vm1898_vm1, %v3072_v4  ;;  %v4368_v1 = vcombine.low %v1190_v44, %v1200_v37  ;;  %v1395_v12 = vrot.slane %v1393_v21, 4  ;;  %v1400_v37 = vrot.slane %v4359_v54, 5  ;;  %v1226_v41 = vshrl.u32 %v4406_v60, 16 }
  0xd5   : > { %3186 = vmatmul.mubr.msk.bf16.gmra.mxu1 %vm1898_vm1, %v3073_v42  ;;  %v1229_v56 = vshll.u32 %v4406_v60, 16  ;;  %v2991_v34 = vrot.slane %v4345_v29, 9 }
  0xd6   : > { %v1838_v31 = vpop.permute.xlu1 %1837  ;;  %1746 = vrot.lane.b32.xlu0 %v4219_v43, %s3293_s30  ;;  %v2118_v43 = vsel %vm2112_vm8, %v2085_v22, %v1836_v11  ;;  %v1397_v47 = vsel %vm3362_vm9, %v1395_v12, %v1396_v16  ;;  %v1213_v22 = vrot.slane %v1211_v45, 5  ;;  %3189 = vmatprep.mubr.msk.bf16.mxu1 %vm1898_vm1, %v3074_v35  ;;  %v3267_v12 = vld [vmem:[%s3369_s23 + $0x3c] sm:$0xf]  ;;  %v4430_v45 = vcombine.low %v4345_v29, %v4359_v54 }
  0xd7   : > { %v1402_v19 = vrot.slane %v1400_v37, 4  ;;  %v1228_v40 = vrot.slane %v1226_v41, 4  ;;  %v1231_v35 = vrot.slane %v1229_v56, 5 }
  0xd8   : > { %1748 = vrot.lane.b32.xlu1 %v4300_v59, %s3293_s30  ;;  %v1871_v33 = vpop.permute.xlu0 %1870  ;;  %v1218_v9 = vor.u32 %v1217_v38, %v1213_v22 }
  0xd9   : > { %v2151_v18 = vsel %vm2145_vm10, %v2118_v43, %v1871_v33  ;;  %v3263_v43 = vld [vmem:[%s3369_s23 + $0x2c] sm:$0xf] }
  0xda   : > { %v4328_v0 = vpop.permute.xlu1 %1584  ;;  %1781 = vrot.lane.b32.xlu0 %v4244_v17, %s3291_s28  ;;  %3151 = vmatprep.mubr.msk.bf16.mxu0 %vm2200_vm11, %v2151_v18  ;;  %v2120_v17 = vsel %vm2112_vm8, %v2087_v20, %v1838_v31  ;;  %v1394_v31 = vsel %vm3362_vm9, %v2990_v62, %v1393_v21  ;;  %v3075_v33 = vcombine.low %v3262_v28, %v3263_v43  ;;  %v1221_v18 = vshll.u32 %v4391_v48, 16  ;;  %v4410_v20 = vld [vmem:[#allocation2 + $0xb8] sm:$0xf]  ;;  %v4443_v28 = vld [vmem:[#allocation2 + $0xbc] sm:$0x1] }
  0xdb   : > { %v4400_v53 = vcombine.low %v1394_v31, %v1397_v47  ;;  %v1209_v21 = vrot.slane %v1208_v55, 4  ;;  %v1239_v39 = vshrl.u32 %v4410_v20, 16  ;;  %v1235_v27 = vshll.u32 %v4410_v20, 16  ;;  %v3266_v62 = vld [vmem:[%s3369_s23 + $0x38] sm:$0xf] }
  0xdc   : > { %1783 = vrot.lane.b32.xlu1 %v4321_v63, %s3291_s28  ;;  %v1873_v10 = vpop.permute.xlu0 %1872  ;;  %v1223_v44 = vrot.slane %v1221_v18, 5  ;;  %v3077_v16 = vcombine.low %v3266_v62, %v3267_v12  ;;  %v1913_v48 = vsel %vm1898_vm1, %v3628_v5, %v4328_v0  ;;  %v3268_v43 = vld [vmem:[%s3369_s23 + $0x40] sm:$0xf]  ;;  %v1404_v5 = vsel %vm3362_vm9, %v1402_v19, %v1403_v52  ;;  %v3273_v52 = vld [vmem:[%s3369_s23 + $0x54] sm:$0xf] }
  0xdd   : > { %v2153_v51 = vsel %vm2145_vm10, %v2120_v17, %v1873_v10  ;;  %3190 = vmatmul.mubr.msk.bf16.gmra.mxu1 %vm1898_vm1, %v3075_v33  ;;  %v3264_v17 = vld [vmem:[%s3369_s23 + $0x30] sm:$0xf]  ;;  %v4441_v29 = vrot.slane %v1235_v27, 5  ;;  %v1241_v47 = vrot.slane %v1239_v39, 4  ;;  %v3269_v33 = vld [vmem:[%s3369_s23 + $0x44] sm:$0xf]  ;;  %v1232_v0 = vor.u32 %v1231_v35, %v1228_v40 }
  0xde   : > { %v4356_v3 = vpop.permute.xlu1 %1586  ;;  %1816 = vrot.lane.b32.xlu0 %v4270_v6, %s3290_s27  ;;  %3152 = vmatmul.mubr.msk.bf16.gmra.mxu0 %vm2200_vm11, %v2153_v51  ;;  %v1219_v51 = vrot.slane %v1218_v9, 4  ;;  %v3078_v55 = vcombine.low %v3268_v43, %v3269_v33  ;;  %v4520_v33 = vld [vmem:[#allocation2 + $0xc4] sm:$0xf] }
  0xdf   : > { %v1233_v62 = vrot.slane %v1232_v0, 4 }
  0xe0   : > { %1818 = vrot.lane.b32.xlu1 %v4342_v2, %s3290_s27  ;;  %v4373_v11 = vpop.permute.xlu0 %1664  ;;  %v1224_v54 = vsel %vm3399_vm13, %v1219_v51, %v1223_v44  ;;  %v3271_v44 = vld [vmem:[%s3369_s23 + $0x4c] sm:$0xf]  ;;  %v1916_v51 = vsel %vm1898_vm1, %v3673_v57, %v4356_v3 }
  0xe1   : > { %v1957_v18 = vsel %vm1947_vm2, %v1913_v48, %v4373_v11  ;;  %v3270_v11 = vld [vmem:[%s3369_s23 + $0x48] sm:$0xf]  ;;  %v3275_v48 = vld [vmem:[%s3369_s23 + $0x5c] sm:$0xf] }
  0xe2   : > { %v4377_v36 = vpop.permute.xlu1 %1666  ;;  %1851 = vrot.lane.b32.xlu0 %v4300_v59, %s3294_s6 }
  0xe4   : > { %1853 = vrot.lane.b32.xlu1 %v4368_v1, %s3294_s6  ;;  %v4389_v61 = vpop.permute.xlu0 %1699 }
  0xe6   : > { %v4396_v7 = vpop.permute.xlu1 %1701  ;;  %1886 = vrot.lane.b32.xlu0 %v4321_v63, %s3292_s29 }
  0xe8   : > { %1600 = vrot.lane.b32.xlu1 %v4300_v59, %s3288_s25  ;;  %v1735_v50 = vpop.permute.xlu0 %1734  ;;  %v3265_v59 = vld [vmem:[%s3369_s23 + $0x34] sm:$0xf] }
  0xe9   : > { %v3076_v10 = vcombine.low %v3264_v17, %v3265_v59  ;;  %v1242_v59 = vor.u32 %v1241_v47, %v4441_v29  ;;  %v4512_v47 = vld [vmem:[#allocation2 + $0xc0] sm:$0xf] }
  0xea   : > { %v4408_v4 = vpop.permute.xlu1 %1736  ;;  %1888 = vrot.lane.b32.xlu0 %v4400_v53, %s3292_s29  ;;  %v1413_v0 = vshrl.u32 %v4512_v47, 16 }
  0xeb   : > { %3193 = vmatprep.mubr.msk.bf16.mxu1 %vm1898_vm1, %v3076_v10  ;;  %v1245_v10 = vshll.u32 %v4443_v28, 16 }
  0xec   : > { %1602 = vrot.lane.b32.xlu1 %v4368_v1, %s3288_s25  ;;  %v1770_v42 = vpop.permute.xlu0 %1769  ;;  %3194 = vmatmul.mubr.msk.bf16.gmra.mxu1 %vm1898_vm1, %v3077_v16 }
  0xed   : > { %3197 = vmatprep.mubr.msk.bf16.mxu1 %vm1898_vm1, %v3078_v55 }
  0xee   : > { %v1772_v25 = vpop.permute.xlu1 %1771  ;;  %1680 = vrot.lane.b32.xlu0 %v4321_v63, %s3287_s24  ;;  %v1214_v63 = vsel %vm3399_vm13, %v1209_v21, %v1213_v22  ;;  %v1401_v22 = vsel %vm3362_vm9, %v2991_v34, %v1400_v37  ;;  %v1990_v21 = vsel %vm1980_vm4, %v1957_v18, %v4389_v61  ;;  %v3079_v37 = vcombine.low %v3270_v11, %v3271_v44 }
  0xef   : > { %v4458_v9 = vcombine.low %v1214_v63, %v1224_v54  ;;  %v2023_v41 = vsel %vm2013_vm5, %v1990_v21, %v1735_v50  ;;  %v1959_v61 = vsel %vm1947_vm2, %v1916_v51, %v4377_v36  ;;  %v4481_v50 = vcombine.low %v1401_v22, %v1404_v5 }
  0xf0   : > { %1682 = vrot.lane.b32.xlu1 %v4400_v53, %s3287_s24  ;;  %v1805_v31 = vpop.permute.xlu0 %1804  ;;  %v2056_v39 = vsel %vm2046_vm0, %v2023_v41, %v1770_v42  ;;  %v1992_v57 = vsel %vm1980_vm4, %v1959_v61, %v4396_v7  ;;  %v1243_v42 = vrot.slane %v1242_v59, 4  ;;  %v1247_v36 = vrot.slane %v1245_v10, 5  ;;  %v3272_v7 = vld [vmem:[%s3369_s23 + $0x50] sm:$0xf]  ;;  %v3277_v41 = vld [vmem:[%s3369_s23 + $0x64] sm:$0xf] }
  0xf1   : > { %v2089_v27 = vsel %vm2079_vm7, %v2056_v39, %v1805_v31  ;;  %v2025_v12 = vsel %vm2013_vm5, %v1992_v57, %v4408_v4  ;;  %v3080_v40 = vcombine.low %v3272_v7, %v3273_v52  ;;  %v4503_v4 = vcombine.low %v4406_v60, %v4410_v20 }
  0xf2   : > { %v1807_v38 = vpop.permute.xlu1 %1806  ;;  %1715 = vrot.lane.b32.xlu0 %v4342_v2, %s3289_s26  ;;  %v2058_v19 = vsel %vm2046_vm0, %v2025_v12, %v1772_v25  ;;  %v1407_v25 = vrot.slane %v4410_v20, 5  ;;  %v1238_v63 = vsel %vm3399_vm13, %v1233_v62, %v4441_v29  ;;  %v1248_v54 = vsel %vm3399_vm13, %v1243_v42, %v1247_v36  ;;  %v4561_v42 = vld [vmem:[#allocation2 + $0xcc] sm:$0xf] }
  0xf3   : > { %v2091_v35 = vsel %vm2079_vm7, %v2058_v19, %v1807_v38  ;;  %v3274_v38 = vld [vmem:[%s3369_s23 + $0x58] sm:$0xf]  ;;  %v2992_v29 = vrot.slane %v4406_v60, 9  ;;  %v4528_v55 = vcombine.low %v1238_v63, %v1248_v54  ;;  %v1410_v5 = vrot.slane %v4443_v28, 5 }
  0xf4   : > { %1717 = vrot.lane.b32.xlu1 %v4430_v45, %s3289_s26  ;;  %v1840_v17 = vpop.permute.xlu0 %1839  ;;  %3198 = vmatmul.mubr.msk.bf16.gmra.mxu1 %vm1898_vm1, %v3079_v37  ;;  %v3081_v22 = vcombine.low %v3274_v38, %v3275_v48  ;;  %v1409_v18 = vrot.slane %v1407_v25, 4  ;;  %v1426_v60 = vshrl.u32 %v4520_v33, 16  ;;  %v1422_v59 = vshll.u32 %v4520_v33, 16  ;;  %v3276_v37 = vld [vmem:[%s3369_s23 + $0x60] sm:$0xf] }
  0xf5   : > { %v2122_v3 = vsel %vm2112_vm8, %v2089_v27, %v1840_v17  ;;  %3201 = vmatprep.mubr.msk.bf16.mxu1 %vm1898_vm1, %v3080_v40  ;;  %v1416_v17 = vshll.u32 %v4512_v47, 16  ;;  %v1408_v28 = vsel %vm3362_vm9, %v2992_v29, %v1407_v25  ;;  %v1415_v44 = vrot.slane %v1413_v0, 4 }
  0xf6   : > { %v1842_v56 = vpop.permute.xlu1 %1841  ;;  %1750 = vrot.lane.b32.xlu0 %v4368_v1, %s3293_s30  ;;  %v1411_v11 = vsel %vm3362_vm9, %v1409_v18, %v1410_v5  ;;  %v1424_v61 = vrot.slane %v1422_v59, 5  ;;  %v1428_v27 = vrot.slane %v1426_v60, 4  ;;  %v3083_v62 = vcombine.low %v3965_v13, %v3997_v24 }
  0xf7   : > { %v2124_v31 = vsel %vm2112_vm8, %v2091_v35, %v1842_v56  ;;  %v3082_v56 = vcombine.low %v3276_v37, %v3277_v41  ;;  %v1418_v39 = vrot.slane %v1416_v17, 5  ;;  %v1447_v7 = vshrl.u32 %v4561_v42, 16  ;;  %v856_v17 = vld [vmem:[#allocation2 + $0xd4] sm:$0x1] }
  0xf8   : > { %1752 = vrot.lane.b32.xlu1 %v4458_v9, %s3293_s30  ;;  %v1875_v1 = vpop.permute.xlu0 %1874  ;;  %v1429_v13 = vor.u32 %v1428_v27, %v1424_v61  ;;  %v1450_v52 = vshll.u32 %v4561_v42, 16  ;;  %v3084_v25 = vcombine.low %v4024_v32, %v4038_v8  ;;  %v3085_v38 = vcombine.low %v4067_v46, %v4082_v23 }
  0xf9   : > { %v2155_v34 = vsel %vm2145_vm10, %v2122_v3, %v1875_v1  ;;  %v853_v3 = vld [vmem:[#allocation2 + $0xc8] sm:$0x1]  ;;  %v4557_v1 = vcombine.low %v1408_v28, %v1411_v11  ;;  %v1419_v12 = vor.u32 %v1418_v39, %v1415_v44  ;;  %v2993_v32 = vrot.slane %v4512_v47, 9 }
  0xfa   : > { %v4489_v16 = vpop.permute.xlu1 %1588  ;;  %1785 = vrot.lane.b32.xlu0 %v4400_v53, %s3291_s28  ;;  %3155 = vmatprep.mubr.msk.bf16.mxu0 %vm2200_vm11, %v2155_v34  ;;  %v1432_v24 = vshll.u32 %v853_v3, 16  ;;  %v4564_v34 = vld [vmem:[#allocation2 + $0xd0] sm:$0xf]  ;;  %v1430_v63 = vrot.slane %v1429_v13, 4  ;;  %v1452_v29 = vrot.slane %v1450_v52, 5  ;;  %v1444_v5 = vrot.slane %v853_v3, 5 }
  0xfb   : > { %v1460_v40 = vshrl.u32 %v4564_v34, 16  ;;  %v1456_v35 = vshll.u32 %v4564_v34, 16 }
  0xfc   : > { %1787 = vrot.lane.b32.xlu1 %v4481_v50, %s3291_s28  ;;  %v1877_v53 = vpop.permute.xlu0 %1876  ;;  %3202 = vmatmul.mubr.msk.bf16.gmra.mxu1 %vm1898_vm1, %v3081_v22  ;;  %v1434_v54 = vrot.slane %v1432_v24, 5  ;;  %v3043_v22 = vcombine.low %v4512_v47, %v4520_v33  ;;  %v1919_v47 = vsel %vm1898_vm1, %v3772_v26, %v4489_v16  ;;  %v1466_v16 = vshll.u32 %v856_v17, 16 }
  0xfd   : > { %v2157_v20 = vsel %vm2145_vm10, %v2124_v31, %v1877_v53  ;;  %3205 = vmatprep.mubr.msk.bf16.mxu1 %vm1898_vm1, %v3082_v56  ;;  %v1420_v53 = vrot.slane %v1419_v12, 4  ;;  %v1458_v18 = vrot.slane %v1456_v35, 5 }
  0xfe   : > { %v4517_v43 = vpop.permute.xlu1 %1590  ;;  %1820 = vrot.lane.b32.xlu0 %v4430_v45, %s3290_s27  ;;  %3156 = vmatmul.mubr.msk.bf16.gmra.mxu0 %vm2200_vm11, %v2157_v20  ;;  %v1449_v20 = vrot.slane %v1447_v7, 4  ;;  %v1468_v52 = vrot.slane %v1466_v16, 5 }
  0xff   : > { %v1425_v23 = vsel %vm3399_vm13, %v1420_v53, %v1424_v61 }
 0x100   : > { %1822 = vrot.lane.b32.xlu1 %v4503_v4, %s3290_s27  ;;  %v4533_v21 = vpop.permute.xlu0 %1668  ;;  %v1453_v11 = vor.u32 %v1452_v29, %v1449_v20 }
 0x101   : > { %v1961_v60 = vsel %vm1947_vm2, %v1919_v47, %v4533_v21  ;;  %v4861_v21 = vld [vmem:[#allocation3_spill] sm:$0xff] }
 0x102   : > { %v4538_v10 = vpop.permute.xlu1 %1670  ;;  %1855 = vrot.lane.b32.xlu0 %v4458_v9, %s3294_s6  ;;  %v1922_v61 = vsel %vm1898_vm1, %v4861_v21, %v4517_v43  ;;  %v1454_v12 = vrot.slane %v1453_v11, 4 }
 0x104   : > { %1857 = vrot.lane.b32.xlu1 %v4528_v55, %s3294_s6  ;;  %v1704_v51 = vpop.permute.xlu0 %1703  ;;  %3206 = vmatmul.mubr.msk.bf16.gmra.mxu1 %vm1898_vm1, %v3083_v62  ;;  %v1963_v62 = vsel %vm1947_vm2, %v1922_v61, %v4538_v10 }
 0x105   : > { %3209 = vmatprep.mubr.msk.bf16.mxu1 %vm1898_vm1, %v3084_v25  ;;  %v1994_v44 = vsel %vm1980_vm4, %v1961_v60, %v1704_v51  ;;  %v1475_v51 = vrot.slane %v4564_v34, 5  ;;  %v2994_v25 = vrot.slane %v4561_v42, 9 }
 0x106   : > { %v4552_v57 = vpop.permute.xlu1 %1705  ;;  %1890 = vrot.lane.b32.xlu0 %v4481_v50, %s3292_s29 }
 0x107   : > { %v1996_v13 = vsel %vm1980_vm4, %v1963_v62, %v4552_v57  ;;  %v3046_v57 = vcombine.low %v4561_v42, %v4564_v34  ;;  %v1476_v20 = vsel %vm3362_vm9, %v2994_v25, %v1475_v51 }
 0x108   : > { %1604 = vrot.lane.b32.xlu1 %v4458_v9, %s3288_s25  ;;  %v1739_v36 = vpop.permute.xlu0 %1738  ;;  %v1441_v9 = vrot.slane %v4520_v33, 5  ;;  %v1462_v33 = vrot.slane %v1460_v40, 4 }
 0x109   : > { %v2027_v56 = vsel %vm2013_vm5, %v1994_v44, %v1739_v36 }
 0x10a   : > { %v1741_v19 = vpop.permute.xlu1 %1740  ;;  %1892 = vrot.lane.b32.xlu0 %v4557_v1, %s3292_s29  ;;  %v1443_v8 = vrot.slane %v1441_v9, 4  ;;  %v1442_v28 = vsel %vm3362_vm9, %v2993_v32, %v1441_v9  ;;  %v1463_v26 = vor.u32 %v1462_v33, %v1458_v18 }
 0x10c   : > { %1606 = vrot.lane.b32.xlu1 %v4528_v55, %s3288_s25  ;;  %v1774_v31 = vpop.permute.xlu0 %1773  ;;  %3210 = vmatmul.mubr.msk.bf16.gmra.mxu1 %vm1898_vm1, %v3085_v38  ;;  %v1445_v41 = vsel %vm3362_vm9, %v1443_v8, %v1444_v5  ;;  %v1464_v7 = vrot.slane %v1463_v26, 4 }
 0x10d   : > { %v2060_v27 = vsel %vm2046_vm0, %v2027_v56, %v1774_v31  ;;  %v3045_v36 = vcombine.low %v1442_v28, %v1445_v41 }
 0x10e   : > { %v1776_v48 = vpop.permute.xlu1 %1775  ;;  %1684 = vrot.lane.b32.xlu0 %v4481_v50, %s3287_s24  ;;  %v1435_v50 = vsel %vm3399_vm13, %v1430_v63, %v1434_v54  ;;  %v1459_v63 = vsel %vm3399_vm13, %v1454_v12, %v1458_v18  ;;  %v1478_v54 = vrot.slane %v856_v17, 5 }
 0x10f   : > { %v3044_v59 = vcombine.low %v1425_v23, %v1435_v50 }
 0x110   : > { %1686 = vrot.lane.b32.xlu1 %v4557_v1, %s3287_s24  ;;  %v1809_v46 = vpop.permute.xlu0 %1808  ;;  %s222_s24 = scalar_lea.vmem %s4843_s5, %s2976_s21 }
 0x111   : > { %v2093_v3 = vsel %vm2079_vm7, %v2060_v27, %v1809_v46 }
 0x112   : > { %v1811_v0 = vpop.permute.xlu1 %1810  ;;  %1719 = vrot.lane.b32.xlu0 %v4503_v4, %s3289_s26 }
 0x114   : > { %1721 = vrot.lane.b32.xlu1 %v3043_v22, %s3289_s26  ;;  %v1844_v37 = vpop.permute.xlu0 %1843 }
 0x115   : > { %v2126_v43 = vsel %vm2112_vm8, %v2093_v3, %v1844_v37 }
 0x116   : > { %v1846_v39 = vpop.permute.xlu1 %1845  ;;  %1754 = vrot.lane.b32.xlu0 %v4528_v55, %s3293_s30  ;;  %v2029_v55 = vsel %vm2013_vm5, %v1996_v13, %v1741_v19  ;;  %v1477_v19 = vrot.slane %v1475_v51, 4 }
 0x117   : > { %v2062_v10 = vsel %vm2046_vm0, %v2029_v55, %v1776_v48 }
 0x118   : > { %1756 = vrot.lane.b32.xlu1 %v3044_v59, %s3293_s30  ;;  %v1879_v24 = vpop.permute.xlu0 %1878  ;;  %v2095_v35 = vsel %vm2079_vm7, %v2062_v10, %v1811_v0  ;;  %v1479_v32 = vsel %vm3362_vm9, %v1477_v19, %v1478_v54 }
 0x119   : > { %v2159_v40 = vsel %vm2145_vm10, %v2126_v43, %v1879_v24  ;;  %v2128_v31 = vsel %vm2112_vm8, %v2095_v35, %v1846_v39  ;;  %v3048_v8 = vcombine.low %v1476_v20, %v1479_v32 }
 0x11a   : > { %v1593_v9 = vpop.permute.xlu1 %1592  ;;  %1789 = vrot.lane.b32.xlu0 %v4557_v1, %s3291_s28  ;;  %3159 = vmatprep.mubr.msk.bf16.mxu0 %vm2200_vm11, %v2159_v40  ;;  %v1469_v1 = vsel %vm3399_vm13, %v1464_v7, %v1468_v52 }
 0x11b   : > { %v3047_v42 = vcombine.low %v1459_v63, %v1469_v1  ;;  %v1925_v0 = vsel %vm1898_vm1, %v4862_v14, %v1593_v9 }
 0x11c   : > { %1791 = vrot.lane.b32.xlu1 %v3045_v36, %s3291_s28  ;;  %v1881_v53 = vpop.permute.xlu0 %1880 }
 0x11d   : > { %v2161_v48 = vsel %vm2145_vm10, %v2128_v31, %v1881_v53 }
 0x11e   : > { %v1595_v38 = vpop.permute.xlu1 %1594  ;;  %1824 = vrot.lane.b32.xlu0 %v3043_v22, %s3290_s27  ;;  %3160 = vmatmul.mubr.msk.bf16.gmra.mxu0 %vm2200_vm11, %v2161_v48 }
 0x11f   : > { %v1928_v11 = vsel %vm1898_vm1, %v3994_v30, %v1595_v38 }
 0x120   : > { %1826 = vrot.lane.b32.xlu1 %v3046_v57, %s3290_s27  ;;  %v1673_v34 = vpop.permute.xlu0 %1672 }
 0x121   : > { %v1965_v17 = vsel %vm1947_vm2, %v1925_v0, %v1673_v34 }
 0x122   : > { %v1675_v49 = vpop.permute.xlu1 %1674  ;;  %1859 = vrot.lane.b32.xlu0 %v3044_v59, %s3294_s6 }
 0x123   : > { %v1967_v37 = vsel %vm1947_vm2, %v1928_v11, %v1675_v49 }
 0x124   : > { %1861 = vrot.lane.b32.xlu1 %v3047_v42, %s3294_s6  ;;  %v1708_v29 = vpop.permute.xlu0 %1707 }
 0x125   : > { %v1998_v47 = vsel %vm1980_vm4, %v1965_v17, %v1708_v29 }
 0x126   : > { %v1710_v22 = vpop.permute.xlu1 %1709  ;;  %1894 = vrot.lane.b32.xlu0 %v3045_v36, %s3292_s29 }
 0x127   : > { %v2000_v26 = vsel %vm1980_vm4, %v1967_v37, %v1710_v22 }
 0x128   : > { %1896 = vrot.lane.b32.xlu1 %v3048_v8, %s3292_s29  ;;  %v1743_v18 = vpop.permute.xlu0 %1742 }
 0x129   : > { %v2031_v59 = vsel %vm2013_vm5, %v1998_v47, %v1743_v18 }
 0x12a   : > { %v1745_v46 = vpop.permute.xlu1 %1744 }
 0x12b   : > { %v2033_v39 = vsel %vm2013_vm5, %v2000_v26, %v1745_v46 }
 0x12c   : > { %v1778_v23 = vpop.permute.xlu0 %1777 }
 0x12d   : > { %v2064_v44 = vsel %vm2046_vm0, %v2031_v59, %v1778_v23 }
 0x12e   : > { %v1780_v50 = vpop.permute.xlu1 %1779 }
 0x12f   : > { %v2066_v27 = vsel %vm2046_vm0, %v2033_v39, %v1780_v50 }
 0x130   : > { %v1813_v5 = vpop.permute.xlu0 %1812 }
 0x131   : > { %v2097_v41 = vsel %vm2079_vm7, %v2064_v44, %v1813_v5 }
 0x132   : > { %v1815_v33 = vpop.permute.xlu1 %1814 }
 0x133   : > { %v2099_v30 = vsel %vm2079_vm7, %v2066_v27, %v1815_v33 }
 0x134   : > { %v1848_v60 = vpop.permute.xlu0 %1847 }
 0x135   : > { %v2130_v16 = vsel %vm2112_vm8, %v2097_v41, %v1848_v60 }
 0x136   : > { %v1850_v28 = vpop.permute.xlu1 %1849 }
 0x137   : > { %v2132_v51 = vsel %vm2112_vm8, %v2099_v30, %v1850_v28 }
 0x138   : > { %v1883_v56 = vpop.permute.xlu0 %1882 }
 0x139   : > { %v2163_v61 = vsel %vm2145_vm10, %v2130_v16, %v1883_v56 }
 0x13a   : > { %v1597_v21 = vpop.permute.xlu1 %1596  ;;  %3163 = vmatprep.mubr.msk.bf16.mxu0 %vm2200_vm11, %v2163_v61 }
 0x13b   : > { %v1931_v35 = vsel %vm1898_vm1, %v4111_v58, %v1597_v21 }
 0x13c   : > { %v1885_v62 = vpop.permute.xlu0 %1884 }
 0x13d   : > { %v2165_v36 = vsel %vm2145_vm10, %v2132_v51, %v1885_v62 }
 0x13e   : > { %v1599_v3 = vpop.permute.xlu1 %1598  ;;  %3164 = vmatmul.mubr.msk.bf16.gmra.mxu0 %vm2200_vm11, %v2165_v36 }
 0x13f   : > { %v1934_v63 = vsel %vm1898_vm1, %v4192_v15, %v1599_v3 }
 0x140   : > { %v1677_v12 = vpop.permute.xlu0 %1676 }
 0x141   : > { %v1969_v57 = vsel %vm1947_vm2, %v1931_v35, %v1677_v12 }
 0x142   : > { %v1679_v13 = vpop.permute.xlu1 %1678 }
 0x143   : > { %v1971_v54 = vsel %vm1947_vm2, %v1934_v63, %v1679_v13 }
 0x144   : > { %v1712_v43 = vpop.permute.xlu0 %1711 }
 0x145   : > { %v2002_v25 = vsel %vm1980_vm4, %v1969_v57, %v1712_v43 }
 0x146   : > { %v1714_v24 = vpop.permute.xlu1 %1713 }
 0x147   : > { %v2004_v48 = vsel %vm1980_vm4, %v1971_v54, %v1714_v24 }
 0x148   : > { %v1747_v7 = vpop.permute.xlu0 %1746 }
 0x149   : > { %v2035_v31 = vsel %vm2013_vm5, %v2002_v25, %v1747_v7 }
 0x14a   : > { %v1749_v52 = vpop.permute.xlu1 %1748 }
 0x14b   : > { %v2037_v34 = vsel %vm2013_vm5, %v2004_v48, %v1749_v52 }
 0x14c   : > { %v1782_v55 = vpop.permute.xlu0 %1781 }
 0x14d   : > { %v2068_v1 = vsel %vm2046_vm0, %v2035_v31, %v1782_v55 }
 0x14e   : > { %v1784_v9 = vpop.permute.xlu1 %1783 }
 0x14f   : > { %v2070_v49 = vsel %vm2046_vm0, %v2037_v34, %v1784_v9 }
 0x150   : > { %v1817_v40 = vpop.permute.xlu0 %1816 }
 0x151   : > { %v2101_v38 = vsel %vm2079_vm7, %v2068_v1, %v1817_v40 }
 0x152   : > { %v1819_v10 = vpop.permute.xlu1 %1818 }
 0x153   : > { %v2103_v15 = vsel %vm2079_vm7, %v2070_v49, %v1819_v10 }
 0x154   : > { %v1852_v19 = vpop.permute.xlu0 %1851 }
 0x155   : > { %v2134_v58 = vsel %vm2112_vm8, %v2101_v38, %v1852_v19 }
 0x156   : > { %v1854_v53 = vpop.permute.xlu1 %1853 }
 0x157   : > { %v2136_v8 = vsel %vm2112_vm8, %v2103_v15, %v1854_v53 }
 0x158   : > { %v1887_v42 = vpop.permute.xlu0 %1886 }
 0x159   : > { %v2167_v32 = vsel %vm2145_vm10, %v2134_v58, %v1887_v42 }
 0x15a   : > { %v1601_v20 = vpop.permute.xlu1 %1600  ;;  %3167 = vmatprep.mubr.msk.bf16.mxu0 %vm2200_vm11, %v2167_v32 }
 0x15b   : > { %v1937_v59 = vsel %vm1898_vm1, %v4270_v6, %v1601_v20 }
 0x15c   : > { %v1889_v29 = vpop.permute.xlu0 %1888 }
 0x15d   : > { %v2169_v18 = vsel %vm2145_vm10, %v2136_v8, %v1889_v29 }
 0x15e   : > { %v1603_v22 = vpop.permute.xlu1 %1602  ;;  %3168 = vmatmul.mubr.msk.bf16.gmra.mxu0 %vm2200_vm11, %v2169_v18 }
 0x15f   : > { %v1940_v26 = vsel %vm1898_vm1, %v4342_v2, %v1603_v22 }
 0x160   : > { %v1681_v46 = vpop.permute.xlu0 %1680 }
 0x161   : > { %v1973_v28 = vsel %vm1947_vm2, %v1937_v59, %v1681_v46 }
 0x162   : > { %v1683_v23 = vpop.permute.xlu1 %1682 }
 0x163   : > { %v1975_v56 = vsel %vm1947_vm2, %v1940_v26, %v1683_v23  ;;  %v4731_v23 = vld [vmem:[%s4842_s4] ss:$0 sm:$0xff] }
 0x164   : > { %v1716_v50 = vpop.permute.xlu0 %1715 }
 0x165   : > { %v2006_v11 = vsel %vm1980_vm4, %v1973_v28, %v1716_v50 }
 0x166   : > { %v1718_v5 = vpop.permute.xlu1 %1717 }
 0x167   : > { %v2008_v21 = vsel %vm1980_vm4, %v1975_v56, %v1718_v5 }
 0x168   : > { %v1751_v33 = vpop.permute.xlu0 %1750 }
 0x169   : > { %v2039_v37 = vsel %vm2013_vm5, %v2006_v11, %v1751_v33 }
 0x16a   : > { %v1753_v14 = vpop.permute.xlu1 %1752 }
 0x16b   : > { %v2041_v27 = vsel %vm2013_vm5, %v2008_v21, %v1753_v14 }
 0x16c   : > { %v1786_v0 = vpop.permute.xlu0 %1785 }
 0x16d   : > { %v2072_v16 = vsel %vm2046_vm0, %v2039_v37, %v1786_v0 }
 0x16e   : > { %v1788_v17 = vpop.permute.xlu1 %1787 }
 0x16f   : > { %v2074_v62 = vsel %vm2046_vm0, %v2041_v27, %v1788_v17 }
 0x170   : > { %v1821_v47 = vpop.permute.xlu0 %1820 }
 0x171   : > { %v2105_v39 = vsel %vm2079_vm7, %v2072_v16, %v1821_v47 }
 0x172   : > { %v1823_v60 = vpop.permute.xlu1 %1822 }
 0x173   : > { %v2107_v2 = vsel %vm2079_vm7, %v2074_v62, %v1823_v60 }
 0x174   : > { %v1856_v44 = vpop.permute.xlu0 %1855 }
 0x175   : > { %v2138_v6 = vsel %vm2112_vm8, %v2105_v39, %v1856_v44 }
 0x176   : > { %v1858_v41 = vpop.permute.xlu1 %1857 }
 0x177   : > { %v2140_v3 = vsel %vm2112_vm8, %v2107_v2, %v1858_v41 }
 0x178   : > { %v1891_v61 = vpop.permute.xlu0 %1890 }
 0x179   : > { %v2171_v51 = vsel %vm2145_vm10, %v2138_v6, %v1891_v61 }
 0x17a   : > { %v1605_v30 = vpop.permute.xlu1 %1604  ;;  %3171 = vmatprep.mubr.msk.bf16.mxu0 %vm2200_vm11, %v2171_v51 }
 0x17b   : > { %v1943_v25 = vsel %vm1898_vm1, %v4430_v45, %v1605_v30 }
 0x17c   : > { %v1893_v36 = vpop.permute.xlu0 %1892 }
 0x17d   : > { %v2173_v13 = vsel %vm2145_vm10, %v2140_v3, %v1893_v36 }
 0x17e   : > { %v1607_v12 = vpop.permute.xlu1 %1606  ;;  %3172 = vmatmul.mubr.msk.bf16.gmra.mxu0 %vm2200_vm11, %v2173_v13 }
 0x17f   : > { %v1946_v19 = vsel %vm1898_vm1, %v4503_v4, %v1607_v12 }
 0x180   : > { %v1685_v43 = vpop.permute.xlu0 %1684  ;;  %v3149_v21 = vpop.f32.mrf.mxu0 }
 0x181   : > { %v1977_v31 = vsel %vm1947_vm2, %v1943_v25, %v1685_v43 }
 0x182   : > { %v1687_v24 = vpop.permute.xlu1 %1686  ;;  %v2271_v62 = vpop.f32.mrf.mxu0 }
 0x183   : > { %v1979_v53 = vsel %vm1947_vm2, %v1946_v19, %v1687_v24 }
 0x184   : > { %v1720_v7 = vpop.permute.xlu0 %1719  ;;  %v3150_v43 = vpop.f32.mrf.mxu0 }
 0x185   : > { %v2010_v63 = vsel %vm1980_vm4, %v1977_v31, %v1720_v7 }
 0x186   : > { %v1722_v52 = vpop.permute.xlu1 %1721 }
 0x187   : > { %v2012_v54 = vsel %vm1980_vm4, %v1979_v53, %v1722_v52 }
 0x188   : > { %v1755_v55 = vpop.permute.xlu0 %1754 }
 0x189   : > { %v2043_v38 = vsel %vm2013_vm5, %v2010_v63, %v1755_v55 }
 0x18a   : > { %v1757_v9 = vpop.permute.xlu1 %1756 }
 0x18b   : > { %v2045_v58 = vsel %vm2013_vm5, %v2012_v54, %v1757_v9 }
 0x18c   : > { %v1790_v40 = vpop.permute.xlu0 %1789  ;;  %v3183_v22 = vpop.f32.mrf.mxu1 }
 0x18d   : > { %v2076_v42 = vsel %vm2046_vm0, %v2043_v38, %v1790_v40  ;;  %v2580_v0 = vadd.f32 %v3183_v22, %v4731_v23  ;;  %v2274_v40 = vpop.f32.mrf.mxu0  ;;  %v4752_v22 = vld [vmem:[%s4840_s2] ss:$0 sm:$0xff] }
 0x18e   : > { %v1792_v10 = vpop.permute.xlu1 %1791  ;;  %v2571_v18 = vpop.f32.mrf.mxu1 }
 0x18f   : > { %v2078_v45 = vsel %vm2046_vm0, %v2045_v58, %v1792_v10  ;;  %v2572_v5 = vadd.f32 %v4731_v23, %v2571_v18  ;;  %v2843_v59 = vmul.f32 %v2580_v0, %v2580_v0 }
 0x190   : > { %v1825_v35 = vpop.permute.xlu0 %1824  ;;  %v3184_v46 = vpop.f32.mrf.mxu1 }
 0x191   : > { %v2109_v4 = vsel %vm2079_vm7, %v2076_v42, %v1825_v35  ;;  %v2841_v17 = vmul.f32 %v2572_v5, %v2572_v5  ;;  %v2583_v28 = vadd.f32 %v3184_v46, %v4731_v23  ;;  %v2275_v46 = vadd.f32 %v4752_v22, %v2274_v40 }
 0x192   : > { %v1827_v57 = vpop.permute.xlu1 %1826  ;;  %v2574_v50 = vpop.f32.mrf.mxu1 }
 0x193   : > { %v2111_v34 = vsel %vm2079_vm7, %v2078_v45, %v1827_v57  ;;  %v2575_v33 = vadd.f32 %v4731_v23, %v2574_v50  ;;  %v2844_v41 = vmul.f32 %v2583_v28, %v2583_v28 }
 0x194   : > { %v1860_v1 = vpop.permute.xlu0 %1859 }
 0x195   : > { %v2142_v20 = vsel %vm2112_vm8, %v2109_v4, %v1860_v1  ;;  %v3187_v14 = vpop.f32.mrf.mxu1  ;;  %v2842_v47 = vmul.f32 %v2575_v33, %v2575_v33  ;;  %v2804_v11 = vadd.f32 %v2575_v33, %v2572_v5 }
 0x196   : > { %v1862_v48 = vpop.permute.xlu1 %1861  ;;  %v2596_v2 = vadd.f32 %v3187_v14, %v4731_v23 }
 0x197   : > { %v2144_v49 = vsel %vm2112_vm8, %v2111_v34, %v1862_v48  ;;  %v2587_v60 = vpop.f32.mrf.mxu1  ;;  %v2873_v44 = vadd.f32 %v2842_v47, %v2841_v17  ;;  %v2805_v26 = vadd.f32 %v2804_v11, %v2580_v0  ;;  %v2272_v17 = vadd.f32 %v4752_v22, %v2271_v62 }
 0x198   : > { %v1895_v32 = vpop.permute.xlu0 %1894  ;;  %v2588_v56 = vadd.f32 %v4731_v23, %v2587_v60  ;;  %v2847_v24 = vmul.f32 %v2596_v2, %v2596_v2  ;;  %v2736_v60 = vmul.f32 %v2275_v46, %v2275_v46 }
 0x199   : > { %v2175_v8 = vsel %vm2145_vm10, %v2142_v20, %v1895_v32  ;;  %v3188_v37 = vpop.f32.mrf.mxu1  ;;  %v2874_v16 = vadd.f32 %v2873_v44, %v2843_v59  ;;  %v2806_v6 = vadd.f32 %v2805_v26, %v2583_v28  ;;  %v2735_v26 = vmul.f32 %v2272_v17, %v2272_v17 }
 0x19a   : > { %v1897_v15 = vpop.permute.xlu1 %1896  ;;  %3175 = vmatprep.mubr.msk.bf16.mxu0 %vm2200_vm11, %v2175_v8  ;;  %v2845_v61 = vmul.f32 %v2588_v56, %v2588_v56  ;;  %v2599_v7 = vadd.f32 %v3188_v37, %v4731_v23 }
 0x19b   : > { %v2177_v29 = vsel %vm2145_vm10, %v2144_v49, %v1897_v15  ;;  %v2590_v39 = vpop.f32.mrf.mxu1  ;;  %v2875_v27 = vadd.f32 %v2874_v16, %v2844_v41  ;;  %v2807_v3 = vadd.f32 %v2806_v6, %v2588_v56  ;;  %v2280_v41 = vadd.f32 %v3149_v21, %v4752_v22 }
 0x19c   : > { %3176 = vmatmul.mubr.msk.bf16.gmra.mxu0 %vm2200_vm11, %v2177_v29  ;;  %v2591_v30 = vadd.f32 %v4731_v23, %v2590_v39  ;;  %v2848_v10 = vmul.f32 %v2599_v7, %v2599_v7  ;;  %v2698_v16 = vadd.f32 %v2275_v46, %v2272_v17  ;;  %v2767_v39 = vadd.f32 %v2736_v60, %v2735_v26 }
 0x19d   : > { %v3191_v51 = vpop.f32.mrf.mxu1  ;;  %v2876_v36 = vadd.f32 %v2875_v27, %v2845_v61  ;;  %v2737_v62 = vmul.f32 %v2280_v41, %v2280_v41 }
 0x19e   : > { %v2846_v12 = vmul.f32 %v2591_v30, %v2591_v30  ;;  %v2808_v52 = vadd.f32 %v2807_v3, %v2591_v30  ;;  %v4742_v31 = vpop.f32.mrf.mxu0  ;;  %v2612_v58 = vadd.f32 %v3191_v51, %v4731_v23  ;;  %v2699_v3 = vadd.f32 %v2698_v16, %v2280_v41 }
 0x19f   : > { %v2603_v13 = vpop.f32.mrf.mxu1 }
 0x1a0   : > { %v2877_v55 = vadd.f32 %v2876_v36, %v2846_v12  ;;  %v2809_v35 = vadd.f32 %v2808_v52, %v2596_v2  ;;  %v2604_v25 = vadd.f32 %v4731_v23, %v2603_v13  ;;  %v2287_v48 = vpop.f32.mrf.mxu0  ;;  %v2851_v32 = vmul.f32 %v2612_v58, %v2612_v58 }
 0x1a1   : > { %v3192_v9 = vpop.f32.mrf.mxu1  ;;  %v2283_v2 = vadd.f32 %v3150_v43, %v4752_v22  ;;  %v2288_v36 = vadd.f32 %v4752_v22, %v2287_v48  ;;  %v2768_v13 = vadd.f32 %v2767_v39, %v2737_v62  ;;  %v2296_v48 = vadd.f32 %v4742_v31, %v4752_v22 }
 0x1a2   : > { %v2878_v57 = vadd.f32 %v2877_v55, %v2847_v24  ;;  %v2810_v53 = vadd.f32 %v2809_v35, %v2599_v7  ;;  %v2849_v63 = vmul.f32 %v2604_v25, %v2604_v25  ;;  %v4746_v20 = vpop.f32.mrf.mxu0  ;;  %v2615_v49 = vadd.f32 %v3192_v9, %v4731_v23 }
 0x1a3   : > { %v2606_v19 = vpop.f32.mrf.mxu1  ;;  %v2738_v40 = vmul.f32 %v2283_v2, %v2283_v2  ;;  %v2739_v35 = vmul.f32 %v2288_v36, %v2288_v36 }
 0x1a4   : > { %v2879_v1 = vadd.f32 %v2878_v57, %v2848_v10  ;;  %v2607_v54 = vadd.f32 %v4731_v23, %v2606_v19  ;;  %v2811_v42 = vadd.f32 %v2810_v53, %v2604_v25  ;;  %v2290_v18 = vpop.f32.mrf.mxu0  ;;  %v2852_v5 = vmul.f32 %v2615_v49, %v2615_v49 }
 0x1a5   : > { %v2291_v21 = vadd.f32 %v4752_v22, %v2290_v18  ;;  %v2700_v10 = vadd.f32 %v2699_v3, %v2283_v2  ;;  %v2769_v19 = vadd.f32 %v2768_v13, %v2738_v40  ;;  %v2299_v18 = vadd.f32 %v4746_v20, %v4752_v22 }
 0x1a6   : > { %v2880_v45 = vadd.f32 %v2879_v1, %v2849_v63  ;;  %v2850_v4 = vmul.f32 %v2607_v54, %v2607_v54  ;;  %v2812_v15 = vadd.f32 %v2811_v42, %v2607_v54 }
 0x1a7   : > { %v2701_v43 = vadd.f32 %v2700_v10, %v2288_v36  ;;  %v2740_v53 = vmul.f32 %v2291_v21, %v2291_v21 }
 0x1a8   : > { %v2881_v8 = vadd.f32 %v2880_v45, %v2850_v4  ;;  %v2813_v33 = vadd.f32 %v2812_v15, %v2612_v58  ;;  %v2770_v58 = vadd.f32 %v2769_v19, %v2739_v35 }
 0x1a9   : > { %v2702_v42 = vadd.f32 %v2701_v43, %v2291_v21 }
 0x1aa   : > { %v2882_v14 = vadd.f32 %v2881_v8, %v2851_v32  ;;  %v2814_v28 = vadd.f32 %v2813_v33, %v2615_v49 }
 0x1ab   : > { %v2703_v46 = vadd.f32 %v2702_v42, %v2296_v48 }
 0x1ac   : > { %v3195_v38 = vpop.f32.mrf.mxu1  ;;  %v2883_v44 = vadd.f32 %v2882_v14, %v2852_v5 }
 0x1ad   : > { %v2628_v61 = vadd.f32 %v3195_v38, %v4731_v23 }
 0x1ae   : > { %v2619_v34 = vpop.f32.mrf.mxu1 }
 0x1af   : > { %v2620_v0 = vadd.f32 %v4731_v23, %v2619_v34  ;;  %v2855_v7 = vmul.f32 %v2628_v61, %v2628_v61  ;;  %v2771_v34 = vadd.f32 %v2770_v58, %v2740_v53 }
 0x1b0   : > { %v3196_v29 = vpop.f32.mrf.mxu1 }
 0x1b1   : > { %v2853_v11 = vmul.f32 %v2620_v0, %v2620_v0  ;;  %v2815_v27 = vadd.f32 %v2814_v28, %v2620_v0  ;;  %v2631_v52 = vadd.f32 %v3196_v29, %v4731_v23  ;;  %v2741_v29 = vmul.f32 %v2296_v48, %v2296_v48 }
 0x1b2   : > { %v2622_v47 = vpop.f32.mrf.mxu1 }
 0x1b3   : > { %v2623_v37 = vadd.f32 %v4731_v23, %v2622_v47  ;;  %v2884_v30 = vadd.f32 %v2883_v44, %v2853_v11  ;;  %v2856_v63 = vmul.f32 %v2631_v52, %v2631_v52  ;;  %v2772_v31 = vadd.f32 %v2771_v34, %v2741_v29 }
 0x1b4   : > { %v3199_v56 = vpop.f32.mrf.mxu1  ;;  %v2742_v11 = vmul.f32 %v2299_v18, %v2299_v18  ;;  %v2704_v44 = vadd.f32 %v2703_v46, %v2299_v18 }
 0x1b5   : > { %v2854_v51 = vmul.f32 %v2623_v37, %v2623_v37  ;;  %v2816_v55 = vadd.f32 %v2815_v27, %v2623_v37  ;;  %v2644_v17 = vadd.f32 %v3199_v56, %v4731_v23 }
 0x1b6   : > { %v2635_v12 = vpop.f32.mrf.mxu1  ;;  %v2773_v16 = vadd.f32 %v2772_v31, %v2742_v11 }
 0x1b7   : > { %v2885_v9 = vadd.f32 %v2884_v30, %v2854_v51  ;;  %v2817_v1 = vadd.f32 %v2816_v55, %v2628_v61  ;;  %v2636_v38 = vadd.f32 %v4731_v23, %v2635_v12  ;;  %v2859_v61 = vmul.f32 %v2644_v17, %v2644_v17 }
 0x1b8   : > { %v3200_v57 = vpop.f32.mrf.mxu1 }
 0x1b9   : > { %v2886_v54 = vadd.f32 %v2885_v9, %v2855_v7  ;;  %v2818_v32 = vadd.f32 %v2817_v1, %v2631_v52  ;;  %v2857_v49 = vmul.f32 %v2636_v38, %v2636_v38  ;;  %v2647_v27 = vadd.f32 %v3200_v57, %v4731_v23 }
 0x1ba   : > { %v2638_v45 = vpop.f32.mrf.mxu1 }
 0x1bb   : > { %v2887_v15 = vadd.f32 %v2886_v54, %v2856_v63  ;;  %v2639_v8 = vadd.f32 %v4731_v23, %v2638_v45  ;;  %v2819_v47 = vadd.f32 %v2818_v32, %v2636_v38  ;;  %v2860_v13 = vmul.f32 %v2647_v27, %v2647_v27 }
 0x1bc   : > { %v3203_v33 = vpop.f32.mrf.mxu1 }
 0x1bd   : > { %v2888_v60 = vadd.f32 %v2887_v15, %v2857_v49  ;;  %v2858_v28 = vmul.f32 %v2639_v8, %v2639_v8  ;;  %v2820_v30 = vadd.f32 %v2819_v47, %v2639_v8 }
 0x1be   : > { %v4755_v50 = vpop.f32.mrf.mxu0  ;;  %v2651_v41 = vpop.f32.mrf.mxu1 }
 0x1bf   : > { %v2889_v51 = vadd.f32 %v2888_v60, %v2858_v28  ;;  %v2312_v56 = vadd.f32 %v4755_v50, %v4752_v22  ;;  %v2821_v21 = vadd.f32 %v2820_v30, %v2644_v17  ;;  %v2652_v7 = vadd.f32 %v4731_v23, %v2651_v41 }
 0x1c0   : > { %v2303_v59 = vpop.f32.mrf.mxu0  ;;  %v3204_v3 = vpop.f32.mrf.mxu1 }
 0x1c1   : > { %v2304_v5 = vadd.f32 %v4752_v22, %v2303_v59  ;;  %v2745_v52 = vmul.f32 %v2312_v56, %v2312_v56  ;;  %v2822_v43 = vadd.f32 %v2821_v21, %v2647_v27  ;;  %v2861_v19 = vmul.f32 %v2652_v7, %v2652_v7 }
 0x1c2   : > { %v4761_v6 = vpop.f32.mrf.mxu0  ;;  %v2654_v10 = vpop.f32.mrf.mxu1 }
 0x1c3   : > { %v2743_v37 = vmul.f32 %v2304_v5, %v2304_v5  ;;  %v2705_v20 = vadd.f32 %v2704_v44, %v2304_v5  ;;  %v2315_v55 = vadd.f32 %v4761_v6, %v4752_v22  ;;  %v2655_v63 = vadd.f32 %v4731_v23, %v2654_v10 }
 0x1c4   : > { %v2306_v24 = vpop.f32.mrf.mxu0  ;;  %v3207_v48 = vpop.f32.mrf.mxu1  ;;  %v2823_v34 = vadd.f32 %v2822_v43, %v2652_v7 }
 0x1c5   : > { %v2307_v0 = vadd.f32 %v4752_v22, %v2306_v24  ;;  %v2774_v62 = vadd.f32 %v2773_v16, %v2743_v37  ;;  %v2890_v24 = vadd.f32 %v2889_v51, %v2859_v61  ;;  %v2746_v1 = vmul.f32 %v2315_v55, %v2315_v55 }
 0x1c6   : > { %v2862_v49 = vmul.f32 %v2655_v63, %v2655_v63  ;;  %v2667_v18 = vpop.f32.mrf.mxu1  ;;  %v2824_v17 = vadd.f32 %v2823_v34, %v2655_v63  ;;  %v2676_v10 = vadd.f32 %v3207_v48, %v4731_v23 }
 0x1c7   : > { %v2744_v39 = vmul.f32 %v2307_v0, %v2307_v0  ;;  %v2706_v2 = vadd.f32 %v2705_v20, %v2307_v0  ;;  %v2891_v53 = vadd.f32 %v2890_v24, %v2860_v13  ;;  %v2663_v0 = vadd.f32 %v3204_v3, %v4731_v23 }
 0x1c8   : > { %v3208_v44 = vpop.f32.mrf.mxu1 }
 0x1c9   : > { %v2775_v36 = vadd.f32 %v2774_v62, %v2744_v39  ;;  %v2707_v9 = vadd.f32 %v2706_v2, %v2312_v56  ;;  %v2892_v32 = vadd.f32 %v2891_v53, %v2861_v19  ;;  %v2668_v39 = vadd.f32 %v4731_v23, %v2667_v18 }
 0x1ca   : > { %v2670_v51 = vpop.f32.mrf.mxu1 }
 0x1cb   : > { %v2776_v35 = vadd.f32 %v2775_v36, %v2745_v52  ;;  %v2708_v54 = vadd.f32 %v2707_v9, %v2315_v55  ;;  %v2893_v47 = vadd.f32 %v2892_v32, %v2862_v49  ;;  %v2865_v36 = vmul.f32 %v2668_v39, %v2668_v39 }
 0x1cc   : > { %v2671_v13 = vadd.f32 %v4731_v23, %v2670_v51  ;;  %v3211_v52 = vpop.f32.mrf.mxu1 }
 0x1cd   : > { %v2777_v6 = vadd.f32 %v2776_v35, %v2746_v1 }
 0x1ce   : > { %v2866_v43 = vmul.f32 %v2671_v13, %v2671_v13 }
 0x1de   : > { %v4768_v25 = vpop.f32.mrf.mxu0 }
 0x1df   : > { %v2328_v15 = vadd.f32 %v4768_v25, %v4752_v22 }
 0x1e0   : > { %v2319_v4 = vpop.f32.mrf.mxu0 }
 0x1e1   : > { %v2320_v40 = vadd.f32 %v4752_v22, %v2319_v4  ;;  %v2660_v4 = vadd.f32 %v3203_v33, %v4731_v23  ;;  %v2749_v60 = vmul.f32 %v2328_v15, %v2328_v15 }
 0x1e2   : > { %v4777_v14 = vpop.f32.mrf.mxu0 }
 0x1e3   : > { %v2747_v38 = vmul.f32 %v2320_v40, %v2320_v40  ;;  %v2709_v58 = vadd.f32 %v2708_v54, %v2320_v40  ;;  %v2863_v31 = vmul.f32 %v2660_v4, %v2660_v4  ;;  %v2331_v33 = vadd.f32 %v4777_v14, %v4752_v22  ;;  %v2683_v54 = vpop.f32.mrf.mxu1 }
 0x1e4   : > { %v2322_v26 = vpop.f32.mrf.mxu0  ;;  %v2825_v20 = vadd.f32 %v2824_v17, %v2660_v4 }
 0x1e5   : > { %v2323_v50 = vadd.f32 %v4752_v22, %v2322_v26  ;;  %v2778_v8 = vadd.f32 %v2777_v6, %v2747_v38  ;;  %v2864_v26 = vmul.f32 %v2663_v0, %v2663_v0  ;;  %v2894_v16 = vadd.f32 %v2893_v47, %v2863_v31  ;;  %v3212_v49 = vpop.f32.mrf.mxu1 }
 0x1e6   : > { %v2750_v61 = vmul.f32 %v2331_v33, %v2331_v33  ;;  %v2826_v3 = vadd.f32 %v2825_v20, %v2663_v0  ;;  %v2867_v6 = vmul.f32 %v2676_v10, %v2676_v10  ;;  %v2684_v0 = vadd.f32 %v4731_v23, %v2683_v54 }
 0x1e7   : > { %v2748_v42 = vmul.f32 %v2323_v50, %v2323_v50  ;;  %v2710_v29 = vadd.f32 %v2709_v58, %v2323_v50 }
 0x1e8   : > { %v2827_v35 = vadd.f32 %v2826_v3, %v2668_v39 }
 0x1e9   : > { %v2779_v5 = vadd.f32 %v2778_v8, %v2748_v42  ;;  %v2711_v28 = vadd.f32 %v2710_v29, %v2328_v15  ;;  %v2679_v42 = vadd.f32 %v3208_v44, %v4731_v23 }
 0x1eb   : > { %v2780_v37 = vadd.f32 %v2779_v5, %v2749_v60  ;;  %v2712_v27 = vadd.f32 %v2711_v28, %v2331_v33  ;;  %v2868_v18 = vmul.f32 %v2679_v42, %v2679_v42  ;;  %v2686_v33 = vpop.f32.mrf.mxu1 }
 0x1ed   : > { %v2781_v14 = vadd.f32 %v2780_v37, %v2750_v61 }
 0x1fe   : > { %v4781_v59 = vpop.f32.mrf.mxu0 }
 0x1ff   : > { %v2344_v21 = vadd.f32 %v4781_v59, %v4752_v22 }
 0x200   : > { %v2335_v12 = vpop.f32.mrf.mxu0 }
 0x201   : > { %v2336_v11 = vadd.f32 %v4752_v22, %v2335_v12  ;;  %v2895_v12 = vadd.f32 %v2894_v16, %v2864_v26  ;;  %v2753_v19 = vmul.f32 %v2344_v21, %v2344_v21 }
 0x202   : > { %v4791_v57 = vpop.f32.mrf.mxu0 }
 0x203   : > { %v2751_v30 = vmul.f32 %v2336_v11, %v2336_v11  ;;  %v2713_v62 = vadd.f32 %v2712_v27, %v2336_v11  ;;  %v2896_v50 = vadd.f32 %v2895_v12, %v2865_v36  ;;  %v2347_v53 = vadd.f32 %v4791_v57, %v4752_v22 }
 0x204   : > { %v2338_v45 = vpop.f32.mrf.mxu0 }
 0x205   : > { %v2339_v41 = vadd.f32 %v4752_v22, %v2338_v45  ;;  %v2782_v24 = vadd.f32 %v2781_v14, %v2751_v30  ;;  %v2828_v45 = vadd.f32 %v2827_v35, %v2671_v13  ;;  %v2897_v48 = vadd.f32 %v2896_v50, %v2866_v43 }
 0x206   : > { %v2754_v4 = vmul.f32 %v2347_v53, %v2347_v53 }
 0x207   : > { %v2752_v2 = vmul.f32 %v2339_v41, %v2339_v41  ;;  %v2714_v7 = vadd.f32 %v2713_v62, %v2339_v41  ;;  %v2829_v5 = vadd.f32 %v2828_v45, %v2676_v10  ;;  %v2898_v31 = vadd.f32 %v2897_v48, %v2867_v6 }
 0x208   : > { %v2687_v41 = vadd.f32 %v4731_v23, %v2686_v33 }
 0x209   : > { %v2783_v9 = vadd.f32 %v2782_v24, %v2752_v2  ;;  %v2715_v63 = vadd.f32 %v2714_v7, %v2344_v21  ;;  %v2830_v44 = vadd.f32 %v2829_v5, %v2679_v42  ;;  %v2899_v37 = vadd.f32 %v2898_v31, %v2868_v18 }
 0x20a   : > { %v2870_v62 = vmul.f32 %v2687_v41, %v2687_v41 }
 0x20b   : > { %v2784_v59 = vadd.f32 %v2783_v9, %v2753_v19  ;;  %v2716_v34 = vadd.f32 %v2715_v63, %v2347_v53  ;;  %v2831_v30 = vadd.f32 %v2830_v44, %v2684_v0 }
 0x20d   : > { %v2785_v8 = vadd.f32 %v2784_v59, %v2754_v4  ;;  %v2832_v24 = vadd.f32 %v2831_v30, %v2687_v41 }
 0x21e   : > { %v4797_v46 = vpop.f32.mrf.mxu0 }
 0x21f   : > { %v2360_v17 = vadd.f32 %v4797_v46, %v4752_v22  ;;  %v2692_v46 = vadd.f32 %v3211_v52, %v4731_v23 }
 0x220   : > { %v2351_v25 = vpop.f32.mrf.mxu0 }
 0x221   : > { %v2352_v1 = vadd.f32 %v4752_v22, %v2351_v25  ;;  %v2869_v25 = vmul.f32 %v2684_v0, %v2684_v0  ;;  %v2757_v26 = vmul.f32 %v2360_v17, %v2360_v17  ;;  %v2871_v21 = vmul.f32 %v2692_v46, %v2692_v46 }
 0x222   : > { %v3170_v56 = vpop.f32.mrf.mxu0  ;;  %v2833_v50 = vadd.f32 %v2832_v24, %v2692_v46 }
 0x223   : > { %v2755_v32 = vmul.f32 %v2352_v1, %v2352_v1  ;;  %v2717_v15 = vadd.f32 %v2716_v34, %v2352_v1  ;;  %v2363_v20 = vadd.f32 %v3170_v56, %v4752_v22  ;;  %v2900_v51 = vadd.f32 %v2899_v37, %v2869_v25 }
 0x224   : > { %v2354_v55 = vpop.f32.mrf.mxu0  ;;  %v2695_v56 = vadd.f32 %v3212_v49, %v4731_v23 }
 0x225   : > { %v2355_v38 = vadd.f32 %v4752_v22, %v2354_v55  ;;  %v2786_v47 = vadd.f32 %v2785_v8, %v2755_v32  ;;  %v2758_v14 = vmul.f32 %v2363_v20, %v2363_v20  ;;  %v2901_v7 = vadd.f32 %v2900_v51, %v2870_v62 }
 0x226   : > { %v2872_v52 = vmul.f32 %v2695_v56, %v2695_v56  ;;  %v2834_v23 = vadd.f32 %v2833_v50, %v2695_v56 }
 0x227   : > { %v2756_v57 = vmul.f32 %v2355_v38, %v2355_v38  ;;  %v2718_v60 = vadd.f32 %v2717_v15, %v2355_v38  ;;  %v2902_v43 = vadd.f32 %v2901_v7, %v2871_v21 }
 0x228   : > { %v2835_v15 = vrot.slane %v2834_v23, 4 }
 0x229   : > { %v2787_v28 = vadd.f32 %v2786_v47, %v2756_v57  ;;  %v2719_v16 = vadd.f32 %v2718_v60, %v2360_v17 }
 0x22a   : > { %v2836_v47 = vadd.f32 %v2835_v15, %v2834_v23 }
 0x22b   : > { %v2788_v61 = vadd.f32 %v2787_v28, %v2757_v26  ;;  %v2720_v2 = vadd.f32 %v2719_v16, %v2363_v20 }
 0x22c   : > { %v2837_v37 = vrot.slane %v2836_v47, 2 }
 0x22d   : > { %v2789_v12 = vadd.f32 %v2788_v61, %v2758_v14 }
 0x23e   : > { %v3173_v40 = vpop.f32.mrf.mxu0 }
 0x23f   : > { %v2376_v55 = vadd.f32 %v3173_v40, %v4752_v22 }
 0x240   : > { %v2367_v58 = vpop.f32.mrf.mxu0 }
 0x241   : > { %v2368_v39 = vadd.f32 %v4752_v22, %v2367_v58  ;;  %v2761_v53 = vmul.f32 %v2376_v55, %v2376_v55  ;;  %v2903_v58 = vadd.f32 %v2902_v43, %v2872_v52 }
 0x242   : > { %v3174_v29 = vpop.f32.mrf.mxu0 }
 0x243   : > { %v2759_v3 = vmul.f32 %v2368_v39, %v2368_v39  ;;  %v2721_v36 = vadd.f32 %v2720_v2, %v2368_v39  ;;  %v2379_v63 = vadd.f32 %v3174_v29, %v4752_v22  ;;  %v2904_v8 = vrot.slane %v2903_v58, 4 }
 0x244   : > { %v2370_v11 = vpop.f32.mrf.mxu0 }
 0x245   : > { %v2371_v27 = vadd.f32 %v4752_v22, %v2370_v11  ;;  %v2790_v9 = vadd.f32 %v2789_v12, %v2759_v3  ;;  %v2762_v42 = vmul.f32 %v2379_v63, %v2379_v63  ;;  %v2905_v60 = vadd.f32 %v2904_v8, %v2903_v58 }
 0x247   : > { %v2760_v13 = vmul.f32 %v2371_v27, %v2371_v27  ;;  %v2722_v10 = vadd.f32 %v2721_v36, %v2371_v27  ;;  %v2906_v41 = vrot.slane %v2905_v60, 2 }
 0x249   : > { %v2791_v35 = vadd.f32 %v2790_v9, %v2760_v13  ;;  %v2723_v1 = vadd.f32 %v2722_v10, %v2376_v55  ;;  %v2907_v61 = vadd.f32 %v2906_v41, %v2905_v60 }
 0x24b   : > { %v2792_v59 = vadd.f32 %v2791_v35, %v2761_v53  ;;  %v2724_v40 = vadd.f32 %v2723_v1, %v2379_v63  ;;  %v2908_v14 = vrot.slane %v2907_v61, 1 }
 0x24d   : > { %v2793_v32 = vadd.f32 %v2792_v59, %v2762_v42  ;;  %v2909_v13 = vadd.f32 %v2908_v14, %v2907_v61 }
 0x25c   : > { %v3177_v19 = vpop.f32.mrf.mxu0 }
 0x25d   : > { %v2392_v4 = vadd.f32 %v3177_v19, %v4752_v22 }
 0x25e   : > { %v2383_v54 = vpop.f32.mrf.mxu0 }
 0x25f   : > { %v2384_v38 = vadd.f32 %v4752_v22, %v2383_v54  ;;  %v2765_v31 = vmul.f32 %v2392_v4, %v2392_v4 }
 0x260   : > { %v3178_v6 = vpop.f32.mrf.mxu0 }
 0x261   : > { %v2763_v45 = vmul.f32 %v2384_v38, %v2384_v38  ;;  %v2725_v34 = vadd.f32 %v2724_v40, %v2384_v38  ;;  %v2395_v29 = vadd.f32 %v3178_v6, %v4752_v22 }
 0x262   : > { %v2386_v48 = vpop.f32.mrf.mxu0 }
 0x263   : > { %v2387_v49 = vadd.f32 %v4752_v22, %v2386_v48  ;;  %v2794_v57 = vadd.f32 %v2793_v32, %v2763_v45  ;;  %v2766_v33 = vmul.f32 %v2395_v29, %v2395_v29  ;;  %v2838_v22 = vadd.f32 %v2837_v37, %v2836_v47 }
 0x265   : > { %v2726_v18 = vadd.f32 %v2725_v34, %v2387_v49  ;;  %v2764_v5 = vmul.f32 %v2387_v49, %v2387_v49  ;;  %v2839_v62 = vrot.slane %v2838_v22, 1 }
 0x267   : > { %v2727_v0 = vadd.f32 %v2726_v18, %v2392_v4  ;;  %v2795_v17 = vadd.f32 %v2794_v57, %v2764_v5  ;;  %v2840_v12 = vadd.f32 %v2839_v62, %v2838_v22 }
 0x269   : > { %v2728_v28 = vadd.f32 %v2727_v0, %v2395_v29  ;;  %v2796_v11 = vadd.f32 %v2795_v17, %v2765_v31 }
 0x26b   : > { %v2729_v44 = vrot.slane %v2728_v28, 4  ;;  %v2797_v25 = vadd.f32 %v2796_v11, %v2766_v33 }
 0x26d   : > { %v2730_v26 = vadd.f32 %v2729_v44, %v2728_v28  ;;  %v2798_v20 = vrot.slane %v2797_v25, 4 }
 0x26f   : > { %v2731_v16 = vrot.slane %v2730_v26, 2  ;;  %v2799_v39 = vadd.f32 %v2798_v20, %v2797_v25 }
 0x271   : > { %v2732_v27 = vadd.f32 %v2731_v16, %v2730_v26  ;;  %v2800_v46 = vrot.slane %v2799_v39, 2 }
 0x273   : > { %v2733_v30 = vrot.slane %v2732_v27, 1  ;;  %v2801_v51 = vadd.f32 %v2800_v46, %v2799_v39 }
 0x275   : > { %v2802_v2 = vrot.slane %v2801_v51, 1  ;;  %v2734_v3 = vadd.f32 %v2733_v30, %v2732_v27 }
 0x277   : > { %v2803_v36 = vadd.f32 %v2802_v2, %v2801_v51 }
 0x279   : > { %v2911_v21 = vsel %vm2910_vm3, %v2734_v3, %v2803_v36 }
 0x27a   : > { %v2912_v56 = vsel %vm2233_vm15, %v2911_v21, %v2840_v12 }
 0x27b   : > { %v2914_v24 = vsel %vm1297_vm6, %v2912_v56, %v2909_v13 }
 0x27c   : > { %2915 = vst [vmem:[%s222_s24] sm:$0xf] %v2914_v24 }
 0x27d PF: > { %s15_s18 = sadd.s32 1, %s3284_s18  }
 0x27e   : > { %p12_p4 = scmp.ge.s32.totalorder %s15_s18, 4  }
 0x280   :  { %14 = sbr.rel (!%p12_p4) target bundleno = 1 (0x1), region = 72 }

// kernel: resblock_forward.3
= control target key start
LH: loop header
LB: loop body
LE: loop exit
PB: predicated region body
PF: predicated region fallthrough
CT: control target
= control target key end

     0   :  { %s8839_s21 = smov 0   ;;  %s12149_s0 = inlined_call_operand.vmem [shape: f32[4,128], index: 0, kind: input, shape index: {}]   ;;  %s12150_s1 = inlined_call_operand.vmem [shape: bf16[2,16,16,4], index: 1, kind: input, shape index: {}]   ;;  %s12151_s2 = inlined_call_operand.vmem [shape: bf16[36,128], index: 2, kind: input, shape index: {}]   ;;  %s12152_s3 = inlined_call_operand.vmem [shape: f32[1,128], index: 3, kind: input, shape index: {}]   ;;  %s12153_s4 = inlined_call_operand.vmem [shape: f32[1,128], index: 4, kind: input, shape index: {}]   ;;  %s12154_s5 = inlined_call_operand.vmem [shape: f32[1,128], index: 5, kind: input, shape index: {}]   ;;  %s12155_s6 = inlined_call_operand.vmem [shape: bf16[1152,128], index: 6, kind: input, shape index: {}]   ;;  %s12156_s7 = inlined_call_operand.vmem [shape: f32[1,128], index: 7, kind: input, shape index: {}]   ;;  %s12157_s8 = inlined_call_operand.vmem [shape: bf16[4,128], index: 8, kind: input, shape index: {}]   ;;  %s12158_s9 = inlined_call_operand.vmem [shape: f32[1,128], index: 9, kind: input, shape index: {}]   ;;  %s12159_s10 = inlined_call_operand.vmem [shape: f32[1,128], index: 10, kind: input, shape index: {}]   ;;  %s12160_s11 = inlined_call_operand.vmem [shape: f32[1,128], index: 11, kind: input, shape index: {}]   ;;  %s12161_s12 = inlined_call_operand.vmem [shape: bf16[2,256,128], index: 12, kind: output, shape index: {}]  }
   0x1 LB: > { %s7311_s22 = sadd.s32 4294967295, %s8763_s21   ;;  %p7315_p0 = scmp.ge.s32.totalorder %s8763_s21, 1  ;;  %s8763_s21 = sphi %s8839_s21, %s22_s21  }
   0x2   : > { %p362_p1 = scmp.lt.s32.totalorder %s8763_s21, 3 }
   0x4   : > { %p363_p2 = pnand %p7315_p0, %p362_p1 }
   0x6   : > { %366 = sbr.rel (%p363_p2) target bundleno = 1125 (0x465), region = 68 }
   0xb   : > { %vm447_vm0 = vcmask 27648   ;;  %vm450_vm1 = vcmask 24576   ;;  %vm458_vm2 = vsmask.f32 256  ;;  %v8765_v0 = vmov 0   ;;  %p404_p3 = scmp.lt.s32.totalorder %s7311_s22, 1 }
   0xc   : > { %448 = vst.msk [vmem:[#allocation2] sm:$0xf] %vm447_vm0, %v8765_v0  ;;  %449 = vst.msk [vmem:[#allocation2 + $0x4] sm:$0xf] %vm447_vm0, %v8765_v0  ;;  %vm508_vm4 = vsmask.f32 7938 }
   0xd   : > { %451 = vst.msk [vmem:[#allocation2 + $0x8] sm:$0x1] %vm450_vm1, %v8765_v0  ;;  %vm8852_vm3 = vmand %vm450_vm1, %vm458_vm2  ;;  %vm1488_vm6 = vcmask 1042432   ;;  %vm1489_vm7 = vcmask 1046532   ;;  %v463_v3 = vld [vmem:[#allocation2 + $0x18] sm:$0x1] }
   0xe   : > { %453 = vst.msk [vmem:[#allocation2 + $0xcc] sm:$0xf] %vm447_vm0, %v8765_v0  ;;  %454 = vst.msk [vmem:[#allocation2 + $0xd0] sm:$0xf] %vm447_vm0, %v8765_v0  ;;  %s12288_s22 = smov (!%p404_p3, %s7311_s22), 1  ;;  %v464_v4 = vsel %vm8852_vm3, 0, %v463_v3 }
   0xf   : > { %455 = vst.msk [vmem:[#allocation2 + $0xd4] sm:$0x1] %vm450_vm1, %v8765_v0  ;;  %2773 = vst [vmem:[#allocation3] sm:$0xf] %v8765_v0  ;;  %v460_v5 = vld [vmem:[#allocation2 + $0xc] sm:$0x1] }
  0x10   : > { %2774 = vst [vmem:[#allocation3 + $0x4] sm:$0xf] %v8765_v0  ;;  %2775 = vst [vmem:[#allocation3 + $0x8] sm:$0x1] %v8765_v0  ;;  %v466_v6 = vld [vmem:[#allocation2 + $0x24] sm:$0x1] }
  0x11   : > { %2777 = vst [vmem:[#allocation3 + $0xcc] sm:$0xf] %v8765_v0  ;;  %2778 = vst [vmem:[#allocation3 + $0xd0] sm:$0xf] %v8765_v0  ;;  %vm1053_vm8 = vsmask.f32 3328 }
  0x12   : > { %2779 = vst [vmem:[#allocation3 + $0xd4] sm:$0x1] %v8765_v0  ;;  %vm8861_vm5 = vmand %vm450_vm1, %vm508_vm4  ;;  %v461_v7 = vsel %vm8852_vm3, 0, %v460_v5  ;;  %v467_v8 = vsel %vm8852_vm3, 0, %v466_v6  ;;  %v510_v9 = vld [vmem:[#allocation2 + $0x14] sm:$0x1] }
  0x13   : > { %465 = vst [vmem:[#allocation2 + $0x18] sm:$0x1] %v464_v4  ;;  %s7664_s23 = sshll.u32 %s12288_s22, 7  ;;  %462 = vst [vmem:[#allocation2 + $0xc] sm:$0x1] %v461_v7  ;;  %v511_v10 = vsel %vm8861_vm5, 0, %v510_v9 }
  0x14   : > { %468 = vst [vmem:[#allocation2 + $0x24] sm:$0x1] %v467_v8  ;;  %v513_v11 = vld [vmem:[#allocation2 + $0x20] sm:$0x1]  ;;  %v516_v12 = vld [vmem:[#allocation2 + $0x2c] sm:$0x1]  ;;  %vm8878_vm9 = vmor %vm1488_vm6, %vm1489_vm7  ;;  %s8887_s26 = scalar_lea.vmem %s12150_s1, %s7664_s23  ;;  %s11951_s19 = scalar_lea.vmem %s12161_s12, %s7664_s23 }
  0x15   : > { %vm1054_vm10 = vsmask.f32 7440  ;;  %vm558_vm11 = vsmask.f32 4368  ;;  %512 = vst [vmem:[#allocation2 + $0x14] sm:$0x1] %v511_v10  ;;  %vm8913_vm12 = vmand %vm447_vm0, %vm508_vm4 }
  0x16   : > { %v514_v14 = vsel %vm8861_vm5, 0, %v513_v11  ;;  %v517_v15 = vsel %vm8861_vm5, 0, %v516_v12  ;;  %v8893_v16 = vld [vmem:[#allocation2] sm:$0xf]  ;;  %v8895_v17 = vld [vmem:[#allocation2 + $0x4] sm:$0xf]  ;;  %vm8919_vm13 = vmor %vm1053_vm8, %vm1054_vm10 }
  0x17   : > { %v996_v18 = vld [vmem:[#allocation2 + $0x8] sm:$0x1]  ;;  %515 = vst [vmem:[#allocation2 + $0x20] sm:$0x1] %v514_v14  ;;  %518 = vst [vmem:[#allocation2 + $0x2c] sm:$0x1] %v517_v15 }
  0x18   : > { %v7320_v19 = vrot.slane %v8893_v16, 9  ;;  %v1493_v20 = vrot.slane %v8895_v17, 5  ;;  %v1496_v21 = vrot.slane %v996_v18, 5  ;;  %v1057_v22 = vshrl.u32 %v8893_v16, 16  ;;  %v417_v23 = vld [vmem:[%s8887_s26 + $0x8] sm:$0xf]  ;;  %vm8926_vm14 = vmor %vm458_vm2, %vm558_vm11 }
  0x19   : > { %v1060_v24 = vshll.u32 %v8893_v16, 16  ;;  %v1066_v25 = vshll.u32 %v8895_v17, 16  ;;  %v1070_v26 = vshrl.u32 %v8895_v17, 16  ;;  %v1076_v27 = vshll.u32 %v996_v18, 16  ;;  %v418_v28 = vld [vmem:[%s8887_s26 + $0xc] sm:$0xf] }
  0x1a   : > { %v1494_v29 = vsel %vm8878_vm9, %v7320_v19, %v1493_v20  ;;  %v1495_v30 = vrot.slane %v1493_v20, 4  ;;  %v1059_v31 = vrot.slane %v1057_v22, 4  ;;  %v578_v32 = vshrl.u32 %v417_v23, 16  ;;  %v415_v37 = vld [vmem:[%s8887_s26] sm:$0xf]  ;;  %s8766_s27 = smov 8  }
  0x1b   : > { %v1062_v33 = vrot.slane %v1060_v24, 5  ;;  %v1068_v34 = vrot.slane %v1066_v25, 5  ;;  %v1072_v35 = vrot.slane %v1070_v26, 4  ;;  %v1078_v36 = vrot.slane %v1076_v27, 5  ;;  %v416_v42 = vld [vmem:[%s8887_s26 + $0x4] sm:$0xf] }
  0x1c   : > { %v1497_v38 = vsel %vm8878_vm9, %v1495_v30, %v1496_v21  ;;  %v580_v39 = vrot.slane %v578_v32, 7  ;;  %v581_v40 = vshll.u32 %v417_v23, 16  ;;  %v586_v41 = vshrl.u32 %v418_v28, 16  ;;  %v889_v48 = vld [vmem:[#allocation2 + $0x18] sm:$0xf]  ;;  %s8767_s28 = smov 4  }
  0x1d   : > { %v7370_v44 = vcombine.low %v1494_v29, %v1497_v38  ;;  %v1063_v45 = vor.u32 %v1062_v33, %v1059_v31  ;;  %v1073_v46 = vor.u32 %v1072_v35, %v1068_v34  ;;  %v589_v47 = vshll.u32 %v418_v28, 16  ;;  %v882_v63 = vld [vmem:[#allocation2 + $0xc] sm:$0xf]  ;;  %v419_v0 = vld [vmem:[%s8887_s26 + $0x10] sm:$0xf]  ;;  %s8768_s29 = smov 12  }
  0x1e   : > { %v583_v50 = vor.u32 %v581_v40, %v580_v39  ;;  %v584_v51 = vrot.slane %v580_v39, 4  ;;  %v588_v52 = vrot.slane %v586_v41, 7  ;;  %v561_v53 = vshrl.u32 %v415_v37, 16  ;;  %v469_v3 = vld [vmem:[#allocation2 + $0x30] sm:$0x1]  ;;  %s8769_s30 = smov 24  }
  0x1f   : > { %1847 = vrot.lane.b32.xlu1 %v7370_v44, %s8766_s27  ;;  %v1064_v54 = vrot.slane %v1063_v45, 4  ;;  %v1074_v55 = vrot.slane %v1073_v46, 4  ;;  %v564_v57 = vshll.u32 %v415_v37, 16  ;;  %v569_v58 = vshrl.u32 %v416_v42, 16  ;;  %v420_v8 = vld [vmem:[%s8887_s26 + $0x14] sm:$0xf] }
  0x20   : > { %v591_v59 = vor.u32 %v589_v47, %v588_v52  ;;  %v593_v60 = vrot.slane %v588_v52, 4  ;;  %v890_v61 = vsel %vm8913_vm12, %v583_v50, %v889_v48  ;;  %v563_v62 = vrot.slane %v561_v53, 7  ;;  %v893_v9 = vld [vmem:[#allocation2 + $0x20] sm:$0x1]  ;;  %v886_v15 = vld [vmem:[#allocation2 + $0x14] sm:$0x1] }
  0x21   : > { %v1069_v4 = vsel %vm8919_vm13, %v1064_v54, %v1068_v34  ;;  %v1079_v5 = vsel %vm8919_vm13, %v1074_v55, %v1078_v36  ;;  %891 = vst [vmem:[#allocation2 + $0x18] sm:$0xf] %v890_v61  ;;  %v571_v6 = vrot.slane %v569_v58, 7  ;;  %v572_v7 = vshll.u32 %v416_v42, 16  ;;  %v8941_v18 = vld [vmem:[%s8887_s26 + $0x18] sm:$0xf] }
  0x22   : > { %v7354_v10 = vcombine.low %v1069_v4, %v1079_v5  ;;  %v592_v11 = vsel %vm8926_vm14, %v584_v51, %v591_v59  ;;  %v566_v12 = vor.u32 %v564_v57, %v563_v62  ;;  %v567_v14 = vrot.slane %v563_v62, 4  ;;  %v422_v23 = vld [vmem:[%s8887_s26 + $0x1c] sm:$0xf]  ;;  %v519_v28 = vld [vmem:[#allocation2 + $0x38] sm:$0x1]  ;;  %s8770_s13 = smov 20  }
  0x23   : > { %892 = vst.msk [vmem:[#allocation2 + $0x1c] sm:$0xf] %vm447_vm0, %v592_v11  ;;  %v574_v19 = vor.u32 %v572_v7, %v571_v6  ;;  %v576_v20 = vrot.slane %v571_v6, 4  ;;  %v595_v21 = vshrl.u32 %v419_v0, 16  ;;  %v598_v22 = vshll.u32 %v419_v0, 16  ;;  %s8771_s14 = smov 32  }
  0x24   : > { %1767 = vrot.lane.b32.xlu0 %v7354_v10, %s8767_s28  ;;  %v883_v24 = vsel %vm8913_vm12, %v566_v12, %v882_v63  ;;  %v603_v25 = vshrl.u32 %v420_v8, 16  ;;  %v606_v26 = vshll.u32 %v420_v8, 16  ;;  %v894_v27 = vsel %vm8852_vm3, %v593_v60, %v893_v9  ;;  %v896_v34 = vld [vmem:[#allocation2 + $0x24] sm:$0xf]  ;;  %v900_v39 = vld [vmem:[#allocation2 + $0x2c] sm:$0x1] }
  0x25   : > { %v575_v29 = vsel %vm8926_vm14, %v567_v14, %v574_v19  ;;  %884 = vst [vmem:[#allocation2 + $0xc] sm:$0xf] %v883_v24  ;;  %v597_v30 = vrot.slane %v595_v21, 7  ;;  %v887_v31 = vsel %vm8852_vm3, %v576_v20, %v886_v15  ;;  %895 = vst [vmem:[#allocation2 + $0x20] sm:$0x1] %v894_v27  ;;  %v470_v32 = vsel %vm8852_vm3, 0, %v469_v3 }
  0x26   : > { %885 = vst.msk [vmem:[#allocation2 + $0x10] sm:$0xf] %vm447_vm0, %v575_v29  ;;  %v605_v33 = vrot.slane %v603_v25, 7  ;;  %888 = vst [vmem:[#allocation2 + $0x14] sm:$0x1] %v887_v31  ;;  %v612_v35 = vshrl.u32 %v8941_v18, 16  ;;  %v7338_v4 = vcombine.low %v8893_v16, %v8895_v17 }
  0x27   : > { %471 = vst [vmem:[#allocation2 + $0x30] sm:$0x1] %v470_v32  ;;  %v620_v36 = vshrl.u32 %v422_v23, 16  ;;  %v600_v37 = vor.u32 %v598_v22, %v597_v30  ;;  %v601_v38 = vrot.slane %v597_v30, 4  ;;  %v615_v40 = vshll.u32 %v8941_v18, 16  ;;  %s8772_s15 = smov 16  }
  0x28   : > { %v520_v41 = vsel %vm8861_vm5, 0, %v519_v28  ;;  %v1000_v42 = vld [vmem:[#allocation2 + $0x18] sm:$0xf]  ;;  %v608_v44 = vor.u32 %v606_v26, %v605_v33  ;;  %v610_v45 = vrot.slane %v605_v33, 4  ;;  %v8961_v46 = vrot.slane %v612_v35, 7  ;;  %s8773_s16 = smov 28  }
  0x29   : > { %v623_v47 = vshll.u32 %v422_v23, 16  ;;  %521 = vst [vmem:[#allocation2 + $0x38] sm:$0x1] %v520_v41  ;;  %v1105_v48 = vshrl.u32 %v1000_v42, 16  ;;  %v1108_v50 = vshll.u32 %v1000_v42, 16  ;;  %v897_v51 = vsel %vm8913_vm12, %v600_v37, %v896_v34 }
  0x2a   : > { %v8965_v52 = vrot.slane %v620_v36, 7  ;;  %v1001_v53 = vld [vmem:[#allocation2 + $0x1c] sm:$0xf]  ;;  %v609_v54 = vsel %vm8926_vm14, %v601_v38, %v608_v44  ;;  %898 = vst [vmem:[#allocation2 + $0x24] sm:$0xf] %v897_v51  ;;  %v7322_v55 = vrot.slane %v1000_v42, 9  ;;  %v901_v57 = vsel %vm8852_vm3, %v610_v45, %v900_v39 }
  0x2b   : > { %v1118_v58 = vshrl.u32 %v1001_v53, 16  ;;  %v8971_v59 = vcombine.low %v1000_v42, %v1001_v53  ;;  %899 = vst.msk [vmem:[#allocation2 + $0x28] sm:$0xf] %vm447_vm0, %v609_v54  ;;  %v1507_v60 = vrot.slane %v1001_v53, 5  ;;  %902 = vst [vmem:[#allocation2 + $0x2c] sm:$0x1] %v901_v57  ;;  %v8983_v8 = vor.u32 %v615_v40, %v8961_v46 }
  0x2c   : > { %v1107_v61 = vrot.slane %v1105_v48, 4  ;;  %v997_v62 = vld [vmem:[#allocation2 + $0xc] sm:$0xf]  ;;  %v1002_v63 = vld [vmem:[#allocation2 + $0x20] sm:$0x1]  ;;  %v1110_v0 = vrot.slane %v1108_v50, 5  ;;  %v8987_v10 = vor.u32 %v623_v47, %v8965_v52 }
  0x2d   : > { %v1114_v3 = vshll.u32 %v1001_v53, 16  ;;  %1884 = vrot.lane.b32.xlu1 %v8971_v59, %s8768_s29  ;;  %v8978_v5 = vld [vmem:[#allocation2 + $0x10] sm:$0xf]  ;;  %v1081_v6 = vshrl.u32 %v997_v62, 16  ;;  %v8980_v7 = vld [vmem:[#allocation2 + $0x14] sm:$0x1]  ;;  %v1508_v28 = vsel %vm8878_vm9, %v7322_v55, %v1507_v60 }
  0x2e   : > { %v618_v9 = vrot.slane %v8961_v46, 4  ;;  %v8990_v11 = vcombine.low %v997_v62, %v8978_v5  ;;  %v1084_v12 = vshll.u32 %v997_v62, 16  ;;  %v7321_v14 = vrot.slane %v997_v62, 9  ;;  %v425_v46 = vld [vmem:[%s8887_s26 + $0x28] sm:$0xf] }
  0x2f   : > { %v1500_v15 = vrot.slane %v8978_v5, 5  ;;  %v1503_v18 = vrot.slane %v8980_v7, 5  ;;  %v1509_v19 = vrot.slane %v1507_v60, 4  ;;  %v1510_v20 = vrot.slane %v1002_v63, 5  ;;  %v8727_v49 = vld [vmem:[%s8887_s26 + $0x8] sm:$0xf] }
  0x30   : > { %v1111_v21 = vor.u32 %v1110_v0, %v1107_v61  ;;  %1882 = vrot.lane.b32.xlu0 %v8990_v11, %s8768_s29  ;;  %v8998_v24 = vrot.slane %v1114_v3, 5  ;;  %v1120_v25 = vrot.slane %v1118_v58, 4  ;;  %v1094_v26 = vshrl.u32 %v8978_v5, 16 }
  0x31   : > { %v1501_v22 = vsel %vm8878_vm9, %v7321_v14, %v1500_v15  ;;  %v1502_v23 = vrot.slane %v1500_v15, 4  ;;  %v1003_v27 = vld [vmem:[#allocation2 + $0x24] sm:$0xf]  ;;  %v1124_v30 = vshll.u32 %v1002_v63, 16  ;;  %v1511_v35 = vsel %vm8878_vm9, %v1509_v19, %v1510_v20  ;;  %v9027_v14 = vld [vmem:[%s8887_s26 + $0x20] sm:$0xf] }
  0x32   : > { %v9003_v29 = vrot.slane %v1111_v21, 4  ;;  %v1004_v31 = vld [vmem:[#allocation2 + $0x28] sm:$0xf]  ;;  %v1129_v32 = vshrl.u32 %v1003_v27, 16  ;;  %v1132_v33 = vshll.u32 %v1003_v27, 16  ;;  %v1083_v40 = vrot.slane %v1081_v6, 4 }
  0x33   : > { %v1504_v34 = vsel %vm8878_vm9, %v1502_v23, %v1503_v18  ;;  %v1005_v36 = vld [vmem:[#allocation2 + $0x2c] sm:$0x1]  ;;  %v1142_v37 = vshrl.u32 %v1004_v31, 16  ;;  %v9009_v38 = vcombine.low %v1003_v27, %v1004_v31  ;;  %v7323_v41 = vrot.slane %v1003_v27, 9  ;;  %v903_v20 = vld [vmem:[#allocation2 + $0x30] sm:$0xf] }
  0x34   : > { %v7371_v39 = vcombine.low %v1501_v22, %v1504_v34  ;;  %1987 = vrot.lane.b32.xlu0 %v8971_v59, %s8769_s30  ;;  %v1514_v42 = vrot.slane %v1004_v31, 5  ;;  %v1517_v44 = vrot.slane %v1005_v36, 5  ;;  %v1121_v45 = vor.u32 %v1120_v25, %v8998_v24  ;;  %v472_v21 = vld [vmem:[#allocation2 + $0x3c] sm:$0x1]  ;;  %v424_v27 = vld [vmem:[%s8887_s26 + $0x24] sm:$0xf] }
  0x35   : > { %1989 = vrot.lane.b32.xlu1 %v9009_v38, %s8769_s30  ;;  %v1126_v47 = vrot.slane %v1124_v30, 5  ;;  %v1131_v48 = vrot.slane %v1129_v32, 4  ;;  %v1134_v50 = vrot.slane %v1132_v33, 5  ;;  %v1138_v51 = vshll.u32 %v1004_v31, 16  ;;  %v522_v31 = vld [vmem:[#allocation2 + $0x44] sm:$0x1] }
  0x36   : > { %v9016_v53 = vcombine.low %v1508_v28, %v1511_v35  ;;  %v1516_v54 = vrot.slane %v1514_v42, 4  ;;  %v1122_v55 = vrot.slane %v1121_v45, 4  ;;  %v1144_v57 = vrot.slane %v1142_v37, 4  ;;  %v475_v35 = vld [vmem:[#allocation2 + $0x48] sm:$0x1] }
  0x37   : > { %v1135_v58 = vor.u32 %v1134_v50, %v1131_v48  ;;  %v9018_v60 = vrot.slane %v1138_v51, 5  ;;  %v1148_v61 = vshll.u32 %v1005_v36, 16  ;;  %v1086_v62 = vrot.slane %v1084_v12, 5 }
  0x38   : > { %1952 = vrot.lane.b32.xlu0 %v7371_v39, %s8770_s13  ;;  %v1515_v63 = vsel %vm8878_vm9, %v7323_v41, %v1514_v42  ;;  %v1518_v0 = vsel %vm8878_vm9, %v1516_v54, %v1517_v44  ;;  %v1090_v3 = vshll.u32 %v8978_v5, 16  ;;  %v1096_v6 = vrot.slane %v1094_v26, 4  ;;  %v907_v26 = vld [vmem:[#allocation2 + $0x38] sm:$0x1] }
  0x39   : > { %1849 = vrot.lane.b32.xlu1 %v7371_v39, %s8766_s27  ;;  %v1117_v12 = vsel %vm8919_vm13, %v9003_v29, %v8998_v24  ;;  %v1127_v15 = vsel %vm8919_vm13, %v1122_v55, %v1126_v47  ;;  %v1136_v18 = vrot.slane %v1135_v58, 4  ;;  %v1145_v19 = vor.u32 %v1144_v57, %v9018_v60  ;;  %v525_v47 = vld [vmem:[#allocation2 + $0x50] sm:$0x1]  ;;  %v478_v55 = vld [vmem:[#allocation2 + $0x54] sm:$0x1] }
  0x3a   : > { %v1150_v22 = vrot.slane %v1148_v61, 5  ;;  %v1087_v5 = vor.u32 %v1086_v62, %v1083_v40  ;;  %v1092_v23 = vrot.slane %v1090_v3, 5  ;;  %v1100_v25 = vshll.u32 %v8980_v7, 16  ;;  %v426_v61 = vld [vmem:[%s8887_s26 + $0x2c] sm:$0xf] }
  0x3b   : > { %v9039_v28 = vcombine.low %v1515_v63, %v1518_v0  ;;  %v1146_v30 = vrot.slane %v1145_v19, 4  ;;  %v626_v24 = vsel %vm8926_vm14, %v618_v9, %v8987_v10  ;;  %v627_v29 = vrot.slane %v8965_v52, 4 }
  0x3c   : > { %2057 = vrot.lane.b32.xlu0 %v9016_v53, %s8771_s14  ;;  %v1088_v32 = vrot.slane %v1087_v5, 4  ;;  %v1097_v7 = vor.u32 %v1096_v6, %v1092_v23  ;;  %v1102_v33 = vrot.slane %v1100_v25, 5  ;;  %v904_v34 = vsel %vm8913_vm12, %v8983_v8, %v903_v20  ;;  %906 = vst.msk [vmem:[#allocation2 + $0x34] sm:$0xf] %vm447_vm0, %v626_v24 }
  0x3d   : > { %1954 = vrot.lane.b32.xlu1 %v9016_v53, %s8770_s13  ;;  %v9056_v52 = vcombine.low %v1117_v12, %v1127_v15  ;;  %905 = vst [vmem:[#allocation2 + $0x30] sm:$0xf] %v904_v34  ;;  %v908_v9 = vsel %vm8852_vm3, %v627_v29, %v907_v26  ;;  %v473_v10 = vsel %vm8852_vm3, 0, %v472_v21  ;;  %v629_v36 = vshrl.u32 %v9027_v14, 16 }
  0x3e   : > { %v1141_v8 = vsel %vm8919_vm13, %v1136_v18, %v9018_v60  ;;  %v1151_v37 = vsel %vm8919_vm13, %v1146_v30, %v1150_v22  ;;  %v1093_v39 = vsel %vm8919_vm13, %v1088_v32, %v1092_v23  ;;  %v1098_v40 = vrot.slane %v1097_v7, 4  ;;  %909 = vst [vmem:[#allocation2 + $0x38] sm:$0x1] %v908_v9  ;;  %474 = vst [vmem:[#allocation2 + $0x3c] sm:$0x1] %v473_v10 }
  0x3f   : > { %v631_v41 = vrot.slane %v629_v36, 7  ;;  %v632_v42 = vshll.u32 %v9027_v14, 16  ;;  %v637_v44 = vshrl.u32 %v424_v27, 16  ;;  %v523_v45 = vsel %vm8861_vm5, 0, %v522_v31  ;;  %v427_v14 = vld [vmem:[%s8887_s26 + $0x30] sm:$0xf] }
  0x40   : > { %2059 = vrot.lane.b32.xlu0 %v9039_v28, %s8771_s14  ;;  %v1103_v48 = vsel %vm8919_vm13, %v1098_v40, %v1102_v33  ;;  %v640_v50 = vshll.u32 %v424_v27, 16  ;;  %524 = vst [vmem:[#allocation2 + $0x44] sm:$0x1] %v523_v45  ;;  %v476_v51 = vsel %vm8852_vm3, 0, %v475_v35  ;;  %v646_v54 = vshrl.u32 %v425_v46, 16 }
  0x41   : > { %1919 = vrot.lane.b32.xlu1 %v9056_v52, %s8772_s15  ;;  %v9081_v57 = vcombine.low %v1141_v8, %v1151_v37  ;;  %v7355_v58 = vcombine.low %v1093_v39, %v1103_v48  ;;  %v639_v60 = vrot.slane %v637_v44, 7  ;;  %477 = vst [vmem:[#allocation2 + $0x48] sm:$0x1] %v476_v51  ;;  %v649_v63 = vshll.u32 %v425_v46, 16  ;;  %v428_v36 = vld [vmem:[%s8887_s26 + $0x34] sm:$0xf] }
  0x42   : > { %v9084_v62 = vrot.slane %v646_v54, 7  ;;  %v526_v0 = vsel %vm8861_vm5, 0, %v525_v47  ;;  %v634_v6 = vor.u32 %v632_v42, %v631_v41  ;;  %v479_v12 = vsel %vm8852_vm3, 0, %v478_v55  ;;  %v528_v44 = vld [vmem:[#allocation2 + $0x5c] sm:$0x1] }
  0x43   : > { %v9088_v3 = vld [vmem:[#allocation2 + $0x34] sm:$0xf]  ;;  %527 = vst [vmem:[#allocation2 + $0x50] sm:$0x1] %v526_v0  ;;  %v635_v20 = vrot.slane %v631_v41, 4  ;;  %v642_v21 = vor.u32 %v640_v50, %v639_v60  ;;  %v644_v25 = vrot.slane %v639_v60, 4 }
  0x44   : > { %1769 = vrot.lane.b32.xlu0 %v7355_v58, %s8767_s28  ;;  %v9094_v15 = vld [vmem:[#allocation2 + $0x30] sm:$0xf]  ;;  %v1166_v18 = vshrl.u32 %v9088_v3, 16  ;;  %v1162_v19 = vshll.u32 %v9088_v3, 16  ;;  %480 = vst [vmem:[#allocation2 + $0x54] sm:$0x1] %v479_v12  ;;  %v651_v24 = vor.u32 %v649_v63, %v9084_v62 }
  0x45   : > { %2024 = vrot.lane.b32.xlu1 %v9081_v57, %s8773_s16  ;;  %v1153_v22 = vshrl.u32 %v9094_v15, 16  ;;  %v1156_v5 = vshll.u32 %v9094_v15, 16  ;;  %v9102_v23 = vld [vmem:[#allocation2 + $0x38] sm:$0x1]  ;;  %v910_v30 = vld [vmem:[#allocation2 + $0x3c] sm:$0xf]  ;;  %v643_v46 = vsel %vm8926_vm14, %v635_v20, %v642_v21 }
  0x46   : > { %v9104_v26 = vrot.slane %v1162_v19, 5  ;;  %v1168_v27 = vrot.slane %v1166_v18, 4  ;;  %v654_v29 = vshrl.u32 %v426_v61, 16  ;;  %v663_v33 = vshrl.u32 %v427_v14, 16  ;;  %913 = vst.msk [vmem:[#allocation2 + $0x40] sm:$0xf] %vm447_vm0, %v643_v46 }
  0x47   : > { %v1155_v31 = vrot.slane %v1153_v22, 4  ;;  %v1158_v32 = vrot.slane %v1156_v5, 5  ;;  %v914_v7 = vld [vmem:[#allocation2 + $0x44] sm:$0x1]  ;;  %v1172_v34 = vshll.u32 %v9102_v23, 16  ;;  %v911_v35 = vsel %vm8913_vm12, %v634_v6, %v910_v30 }
  0x48   : > { %1917 = vrot.lane.b32.xlu0 %v7355_v58, %s8772_s15  ;;  %v657_v9 = vshll.u32 %v426_v61, 16  ;;  %v917_v10 = vld [vmem:[#allocation2 + $0x48] sm:$0xf]  ;;  %v1169_v37 = vor.u32 %v1168_v27, %v9104_v26  ;;  %912 = vst [vmem:[#allocation2 + $0x3c] sm:$0xf] %v911_v35  ;;  %v915_v39 = vsel %vm8852_vm3, %v644_v25, %v914_v7  ;;  %v652_v40 = vrot.slane %v9084_v62, 4 }
  0x49   : > { %1771 = vrot.lane.b32.xlu1 %v9056_v52, %s8767_s28  ;;  %v1159_v8 = vor.u32 %v1158_v32, %v1155_v31  ;;  %916 = vst [vmem:[#allocation2 + $0x44] sm:$0x1] %v915_v39  ;;  %v656_v41 = vrot.slane %v654_v29, 7  ;;  %v918_v42 = vsel %vm8913_vm12, %v651_v24, %v917_v10  ;;  %v481_v45 = vld [vmem:[#allocation2 + $0x60] sm:$0x1]  ;;  %v665_v48 = vrot.slane %v663_v33, 7 }
  0x4a   : > { %919 = vst [vmem:[#allocation2 + $0x48] sm:$0xf] %v918_v42  ;;  %v921_v47 = vld [vmem:[#allocation2 + $0x50] sm:$0x1]  ;;  %v666_v50 = vshll.u32 %v427_v14, 16  ;;  %v671_v51 = vshrl.u32 %v428_v36, 16  ;;  %v9144_v22 = vcombine.low %v9094_v15, %v9088_v3 }
  0x4b   : > { %v1174_v54 = vrot.slane %v1172_v34, 5  ;;  %v1521_v55 = vrot.slane %v9088_v3, 5  ;;  %v659_v58 = vor.u32 %v657_v9, %v656_v41  ;;  %v661_v60 = vrot.slane %v656_v41, 4  ;;  %v924_v61 = vld [vmem:[#allocation2 + $0x54] sm:$0xf] }
  0x4c   : > { %2022 = vrot.lane.b32.xlu0 %v9056_v52, %s8773_s16  ;;  %v1160_v62 = vrot.slane %v1159_v8, 4  ;;  %v1170_v63 = vrot.slane %v1169_v37, 4  ;;  %v668_v0 = vor.u32 %v666_v50, %v665_v48  ;;  %v674_v6 = vshll.u32 %v428_v36, 16 }
  0x4d   : > { %1773 = vrot.lane.b32.xlu1 %v9081_v57, %s8767_s28  ;;  %v660_v14 = vsel %vm8926_vm14, %v652_v40, %v659_v58  ;;  %v922_v12 = vsel %vm8852_vm3, %v661_v60, %v921_v47  ;;  %v673_v52 = vrot.slane %v671_v51, 7  ;;  %v529_v18 = vsel %vm8861_vm5, 0, %v528_v44  ;;  %v9149_v30 = vld [vmem:[#allocation2 + $0x40] sm:$0xf]  ;;  %v429_v40 = vld [vmem:[%s8887_s26 + $0x38] sm:$0xf] }
  0x4e   : > { %v7324_v19 = vrot.slane %v9094_v15, 9  ;;  %920 = vst.msk [vmem:[#allocation2 + $0x4c] sm:$0xf] %vm447_vm0, %v660_v14  ;;  %923 = vst [vmem:[#allocation2 + $0x50] sm:$0x1] %v922_v12  ;;  %v925_v20 = vsel %vm8913_vm12, %v668_v0, %v924_v61  ;;  %v482_v21 = vsel %vm8852_vm3, 0, %v481_v45  ;;  %v1175_v24 = vsel %vm8919_vm13, %v1170_v63, %v1174_v54 }
  0x4f   : > { %530 = vst [vmem:[#allocation2 + $0x5c] sm:$0x1] %v529_v18  ;;  %v1523_v5 = vrot.slane %v1521_v55, 4  ;;  %v1524_v25 = vrot.slane %v9102_v23, 5  ;;  %v9147_v27 = vld [vmem:[#allocation2 + $0x3c] sm:$0xf]  ;;  %v1165_v23 = vsel %vm8919_vm13, %v1160_v62, %v9104_v26  ;;  %v676_v7 = vor.u32 %v674_v6, %v673_v52 }
  0x50   : > { %1851 = vrot.lane.b32.xlu0 %v9016_v53, %s8766_s27  ;;  %926 = vst [vmem:[#allocation2 + $0x54] sm:$0xf] %v925_v20  ;;  %483 = vst [vmem:[#allocation2 + $0x60] sm:$0x1] %v482_v21  ;;  %v1177_v53 = vshrl.u32 %v9147_v27, 16  ;;  %v1180_v3 = vshll.u32 %v9147_v27, 16  ;;  %v9168_v9 = vcombine.low %v1165_v23, %v1175_v24  ;;  %v1522_v26 = vsel %vm8878_vm9, %v7324_v19, %v1521_v55 }
  0x51   : > { %1853 = vrot.lane.b32.xlu1 %v9039_v28, %s8766_s27  ;;  %v1190_v15 = vshrl.u32 %v9149_v30, 16  ;;  %v9161_v29 = vld [vmem:[#allocation2 + $0x44] sm:$0x1]  ;;  %v1186_v31 = vshll.u32 %v9149_v30, 16  ;;  %v669_v32 = vrot.slane %v665_v48, 4  ;;  %v1525_v36 = vsel %vm8878_vm9, %v1523_v5, %v1524_v25 }
  0x52   : > { %v1179_v33 = vrot.slane %v1177_v53, 4  ;;  %v1182_v34 = vrot.slane %v1180_v3, 5  ;;  %v1196_v10 = vshll.u32 %v9161_v29, 16  ;;  %v9181_v41 = vld [vmem:[#allocation2 + $0x48] sm:$0xf]  ;;  %v678_v42 = vrot.slane %v673_v52, 4 }
  0x53   : > { %v1192_v46 = vrot.slane %v1190_v15, 4  ;;  %v1188_v35 = vrot.slane %v1186_v31, 5  ;;  %v677_v39 = vsel %vm8926_vm14, %v669_v32, %v676_v7  ;;  %v9185_v44 = vcombine.low %v1522_v26, %v1525_v36  ;;  %v430_v12 = vld [vmem:[%s8887_s26 + $0x3c] sm:$0xf]  ;;  %v531_v52 = vld [vmem:[#allocation2 + $0x68] sm:$0x1] }
  0x54   : > { %1886 = vrot.lane.b32.xlu0 %v9009_v38, %s8768_s29  ;;  %v1183_v8 = vor.u32 %v1182_v34, %v1179_v33  ;;  %927 = vst.msk [vmem:[#allocation2 + $0x58] sm:$0xf] %vm447_vm0, %v677_v39  ;;  %v1198_v45 = vrot.slane %v1196_v10, 5  ;;  %v680_v48 = vshrl.u32 %v429_v40, 16  ;;  %v1528_v54 = vrot.slane %v9149_v30, 5 }
  0x55   : > { %1888 = vrot.lane.b32.xlu1 %v9144_v22, %s8768_s29  ;;  %v1193_v37 = vor.u32 %v1192_v46, %v1188_v35  ;;  %v9188_v55 = vld [vmem:[#allocation2 + $0x4c] sm:$0xf]  ;;  %v683_v58 = vshll.u32 %v429_v40, 16  ;;  %v9197_v60 = vcombine.low %v9147_v27, %v9149_v30  ;;  %v1201_v61 = vshrl.u32 %v9181_v41, 16  ;;  %v431_v21 = vld [vmem:[%s8887_s26 + $0x40] sm:$0xf] }
  0x56   : > { %v928_v47 = vld [vmem:[#allocation2 + $0x5c] sm:$0x1]  ;;  %v1184_v50 = vrot.slane %v1183_v8, 4  ;;  %v682_v63 = vrot.slane %v680_v48, 7  ;;  %v1204_v6 = vshll.u32 %v9181_v41, 16  ;;  %v1214_v14 = vshrl.u32 %v9188_v55, 16 }
  0x57   : > { %v1194_v51 = vrot.slane %v1193_v37, 4  ;;  %v929_v62 = vsel %vm8852_vm3, %v678_v42, %v928_v47  ;;  %v1530_v18 = vrot.slane %v1528_v54, 4  ;;  %v1531_v19 = vrot.slane %v9161_v29, 5  ;;  %v931_v25 = vld [vmem:[#allocation2 + $0x60] sm:$0xf] }
  0x58   : > { %1921 = vrot.lane.b32.xlu0 %v9081_v57, %s8772_s15  ;;  %v7325_v57 = vrot.slane %v9147_v27, 9  ;;  %930 = vst [vmem:[#allocation2 + $0x5c] sm:$0x1] %v929_v62  ;;  %v1210_v20 = vshll.u32 %v9188_v55, 16  ;;  %v685_v5 = vor.u32 %v683_v58, %v682_v63  ;;  %v432_v27 = vld [vmem:[%s8887_s26 + $0x44] sm:$0xf] }
  0x59   : > { %1923 = vrot.lane.b32.xlu1 %v9168_v9, %s8772_s15  ;;  %v1199_v0 = vsel %vm8919_vm13, %v1194_v51, %v1198_v45  ;;  %v484_v30 = vld [vmem:[#allocation2 + $0x6c] sm:$0x1]  ;;  %v1203_v3 = vrot.slane %v1201_v61, 4  ;;  %v1206_v15 = vrot.slane %v1204_v6, 5  ;;  %v1216_v23 = vrot.slane %v1214_v14, 4 }
  0x5a   : > { %v1529_v53 = vsel %vm8878_vm9, %v7325_v57, %v1528_v54  ;;  %v688_v29 = vshrl.u32 %v430_v12, 16  ;;  %v691_v31 = vshll.u32 %v430_v12, 16  ;;  %v1532_v32 = vsel %vm8878_vm9, %v1530_v18, %v1531_v19  ;;  %v9235_v36 = vld [vmem:[#allocation2 + $0x50] sm:$0x1]  ;;  %v534_v39 = vld [vmem:[#allocation2 + $0x74] sm:$0x1] }
  0x5b   : > { %v9223_v7 = vrot.slane %v1210_v20, 5  ;;  %v932_v33 = vsel %vm8913_vm12, %v685_v5, %v931_v25  ;;  %v532_v34 = vsel %vm8861_vm5, 0, %v531_v52  ;;  %v686_v46 = vrot.slane %v682_v63, 4  ;;  %v9239_v42 = vld [vmem:[#allocation2 + $0x54] sm:$0xf] }
  0x5c   : > { %1956 = vrot.lane.b32.xlu0 %v9039_v28, %s8770_s13  ;;  %v1189_v28 = vsel %vm8919_vm13, %v1184_v50, %v1188_v35  ;;  %v690_v35 = vrot.slane %v688_v29, 7  ;;  %933 = vst [vmem:[#allocation2 + $0x60] sm:$0xf] %v932_v33  ;;  %533 = vst [vmem:[#allocation2 + $0x68] sm:$0x1] %v532_v34  ;;  %v485_v26 = vsel %vm8852_vm3, 0, %v484_v30  ;;  %v9237_v40 = vcombine.low %v1529_v53, %v1532_v32 }
  0x5d   : > { %1958 = vrot.lane.b32.xlu1 %v9185_v44, %s8770_s13  ;;  %v9217_v24 = vcombine.low %v1189_v28, %v1199_v0  ;;  %v697_v10 = vshrl.u32 %v431_v21, 16  ;;  %486 = vst [vmem:[#allocation2 + $0x6c] sm:$0x1] %v485_v26  ;;  %v700_v8 = vshll.u32 %v431_v21, 16  ;;  %v705_v37 = vshrl.u32 %v432_v27, 16 }
  0x5e   : > { %v693_v45 = vor.u32 %v691_v31, %v690_v35  ;;  %v487_v47 = vld [vmem:[#allocation2 + $0x78] sm:$0x1]  ;;  %v1207_v48 = vor.u32 %v1206_v15, %v1203_v3  ;;  %v708_v57 = vshll.u32 %v432_v27, 16  ;;  %v1217_v58 = vor.u32 %v1216_v23, %v9223_v7  ;;  %v9252_v28 = vld [vmem:[%s8887_s26 + $0x48] sm:$0xf] }
  0x5f   : > { %v9241_v50 = vld [vmem:[#allocation2 + $0x58] sm:$0xf]  ;;  %v699_v51 = vrot.slane %v697_v10, 7  ;;  %v9243_v54 = vrot.slane %v705_v37, 7  ;;  %v1220_v61 = vshll.u32 %v9235_v36, 16  ;;  %v695_v63 = vrot.slane %v690_v35, 4 }
  0x60   : > { %1991 = vrot.lane.b32.xlu0 %v9144_v22, %s8769_s30  ;;  %v694_v62 = vsel %vm8926_vm14, %v686_v46, %v693_v45  ;;  %v9255_v0 = vld [vmem:[%s8887_s26 + $0x4c] sm:$0xf]  ;;  %v7326_v52 = vrot.slane %v9181_v41, 9  ;;  %v535_v18 = vsel %vm8861_vm5, 0, %v534_v39  ;;  %v488_v19 = vsel %vm8852_vm3, 0, %v487_v47 }
  0x61   : > { %1993 = vrot.lane.b32.xlu1 %v9197_v60, %s8769_s30  ;;  %934 = vst.msk [vmem:[#allocation2 + $0x64] sm:$0xf] %vm447_vm0, %v694_v62  ;;  %v702_v6 = vor.u32 %v700_v8, %v699_v51  ;;  %v703_v14 = vrot.slane %v699_v51, 4  ;;  %v710_v12 = vor.u32 %v708_v57, %v9243_v54  ;;  %v8617_v20 = vld [vmem:[%s12151_s2 + $0x10] ss:$0 sps:$4 sm:$0x33]   ;;  %v9291_v35 = vcombine.low %v9181_v41, %v9188_v55 }
  0x62   : > { %v1208_v21 = vrot.slane %v1207_v48, 4  ;;  %v1228_v5 = vshll.u32 %v9239_v42, 16  ;;  %536 = vst [vmem:[#allocation2 + $0x74] sm:$0x1] %v535_v18  ;;  %489 = vst [vmem:[#allocation2 + $0x78] sm:$0x1] %v488_v19 }
  0x63   : > { %v935_v25 = vld [vmem:[#allocation2 + $0x68] sm:$0x1]  ;;  %v711_v27 = vsel %vm8926_vm14, %v703_v14, %v710_v12  ;;  %v1218_v30 = vrot.slane %v1217_v58, 4  ;;  %v1222_v53 = vrot.slane %v1220_v61, 5  ;;  %v1234_v3 = vshll.u32 %v9241_v50, 16  ;;  %v8619_v48 = vld [vmem:[%s12151_s2] sm:$0xff]  }
  0x64   : > { %2026 = vrot.lane.b32.xlu0 %v9168_v9, %s8773_s16  ;;  %v936_v15 = vsel %vm8852_vm3, %v695_v63, %v935_v25  ;;  %v938_v23 = vld [vmem:[#allocation2 + $0x6c] sm:$0xf]  ;;  %941 = vst.msk [vmem:[#allocation2 + $0x70] sm:$0xf] %vm447_vm0, %v711_v27  ;;  %v1238_v29 = vshrl.u32 %v9241_v50, 16  ;;  %v714_v32 = vshrl.u32 %v9252_v28, 16  ;;  %v1213_v8 = vsel %vm8919_vm13, %v1208_v21, %v9223_v7 }
  0x65   : > { %2028 = vrot.lane.b32.xlu1 %v9217_v24, %s8773_s16  ;;  %937 = vst [vmem:[#allocation2 + $0x68] sm:$0x1] %v936_v15  ;;  %v939_v31 = vsel %vm8913_vm12, %v702_v6, %v938_v23  ;;  %v722_v33 = vshrl.u32 %v9255_v0, 16  ;;  %v537_v34 = vld [vmem:[#allocation2 + $0x80] sm:$0x1]  ;;  %v8618_v46 = vld [vmem:[%s12151_s2 + $0x8] sm:$0xff]  }
  0x66   : > { %v1535_v26 = vrot.slane %v9188_v55, 5  ;;  %v1538_v10 = vrot.slane %v9235_v36, 5  ;;  %940 = vst [vmem:[#allocation2 + $0x6c] sm:$0xf] %v939_v31  ;;  %vm12162_vm15 = vcmask 1041408   ;;  %v1230_v39 = vrot.slane %v1228_v5, 5 }
  0x67   : > { %8587 = vmatprep.subr.msk.bf16.mxu0 %vm12162_vm15, %v8617_v20  ;;  %v2426_v45 = vsel %vm12162_vm15, %v8617_v20, 0  ;;  %8588 = vmatprep.subr.msk.bf16.mxu1 %vm12162_vm15, %v8617_v20  ;;  %v1223_v55 = vsel %vm8919_vm13, %v1218_v30, %v1222_v53  ;;  %v9305_v36 = vrot.slane %v1234_v3, 5  ;;  %v712_v47 = vrot.slane %v9243_v54, 4  ;;  %v9316_v54 = vld [vmem:[#allocation2 + $0x5c] sm:$0x1] }
  0x68   : > { %2061 = vrot.lane.b32.xlu0 %v9185_v44, %s8771_s14  ;;  %8078 = vmatpush3.bf16.msra.mxu0 %v2426_v45  ;;  %v538_v7 = vsel %vm8861_vm5, 0, %v537_v34  ;;  %v1240_v51 = vrot.slane %v1238_v29, 4  ;;  %v724_v57 = vrot.slane %v722_v33, 7  ;;  %v725_v58 = vshll.u32 %v9255_v0, 16  ;;  %v435_v27 = vld [vmem:[%s8887_s26 + $0x50] sm:$0xf] }
  0x69   : > { %1775 = vrot.lane.b32.xlu1 %v9168_v9, %s8767_s28  ;;  %v1225_v9 = vshrl.u32 %v9239_v42, 16  ;;  %539 = vst [vmem:[#allocation2 + $0x80] sm:$0x1] %v538_v7  ;;  %8079 = vmatprep.subr.bf16.mxu0 %v8618_v46  ;;  %v1537_v61 = vrot.slane %v1535_v26, 4  ;;  %v942_v62 = vld [vmem:[#allocation2 + $0x74] sm:$0x1]  ;;  %v9321_v6 = vcombine.low %v1213_v8, %v1223_v55  ;;  %v1536_v20 = vsel %vm8878_vm9, %v7326_v52, %v1535_v26 }
  0x6a   : > { %v717_v63 = vshll.u32 %v9252_v28, 16  ;;  %8584 = vmatpush3.bf16.msra.mxu1 %v2426_v45  ;;  %v943_v0 = vsel %vm8852_vm3, %v712_v47, %v942_v62  ;;  %v1241_v12 = vor.u32 %v1240_v51, %v9305_v36  ;;  %v1244_v28 = vshll.u32 %v9316_v54, 16  ;;  %v945_v25 = vld [vmem:[#allocation2 + $0x78] sm:$0xf]  ;;  %v436_v30 = vld [vmem:[%s8887_s26 + $0x54] sm:$0xf] }
  0x6b   : > { %v1227_v37 = vrot.slane %v1225_v9, 4  ;;  %8582 = vmatprep.subr.bf16.mxu1 %v8618_v46  ;;  %944 = vst [vmem:[#allocation2 + $0x74] sm:$0x1] %v943_v0  ;;  %v727_v19 = vor.u32 %v725_v58, %v724_v57  ;;  %v1539_v21 = vsel %vm8878_vm9, %v1537_v61, %v1538_v10  ;;  %v729_v5 = vrot.slane %v724_v57, 4  ;;  %v490_v41 = vld [vmem:[#allocation2 + $0x84] sm:$0x1] }
  0x6c   : > { %2063 = vrot.lane.b32.xlu0 %v9237_v40, %s8771_s14  ;;  %8080 = vmatpush3.bf16.msra.mxu0 %v8618_v46  ;;  %v9341_v52 = vcombine.low %v1536_v20, %v1539_v21  ;;  %v1242_v15 = vrot.slane %v1241_v12, 4  ;;  %v1246_v23 = vrot.slane %v1244_v28, 5  ;;  %v540_v33 = vld [vmem:[#allocation2 + $0x8c] sm:$0x1]  ;;  %v1542_v34 = vrot.slane %v9241_v50, 5 }
  0x6d   : > { %1777 = vrot.lane.b32.xlu1 %v9217_v24, %s8767_s28  ;;  %v1231_v14 = vor.u32 %v1230_v39, %v1227_v37  ;;  %8081 = vmatprep.subr.bf16.mxu0 %v8619_v48  ;;  %v739_v26 = vshrl.u32 %v436_v30, 16  ;;  %v493_v10 = vld [vmem:[#allocation2 + $0x90] sm:$0x1]  ;;  %v9359_v8 = vcombine.low %v9239_v42, %v9241_v50  ;;  %v9366_v39 = vld [vmem:[#allocation2 + $0x60] sm:$0xf]  ;;  %v734_v47 = vshll.u32 %v435_v27, 16 }
  0x6e   : > { %8585 = vmatpush3.bf16.msra.mxu1 %v8618_v46  ;;  %v731_v46 = vshrl.u32 %v435_v27, 16  ;;  %v9368_v45 = vld [vmem:[#allocation2 + $0x64] sm:$0xf]  ;;  %v7327_v51 = vrot.slane %v9239_v42, 9  ;;  %v541_v50 = vsel %vm8861_vm5, 0, %v540_v33  ;;  %v1544_v57 = vrot.slane %v1542_v34, 4 }
  0x6f   : > { %8583 = vmatprep.subr.bf16.mxu1 %v8619_v48  ;;  %v1232_v53 = vrot.slane %v1231_v14, 4  ;;  %v741_v7 = vrot.slane %v739_v26, 7  ;;  %v1545_v58 = vrot.slane %v9316_v54, 5  ;;  %v1249_v61 = vshrl.u32 %v9366_v39, 16  ;;  %542 = vst [vmem:[#allocation2 + $0x8c] sm:$0x1] %v541_v50 }
  0x70   : > { %1855 = vrot.lane.b32.xlu0 %v9185_v44, %s8766_s27  ;;  %v716_v44 = vrot.slane %v714_v32, 7  ;;  %v949_v3 = vld [vmem:[#allocation2 + $0x80] sm:$0x1]  ;;  %8082 = vmatpush3.bf16.msra.mxu0 %v8619_v48  ;;  %v491_v32 = vsel %vm8852_vm3, 0, %v490_v41  ;;  %v733_v55 = vrot.slane %v731_v46, 7  ;;  %v1252_v62 = vshll.u32 %v9366_v39, 16 }
  0x71   : > { %1857 = vrot.lane.b32.xlu1 %v9237_v40, %s8766_s27  ;;  %492 = vst [vmem:[#allocation2 + $0x84] sm:$0x1] %v491_v32  ;;  %v1237_v37 = vsel %vm8919_vm13, %v1232_v53, %v9305_v36  ;;  %v494_v36 = vsel %vm8852_vm3, 0, %v493_v10  ;;  %v1258_v14 = vshll.u32 %v9368_v45, 16  ;;  %v1543_v54 = vsel %vm8878_vm9, %v7327_v51, %v1542_v34  ;;  %v9399_v41 = vld [vmem:[%s8887_s26 + $0x60] sm:$0xf] }
  0x72   : > { %v720_v18 = vrot.slane %v716_v44, 4  ;;  %v719_v9 = vor.u32 %v717_v63, %v716_v44  ;;  %8586 = vmatpush3.bf16.msra.mxu1 %v8619_v48  ;;  %v742_v48 = vshll.u32 %v436_v30, 16  ;;  %v437_v44 = vld [vmem:[%s8887_s26 + $0x58] sm:$0xf]  ;;  %495 = vst [vmem:[#allocation2 + $0x90] sm:$0x1] %v494_v36  ;;  %v736_v0 = vor.u32 %v734_v47, %v733_v55 }
  0x73   : > { %v1262_v63 = vshrl.u32 %v9368_v45, 16  ;;  %v737_v12 = vrot.slane %v733_v55, 4  ;;  %v1546_v20 = vsel %vm8878_vm9, %v1544_v57, %v1545_v58  ;;  %v1251_v21 = vrot.slane %v1249_v61, 4  ;;  %v440_v10 = vld [vmem:[%s8887_s26 + $0x64] sm:$0xf] }
  0x74   : > { %1890 = vrot.lane.b32.xlu0 %v9197_v60, %s8768_s29  ;;  %v728_v29 = vsel %vm8926_vm14, %v720_v18, %v727_v19  ;;  %v946_v31 = vsel %vm8913_vm12, %v719_v9, %v945_v25  ;;  %v744_v28 = vor.u32 %v742_v48, %v741_v7  ;;  %v438_v18 = vld [vmem:[%s8887_s26 + $0x5c] sm:$0xf]  ;;  %v748_v19 = vshrl.u32 %v437_v44, 16  ;;  %v499_v48 = vld [vmem:[#allocation2 + $0xa8] sm:$0x1] }
  0x75   : > { %1892 = vrot.lane.b32.xlu1 %v9291_v35, %s8768_s29  ;;  %948 = vst.msk [vmem:[#allocation2 + $0x7c] sm:$0xf] %vm447_vm0, %v728_v29  ;;  %947 = vst [vmem:[#allocation2 + $0x78] sm:$0xf] %v946_v31  ;;  %v1254_v9 = vrot.slane %v1252_v62, 5  ;;  %v9396_v27 = vrot.slane %v1258_v14, 5  ;;  %v9409_v32 = vcombine.low %v1543_v54, %v1546_v20 }
  0x76   : > { %v1264_v30 = vrot.slane %v1262_v63, 4  ;;  %v751_v53 = vshll.u32 %v437_v44, 16  ;;  %v9403_v29 = vld [vmem:[#allocation2 + $0x70] sm:$0xf]  ;;  %v745_v31 = vsel %vm8926_vm14, %v737_v12, %v744_v28  ;;  %v956_v33 = vld [vmem:[#allocation2 + $0x8c] sm:$0x1] }
  0x77   : > { %955 = vst.msk [vmem:[#allocation2 + $0x88] sm:$0xf] %vm447_vm0, %v745_v31  ;;  %v750_v34 = vrot.slane %v748_v19, 7  ;;  %v756_v46 = vshrl.u32 %v438_v18, 16  ;;  %v759_v47 = vshll.u32 %v438_v18, 16  ;;  %v765_v63 = vshrl.u32 %v9399_v41, 16 }
  0x78   : > { %1925 = vrot.lane.b32.xlu0 %v9217_v24, %s8772_s15  ;;  %v950_v24 = vsel %vm8852_vm3, %v729_v5, %v949_v3  ;;  %v746_v5 = vrot.slane %v741_v7, 4  ;;  %v952_v25 = vld [vmem:[#allocation2 + $0x84] sm:$0xf]  ;;  %v543_v3 = vld [vmem:[#allocation2 + $0x98] sm:$0x1]  ;;  %v1265_v51 = vor.u32 %v1264_v30, %v9396_v27  ;;  %v1282_v14 = vshll.u32 %v9403_v29, 16 }
  0x79   : > { %1927 = vrot.lane.b32.xlu1 %v9321_v6, %s8772_s15  ;;  %951 = vst [vmem:[#allocation2 + $0x80] sm:$0x1] %v950_v24  ;;  %v953_v24 = vsel %vm8913_vm12, %v736_v0, %v952_v25  ;;  %v959_v26 = vld [vmem:[#allocation2 + $0x90] sm:$0xf]  ;;  %v546_v7 = vld [vmem:[#allocation2 + $0xa4] sm:$0x1]  ;;  %v753_v44 = vor.u32 %v751_v53, %v750_v34 }
  0x7a   : > { %954 = vst [vmem:[#allocation2 + $0x84] sm:$0xf] %v953_v24  ;;  %v957_v55 = vsel %vm8852_vm3, %v746_v5, %v956_v33  ;;  %v9421_v50 = vld [vmem:[#allocation2 + $0x6c] sm:$0xf]  ;;  %v754_v36 = vrot.slane %v750_v34, 4  ;;  %v758_v57 = vrot.slane %v756_v46, 7  ;;  %v9450_v24 = vcombine.low %v9366_v39, %v9368_v45 }
  0x7b   : > { %958 = vst [vmem:[#allocation2 + $0x8c] sm:$0x1] %v957_v55  ;;  %v544_v61 = vsel %vm8861_vm5, 0, %v543_v3  ;;  %v960_v12 = vsel %vm8913_vm12, %v753_v44, %v959_v26  ;;  %v1273_v28 = vshrl.u32 %v9421_v50, 16  ;;  %v1276_v54 = vshll.u32 %v9421_v50, 16 }
  0x7c   : > { %1960 = vrot.lane.b32.xlu0 %v9237_v40, %s8770_s13  ;;  %v1247_v40 = vsel %vm8919_vm13, %v1242_v15, %v1246_v23  ;;  %v496_v15 = vld [vmem:[#allocation2 + $0x9c] sm:$0x1]  ;;  %v9401_v23 = vld [vmem:[#allocation2 + $0x68] sm:$0x1]  ;;  %v761_v0 = vor.u32 %v759_v47, %v758_v57  ;;  %545 = vst [vmem:[#allocation2 + $0x98] sm:$0x1] %v544_v61 }
  0x7d   : > { %1962 = vrot.lane.b32.xlu1 %v9341_v52, %s8770_s13  ;;  %v9383_v42 = vcombine.low %v1237_v37, %v1247_v40  ;;  %v1255_v37 = vor.u32 %v1254_v9, %v1251_v21  ;;  %v1549_v40 = vrot.slane %v9368_v45, 5  ;;  %v1268_v58 = vshll.u32 %v9401_v23, 16  ;;  %961 = vst [vmem:[#allocation2 + $0x90] sm:$0xf] %v960_v12 }
  0x7e   : > { %v497_v62 = vsel %vm8852_vm3, 0, %v496_v15  ;;  %v767_v18 = vrot.slane %v765_v63, 7  ;;  %v773_v19 = vshrl.u32 %v440_v10, 16  ;;  %v762_v20 = vsel %vm8926_vm14, %v754_v36, %v761_v0  ;;  %v441_v0 = vld [vmem:[%s8887_s26 + $0x68] sm:$0xf] }
  0x7f   : > { %498 = vst [vmem:[#allocation2 + $0x9c] sm:$0x1] %v497_v62  ;;  %v776_v21 = vshll.u32 %v440_v10, 16  ;;  %v547_v9 = vsel %vm8861_vm5, 0, %v546_v7  ;;  %v500_v5 = vsel %vm8852_vm3, 0, %v499_v48  ;;  %v1256_v25 = vrot.slane %v1255_v37, 4 }
  0x80   : > { %1995 = vrot.lane.b32.xlu0 %v9291_v35, %s8769_s30  ;;  %v1266_v30 = vrot.slane %v1265_v51, 4  ;;  %v1270_v53 = vrot.slane %v1268_v58, 5  ;;  %962 = vst.msk [vmem:[#allocation2 + $0x94] sm:$0xf] %vm447_vm0, %v762_v20  ;;  %v775_v3 = vrot.slane %v773_v19, 7  ;;  %v763_v15 = vrot.slane %v758_v57, 4 }
  0x81   : > { %1997 = vrot.lane.b32.xlu1 %v9359_v8, %s8769_s30  ;;  %548 = vst [vmem:[#allocation2 + $0xa4] sm:$0x1] %v547_v9  ;;  %501 = vst [vmem:[#allocation2 + $0xa8] sm:$0x1] %v500_v5  ;;  %v771_v31 = vrot.slane %v767_v18, 4  ;;  %v7328_v33 = vrot.slane %v9366_v39, 9 }
  0x82   : > { %v9453_v34 = vrot.slane %v1282_v14, 5  ;;  %v778_v46 = vor.u32 %v776_v21, %v775_v3  ;;  %v1275_v26 = vrot.slane %v1273_v28, 4  ;;  %v1278_v10 = vrot.slane %v1276_v54, 5  ;;  %v9466_v51 = vld [vmem:[#allocation2 + $0x74] sm:$0x1] }
  0x83   : > { %v768_v55 = vshll.u32 %v9399_v41, 16  ;;  %v1271_v47 = vsel %vm8919_vm13, %v1266_v30, %v1270_v53  ;;  %v1551_v39 = vrot.slane %v1549_v40, 4  ;;  %v1552_v7 = vrot.slane %v9401_v23, 5  ;;  %v963_v48 = vld [vmem:[#allocation2 + $0x98] sm:$0x1] }
  0x84   : > { %2030 = vrot.lane.b32.xlu0 %v9321_v6, %s8773_s16  ;;  %v964_v44 = vsel %vm8852_vm3, %v763_v15, %v963_v48  ;;  %v779_v41 = vsel %vm8926_vm14, %v771_v31, %v778_v46  ;;  %v1279_v23 = vor.u32 %v1278_v10, %v1275_v26  ;;  %v1550_v58 = vsel %vm8878_vm9, %v7328_v33, %v1549_v40  ;;  %v442_v9 = vld [vmem:[%s8887_s26 + $0x6c] sm:$0xf]  ;;  %v9508_v30 = vld [vmem:[#allocation2 + $0x78] sm:$0xf]  ;;  %v549_v53 = vld [vmem:[#allocation2 + $0xb0] sm:$0x1] }
  0x85   : > { %2032 = vrot.lane.b32.xlu1 %v9383_v42, %s8773_s16  ;;  %965 = vst [vmem:[#allocation2 + $0x98] sm:$0x1] %v964_v44  ;;  %969 = vst.msk [vmem:[#allocation2 + $0xa0] sm:$0xf] %vm447_vm0, %v779_v41  ;;  %v770_v57 = vor.u32 %v768_v55, %v767_v18  ;;  %v1553_v61 = vsel %vm8878_vm9, %v1551_v39, %v1552_v7  ;;  %v1292_v62 = vshll.u32 %v9466_v51, 16  ;;  %v780_v63 = vrot.slane %v775_v3, 4 }
  0x86   : > { %v1556_v12 = vrot.slane %v9403_v29, 5  ;;  %v9493_v45 = vcombine.low %v1550_v58, %v1553_v61  ;;  %v1280_v40 = vrot.slane %v1279_v23, 4  ;;  %v782_v20 = vshrl.u32 %v441_v0, 16  ;;  %v502_v46 = vld [vmem:[#allocation2 + $0xb4] sm:$0x1] }
  0x87   : > { %v1294_v18 = vrot.slane %v1292_v62, 5  ;;  %v785_v5 = vshll.u32 %v441_v0, 16  ;;  %v9514_v3 = vcombine.low %v9421_v50, %v9403_v29  ;;  %v7329_v15 = vrot.slane %v9421_v50, 9  ;;  %v443_v41 = vld [vmem:[%s8887_s26 + $0x70] sm:$0xf] }
  0x88   : > { %2065 = vrot.lane.b32.xlu0 %v9341_v52, %s8771_s14  ;;  %v970_v14 = vld [vmem:[#allocation2 + $0xa4] sm:$0x1]  ;;  %v1558_v31 = vrot.slane %v1556_v12, 4  ;;  %v784_v33 = vrot.slane %v782_v20, 7  ;;  %v973_v55 = vld [vmem:[#allocation2 + $0xa8] sm:$0xf] }
  0x89   : > { %1779 = vrot.lane.b32.xlu1 %v9321_v6, %s8767_s28  ;;  %v1286_v6 = vshrl.u32 %v9403_v29, 16  ;;  %v971_v19 = vsel %vm8852_vm3, %v780_v63, %v970_v14  ;;  %v1297_v29 = vshrl.u32 %v9508_v30, 16  ;;  %v1300_v50 = vshll.u32 %v9508_v30, 16  ;;  %v444_v61 = vld [vmem:[%s8887_s26 + $0x74] sm:$0xf] }
  0x8a   : > { %972 = vst [vmem:[#allocation2 + $0xa4] sm:$0x1] %v971_v19  ;;  %v550_v44 = vsel %vm8861_vm5, 0, %v549_v53  ;;  %v503_v23 = vsel %vm8852_vm3, 0, %v502_v46  ;;  %v793_v58 = vshll.u32 %v442_v9, 16  ;;  %vm2089_vm1 = vcmask 31744  }
  0x8b   : > { %v1288_v37 = vrot.slane %v1286_v6, 4  ;;  %v966_v6 = vld [vmem:[#allocation2 + $0x9c] sm:$0xf]  ;;  %551 = vst [vmem:[#allocation2 + $0xb0] sm:$0x1] %v550_v44  ;;  %v1299_v63 = vrot.slane %v1297_v29, 4 }
  0x8c   : > { %2067 = vrot.lane.b32.xlu0 %v9409_v32, %s8771_s14  ;;  %v967_v54 = vsel %vm8913_vm12, %v770_v57, %v966_v6  ;;  %504 = vst [vmem:[#allocation2 + $0xb4] sm:$0x1] %v503_v23  ;;  %v9547_v62 = vld [vmem:[#allocation2 + $0x80] sm:$0x1]  ;;  %v1302_v6 = vrot.slane %v1300_v50, 5  ;;  %vm2171_vm6 = vcmask 97280  }
  0x8d   : > { %1781 = vrot.lane.b32.xlu1 %v9383_v42, %s8767_s28  ;;  %v1289_v36 = vor.u32 %v1288_v37, %v9453_v34  ;;  %968 = vst [vmem:[#allocation2 + $0x9c] sm:$0xf] %v967_v54  ;;  %v552_v14 = vld [vmem:[#allocation2 + $0xbc] sm:$0x1]  ;;  %v505_v0 = vld [vmem:[#allocation2 + $0xc0] sm:$0x1] }
  0x8e   : > { %v799_v54 = vshrl.u32 %v443_v41, 16  ;;  %v9569_v29 = vld [vmem:[#allocation2 + $0x84] sm:$0xf]  ;;  %vm2204_vm7 = vcmask 130048   ;;  %vm2237_vm8 = vcmask 162816   ;;  %vm2270_vm10 = vcmask 195584  }
  0x8f   : > { %v1290_v28 = vrot.slane %v1289_v36, 4  ;;  %vm2303_vm11 = vcmask 228352  }
  0x90   : > { %1859 = vrot.lane.b32.xlu0 %v9341_v52, %s8766_s27  ;;  %v1261_v52 = vsel %vm8919_vm13, %v1256_v25, %v9396_v27 }
  0x91   : > { %1861 = vrot.lane.b32.xlu1 %v9409_v32, %s8766_s27  ;;  %v9477_v27 = vcombine.low %v1261_v52, %v1271_v47  ;;  %v9499_v21 = vpop.permute.xlu1 %1847  ;;  %v1295_v26 = vsel %vm8919_vm13, %v1290_v28, %v1294_v18  ;;  %v787_v52 = vor.u32 %v785_v5, %v784_v33  ;;  %v790_v47 = vshrl.u32 %v442_v9, 16 }
  0x92   : > { %v1557_v18 = vsel %vm8878_vm9, %v7329_v15, %v1556_v12  ;;  %v802_v9 = vshll.u32 %v443_v41, 16  ;;  %v807_v12 = vshrl.u32 %v444_v61, 16  ;;  %v810_v15 = vshll.u32 %v444_v61, 16  ;;  %v977_v44 = vld [vmem:[#allocation2 + $0xb0] sm:$0x1] }
  0x93   : > { %v974_v48 = vsel %vm8913_vm12, %v787_v52, %v973_v55  ;;  %v792_v28 = vrot.slane %v790_v47, 7  ;;  %v445_v55 = vld [vmem:[%s8887_s26 + $0x78] sm:$0xf]  ;;  %v553_v52 = vsel %vm8861_vm5, 0, %v552_v14  ;;  %v506_v47 = vsel %vm8852_vm3, 0, %v505_v0 }
  0x94   : > { %1894 = vrot.lane.b32.xlu0 %v9359_v8, %s8768_s29  ;;  %975 = vst [vmem:[#allocation2 + $0xa8] sm:$0xf] %v974_v48  ;;  %v9580_v48 = vld [vmem:[#allocation2 + $0x88] sm:$0xf]  ;;  %554 = vst [vmem:[#allocation2 + $0xbc] sm:$0x1] %v553_v52 }
  0x95   : > { %1896 = vrot.lane.b32.xlu1 %v9450_v24, %s8768_s29  ;;  %v795_v46 = vor.u32 %v793_v58, %v792_v28  ;;  %507 = vst [vmem:[#allocation2 + $0xc0] sm:$0x1] %v506_v47  ;;  %v555_v58 = vld [vmem:[#allocation2 + $0xc8] sm:$0x1]  ;;  %v980_v0 = vld [vmem:[#allocation2 + $0xb4] sm:$0xf] }
  0x96   : > { %v9506_v25 = vpop.permute.xlu0 %1767  ;;  %v556_v52 = vsel %vm8861_vm5, 0, %v555_v58  ;;  %vm2138_vm5 = vcmask 64512  }
  0x97   : > { %557 = vst [vmem:[#allocation2 + $0xc8] sm:$0x1] %v556_v52 }
  0x98   : > { %1929 = vrot.lane.b32.xlu0 %v9383_v42, %s8772_s15  ;;  %v9501_v42 = vld [vmem:[#allocation2 + $0x7c] sm:$0xf] }
  0x99   : > { %1931 = vrot.lane.b32.xlu1 %v9477_v27, %s8772_s15  ;;  %v1310_v10 = vshrl.u32 %v9501_v42, 16  ;;  %v1306_v37 = vshll.u32 %v9501_v42, 16  ;;  %v1563_v20 = vrot.slane %v9501_v42, 5 }
  0x9b   : > { %v1312_v57 = vrot.slane %v1310_v10, 4  ;;  %v1303_v10 = vor.u32 %v1302_v6, %v1299_v63  ;;  %v984_v58 = vld [vmem:[#allocation2 + $0xbc] sm:$0x1] }
  0x9c   : > { %1964 = vrot.lane.b32.xlu0 %v9409_v32, %s8770_s13  ;;  %v1285_v32 = vsel %vm8919_vm13, %v1280_v40, %v9453_v34  ;;  %v1559_v34 = vrot.slane %v9466_v51, 5  ;;  %v9544_v51 = vrot.slane %v1306_v37, 5  ;;  %v788_v40 = vrot.slane %v784_v33, 4 }
  0x9d   : > { %1966 = vrot.lane.b32.xlu1 %v9493_v45, %s8770_s13  ;;  %v9533_v7 = vcombine.low %v1285_v32, %v1295_v26  ;;  %v1316_v33 = vshll.u32 %v9547_v62, 16  ;;  %v797_v32 = vrot.slane %v792_v28, 4  ;;  %v801_v37 = vrot.slane %v799_v54, 7 }
  0x9e   : > { %v1560_v19 = vsel %vm8878_vm9, %v1558_v31, %v1559_v34  ;;  %v1313_v53 = vor.u32 %v1312_v57, %v9544_v51  ;;  %v796_v50 = vsel %vm8926_vm14, %v788_v40, %v795_v46  ;;  %v446_v34 = vld [vmem:[%s8887_s26 + $0x7c] sm:$0xf]  ;;  %v809_v57 = vrot.slane %v807_v12, 7 }
  0x9f   : > { %v9531_v39 = vpop.permute.xlu1 %1884  ;;  %v9567_v31 = vcombine.low %v1557_v18, %v1560_v19  ;;  %976 = vst.msk [vmem:[#allocation2 + $0xac] sm:$0xf] %vm447_vm0, %v796_v50  ;;  %v804_v41 = vor.u32 %v802_v9, %v801_v37  ;;  %v805_v23 = vrot.slane %v801_v37, 4  ;;  %v1318_v6 = vrot.slane %v1316_v33, 5 }
  0xa0   : > { %1999 = vrot.lane.b32.xlu0 %v9450_v24, %s8769_s30  ;;  %v1314_v63 = vrot.slane %v1313_v53, 4  ;;  %v978_v14 = vsel %vm8852_vm3, %v797_v32, %v977_v44  ;;  %v1304_v40 = vrot.slane %v1303_v10, 4  ;;  %v1321_v28 = vshrl.u32 %v9569_v29, 16 }
  0xa1   : > { %2001 = vrot.lane.b32.xlu1 %v9514_v3, %s8769_s30  ;;  %979 = vst [vmem:[#allocation2 + $0xb0] sm:$0x1] %v978_v14  ;;  %v812_v54 = vor.u32 %v810_v15, %v809_v57  ;;  %v1324_v18 = vshll.u32 %v9569_v29, 16  ;;  %v1334_v19 = vshrl.u32 %v9580_v48, 16  ;;  %v981_v9 = vsel %vm8913_vm12, %v804_v41, %v980_v0 }
  0xa2   : > { %v9542_v36 = vpop.permute.xlu0 %1882  ;;  %v816_v53 = vshrl.u32 %v445_v55, 16  ;;  %v1330_v33 = vshll.u32 %v9580_v48, 16  ;;  %982 = vst [vmem:[#allocation2 + $0xb4] sm:$0xf] %v981_v9  ;;  %v819_v32 = vshll.u32 %v445_v55, 16  ;;  %v824_v10 = vshrl.u32 %v446_v34, 16 }
  0xa3   : > { %v813_v46 = vsel %vm8926_vm14, %v805_v23, %v812_v54  ;;  %v814_v12 = vrot.slane %v809_v57, 4  ;;  %v827_v50 = vshll.u32 %v446_v34, 16  ;;  %v9610_v44 = vcombine.low %v9508_v30, %v9501_v42  ;;  %v9622_v57 = vld [vmem:[#allocation2 + $0x8c] sm:$0x1] }
  0xa4   : > { %2034 = vrot.lane.b32.xlu0 %v9477_v27, %s8773_s16  ;;  %983 = vst.msk [vmem:[#allocation2 + $0xb8] sm:$0xf] %vm447_vm0, %v813_v46  ;;  %v818_v15 = vrot.slane %v816_v53, 7  ;;  %v7330_v41 = vrot.slane %v9508_v30, 9  ;;  %v1565_v55 = vrot.slane %v1563_v20, 4  ;;  %v9615_v23 = vrot.slane %v824_v10, 7 }
  0xa5   : > { %2036 = vrot.lane.b32.xlu1 %v9533_v7, %s8773_s16  ;;  %v1319_v2 = vsel %vm8919_vm13, %v1314_v63, %v1318_v6  ;;  %v1566_v34 = vrot.slane %v9547_v62, 5  ;;  %v1309_v30 = vsel %vm8919_vm13, %v1304_v40, %v9544_v51  ;;  %v1323_v54 = vrot.slane %v1321_v28, 4  ;;  %v987_v53 = vld [vmem:[#allocation2 + $0xc0] sm:$0xf] }
  0xa6   : > { %v9558_v5 = vpop.permute.xlu0 %1987  ;;  %v821_v14 = vor.u32 %v819_v32, %v818_v15  ;;  %v822_v0 = vrot.slane %v818_v15, 4  ;;  %v1326_v9 = vrot.slane %v1324_v18, 5  ;;  %v9631_v63 = vrot.slane %v1330_v33, 5 }
  0xa7   : > { %v9562_v26 = vpop.permute.xlu1 %1989  ;;  %v985_v62 = vsel %vm8852_vm3, %v814_v12, %v984_v58  ;;  %v829_v6 = vor.u32 %v827_v50, %v9615_v23  ;;  %v1340_v51 = vshll.u32 %v9622_v57, 16  ;;  %v9645_v43 = vcombine.low %v1309_v30, %v1319_v2  ;;  %v9679_v2 = vld [vmem:[#allocation2 + $0x94] sm:$0xf] }
  0xa8   : > { %2069 = vrot.lane.b32.xlu0 %v9493_v45, %s8771_s14  ;;  %v988_v32 = vsel %vm8913_vm12, %v821_v14, %v987_v53  ;;  %986 = vst [vmem:[#allocation2 + $0xbc] sm:$0x1] %v985_v62  ;;  %v1564_v28 = vsel %vm8878_vm9, %v7330_v41, %v1563_v20  ;;  %v2092_v18 = vsel %vm2089_vm1, %v7338_v4, %v9506_v25  ;;  %vm2391_vm12 = vcmask 293888   ;;  %v9674_v25 = vld [vmem:[#allocation2 + $0x90] sm:$0xf] }
  0xa9   : > { %1783 = vrot.lane.b32.xlu1 %v9477_v27, %s8767_s28  ;;  %989 = vst [vmem:[#allocation2 + $0xc0] sm:$0xf] %v988_v32  ;;  %v830_v40 = vsel %vm8926_vm14, %v822_v0, %v829_v6  ;;  %v1567_v33 = vsel %vm8878_vm9, %v1565_v55, %v1566_v34  ;;  %v1327_v12 = vor.u32 %v1326_v9, %v1323_v54  ;;  %v1342_v16 = vrot.slane %v1340_v51, 5 }
  0xaa   : > { %v9583_v61 = vpop.permute.xlu0 %1952  ;;  %990 = vst.msk [vmem:[#allocation2 + $0xc4] sm:$0xf] %vm447_vm0, %v830_v40  ;;  %vm2336_vm0 = vcmask 261120   ;;  %v2140_v17 = vsel %vm2138_vm5, %v2092_v18, %v9499_v21  ;;  %v7331_v58 = vrot.slane %v9569_v29, 9  ;;  %v1570_v14 = vrot.slane %v9580_v48, 5 }
  0xab   : > { %v9587_v27 = vpop.permute.xlu1 %1849  ;;  %v1328_v41 = vrot.slane %v1327_v12, 4  ;;  %v1345_v30 = vshrl.u32 %v9674_v25, 16  ;;  %v1348_v54 = vshll.u32 %v9674_v25, 16  ;;  %v9702_v9 = vcombine.low %v9569_v29, %v9580_v48 }
  0xac   : > { %2071 = vrot.lane.b32.xlu0 %v9567_v31, %s8771_s14  ;;  %v1572_v48 = vrot.slane %v1570_v14, 4  ;;  %v1573_v32 = vrot.slane %v9622_v57, 5  ;;  %v1577_v1 = vrot.slane %v9679_v2, 5 }
  0xad   : > { %1785 = vrot.lane.b32.xlu1 %v9533_v7, %s8767_s28  ;;  %v1333_v53 = vsel %vm8919_vm13, %v1328_v41, %v9631_v63  ;;  %v1350_v40 = vrot.slane %v1348_v54, 5 }
  0xae   : > { %v9601_v37 = vpop.permute.xlu0 %2057 }
  0xaf   : > { %v9606_v47 = vpop.permute.xlu1 %1954 }
  0xb0   : > { %1863 = vrot.lane.b32.xlu0 %v9493_v45, %s8766_s27  ;;  %v1336_v45 = vrot.slane %v1334_v19, 4 }
  0xb1   : > { %1865 = vrot.lane.b32.xlu1 %v9567_v31, %s8766_s27 }
  0xb2   : > { %v9629_v46 = vpop.permute.xlu0 %2059  ;;  %v1337_v15 = vor.u32 %v1336_v45, %v9631_v63  ;;  %v1347_v63 = vrot.slane %v1345_v30, 4 }
  0xb3   : > { %v1920_v10 = vpop.permute.xlu1 %1919 }
  0xb4   : > { %1898 = vrot.lane.b32.xlu0 %v9514_v3, %s8768_s29  ;;  %v1338_v55 = vrot.slane %v1337_v15, 4  ;;  %v9735_v15 = vld [vmem:[#allocation2 + $0xa0] sm:$0xf] }
  0xb5   : > { %1900 = vrot.lane.b32.xlu1 %v9610_v44, %s8768_s29 }
  0xb6   : > { %v1770_v19 = vpop.permute.xlu0 %1769  ;;  %v1343_v62 = vsel %vm8919_vm13, %v1338_v55, %v1342_v16  ;;  %v1351_v16 = vor.u32 %v1350_v40, %v1347_v63  ;;  %v7332_v55 = vrot.slane %v9674_v25, 9 }
  0xb7   : > { %v2025_v50 = vpop.permute.xlu1 %2024  ;;  %v2095_v42 = vsel %vm2089_vm1, %v8990_v11, %v1770_v19  ;;  %v9672_v11 = vcombine.low %v1564_v28, %v1567_v33  ;;  %v9726_v28 = vcombine.low %v1333_v53, %v1343_v62  ;;  %v1032_v33 = vld [vmem:[#allocation2 + $0x98] sm:$0x1]  ;;  %v9765_v62 = vcombine.low %v9674_v25, %v9679_v2 }
  0xb8   : > { %v2142_v20 = vsel %vm2138_vm5, %v2095_v42, %v9587_v27  ;;  %1933 = vrot.lane.b32.xlu0 %v9533_v7, %s8772_s15  ;;  %v2173_v27 = vsel %vm2171_vm6, %v2140_v17, %v9542_v36  ;;  %v1364_v42 = vshll.u32 %v1032_v33, 16  ;;  %v1580_v54 = vrot.slane %v1032_v33, 5 }
  0xb9   : > { %v2175_v4 = vsel %vm2171_vm6, %v2142_v20, %v9531_v39  ;;  %1935 = vrot.lane.b32.xlu1 %v9645_v43, %s8772_s15 }
  0xba   : > { %v2208_v7 = vsel %vm2204_vm7, %v2175_v4, %v1920_v10  ;;  %v1918_v52 = vpop.permute.xlu0 %1917  ;;  %v991_v10 = vld [vmem:[#allocation2 + $0xc8] sm:$0x1]  ;;  %v9744_v4 = vld [vmem:[#allocation2 + $0x9c] sm:$0xf]  ;;  %v1366_v30 = vrot.slane %v1364_v42, 5 }
  0xbb   : > { %v9681_v21 = vpop.permute.xlu1 %1771  ;;  %v2206_v39 = vsel %vm2204_vm7, %v2173_v27, %v1918_v52  ;;  %v2241_v34 = vsel %vm2237_vm8, %v2208_v7, %v9606_v47  ;;  %v1382_v7 = vshrl.u32 %v9735_v15, 16  ;;  %v1378_v52 = vshll.u32 %v9735_v15, 16 }
  0xbc   : > { %v2239_v36 = vsel %vm2237_vm8, %v2206_v39, %v9583_v61  ;;  %1968 = vrot.lane.b32.xlu0 %v9567_v31, %s8770_s13  ;;  %v2274_v0 = vsel %vm2270_vm10, %v2241_v34, %v9562_v26  ;;  %v1358_v61 = vshrl.u32 %v9679_v2, 16  ;;  %v1354_v31 = vshll.u32 %v9679_v2, 16 }
  0xbd   : > { %1970 = vrot.lane.b32.xlu1 %v9672_v11, %s8770_s13  ;;  %v2272_v47 = vsel %vm2270_vm10, %v2239_v36, %v9558_v5  ;;  %v2307_v26 = vsel %vm2303_vm11, %v2274_v0, %v2025_v50  ;;  %v831_v5 = vrot.slane %v9615_v23, 4  ;;  %v1574_v50 = vsel %vm8878_vm9, %v1572_v48, %v1573_v32 }
  0xbe   : > { %v2023_v45 = vpop.permute.xlu0 %2022  ;;  %v2340_v23 = vsel %vm2336_vm0, %v2307_v26, %v9629_v46  ;;  %v1356_v57 = vrot.slane %v1354_v31, 5  ;;  %v1360_v18 = vrot.slane %v1358_v61, 4  ;;  %v1571_v46 = vsel %vm8878_vm9, %v7331_v58, %v1570_v14 }
  0xbf   : > { %v9713_v6 = vpop.permute.xlu1 %1773  ;;  %v2305_v29 = vsel %vm2303_vm11, %v2272_v47, %v2023_v45  ;;  %v7381_v41 = vcombine.low %v1571_v46, %v1574_v50  ;;  %v1579_v39 = vrot.slane %v1577_v1, 4  ;;  %v1369_v34 = vshrl.u32 %v9744_v4, 16 }
  0xc0   : > { %2003 = vrot.lane.b32.xlu0 %v9610_v44, %s8769_s30  ;;  %v2338_v51 = vsel %vm2336_vm0, %v2305_v29, %v9601_v37  ;;  %v992_v37 = vsel %vm8852_vm3, %v831_v5, %v991_v10  ;;  %v1361_v17 = vor.u32 %v1360_v18, %v1356_v57  ;;  %v1372_v58 = vshll.u32 %v9744_v4, 16  ;;  %v9767_v5 = vld [vmem:[#allocation2 + $0xa4] sm:$0x1] }
  0xc1   : > { %2005 = vrot.lane.b32.xlu1 %v9702_v9, %s8769_s30  ;;  %8083 = vmatprep.mubr.msk.bf16.mxu0 %vm2391_vm12, %v2338_v51  ;;  %993 = vst [vmem:[#allocation2 + $0xc8] sm:$0x1] %v992_v37  ;;  %v1352_v36 = vrot.slane %v1351_v16, 4  ;;  %v9755_v61 = vrot.slane %v1378_v52, 5  ;;  %v1384_v31 = vrot.slane %v1382_v7, 4  ;;  %v1578_v51 = vsel %vm8878_vm9, %v7332_v55, %v1577_v1 }
  0xc2   : > { %8084 = vmatmul.mubr.msk.bf16.vlgmr.msra.gmra.mxu0 %vm2391_vm12, %v2340_v23  ;;  %v1852_v19 = vpop.permute.xlu0 %1851  ;;  %v1362_v0 = vrot.slane %v1361_v17, 4  ;;  %v1374_v45 = vrot.slane %v1372_v58, 5  ;;  %v2101_v33 = vsel %vm2089_vm1, %v9009_v38, %v9713_v6  ;;  %v1584_v55 = vrot.slane %v9735_v15, 5 }
  0xc3   : > { %v9731_v12 = vpop.permute.xlu1 %1853  ;;  %v1357_v48 = vsel %vm8919_vm13, %v1352_v36, %v1356_v57  ;;  %v1385_v63 = vor.u32 %v1384_v31, %v9755_v61  ;;  %v1388_v57 = vshll.u32 %v9767_v5, 16  ;;  %v9827_v36 = vld [vmem:[#allocation2 + $0xa8] sm:$0xf]  ;;  %v1587_v31 = vrot.slane %v9767_v5, 5 }
  0xc4   : > { %2038 = vrot.lane.b32.xlu0 %v9645_v43, %s8773_s16  ;;  %v1367_v32 = vsel %vm8919_vm13, %v1362_v0, %v1366_v30  ;;  %v2146_v46 = vsel %vm2138_vm5, %v2101_v33, %v9731_v12  ;;  %vm2781_vm3 = vcmask 1040384  }
  0xc5   : > { %2040 = vrot.lane.b32.xlu1 %v9726_v28, %s8773_s16  ;;  %v9781_v2 = vcombine.low %v1357_v48, %v1367_v32  ;;  %v1386_v1 = vrot.slane %v1385_v63, 4  ;;  %v1390_v17 = vrot.slane %v1388_v57, 5  ;;  %vm10017_vm15 = vmand %vm2781_vm3, %vm458_vm2 }
  0xc6   : > { %v1887_v20 = vpop.permute.xlu0 %1886  ;;  %vm10030_vm2 = vmand %vm2781_vm3, %vm508_vm4  ;;  %vm3296_vm3 = vcmask 1043456  }
  0xc7   : > { %v1889_v27 = vpop.permute.xlu1 %1888 }
  0xc8   : > { %2073 = vrot.lane.b32.xlu0 %v9672_v11, %s8771_s14 }
  0xc9   : > { %1787 = vrot.lane.b32.xlu1 %v9645_v43, %s8767_s28  ;;  %v1371_v43 = vrot.slane %v1369_v34, 4 }
  0xca   : > { %v1922_v14 = vpop.permute.xlu0 %1921 }
  0xcb   : > { %v1924_v47 = vpop.permute.xlu1 %1923 }
  0xcc   : > { %2075 = vrot.lane.b32.xlu0 %v7381_v41, %s8771_s14 }
  0xcd   : > { %1789 = vrot.lane.b32.xlu1 %v9726_v28, %s8767_s28 }
  0xce   : > { %v1957_v26 = vpop.permute.xlu0 %1956 }
  0xcf   : > { %v1959_v53 = vpop.permute.xlu1 %1958 }
  0xd0   : > { %1867 = vrot.lane.b32.xlu0 %v9672_v11, %s8766_s27  ;;  %v2098_v11 = vsel %vm2089_vm1, %v8971_v59, %v9681_v21  ;;  %v1581_v59 = vsel %vm8878_vm9, %v1579_v39, %v1580_v54  ;;  %v1375_v21 = vor.u32 %v1374_v45, %v1371_v43  ;;  %v9819_v39 = vcombine.low %v9744_v4, %v9735_v15  ;;  %v9832_v54 = vld [vmem:[#allocation2 + $0xac] sm:$0xf] }
  0xd1   : > { %1869 = vrot.lane.b32.xlu1 %v7381_v41, %s8766_s27  ;;  %v2144_v25 = vsel %vm2138_vm5, %v2098_v11, %v1852_v19  ;;  %v9802_v42 = vcombine.low %v1578_v51, %v1581_v59  ;;  %v7333_v15 = vrot.slane %v9744_v4, 9  ;;  %v1393_v43 = vshrl.u32 %v9827_v36, 16 }
  0xd2   : > { %v1992_v29 = vpop.permute.xlu0 %1991  ;;  %v2177_v40 = vsel %vm2171_vm6, %v2144_v25, %v1887_v20  ;;  %v2179_v20 = vsel %vm2171_vm6, %v2146_v46, %v1889_v27  ;;  %v1376_v16 = vrot.slane %v1375_v21, 4  ;;  %v1396_v45 = vshll.u32 %v9827_v36, 16 }
  0xd3   : > { %v1994_v10 = vpop.permute.xlu1 %1993  ;;  %v2210_v18 = vsel %vm2204_vm7, %v2177_v40, %v1922_v14  ;;  %v1391_v14 = vsel %vm8919_vm13, %v1386_v1, %v1390_v17  ;;  %v1585_v4 = vsel %vm8878_vm9, %v7333_v15, %v1584_v55  ;;  %v1395_v32 = vrot.slane %v1393_v43, 4  ;;  %v1038_v40 = vld [vmem:[#allocation2 + $0xb0] sm:$0x1] }
  0xd4   : > { %1902 = vrot.lane.b32.xlu0 %v9702_v9, %s8768_s29  ;;  %v2243_v37 = vsel %vm2237_vm8, %v2210_v18, %v1957_v26  ;;  %v1412_v18 = vshll.u32 %v1038_v40, 16 }
  0xd5   : > { %1904 = vrot.lane.b32.xlu1 %v9765_v62, %s8768_s29  ;;  %v2276_v50 = vsel %vm2270_vm10, %v2243_v37, %v1992_v29  ;;  %v1402_v29 = vshll.u32 %v9832_v54, 16  ;;  %v9865_v37 = vld [vmem:[#allocation2 + $0xb8] sm:$0xf] }
  0xd6   : > { %v2027_v23 = vpop.permute.xlu0 %2026  ;;  %v1426_v17 = vshll.u32 %v9865_v37, 16 }
  0xd7   : > { %v2029_v19 = vpop.permute.xlu1 %2028  ;;  %v2309_v38 = vsel %vm2303_vm11, %v2276_v50, %v2027_v23  ;;  %v1404_v25 = vrot.slane %v1402_v29, 5  ;;  %v1591_v50 = vrot.slane %v9832_v54, 5 }
  0xd8   : > { %1937 = vrot.lane.b32.xlu0 %v9726_v28, %s8772_s15  ;;  %v2212_v28 = vsel %vm2204_vm7, %v2179_v20, %v1924_v47  ;;  %v1586_v47 = vrot.slane %v1584_v55, 4 }
  0xd9   : > { %1939 = vrot.lane.b32.xlu1 %v9781_v2, %s8772_s15  ;;  %v2245_v52 = vsel %vm2237_vm8, %v2212_v28, %v1959_v53  ;;  %v1406_v53 = vshrl.u32 %v9832_v54, 16  ;;  %v1593_v55 = vrot.slane %v1591_v50, 4 }
  0xda   : > { %v2062_v6 = vpop.permute.xlu0 %2061  ;;  %v2278_v27 = vsel %vm2270_vm10, %v2245_v52, %v1994_v10  ;;  %v1588_v5 = vsel %vm8878_vm9, %v1586_v47, %v1587_v31  ;;  %v1398_v10 = vrot.slane %v1396_v45, 5  ;;  %v7334_v52 = vrot.slane %v9827_v36, 9  ;;  %v9889_v47 = vld [vmem:[#allocation2 + $0xbc] sm:$0x1] }
  0xdb   : > { %v9807_v7 = vpop.permute.xlu1 %1775  ;;  %v2342_v12 = vsel %vm2336_vm0, %v2309_v38, %v2062_v6  ;;  %v2311_v34 = vsel %vm2303_vm11, %v2278_v27, %v2029_v19  ;;  %v1408_v51 = vrot.slane %v1406_v53, 4  ;;  %v9859_v23 = vcombine.low %v1585_v4, %v1588_v5  ;;  %v9863_v19 = vld [vmem:[#allocation2 + $0xb4] sm:$0xf] }
  0xdc   : > { %1972 = vrot.lane.b32.xlu0 %v7381_v41, %s8770_s13  ;;  %8087 = vmatprep.mubr.msk.bf16.mxu0 %vm2391_vm12, %v2342_v12  ;;  %v1381_v41 = vsel %vm8919_vm13, %v1376_v16, %v9755_v61  ;;  %v1399_v59 = vor.u32 %v1398_v10, %v1395_v32  ;;  %v1420_v1 = vshll.u32 %v9863_v19, 16  ;;  %v1414_v6 = vrot.slane %v1412_v18, 5 }
  0xdd   : > { %1974 = vrot.lane.b32.xlu1 %v9802_v42, %s8770_s13  ;;  %v9840_v61 = vcombine.low %v1381_v41, %v1391_v14  ;;  %v1409_v57 = vor.u32 %v1408_v51, %v1404_v25  ;;  %v1430_v16 = vshrl.u32 %v9865_v37, 16  ;;  %v9880_v12 = vcombine.low %v9827_v36, %v9832_v54 }
  0xde   : > { %v2064_v58 = vpop.permute.xlu0 %2063  ;;  %v1400_v46 = vrot.slane %v1399_v59, 4  ;;  %v1594_v27 = vrot.slane %v1038_v40, 5  ;;  %v2104_v36 = vsel %vm2089_vm1, %v9144_v22, %v9807_v7  ;;  %v1592_v45 = vsel %vm8878_vm9, %v7334_v52, %v1591_v50 }
  0xdf   : > { %v9829_v0 = vpop.permute.xlu1 %1777  ;;  %v2344_v30 = vsel %vm2336_vm0, %v2311_v34, %v2064_v58  ;;  %v1410_v38 = vrot.slane %v1409_v57, 4  ;;  %v1422_v58 = vrot.slane %v1420_v1, 5  ;;  %v1432_v15 = vrot.slane %v1430_v16, 4 }
  0xe0   : > { %2007 = vrot.lane.b32.xlu0 %v9765_v62, %s8769_s30  ;;  %8088 = vmatmul.mubr.msk.bf16.gmra.mxu0 %vm2391_vm12, %v2344_v30  ;;  %v1405_v14 = vsel %vm8919_vm13, %v1400_v46, %v1404_v25  ;;  %v1428_v30 = vrot.slane %v1426_v17, 5  ;;  %v1595_v22 = vsel %vm8878_vm9, %v1593_v55, %v1594_v27  ;;  %v1436_v5 = vshll.u32 %v9889_v47, 16  ;;  %v9947_v17 = vld [vmem:[#allocation2 + $0xc0] sm:$0xf] }
  0xe1   : > { %2009 = vrot.lane.b32.xlu1 %v9819_v39, %s8769_s30  ;;  %v2107_v10 = vsel %vm2089_vm1, %v9197_v60, %v9829_v0  ;;  %v9919_v40 = vcombine.low %v1592_v45, %v1595_v22  ;;  %v7335_v52 = vrot.slane %v9863_v19, 9  ;;  %v1601_v27 = vrot.slane %v9889_v47, 5 }
  0xe2   : > { %v1856_v26 = vpop.permute.xlu0 %1855  ;;  %v1433_v7 = vor.u32 %v1432_v15, %v1428_v30  ;;  %v1438_v18 = vrot.slane %v1436_v5, 5 }
  0xe3   : > { %v9847_v48 = vpop.permute.xlu1 %1857  ;;  %v2148_v31 = vsel %vm2138_vm5, %v2104_v36, %v1856_v26 }
  0xe4   : > { %2042 = vrot.lane.b32.xlu0 %v9781_v2, %s8773_s16  ;;  %v1434_v57 = vrot.slane %v1433_v7, 4  ;;  %v9993_v7 = vld [vmem:[#allocation2 + $0xcc] sm:$0xf] }
  0xe5   : > { %2044 = vrot.lane.b32.xlu1 %v9840_v61, %s8773_s16 }
  0xe6   : > { %v1891_v11 = vpop.permute.xlu0 %1890 }
  0xe7   : > { %v1893_v63 = vpop.permute.xlu1 %1892  ;;  %v2181_v29 = vsel %vm2171_vm6, %v2148_v31, %v1891_v11  ;;  %v2150_v11 = vsel %vm2138_vm5, %v2107_v10, %v9847_v48 }
  0xe8   : > { %2077 = vrot.lane.b32.xlu0 %v9802_v42, %s8771_s14 }
  0xe9   : > { %1791 = vrot.lane.b32.xlu1 %v9781_v2, %s8767_s28  ;;  %v1417_v2 = vshrl.u32 %v9863_v19, 16 }
  0xea   : > { %v1926_v21 = vpop.permute.xlu0 %1925 }
  0xeb   : > { %v1928_v33 = vpop.permute.xlu1 %1927  ;;  %v1419_v34 = vrot.slane %v1417_v2, 4  ;;  %v2214_v26 = vsel %vm2204_vm7, %v2181_v29, %v1926_v21  ;;  %v2183_v21 = vsel %vm2171_vm6, %v2150_v11, %v1893_v63  ;;  %v9936_v2 = vcombine.low %v9863_v19, %v9865_v37  ;;  %v9982_v29 = vld [vmem:[#allocation2 + $0xc8] sm:$0x1] }
  0xec   : > { %2079 = vrot.lane.b32.xlu0 %v9859_v23, %s8771_s14  ;;  %v1623_v10 = vshll.u32 %v9982_v29, 16 }
  0xed   : > { %1793 = vrot.lane.b32.xlu1 %v9840_v61, %s8767_s28  ;;  %v1423_v53 = vor.u32 %v1422_v58, %v1419_v34  ;;  %v1604_v58 = vshrl.u32 %v9947_v17, 16 }
  0xee   : > { %v1961_v20 = vpop.permute.xlu0 %1960 }
  0xef   : > { %v1963_v28 = vpop.permute.xlu1 %1962  ;;  %v2247_v25 = vsel %vm2237_vm8, %v2214_v26, %v1961_v20  ;;  %v1424_v59 = vrot.slane %v1423_v53, 4  ;;  %v1606_v47 = vrot.slane %v1604_v58, 4 }
  0xf0   : > { %1871 = vrot.lane.b32.xlu0 %v9802_v42, %s8766_s27  ;;  %v1415_v42 = vsel %vm8919_vm13, %v1410_v38, %v1414_v6 }
  0xf1   : > { %1873 = vrot.lane.b32.xlu1 %v9859_v23, %s8766_s27  ;;  %v9899_v43 = vcombine.low %v1405_v14, %v1415_v42  ;;  %v1429_v38 = vsel %vm8919_vm13, %v1424_v59, %v1428_v30 }
  0xf2   : > { %v1996_v41 = vpop.permute.xlu0 %1995 }
  0xf3   : > { %v1998_v54 = vpop.permute.xlu1 %1997  ;;  %v2280_v51 = vsel %vm2270_vm10, %v2247_v25, %v1996_v41  ;;  %v1607_v41 = vshll.u32 %v9947_v17, 16  ;;  %v9999_v25 = vld [vmem:[#allocation2 + $0xd0] sm:$0xf] }
  0xf4   : > { %1906 = vrot.lane.b32.xlu0 %v9819_v39, %s8768_s29 }
  0xf5   : > { %1908 = vrot.lane.b32.xlu1 %v9880_v12, %s8768_s29  ;;  %v1609_v36 = vrot.slane %v1607_v41, 5 }
  0xf6   : > { %v2031_v4 = vpop.permute.xlu0 %2030 }
  0xf7   : > { %v2033_v32 = vpop.permute.xlu1 %2032  ;;  %v2313_v60 = vsel %vm2303_vm11, %v2280_v51, %v2031_v4  ;;  %v8627_v4 = vld [vmem:[%s12155_s6 + $0x38] sm:$0xff]   ;;  %v1610_v26 = vor.u32 %v1609_v36, %v1606_v47  ;;  %v1638_v51 = vshrl.u32 %v9993_v7, 16 }
  0xf8   : > { %1941 = vrot.lane.b32.xlu0 %v9840_v61, %s8772_s15  ;;  %v2216_v61 = vsel %vm2204_vm7, %v2183_v21, %v1928_v33  ;;  %v1598_v33 = vrot.slane %v9865_v37, 5  ;;  %8163 = vmatprep.subr.bf16.mxu0 %v8627_v4  ;;  %v1641_v21 = vshll.u32 %v9993_v7, 16  ;;  %v2835_v47 = vld [vmem:[#allocation3 + $0x20] sm:$0x1] }
  0xf9   : > { %1943 = vrot.lane.b32.xlu1 %v9899_v43, %s8772_s15  ;;  %v2249_v50 = vsel %vm2237_vm8, %v2216_v61, %v1963_v28  ;;  %v9949_v28 = vld [vmem:[#allocation2 + $0xc4] sm:$0xf]  ;;  %8164 = vmatpush3.bf16.msra.mxu0 %v8627_v4  ;;  %v2836_v4 = vsel %vm10030_vm2, 0, %v2835_v47 }
  0xfa   : > { %v2066_v0 = vpop.permute.xlu0 %2065  ;;  %v2282_v63 = vsel %vm2270_vm10, %v2249_v50, %v1998_v54  ;;  %v1600_v55 = vrot.slane %v1598_v33, 4  ;;  %v1617_v14 = vshrl.u32 %v9949_v28, 16  ;;  %v1613_v42 = vshll.u32 %v9949_v28, 16  ;;  %2837 = vst [vmem:[#allocation3 + $0x20] sm:$0x1] %v2836_v4 }
  0xfb   : > { %v9924_v46 = vpop.permute.xlu1 %1779  ;;  %v2346_v48 = vsel %vm2336_vm0, %v2313_v60, %v2066_v0  ;;  %v2315_v1 = vsel %vm2303_vm11, %v2282_v63, %v2033_v32  ;;  %v1599_v19 = vsel %vm8878_vm9, %v7335_v52, %v1598_v33  ;;  %v1632_v59 = vrot.slane %v9949_v28, 5 }
  0xfc   : > { %1976 = vrot.lane.b32.xlu0 %v9859_v23, %s8770_s13  ;;  %8091 = vmatprep.mubr.msk.bf16.mxu0 %vm2391_vm12, %v2346_v48  ;;  %v1439_v23 = vsel %vm8919_vm13, %v1434_v57, %v1438_v18  ;;  %v1602_v15 = vsel %vm8878_vm9, %v1600_v55, %v1601_v27  ;;  %v9978_v31 = vrot.slane %v1613_v42, 5  ;;  %v1619_v45 = vrot.slane %v1617_v14, 4  ;;  %v2786_v18 = vld [vmem:[#allocation3 + $0x18] sm:$0x1]  ;;  %v2783_v55 = vld [vmem:[#allocation3 + $0xc] sm:$0x1] }
  0xfd   : > { %1978 = vrot.lane.b32.xlu1 %v9919_v40, %s8770_s13  ;;  %v9956_v37 = vcombine.low %v1429_v38, %v1439_v23  ;;  %v9989_v22 = vcombine.low %v1599_v19, %v1602_v15  ;;  %v1651_v60 = vshrl.u32 %v9999_v25, 16  ;;  %v1647_v0 = vshll.u32 %v9999_v25, 16  ;;  %v10044_v27 = vld [vmem:[%s12155_s6 + $0x78] sm:$0xff]  }
  0xfe   : > { %v2068_v20 = vpop.permute.xlu0 %2067  ;;  %v1620_v32 = vor.u32 %v1619_v45, %v9978_v31  ;;  %v1611_v48 = vrot.slane %v1610_v26, 4  ;;  %v1625_v63 = vrot.slane %v1623_v10, 5  ;;  %v2787_v33 = vsel %vm10017_vm15, 0, %v2786_v18  ;;  %8115 = vmatprep.subr.bf16.mxu1 %v10044_v27  ;;  %v10059_v45 = vld [vmem:[#allocation2 + $0xd4] sm:$0x1] }
  0xff   : > { %v9944_v6 = vpop.permute.xlu1 %1781  ;;  %v2348_v16 = vsel %vm2336_vm0, %v2315_v1, %v2068_v20  ;;  %2788 = vst [vmem:[#allocation3 + $0x18] sm:$0x1] %v2787_v33  ;;  %v8629_v20 = vld [vmem:[%s12155_s6 + $0x28] sm:$0xff]   ;;  %v10038_v23 = vcombine.low %v9947_v17, %v9949_v28  ;;  %v1640_v52 = vrot.slane %v1638_v51, 4  ;;  %v1634_v58 = vrot.slane %v1632_v59, 4 }
 0x100   : > { %2011 = vrot.lane.b32.xlu0 %v9880_v12, %s8769_s30  ;;  %8092 = vmatmul.mubr.msk.bf16.gmra.mxu0 %vm2391_vm12, %v2348_v16  ;;  %v1621_v50 = vrot.slane %v1620_v32, 4  ;;  %v7336_v16 = vrot.slane %v9947_v17, 9  ;;  %v1643_v41 = vrot.slane %v1641_v21, 5  ;;  %v10048_v14 = vrot.slane %v1647_v0, 5  ;;  %v2832_v32 = vld [vmem:[#allocation3 + $0x14] sm:$0x1] }
 0x101   : > { %2013 = vrot.lane.b32.xlu1 %v9936_v2, %s8769_s30  ;;  %v1616_v17 = vsel %vm8919_vm13, %v1611_v48, %v9978_v31  ;;  %v1635_v19 = vrot.slane %v9982_v29, 5  ;;  %v1653_v15 = vrot.slane %v1651_v60, 4  ;;  %v8631_v31 = vld [vmem:[%s12155_s6 + $0x20] sm:$0xff]   ;;  %v2110_v29 = vsel %vm2089_vm1, %v9291_v35, %v9924_v46  ;;  %v8633_v48 = vld [vmem:[%s12155_s6 + $0x18] sm:$0xff]  }
 0x102   : > { %v9960_v34 = vpop.permute.xlu0 %1859  ;;  %v1626_v42 = vsel %vm8919_vm13, %v1621_v50, %v1625_v63  ;;  %v1633_v26 = vsel %vm8878_vm9, %v7336_v16, %v1632_v59  ;;  %v1644_v51 = vor.u32 %v1643_v41, %v1640_v52  ;;  %v2833_v21 = vsel %vm10030_vm2, 0, %v2832_v32  ;;  %v8635_v41 = vld [vmem:[%s12155_s6 + $0x10] sm:$0xff]   ;;  %v10148_v32 = vld [vmem:[#allocation3 + $0x4] sm:$0xf] }
 0x103   : > { %v9966_v30 = vpop.permute.xlu1 %1861  ;;  %v2152_v10 = vsel %vm2138_vm5, %v2110_v29, %v9960_v34  ;;  %v1636_v59 = vsel %vm8878_vm9, %v1634_v58, %v1635_v19  ;;  %v1654_v60 = vor.u32 %v1653_v15, %v10048_v14  ;;  %v1657_v34 = vshll.u32 %v10059_v45, 16  ;;  %2834 = vst [vmem:[#allocation3 + $0x14] sm:$0x1] %v2833_v21  ;;  %v8639_v29 = vld [vmem:[%s12155_s6] sm:$0xff]   ;;  %v8722_v57 = vld [vmem:[#allocation3 + $0x4] sm:$0xf] }
 0x104   : > { %2046 = vrot.lane.b32.xlu0 %v9899_v43, %s8773_s16  ;;  %v1666_v63 = vrot.slane %v9999_v25, 5  ;;  %v1645_v16 = vrot.slane %v1644_v51, 4  ;;  %v1669_v15 = vrot.slane %v10059_v45, 5 }
 0x105   : > { %2048 = vrot.lane.b32.xlu1 %v9956_v37, %s8773_s16  ;;  %v1655_v52 = vrot.slane %v1654_v60, 4 }
 0x106   : > { %v9976_v54 = vpop.permute.xlu0 %1894 }
 0x107   : > { %v9980_v53 = vpop.permute.xlu1 %1896  ;;  %v2185_v35 = vsel %vm2171_vm6, %v2152_v10, %v9976_v54  ;;  %v2113_v54 = vsel %vm2089_vm1, %v9359_v8, %v9944_v6 }
 0x108   : > { %2081 = vrot.lane.b32.xlu0 %v9919_v40, %s8771_s14  ;;  %v2154_v33 = vsel %vm2138_vm5, %v2113_v54, %v9966_v30 }
 0x109   : > { %1795 = vrot.lane.b32.xlu1 %v9899_v43, %s8767_s28  ;;  %v8628_v43 = vld [vmem:[%s12155_s6 + $0x30] sm:$0xff]   ;;  %v2187_v8 = vsel %vm2171_vm6, %v2154_v33, %v9980_v53 }
 0x10a   : > { %v9995_v5 = vpop.permute.xlu0 %1929  ;;  %8165 = vmatprep.subr.bf16.mxu0 %v8628_v43 }
 0x10b   : > { %v10001_v11 = vpop.permute.xlu1 %1931  ;;  %8166 = vmatpush3.bf16.msra.mxu0 %v8628_v43  ;;  %v7387_v43 = vcombine.low %v1616_v17, %v1626_v42  ;;  %v2218_v0 = vsel %vm2204_vm7, %v2185_v35, %v9995_v5  ;;  %v1668_v17 = vrot.slane %v1666_v63, 4 }
 0x10c   : > { %2083 = vrot.lane.b32.xlu0 %v9989_v22, %s8771_s14  ;;  %8167 = vmatprep.subr.bf16.mxu0 %v8629_v20 }
 0x10d   : > { %1797 = vrot.lane.b32.xlu1 %v9956_v37, %s8767_s28  ;;  %v1670_v4 = vsel %vm8878_vm9, %v1668_v17, %v1669_v15 }
 0x10e   : > { %v1965_v61 = vpop.permute.xlu0 %1964 }
 0x10f   : > { %v10023_v1 = vpop.permute.xlu1 %1966  ;;  %8168 = vmatpush3.bf16.msra.mxu0 %v8629_v20  ;;  %v2251_v50 = vsel %vm2237_vm8, %v2218_v0, %v1965_v61  ;;  %v7388_v20 = vcombine.low %v1633_v26, %v1636_v59  ;;  %v10146_v26 = vld [vmem:[#allocation3] sm:$0xf] }
 0x110   : > { %1875 = vrot.lane.b32.xlu0 %v9919_v40, %s8766_s27  ;;  %v2784_v40 = vsel %vm10017_vm15, 0, %v2783_v55  ;;  %8169 = vmatprep.subr.bf16.mxu0 %v8631_v31  ;;  %v2220_v55 = vsel %vm2204_vm7, %v2187_v8, %v10001_v11  ;;  %v7389_v11 = vcombine.low %v9993_v7, %v9999_v25  ;;  %v7472_v51 = vcombine.low %v10146_v26, %v10148_v32 }
 0x111   : > { %1877 = vrot.lane.b32.xlu1 %v9989_v22, %s8766_s27  ;;  %2785 = vst [vmem:[#allocation3 + $0xc] sm:$0x1] %v2784_v40  ;;  %v2253_v53 = vsel %vm2237_vm8, %v2220_v55, %v10023_v1 }
 0x112   : > { %v2000_v28 = vpop.permute.xlu0 %1999 }
 0x113   : > { %v2002_v36 = vpop.permute.xlu1 %2001  ;;  %8170 = vmatpush3.bf16.msra.mxu0 %v8631_v31  ;;  %v2284_v5 = vsel %vm2270_vm10, %v2251_v50, %v2000_v28  ;;  %v7337_v28 = vrot.slane %v9993_v7, 9  ;;  %v8637_v7 = vld [vmem:[%s12155_s6 + $0x8] sm:$0xff]  }
 0x114   : > { %1910 = vrot.lane.b32.xlu0 %v9936_v2, %s8768_s29  ;;  %8171 = vmatprep.subr.bf16.mxu0 %v8633_v48  ;;  %v2286_v40 = vsel %vm2270_vm10, %v2253_v53, %v2002_v36 }
 0x115   : > { %1912 = vrot.lane.b32.xlu1 %v10038_v23, %s8768_s29  ;;  %v1667_v45 = vsel %vm8878_vm9, %v7337_v28, %v1666_v63  ;;  %v2838_v63 = vld [vmem:[#allocation3 + $0x2c] sm:$0x1] }
 0x116   : > { %v2035_v46 = vpop.permute.xlu0 %2034 }
 0x117   : > { %v2037_v18 = vpop.permute.xlu1 %2036  ;;  %v2317_v6 = vsel %vm2303_vm11, %v2284_v5, %v2035_v46  ;;  %8172 = vmatpush3.bf16.msra.mxu0 %v8633_v48  ;;  %v2792_v46 = vld [vmem:[#allocation3 + $0x30] sm:$0x1]  ;;  %v2841_v48 = vld [vmem:[#allocation3 + $0x38] sm:$0x1]  ;;  %v2839_v5 = vsel %vm10030_vm2, 0, %v2838_v63 }
 0x118   : > { %1945 = vrot.lane.b32.xlu0 %v9956_v37, %s8772_s15  ;;  %v1659_v37 = vrot.slane %v1657_v34, 5  ;;  %8173 = vmatprep.subr.bf16.mxu0 %v8635_v41  ;;  %v2319_v42 = vsel %vm2303_vm11, %v2286_v40, %v2037_v18  ;;  %v2793_v59 = vsel %vm10017_vm15, 0, %v2792_v46  ;;  %v2789_v34 = vld [vmem:[#allocation3 + $0x24] sm:$0x1]  ;;  %v2842_v54 = vsel %vm10030_vm2, 0, %v2841_v48 }
 0x119   : > { %1947 = vrot.lane.b32.xlu1 %v7387_v43, %s8772_s15  ;;  %2794 = vst [vmem:[#allocation3 + $0x30] sm:$0x1] %v2793_v59  ;;  %v2790_v18 = vsel %vm10017_vm15, 0, %v2789_v34  ;;  %2843 = vst [vmem:[#allocation3 + $0x38] sm:$0x1] %v2842_v54 }
 0x11a   : > { %v2070_v61 = vpop.permute.xlu0 %2069  ;;  %v1660_v1 = vsel %vm8919_vm13, %v1655_v52, %v1659_v37  ;;  %2791 = vst [vmem:[#allocation3 + $0x24] sm:$0x1] %v2790_v18  ;;  %2840 = vst [vmem:[#allocation3 + $0x2c] sm:$0x1] %v2839_v5  ;;  %v8645_v18 = vld [vmem:[%s12155_s6 + $0x40] sm:$0xff]  }
 0x11b   : > { %v10106_v30 = vpop.permute.xlu1 %1783  ;;  %v2350_v58 = vsel %vm2336_vm0, %v2317_v6, %v2070_v61  ;;  %8174 = vmatpush3.bf16.msra.mxu0 %v8635_v41  ;;  %v2795_v48 = vld [vmem:[#allocation3 + $0x3c] sm:$0x1]  ;;  %v2847_v5 = vld [vmem:[#allocation3 + $0x50] sm:$0x1] }
 0x11c   : > { %1980 = vrot.lane.b32.xlu0 %v9989_v22, %s8770_s13  ;;  %8095 = vmatprep.mubr.msk.bf16.mxu0 %vm2391_vm12, %v2350_v58  ;;  %v1650_v22 = vsel %vm8919_vm13, %v1645_v16, %v10048_v14  ;;  %v2796_v63 = vsel %vm10017_vm15, 0, %v2795_v48 }
 0x11d   : > { %1982 = vrot.lane.b32.xlu1 %v7388_v20, %s8770_s13  ;;  %v7390_v14 = vcombine.low %v1650_v22, %v1660_v1  ;;  %8175 = vmatprep.subr.bf16.mxu0 %v8637_v7  ;;  %v8632_v22 = vld [vmem:[%s12155_s6 + $0x70] sm:$0xff]   ;;  %2797 = vst [vmem:[#allocation3 + $0x3c] sm:$0x1] %v2796_v63 }
 0x11e   : > { %v2072_v19 = vpop.permute.xlu0 %2071 }
 0x11f   : > { %v1786_v47 = vpop.permute.xlu1 %1785  ;;  %v2352_v25 = vsel %vm2336_vm0, %v2319_v42, %v2072_v19  ;;  %8176 = vmatpush3.bf16.msra.mxu0 %v8637_v7 }
 0x120   : > { %2015 = vrot.lane.b32.xlu0 %v10038_v23, %s8769_s30  ;;  %8096 = vmatmul.mubr.msk.bf16.gmra.mxu0 %vm2391_vm12, %v2352_v25  ;;  %v7391_v23 = vcombine.low %v1667_v45, %v1670_v4  ;;  %v2119_v37 = vsel %vm2089_vm1, %v9514_v3, %v1786_v47  ;;  %v8634_v25 = vld [vmem:[%s12155_s6 + $0x68] sm:$0xff]  }
 0x121   : > { %2017 = vrot.lane.b32.xlu1 %v7389_v11, %s8769_s30  ;;  %8177 = vmatprep.subr.bf16.mxu0 %v8639_v29 }
 0x122   : > { %v1864_v36 = vpop.permute.xlu0 %1863  ;;  %8179 = vmatprep.mubr.bf16.mxu0 %v7472_v51  ;;  %v8640_v51 = vld [vmem:[%s12155_s6 + $0x50] sm:$0xff]  }
 0x123   : > { %v1866_v31 = vpop.permute.xlu1 %1865  ;;  %8178 = vmatpush3.bf16.msra.mxu0 %v8639_v29  ;;  %v2798_v29 = vld [vmem:[#allocation3 + $0x48] sm:$0x1] }
 0x124   : > { %2050 = vrot.lane.b32.xlu0 %v7387_v43, %s8773_s16  ;;  %v2158_v58 = vsel %vm2138_vm5, %v2119_v37, %v1866_v31 }
 0x125   : > { %2052 = vrot.lane.b32.xlu1 %v7390_v14, %s8773_s16 }
 0x126   : > { %v1899_v10 = vpop.permute.xlu0 %1898 }
 0x127   : > { %v1901_v21 = vpop.permute.xlu1 %1900 }
 0x128   : > { %2085 = vrot.lane.b32.xlu0 %v7388_v20, %s8771_s14  ;;  %v2116_v20 = vsel %vm2089_vm1, %v9450_v24, %v10106_v30  ;;  %v2191_v24 = vsel %vm2171_vm6, %v2158_v58, %v1901_v21 }
 0x129   : > { %2087 = vrot.lane.b32.xlu1 %v7391_v23, %s8771_s14  ;;  %v2156_v16 = vsel %vm2138_vm5, %v2116_v20, %v1864_v36  ;;  %v8636_v36 = vld [vmem:[%s12155_s6 + $0x60] sm:$0xff]   ;;  %v2799_v23 = vsel %vm10017_vm15, 0, %v2798_v29  ;;  %v2801_v29 = vld [vmem:[#allocation3 + $0x54] sm:$0x1] }
 0x12a   : > { %v1934_v43 = vpop.permute.xlu0 %1933  ;;  %v2189_v8 = vsel %vm2171_vm6, %v2156_v16, %v1899_v10  ;;  %2800 = vst [vmem:[#allocation3 + $0x48] sm:$0x1] %v2799_v23 }
 0x12b   : > { %v1936_v35 = vpop.permute.xlu1 %1935  ;;  %v2222_v61 = vsel %vm2204_vm7, %v2189_v8, %v1934_v43  ;;  %v2848_v8 = vsel %vm10030_vm2, 0, %v2847_v5 }
 0x12c   : > { %v2224_v40 = vsel %vm2204_vm7, %v2191_v24, %v1936_v35  ;;  %v8643_v35 = vld [vmem:[%s12155_s6 + $0x48] sm:$0xff]   ;;  %2849 = vst [vmem:[#allocation3 + $0x50] sm:$0x1] %v2848_v8  ;;  %v10264_v8 = vld [vmem:[%s12152_s3] ss:$0 sm:$0xff] }
 0x12e   : > { %v1969_v60 = vpop.permute.xlu0 %1968 }
 0x12f   : > { %v1971_v0 = vpop.permute.xlu1 %1970  ;;  %v2255_v55 = vsel %vm2237_vm8, %v2222_v61, %v1969_v60 }
 0x130   : > { %v2257_v17 = vsel %vm2237_vm8, %v2224_v40, %v1971_v0 }
 0x132   : > { %v2004_v50 = vpop.permute.xlu0 %2003 }
 0x133   : > { %v2006_v33 = vpop.permute.xlu1 %2005  ;;  %v2288_v41 = vsel %vm2270_vm10, %v2255_v55, %v2004_v50 }
 0x134   : > { %v2290_v3 = vsel %vm2270_vm10, %v2257_v17, %v2006_v33 }
 0x136   : > { %v2039_v6 = vpop.permute.xlu0 %2038 }
 0x137   : > { %v2041_v52 = vpop.permute.xlu1 %2040  ;;  %v2321_v30 = vsel %vm2303_vm11, %v2288_v41, %v2039_v6 }
 0x138   : > { %v2323_v42 = vsel %vm2303_vm11, %v2290_v3, %v2041_v52 }
 0x13a   : > { %v2074_v53 = vpop.permute.xlu0 %2073 }
 0x13b   : > { %v1788_v11 = vpop.permute.xlu1 %1787  ;;  %v2354_v28 = vsel %vm2336_vm0, %v2321_v30, %v2074_v53 }
 0x13c   : > { %8099 = vmatprep.mubr.msk.bf16.mxu1 %vm2391_vm12, %v2354_v28  ;;  %v2122_v59 = vsel %vm2089_vm1, %v9610_v44, %v1788_v11 }
 0x13e   : > { %v2076_v19 = vpop.permute.xlu0 %2075 }
 0x13f   : > { %v1790_v1 = vpop.permute.xlu1 %1789  ;;  %v2356_v15 = vsel %vm2336_vm0, %v2323_v42, %v2076_v19 }
 0x140   : > { %8100 = vmatmul.mubr.msk.bf16.vlgmr.msra.gmra.mxu1 %vm2391_vm12, %v2356_v15  ;;  %v2125_v44 = vsel %vm2089_vm1, %v9702_v9, %v1790_v1  ;;  %v2844_v9 = vld [vmem:[#allocation3 + $0x44] sm:$0x1]  ;;  %v2804_v15 = vld [vmem:[#allocation3 + $0x60] sm:$0x1] }
 0x141   : > { %8116 = vmatpush3.bf16.msra.mxu1 %v10044_v27  ;;  %v8638_v27 = vld [vmem:[%s12155_s6 + $0x58] sm:$0xff]   ;;  %v2845_v41 = vsel %vm10030_vm2, 0, %v2844_v9  ;;  %v10271_v9 = vld [vmem:[%s12149_s0] ss:$0 sm:$0xff] }
 0x142   : > { %v1868_v47 = vpop.permute.xlu0 %1867  ;;  %8117 = vmatprep.subr.bf16.mxu1 %v8632_v22  ;;  %2846 = vst [vmem:[#allocation3 + $0x44] sm:$0x1] %v2845_v41 }
 0x143   : > { %v1870_v7 = vpop.permute.xlu1 %1869  ;;  %v2160_v60 = vsel %vm2138_vm5, %v2122_v59, %v1868_v47  ;;  %v2805_v47 = vsel %vm10017_vm15, 0, %v2804_v15 }
 0x144   : > { %v2162_v20 = vsel %vm2138_vm5, %v2125_v44, %v1870_v7  ;;  %2806 = vst [vmem:[#allocation3 + $0x60] sm:$0x1] %v2805_v47 }
 0x145   : > { %8118 = vmatpush3.bf16.msra.mxu1 %v8632_v22 }
 0x146   : > { %v1903_v14 = vpop.permute.xlu0 %1902  ;;  %8119 = vmatprep.subr.bf16.mxu1 %v8634_v25 }
 0x147   : > { %v1905_v45 = vpop.permute.xlu1 %1904  ;;  %v2193_v34 = vsel %vm2171_vm6, %v2160_v60, %v1903_v14 }
 0x148   : > { %v2195_v6 = vsel %vm2171_vm6, %v2162_v20, %v1905_v45 }
 0x149   : > { %8120 = vmatpush3.bf16.msra.mxu1 %v8634_v25 }
 0x14a   : > { %v1938_v4 = vpop.permute.xlu0 %1937  ;;  %8121 = vmatprep.subr.bf16.mxu1 %v8636_v36 }
 0x14b   : > { %v1940_v31 = vpop.permute.xlu1 %1939  ;;  %v2226_v54 = vsel %vm2204_vm7, %v2193_v34, %v1938_v4 }
 0x14c   : > { %v2228_v37 = vsel %vm2204_vm7, %v2195_v6, %v1940_v31  ;;  %v3609_v6 = vshrl.u32 %v10146_v26, 16 }
 0x14d   : > { %8122 = vmatpush3.bf16.msra.mxu1 %v8636_v36 }
 0x14e   : > { %v1973_v10 = vpop.permute.xlu0 %1972  ;;  %8123 = vmatprep.subr.bf16.mxu1 %v8638_v27 }
 0x14f   : > { %v1975_v21 = vpop.permute.xlu1 %1974  ;;  %v2259_v33 = vsel %vm2237_vm8, %v2226_v54, %v1973_v10 }
 0x150   : > { %v2261_v24 = vsel %vm2237_vm8, %v2228_v37, %v1975_v21 }
 0x151   : > { %8124 = vmatpush3.bf16.msra.mxu1 %v8638_v27 }
 0x152   : > { %v2008_v43 = vpop.permute.xlu0 %2007  ;;  %8125 = vmatprep.subr.bf16.mxu1 %v8640_v51 }
 0x153   : > { %v2010_v46 = vpop.permute.xlu1 %2009  ;;  %v2292_v16 = vsel %vm2270_vm10, %v2259_v33, %v2008_v43 }
 0x154   : > { %v2294_v30 = vsel %vm2270_vm10, %v2261_v24, %v2010_v46 }
 0x155   : > { %8126 = vmatpush3.bf16.msra.mxu1 %v8640_v51  ;;  %v2802_v51 = vsel %vm10017_vm15, 0, %v2801_v29 }
 0x156   : > { %v2043_v0 = vpop.permute.xlu0 %2042  ;;  %8127 = vmatprep.subr.bf16.mxu1 %v8643_v35  ;;  %2803 = vst [vmem:[#allocation3 + $0x54] sm:$0x1] %v2802_v51 }
 0x157   : > { %v2045_v50 = vpop.permute.xlu1 %2044  ;;  %v2325_v61 = vsel %vm2303_vm11, %v2292_v16, %v2043_v0 }
 0x158   : > { %v2327_v53 = vsel %vm2303_vm11, %v2294_v30, %v2045_v50  ;;  %v10279_v30 = vld [vmem:[%s12149_s0 + $0x1] ss:$0 sm:$0xff] }
 0x159   : > { %8128 = vmatpush3.bf16.msra.mxu1 %v8643_v35  ;;  %v2853_v35 = vld [vmem:[#allocation3 + $0x68] sm:$0x1] }
 0x15a   : > { %v2078_v52 = vpop.permute.xlu0 %2077  ;;  %8129 = vmatprep.subr.bf16.mxu1 %v8645_v18  ;;  %v2854_v59 = vsel %vm10030_vm2, 0, %v2853_v35 }
 0x15b   : > { %v1792_v55 = vpop.permute.xlu1 %1791  ;;  %v2358_v58 = vsel %vm2336_vm0, %v2325_v61, %v2078_v52  ;;  %2855 = vst [vmem:[#allocation3 + $0x68] sm:$0x1] %v2854_v59  ;;  %v3612_v61 = vshll.u32 %v10146_v26, 16 }
 0x15c   : > { %8103 = vmatprep.mubr.msk.bf16.mxu1 %vm2391_vm12, %v2358_v58  ;;  %v2128_v45 = vsel %vm2089_vm1, %v9765_v62, %v1792_v55  ;;  %v3622_v55 = vshrl.u32 %v10148_v32, 16  ;;  %v3618_v58 = vshll.u32 %v10148_v32, 16 }
 0x15d   : > { %8130 = vmatpush3.bf16.msra.mxu1 %v8645_v18  ;;  %v2850_v18 = vld [vmem:[#allocation3 + $0x5c] sm:$0x1] }
 0x15e   : > { %v2080_v40 = vpop.permute.xlu0 %2079  ;;  %v2851_v50 = vsel %vm10030_vm2, 0, %v2850_v18 }
 0x15f   : > { %v1794_v11 = vpop.permute.xlu1 %1793  ;;  %v2360_v28 = vsel %vm2336_vm0, %v2327_v53, %v2080_v40  ;;  %2852 = vst [vmem:[#allocation3 + $0x5c] sm:$0x1] %v2851_v50  ;;  %v3611_v53 = vrot.slane %v3609_v6, 4  ;;  %v3614_v40 = vrot.slane %v3612_v61, 5 }
 0x160   : > { %8104 = vmatmul.mubr.msk.bf16.gmra.mxu1 %vm2391_vm12, %v2360_v28  ;;  %v2131_v21 = vsel %vm2089_vm1, %v9819_v39, %v1794_v11 }
 0x162   : > { %v1872_v17 = vpop.permute.xlu0 %1871 }
 0x163   : > { %v1874_v3 = vpop.permute.xlu1 %1873  ;;  %v2164_v4 = vsel %vm2138_vm5, %v2128_v45, %v1872_v17  ;;  %v10286_v17 = vld [vmem:[%s12153_s4] ss:$0 sm:$0xff] }
 0x164   : > { %v2166_v62 = vsel %vm2138_vm5, %v2131_v21, %v1874_v3 }
 0x166   : > { %v1907_v42 = vpop.permute.xlu0 %1906 }
 0x167   : > { %v1909_v19 = vpop.permute.xlu1 %1908  ;;  %v2197_v27 = vsel %vm2171_vm6, %v2164_v4, %v1907_v42  ;;  %v10288_v42 = vrot.slane %v3618_v58, 5 }
 0x168   : > { %v2199_v60 = vsel %vm2171_vm6, %v2166_v62, %v1909_v19  ;;  %v3624_v19 = vrot.slane %v3622_v55, 4 }
 0x16a   : > { %v1942_v22 = vpop.permute.xlu0 %1941 }
 0x16b   : > { %v1944_v1 = vpop.permute.xlu1 %1943  ;;  %v2230_v23 = vsel %vm2204_vm7, %v2197_v27, %v1942_v22 }
 0x16c   : > { %v2232_v39 = vsel %vm2204_vm7, %v2199_v60, %v1944_v1 }
 0x16e   : > { %v1977_v25 = vpop.permute.xlu0 %1976 }
 0x16f   : > { %v1979_v7 = vpop.permute.xlu1 %1978  ;;  %v2263_v43 = vsel %vm2237_vm8, %v2230_v23, %v1977_v25  ;;  %v3412_v25 = vld [vmem:[#allocation3 + $0x8] sm:$0x1]  ;;  %v3625_v23 = vor.u32 %v3624_v19, %v10288_v42 }
 0x170   : > { %v2265_v63 = vsel %vm2237_vm8, %v2232_v39, %v1979_v7  ;;  %v10296_v7 = vld [vmem:[%s12154_s5] ss:$0 sm:$0xff] }
 0x172   : > { %v2012_v14 = vpop.permute.xlu0 %2011 }
 0x173   : > { %v2014_v36 = vpop.permute.xlu1 %2013  ;;  %v2296_v46 = vsel %vm2270_vm10, %v2263_v43, %v2012_v14 }
 0x174   : > { %v2298_v44 = vsel %vm2270_vm10, %v2265_v63, %v2014_v36  ;;  %v3615_v36 = vor.u32 %v3614_v40, %v3611_v53 }
 0x176   : > { %v2047_v31 = vpop.permute.xlu0 %2046  ;;  %v3616_v59 = vrot.slane %v3615_v36, 4 }
 0x177   : > { %v2049_v10 = vpop.permute.xlu1 %2048  ;;  %v2329_v34 = vsel %vm2303_vm11, %v2296_v46, %v2047_v31  ;;  %v2810_v46 = vld [vmem:[#allocation3 + $0x78] sm:$0x1] }
 0x178   : > { %v2331_v33 = vsel %vm2303_vm11, %v2298_v44, %v2049_v10  ;;  %v3628_v10 = vshll.u32 %v3412_v25, 16  ;;  %v2811_v60 = vsel %vm10017_vm15, 0, %v2810_v46  ;;  %v3626_v44 = vrot.slane %v3625_v23, 4  ;;  %v3309_v46 = vld [vmem:[#allocation3 + $0x20] sm:$0x1] }
 0x179   : > { %2812 = vst [vmem:[#allocation3 + $0x78] sm:$0x1] %v2811_v60 }
 0x17a   : > { %v2082_v0 = vpop.permute.xlu0 %2081 }
 0x17b   : > { %v1796_v48 = vpop.permute.xlu1 %1795  ;;  %v2362_v54 = vsel %vm2336_vm0, %v2329_v34, %v2082_v0 }
 0x17c   : > { %8107 = vmatprep.mubr.msk.bf16.mxu1 %vm2391_vm12, %v2362_v54  ;;  %v2134_v54 = vsel %vm2089_vm1, %v9880_v12, %v1796_v48  ;;  %v3621_v12 = vsel %vm8919_vm13, %v3616_v59, %v10288_v42 }
 0x17e   : > { %v2084_v5 = vpop.permute.xlu0 %2083 }
 0x17f   : > { %v1798_v20 = vpop.permute.xlu1 %1797  ;;  %v2364_v16 = vsel %vm2336_vm0, %v2331_v33, %v2084_v5  ;;  %v3630_v33 = vrot.slane %v3628_v10, 5 }
 0x180   : > { %8108 = vmatmul.mubr.msk.bf16.gmra.mxu1 %vm2391_vm12, %v2364_v16  ;;  %v2137_v50 = vsel %vm2089_vm1, %v9936_v2, %v1798_v20 }
 0x182   : > { %v8085_v52 = vpop.f32.mrf.mxu0  ;;  %v1876_v37 = vpop.permute.xlu0 %1875 }
 0x183   : > { %v1878_v41 = vpop.permute.xlu1 %1877  ;;  %v2471_v24 = vadd.f32 %v8085_v52, %v10264_v8  ;;  %v2168_v58 = vsel %vm2138_vm5, %v2134_v54, %v1876_v37 }
 0x184   : > { %v2462_v26 = vpop.f32.mrf.mxu0  ;;  %v2170_v55 = vsel %vm2138_vm5, %v2137_v50, %v1878_v41  ;;  %v3631_v41 = vsel %vm8919_vm13, %v3626_v44, %v3630_v33  ;;  %vm10331_vm5 = vmand %vm3296_vm3, %vm508_vm4  ;;  %vm12260_vm4 = vcmask 1041408  }
 0x185   : > { %v2596_v11 = vsub.f32 %v2471_v24, %v10271_v9  ;;  %v2463_v28 = vadd.f32 %v10264_v8, %v2462_v26 }
 0x186   : > { %v8086_v32 = vpop.f32.mrf.mxu0  ;;  %v1911_v3 = vpop.permute.xlu0 %1910 }
 0x187   : > { %v2633_v22 = vmul.f32 %v10279_v30, %v2596_v11  ;;  %v2594_v1 = vsub.f32 %v2463_v28, %v10271_v9  ;;  %v1913_v15 = vpop.permute.xlu1 %1912  ;;  %v2474_v47 = vadd.f32 %v8086_v32, %v10264_v8  ;;  %v2201_v26 = vsel %vm2171_vm6, %v2168_v58, %v1911_v3  ;;  %v3305_v3 = vld [vmem:[#allocation3 + $0x18] sm:$0xf] }
 0x188   : > { %v2465_v14 = vpop.f32.mrf.mxu0  ;;  %v2203_v20 = vsel %vm2171_vm6, %v2170_v55, %v1913_v15 }
 0x189   : > { %v2672_v45 = vmul.f32 %v10286_v17, %v2633_v22  ;;  %v2631_v4 = vmul.f32 %v10279_v30, %v2594_v1  ;;  %v2597_v27 = vsub.f32 %v2474_v47, %v10271_v9  ;;  %v2466_v31 = vadd.f32 %v10264_v8, %v2465_v14 }
 0x18a   : > { %v1946_v29 = vpop.permute.xlu0 %1945 }
 0x18b   : > { %v2711_v51 = vadd.f32 %v10296_v7, %v2672_v45  ;;  %v2670_v21 = vmul.f32 %v10286_v17, %v2631_v4  ;;  %v2634_v43 = vmul.f32 %v10279_v30, %v2597_v27  ;;  %v2595_v35 = vsub.f32 %v2466_v31, %v10271_v9  ;;  %v1948_v62 = vpop.permute.xlu1 %1947  ;;  %v3298_v4 = vld [vmem:[#allocation3 + $0xc] sm:$0xf] }
 0x18c   : > { %v2236_v40 = vsel %vm2204_vm7, %v2203_v20, %v1948_v62  ;;  %v2234_v15 = vsel %vm2204_vm7, %v2201_v26, %v1946_v29 }
 0x18d   : > { %v2743_v34 = vmax.f32 %v2711_v51, 0.0  ;;  %v2709_v0 = vadd.f32 %v10296_v7, %v2670_v21  ;;  %v2673_v18 = vmul.f32 %v10286_v17, %v2634_v43  ;;  %v2632_v39 = vmul.f32 %v10279_v30, %v2595_v35  ;;  %v2807_v21 = vld [vmem:[#allocation3 + $0x6c] sm:$0x1] }
 0x18e   : > { %v1981_v63 = vpop.permute.xlu0 %1980  ;;  %v7448_v51 = vcombine.low %v3621_v12, %v3631_v41  ;;  %v2808_v44 = vsel %vm10017_vm15, 0, %v2807_v21  ;;  %v3302_v12 = vld [vmem:[#allocation3 + $0x14] sm:$0x1] }
 0x18f   : > { %v7668_v5 = vpack.c.bf16 %v2743_v34, %v2743_v34  ;;  %v2741_v16 = vmax.f32 %v2709_v0, 0.0  ;;  %v2712_v6 = vadd.f32 %v10296_v7, %v2673_v18  ;;  %v2671_v61 = vmul.f32 %v10286_v17, %v2632_v39  ;;  %v1983_v52 = vpop.permute.xlu1 %1982  ;;  %v2859_v39 = vld [vmem:[#allocation3 + $0x80] sm:$0x1]  ;;  %2809 = vst [vmem:[#allocation3 + $0x6c] sm:$0x1] %v2808_v44 }
 0x190   : > { %v2269_v47 = vsel %vm2237_vm8, %v2236_v40, %v1983_v52  ;;  %v2267_v31 = vsel %vm2237_vm8, %v2234_v15, %v1981_v63  ;;  %v2856_v52 = vld [vmem:[#allocation3 + $0x74] sm:$0x1] }
 0x191   : > { %v2994_v2 = vshrl.u32 %v7668_v5, 16  ;;  %v7666_v48 = vpack.c.bf16 %v2741_v16, %v2741_v16  ;;  %v2744_v24 = vmax.f32 %v2712_v6, 0.0  ;;  %v2710_v53 = vadd.f32 %v10296_v7, %v2671_v61 }
 0x192   : > { %v2016_v11 = vpop.permute.xlu0 %2015  ;;  %v2997_v28 = vshll.u32 %v7668_v5, 16  ;;  %v2860_v61 = vsel %vm10030_vm2, 0, %v2859_v39  ;;  %v2857_v20 = vsel %vm10030_vm2, 0, %v2856_v52 }
 0x193   : > { %v2996_v37 = vrot.slane %v2994_v2, 7  ;;  %v2977_v32 = vshrl.u32 %v7666_v48, 16  ;;  %v7669_v19 = vpack.c.bf16 %v2744_v24, %v2744_v24  ;;  %v2018_v42 = vpop.permute.xlu1 %2017  ;;  %v2742_v1 = vmax.f32 %v2710_v53, 0.0  ;;  %2861 = vst [vmem:[#allocation3 + $0x80] sm:$0x1] %v2860_v61 }
 0x194   : > { %v2980_v36 = vshll.u32 %v7666_v48, 16  ;;  %v2302_v23 = vsel %vm2270_vm10, %v2269_v47, %v2018_v42  ;;  %v2300_v18 = vsel %vm2270_vm10, %v2267_v31, %v2016_v11  ;;  %2858 = vst [vmem:[#allocation3 + $0x74] sm:$0x1] %v2857_v20 }
 0x195   : > { %v2999_v25 = vor.u32 %v2997_v28, %v2996_v37  ;;  %v2979_v14 = vrot.slane %v2977_v32, 7  ;;  %v3002_v45 = vshrl.u32 %v7669_v19, 16  ;;  %v7667_v27 = vpack.c.bf16 %v2742_v1, %v2742_v1 }
 0x196   : > { %v2051_v10 = vpop.permute.xlu0 %2050  ;;  %v3005_v62 = vshll.u32 %v7669_v19, 16  ;;  %v3000_v60 = vrot.slane %v2996_v37, 4 }
 0x197   : > { %v3306_v43 = vsel %vm10331_vm5, %v2999_v25, %v3305_v3  ;;  %v2982_v35 = vor.u32 %v2980_v36, %v2979_v14  ;;  %v3004_v29 = vrot.slane %v3002_v45, 7  ;;  %v2053_v59 = vpop.permute.xlu1 %2052  ;;  %v2985_v34 = vshrl.u32 %v7667_v27, 16 }
 0x198   : > { %3307 = vst [vmem:[#allocation3 + $0x18] sm:$0xf] %v3306_v43  ;;  %v2988_v0 = vshll.u32 %v7667_v27, 16  ;;  %v2335_v5 = vsel %vm2303_vm11, %v2302_v23, %v2053_v59  ;;  %v2333_v16 = vsel %vm2303_vm11, %v2300_v18, %v2051_v10  ;;  %v2983_v24 = vrot.slane %v2979_v14, 4 }
 0x199   : > { %v3299_v54 = vsel %vm10331_vm5, %v2982_v35, %v3298_v4  ;;  %v3007_v50 = vor.u32 %v3005_v62, %v3004_v29  ;;  %v3009_v63 = vrot.slane %v3004_v29, 4  ;;  %v2987_v33 = vrot.slane %v2985_v34, 7 }
 0x19a   : > { %3300 = vst [vmem:[#allocation3 + $0xc] sm:$0xf] %v3299_v54  ;;  %v2086_v6 = vpop.permute.xlu0 %2085 }
 0x19b   : > { %v3008_v55 = vsel %vm8926_vm14, %v3000_v60, %v3007_v50  ;;  %v3310_v58 = vsel %vm10017_vm15, %v3009_v63, %v3309_v46  ;;  %v2088_v2 = vpop.permute.xlu1 %2087  ;;  %v2366_v48 = vsel %vm2336_vm0, %v2333_v16, %v2086_v6  ;;  %v2990_v26 = vor.u32 %v2988_v0, %v2987_v33 }
 0x19c   : > { %3308 = vst [vmem:[#allocation3 + $0x1c] sm:$0xf] %v3008_v55  ;;  %3311 = vst [vmem:[#allocation3 + $0x20] sm:$0x1] %v3310_v58  ;;  %v2992_v53 = vrot.slane %v2987_v33, 4  ;;  %v2368_v40 = vsel %vm2336_vm0, %v2335_v5, %v2088_v2  ;;  %8111 = vmatprep.mubr.msk.bf16.mxu1 %vm2391_vm12, %v2366_v48 }
 0x19d   : > { %8112 = vmatmul.mubr.msk.bf16.gmra.mxu1 %vm2391_vm12, %v2368_v40  ;;  %v2991_v11 = vsel %vm8926_vm14, %v2983_v24, %v2990_v26 }
 0x19e   : > { %v3303_v41 = vsel %vm10017_vm15, %v2992_v53, %v3302_v12  ;;  %8131 = vmatprep.mubr.bf16.mxu1 %v7448_v51  ;;  %3301 = vst [vmem:[#allocation3 + $0x10] sm:$0xf] %v2991_v11 }
 0x19f   : > { %3304 = vst [vmem:[#allocation3 + $0x14] sm:$0x1] %v3303_v41  ;;  %v10364_v37 = vld [vmem:[#allocation3 + $0x18] sm:$0xf] }
 0x1a0   : > { %v8089_v28 = vpop.f32.mrf.mxu0  ;;  %v3657_v32 = vshrl.u32 %v10364_v37, 16  ;;  %v3660_v19 = vshll.u32 %v10364_v37, 16 }
 0x1a1   : > { %v2487_v42 = vadd.f32 %v8089_v28, %v10264_v8  ;;  %v10369_v3 = vld [vmem:[#allocation3 + $0xc] sm:$0xf]  ;;  %v7498_v28 = vrot.slane %v10364_v37, 9 }
 0x1a2   : > { %v2478_v1 = vpop.f32.mrf.mxu0  ;;  %v3633_v15 = vshrl.u32 %v10369_v3, 16  ;;  %v3636_v47 = vshll.u32 %v10369_v3, 16  ;;  %v3659_v25 = vrot.slane %v3657_v32, 4  ;;  %v3662_v14 = vrot.slane %v3660_v19, 5 }
 0x1a3   : > { %v2600_v36 = vsub.f32 %v2487_v42, %v10271_v9  ;;  %v2479_v45 = vadd.f32 %v10264_v8, %v2478_v1  ;;  %v10375_v4 = vld [vmem:[#allocation3 + $0x1c] sm:$0xf]  ;;  %v10410_v53 = vld [vmem:[#allocation3 + $0x20] sm:$0x1] }
 0x1a4   : > { %v8090_v27 = vpop.f32.mrf.mxu0  ;;  %v3670_v31 = vshrl.u32 %v10375_v4, 16  ;;  %v3635_v23 = vrot.slane %v3633_v15, 4  ;;  %v3638_v10 = vrot.slane %v3636_v47, 5  ;;  %v10383_v35 = vcombine.low %v10364_v37, %v10375_v4 }
 0x1a5   : > { %v2637_v51 = vmul.f32 %v10279_v30, %v2600_v36  ;;  %v2598_v21 = vsub.f32 %v2479_v45, %v10271_v9  ;;  %v2490_v43 = vadd.f32 %v8090_v27, %v10264_v8  ;;  %v10385_v62 = vld [vmem:[#allocation3 + $0x10] sm:$0xf]  ;;  %v3663_v59 = vor.u32 %v3662_v14, %v3659_v25 }
 0x1a6   : > { %v2481_v29 = vpop.f32.mrf.mxu0  ;;  %v3639_v46 = vor.u32 %v3638_v10, %v3635_v23  ;;  %v3666_v60 = vshll.u32 %v10375_v4, 16  ;;  %v3672_v34 = vrot.slane %v3670_v31, 4  ;;  %v10392_v50 = vld [vmem:[#allocation3 + $0x14] sm:$0x1]  ;;  %v3646_v63 = vshrl.u32 %v10385_v62, 16 }
 0x1a7   : > { %v2676_v0 = vmul.f32 %v10286_v17, %v2637_v51  ;;  %v2635_v18 = vmul.f32 %v10279_v30, %v2598_v21  ;;  %v2601_v39 = vsub.f32 %v2490_v43, %v10271_v9  ;;  %v2482_v54 = vadd.f32 %v10264_v8, %v2481_v29  ;;  %v2816_v23 = vld [vmem:[#allocation3 + $0x90] sm:$0x1] }
 0x1a8   : > { %v10397_v44 = vcombine.low %v10369_v3, %v10385_v62  ;;  %v3640_v33 = vrot.slane %v3639_v46, 4  ;;  %v3642_v5 = vshll.u32 %v10385_v62, 16  ;;  %v3648_v58 = vrot.slane %v3646_v63, 4 }
 0x1a9   : > { %v2715_v16 = vadd.f32 %v10296_v7, %v2676_v0  ;;  %v2674_v6 = vmul.f32 %v10286_v17, %v2635_v18  ;;  %v2638_v61 = vmul.f32 %v10279_v30, %v2601_v39  ;;  %v2599_v52 = vsub.f32 %v2482_v54, %v10271_v9 }
 0x1aa   : > { %8180 = vmatmul.mubr.bf16.vlgmr.msra.gmra.mxu0 %v10397_v44  ;;  %v3644_v55 = vrot.slane %v3642_v5, 5  ;;  %v3652_v12 = vshll.u32 %v10392_v50, 16  ;;  %v3664_v2 = vrot.slane %v3663_v59, 4  ;;  %v3668_v41 = vrot.slane %v3666_v60, 5 }
 0x1ab   : > { %v2747_v48 = vmax.f32 %v2715_v16, 0.0  ;;  %v2713_v20 = vadd.f32 %v10296_v7, %v2674_v6  ;;  %v2677_v24 = vmul.f32 %v10286_v17, %v2638_v61  ;;  %v2636_v26 = vmul.f32 %v10279_v30, %v2599_v52  ;;  %8183 = vmatprep.mubr.bf16.mxu0 %v10383_v35  ;;  %v3312_v61 = vld [vmem:[#allocation3 + $0x24] sm:$0xf] }
 0x1ac   : > { %v3645_v40 = vsel %vm8919_vm13, %v3640_v33, %v3644_v55  ;;  %v3649_v11 = vor.u32 %v3648_v58, %v3644_v55  ;;  %v3654_v47 = vrot.slane %v3652_v12, 5  ;;  %v3673_v25 = vor.u32 %v3672_v34, %v3668_v41  ;;  %v3319_v34 = vld [vmem:[#allocation3 + $0x30] sm:$0xf] }
 0x1ad   : > { %v7672_v32 = vpack.c.bf16 %v2747_v48, %v2747_v48  ;;  %v2745_v19 = vmax.f32 %v2713_v20, 0.0  ;;  %v2716_v42 = vadd.f32 %v10296_v7, %v2677_v24  ;;  %v2675_v1 = vmul.f32 %v10286_v17, %v2636_v26  ;;  %v3323_v20 = vld [vmem:[#allocation3 + $0x38] sm:$0x1] }
 0x1ae   : > { %v3650_v15 = vrot.slane %v3649_v11, 4  ;;  %v3676_v14 = vshll.u32 %v10410_v53, 16  ;;  %v3669_v31 = vsel %vm8919_vm13, %v3664_v2, %v3668_v41  ;;  %v3674_v21 = vrot.slane %v3673_v25, 4  ;;  %v2813_v11 = vld [vmem:[#allocation3 + $0x84] sm:$0x1] }
 0x1af   : > { %v3028_v36 = vshrl.u32 %v7672_v32, 16  ;;  %v7670_v45 = vpack.c.bf16 %v2745_v19, %v2745_v19  ;;  %v2748_v27 = vmax.f32 %v2716_v42, 0.0  ;;  %v2714_v10 = vadd.f32 %v10296_v7, %v2675_v1 }
 0x1b0   : > { %v3655_v51 = vsel %vm8919_vm13, %v3650_v15, %v3654_v47  ;;  %v3678_v43 = vrot.slane %v3676_v14, 5  ;;  %v3031_v46 = vshll.u32 %v7672_v32, 16  ;;  %v2817_v54 = vsel %vm10017_vm15, 0, %v2816_v23  ;;  %v2865_v47 = vld [vmem:[#allocation3 + $0x98] sm:$0x1] }
 0x1b1   : > { %v3030_v29 = vrot.slane %v3028_v36, 7  ;;  %v3011_v59 = vshrl.u32 %v7670_v45, 16  ;;  %v7673_v60 = vpack.c.bf16 %v2748_v27, %v2748_v27  ;;  %v2746_v0 = vmax.f32 %v2714_v10, 0.0  ;;  %2818 = vst [vmem:[#allocation3 + $0x90] sm:$0x1] %v2817_v54 }
 0x1b2   : > { %v10423_v18 = vcombine.low %v3645_v40, %v3655_v51  ;;  %v3679_v39 = vsel %vm8919_vm13, %v3674_v21, %v3678_v43  ;;  %v3014_v5 = vshll.u32 %v7670_v45, 16  ;;  %v7497_v24 = vrot.slane %v10369_v3, 9  ;;  %v3316_v27 = vld [vmem:[#allocation3 + $0x2c] sm:$0x1] }
 0x1b3   : > { %v3033_v63 = vor.u32 %v3031_v46, %v3030_v29  ;;  %v3013_v33 = vrot.slane %v3011_v59, 7  ;;  %v3036_v16 = vshrl.u32 %v7673_v60, 16  ;;  %v3034_v6 = vrot.slane %v3030_v29, 4  ;;  %v2862_v51 = vld [vmem:[#allocation3 + $0x8c] sm:$0x1] }
 0x1b4   : > { %12215 = vst [vmem:[#allocation4_spill] sm:$0xff] %v10423_v18  ;;  %v3039_v52 = vshll.u32 %v7673_v60, 16  ;;  %v7671_v55 = vpack.c.bf16 %v2746_v0, %v2746_v0  ;;  %8132 = vmatmul.mubr.bf16.vlgmr.msra.gmra.mxu1 %v10423_v18  ;;  %v10430_v58 = vcombine.low %v3669_v31, %v3679_v39  ;;  %v4595_v41 = vrot.slane %v10385_v62, 5 }
 0x1b5   : > { %v3320_v12 = vsel %vm10331_vm5, %v3033_v63, %v3319_v34  ;;  %v3016_v2 = vor.u32 %v3014_v5, %v3013_v33  ;;  %v3038_v48 = vrot.slane %v3036_v16, 7  ;;  %v4598_v32 = vrot.slane %v10392_v50, 5 }
 0x1b6   : > { %12216 = vst [vmem:[#allocation5_spill] sm:$0xff] %v10430_v58  ;;  %3321 = vst [vmem:[#allocation3 + $0x30] sm:$0xf] %v3320_v12  ;;  %v3019_v26 = vshrl.u32 %v7671_v55, 16  ;;  %v3022_v40 = vshll.u32 %v7671_v55, 16  ;;  %8135 = vmatprep.mubr.bf16.mxu1 %v10430_v58  ;;  %v2814_v15 = vsel %vm10017_vm15, 0, %v2813_v11  ;;  %v4596_v25 = vsel %vm8878_vm9, %v7497_v24, %v4595_v41 }
 0x1b7   : > { %v3313_v19 = vsel %vm10331_vm5, %v3016_v2, %v3312_v61  ;;  %v3041_v42 = vor.u32 %v3039_v52, %v3038_v48  ;;  %v3043_v1 = vrot.slane %v3038_v48, 4  ;;  %2815 = vst [vmem:[#allocation3 + $0x84] sm:$0x1] %v2814_v15  ;;  %v4597_v14 = vrot.slane %v4595_v41, 4 }
 0x1b8   : > { %3314 = vst [vmem:[#allocation3 + $0x24] sm:$0xf] %v3313_v19  ;;  %v3021_v3 = vrot.slane %v3019_v26, 7  ;;  %v4602_v62 = vrot.slane %v10375_v4, 5  ;;  %v3017_v36 = vrot.slane %v3013_v33, 4  ;;  %v2866_v31 = vsel %vm10030_vm2, 0, %v2865_v47 }
 0x1b9   : > { %v3042_v50 = vsel %vm8926_vm14, %v3034_v6, %v3041_v42  ;;  %v3324_v45 = vsel %vm10017_vm15, %v3043_v1, %v3323_v20  ;;  %2867 = vst [vmem:[#allocation3 + $0x98] sm:$0x1] %v2866_v31  ;;  %v4599_v4 = vsel %vm8878_vm9, %v4597_v14, %v4598_v32  ;;  %v2863_v43 = vsel %vm10030_vm2, 0, %v2862_v51 }
 0x1ba   : > { %3322 = vst [vmem:[#allocation3 + $0x34] sm:$0xf] %v3042_v50  ;;  %3325 = vst [vmem:[#allocation3 + $0x38] sm:$0x1] %v3324_v45  ;;  %v3024_v23 = vor.u32 %v3022_v40, %v3021_v3  ;;  %v3026_v10 = vrot.slane %v3021_v3, 4  ;;  %v4603_v21 = vsel %vm8878_vm9, %v7498_v28, %v4602_v62  ;;  %v10459_v29 = vcombine.low %v4596_v25, %v4599_v4 }
 0x1bb   : > { %v4604_v46 = vrot.slane %v4602_v62, 4  ;;  %v4605_v59 = vrot.slane %v10410_v53, 5  ;;  %2864 = vst [vmem:[#allocation3 + $0x8c] sm:$0x1] %v2863_v43 }
 0x1bc   : > { %v3025_v60 = vsel %vm8926_vm14, %v3017_v36, %v3024_v23  ;;  %v3317_v34 = vsel %vm10017_vm15, %v3026_v10, %v3316_v27 }
 0x1bd   : > { %3315 = vst [vmem:[#allocation3 + $0x28] sm:$0xf] %v3025_v60  ;;  %3318 = vst [vmem:[#allocation3 + $0x2c] sm:$0x1] %v3317_v34  ;;  %v10466_v37 = vld [vmem:[#allocation3 + $0x30] sm:$0xf]  ;;  %v4606_v28 = vsel %vm8878_vm9, %v4604_v46, %v4605_v59 }
 0x1be   : > { %v3705_v0 = vshrl.u32 %v10466_v37, 16  ;;  %v3708_v39 = vshll.u32 %v10466_v37, 16  ;;  %v10472_v54 = vcombine.low %v4603_v21, %v4606_v28 }
 0x1bf   : > { %v10474_v53 = vld [vmem:[#allocation3 + $0x24] sm:$0xf] }
 0x1c0   : > { %v8093_v63 = vpop.f32.mrf.mxu0  ;;  %v3681_v33 = vshrl.u32 %v10474_v53, 16  ;;  %v3684_v5 = vshll.u32 %v10474_v53, 16  ;;  %v3707_v16 = vrot.slane %v3705_v0, 4  ;;  %v3710_v6 = vrot.slane %v3708_v39, 5 }
 0x1c1   : > { %v2503_v61 = vadd.f32 %v8093_v63, %v10264_v8  ;;  %v10479_v52 = vld [vmem:[#allocation3 + $0x34] sm:$0xf]  ;;  %v10497_v14 = vld [vmem:[#allocation3 + $0x38] sm:$0x1] }
 0x1c2   : > { %v2494_v55 = vpop.f32.mrf.mxu0  ;;  %v3718_v12 = vshrl.u32 %v10479_v52, 16  ;;  %v3683_v2 = vrot.slane %v3681_v33, 4  ;;  %v3686_v48 = vrot.slane %v3684_v5, 5  ;;  %v10486_v26 = vcombine.low %v10466_v37, %v10479_v52 }
 0x1c3   : > { %v2604_v20 = vsub.f32 %v2503_v61, %v10271_v9  ;;  %v2495_v24 = vadd.f32 %v10264_v8, %v2494_v55  ;;  %v3711_v19 = vor.u32 %v3710_v6, %v3707_v16  ;;  %v3714_v42 = vshll.u32 %v10479_v52, 16  ;;  %v2822_v55 = vld [vmem:[#allocation3 + $0xa8] sm:$0x1] }
 0x1c4   : > { %v8094_v40 = vpop.f32.mrf.mxu0  ;;  %v10488_v11 = vld [vmem:[#allocation3 + $0x28] sm:$0xf]  ;;  %v10490_v41 = vld [vmem:[#allocation3 + $0x2c] sm:$0x1]  ;;  %v3687_v32 = vor.u32 %v3686_v48, %v3683_v2  ;;  %v3720_v1 = vrot.slane %v3718_v12, 4  ;;  %v3724_v46 = vshll.u32 %v10497_v14, 16 }
 0x1c5   : > { %v2641_v15 = vmul.f32 %v10279_v30, %v2604_v20  ;;  %v2602_v3 = vsub.f32 %v2495_v24, %v10271_v9  ;;  %v2506_v47 = vadd.f32 %v8094_v40, %v10264_v8  ;;  %v3694_v25 = vshrl.u32 %v10488_v11, 16 }
 0x1c6   : > { %v2497_v62 = vpop.f32.mrf.mxu0  ;;  %v10501_v36 = vcombine.low %v10474_v53, %v10488_v11  ;;  %v3688_v50 = vrot.slane %v3687_v32, 4  ;;  %v3690_v45 = vshll.u32 %v10488_v11, 16  ;;  %v3700_v27 = vshll.u32 %v10490_v41, 16 }
 0x1c7   : > { %v2680_v31 = vmul.f32 %v10286_v17, %v2641_v15  ;;  %v2639_v23 = vmul.f32 %v10279_v30, %v2602_v3  ;;  %v2605_v10 = vsub.f32 %v2506_v47, %v10271_v9  ;;  %v2498_v51 = vadd.f32 %v10264_v8, %v2497_v62 }
 0x1c8   : > { %8184 = vmatmul.mubr.bf16.gmra.mxu0 %v10501_v36  ;;  %v3692_v4 = vrot.slane %v3690_v45, 5  ;;  %v3696_v21 = vrot.slane %v3694_v25, 4  ;;  %v3702_v43 = vrot.slane %v3700_v27, 5  ;;  %v3712_v63 = vrot.slane %v3711_v19, 4 }
 0x1c9   : > { %v2719_v59 = vadd.f32 %v10296_v7, %v2680_v31  ;;  %v2678_v60 = vmul.f32 %v10286_v17, %v2639_v23  ;;  %v2642_v34 = vmul.f32 %v10279_v30, %v2605_v10  ;;  %v2603_v28 = vsub.f32 %v2498_v51, %v10271_v9  ;;  %8187 = vmatprep.mubr.bf16.mxu0 %v10486_v26 }
 0x1ca   : > { %v3693_v0 = vsel %vm8919_vm13, %v3688_v50, %v3692_v4  ;;  %v3697_v39 = vor.u32 %v3696_v21, %v3692_v4  ;;  %v3716_v33 = vrot.slane %v3714_v42, 5  ;;  %v3726_v48 = vrot.slane %v3724_v46, 5  ;;  %v3333_v4 = vld [vmem:[#allocation3 + $0x48] sm:$0xf] }
 0x1cb   : > { %v2751_v5 = vmax.f32 %v2719_v59, 0.0  ;;  %v2717_v16 = vadd.f32 %v10296_v7, %v2678_v60  ;;  %v2681_v6 = vmul.f32 %v10286_v17, %v2642_v34  ;;  %v2640_v61 = vmul.f32 %v10279_v30, %v2603_v28 }
 0x1cc   : > { %v3698_v12 = vrot.slane %v3697_v39, 4  ;;  %v3721_v2 = vor.u32 %v3720_v1, %v3716_v33  ;;  %v2823_v20 = vsel %vm10017_vm15, 0, %v2822_v55  ;;  %v7499_v3 = vrot.slane %v10474_v53, 9  ;;  %v3326_v39 = vld [vmem:[#allocation3 + $0x3c] sm:$0xf] }
 0x1cd   : > { %v7676_v24 = vpack.c.bf16 %v2751_v5, %v2751_v5  ;;  %v2749_v40 = vmax.f32 %v2717_v16, 0.0  ;;  %v2720_v32 = vadd.f32 %v10296_v7, %v2681_v6  ;;  %v2679_v19 = vmul.f32 %v10286_v17, %v2640_v61  ;;  %2824 = vst [vmem:[#allocation3 + $0xa8] sm:$0x1] %v2823_v20  ;;  %v2819_v20 = vld [vmem:[#allocation3 + $0x9c] sm:$0x1] }
 0x1ce   : > { %v3703_v42 = vsel %vm8919_vm13, %v3698_v12, %v3702_v43  ;;  %v3722_v15 = vrot.slane %v3721_v2, 4  ;;  %v4609_v47 = vrot.slane %v10488_v11, 5  ;;  %v3717_v50 = vsel %vm8919_vm13, %v3712_v63, %v3716_v33  ;;  %v3337_v2 = vld [vmem:[#allocation3 + $0x50] sm:$0x1] }
 0x1cf   : > { %v3062_v1 = vshrl.u32 %v7676_v24, 16  ;;  %v7674_v25 = vpack.c.bf16 %v2749_v40, %v2749_v40  ;;  %v2752_v62 = vmax.f32 %v2720_v32, 0.0  ;;  %v2718_v45 = vadd.f32 %v10296_v7, %v2679_v19 }
 0x1d0   : > { %v10532_v27 = vcombine.low %v3693_v0, %v3703_v42  ;;  %v3727_v31 = vsel %vm8919_vm13, %v3722_v15, %v3726_v48  ;;  %v4610_v23 = vsel %vm8878_vm9, %v7499_v3, %v4609_v47  ;;  %v3065_v53 = vshll.u32 %v7676_v24, 16  ;;  %v2871_v3 = vld [vmem:[#allocation3 + $0xb0] sm:$0x1] }
 0x1d1   : > { %v3064_v10 = vrot.slane %v3062_v1, 7  ;;  %v3045_v51 = vshrl.u32 %v7674_v25, 16  ;;  %v7677_v11 = vpack.c.bf16 %v2752_v62, %v2752_v62  ;;  %v2750_v21 = vmax.f32 %v2718_v45, 0.0 }
 0x1d2   : > { %12217 = vst [vmem:[#allocation6_spill] sm:$0xff] %v10532_v27  ;;  %8136 = vmatmul.mubr.bf16.gmra.mxu1 %v10532_v27  ;;  %v10539_v43 = vcombine.low %v3717_v50, %v3727_v31  ;;  %v4611_v46 = vrot.slane %v4609_v47, 4  ;;  %v4612_v59 = vrot.slane %v10490_v41, 5  ;;  %v3048_v28 = vshll.u32 %v7674_v25, 16  ;;  %v3330_v50 = vld [vmem:[#allocation3 + $0x44] sm:$0x1] }
 0x1d3   : > { %v3067_v60 = vor.u32 %v3065_v53, %v3064_v10  ;;  %v3047_v34 = vrot.slane %v3045_v51, 7  ;;  %v3070_v0 = vshrl.u32 %v7677_v11, 16  ;;  %v7675_v63 = vpack.c.bf16 %v2750_v21, %v2750_v21  ;;  %v2868_v53 = vld [vmem:[#allocation3 + $0xa4] sm:$0x1] }
 0x1d4   : > { %12218 = vst [vmem:[#allocation7_spill] sm:$0xff] %v10539_v43  ;;  %8139 = vmatprep.mubr.bf16.mxu1 %v10539_v43  ;;  %v4613_v33 = vsel %vm8878_vm9, %v4611_v46, %v4612_v59  ;;  %v7500_v5 = vrot.slane %v10466_v37, 9  ;;  %v4616_v16 = vrot.slane %v10479_v52, 5  ;;  %v3073_v55 = vshll.u32 %v7677_v11, 16  ;;  %v8656_v59 = vld [vmem:[%s12155_s6 + $0xf8] sm:$0xff]  }
 0x1d5   : > { %v3334_v6 = vsel %vm10331_vm5, %v3067_v60, %v3333_v4  ;;  %v3050_v61 = vor.u32 %v3048_v28, %v3047_v34  ;;  %v3072_v41 = vrot.slane %v3070_v0, 7  ;;  %v3068_v12 = vrot.slane %v3064_v10, 4  ;;  %v8657_v60 = vld [vmem:[%s12155_s6 + $0xb8] sm:$0xff]   ;;  %v8658_v0 = vld [vmem:[%s12155_s6 + $0xf0] sm:$0xff]   ;;  %8259 = vmatprep.subr.bf16.mxu0 %v8656_v59 }
 0x1d6   : > { %3335 = vst [vmem:[#allocation3 + $0x48] sm:$0xf] %v3334_v6  ;;  %v3053_v48 = vshrl.u32 %v7675_v63, 16  ;;  %v10549_v24 = vcombine.low %v4610_v23, %v4613_v33  ;;  %v4617_v40 = vsel %vm8878_vm9, %v7500_v5, %v4616_v16  ;;  %v2820_v19 = vsel %vm10017_vm15, 0, %v2819_v20  ;;  %8211 = vmatprep.subr.bf16.mxu1 %v8657_v60  ;;  %8260 = vmatpush3.bf16.msra.mxu0 %v8656_v59 }
 0x1d7   : > { %v3327_v37 = vsel %vm10331_vm5, %v3050_v61, %v3326_v39  ;;  %v3075_v52 = vor.u32 %v3073_v55, %v3072_v41  ;;  %v3077_v32 = vrot.slane %v3072_v41, 4  ;;  %v3056_v15 = vshll.u32 %v7675_v63, 16  ;;  %2821 = vst [vmem:[#allocation3 + $0x9c] sm:$0x1] %v2820_v19  ;;  %v8659_v39 = vld [vmem:[%s12155_s6 + $0xb0] sm:$0xff]   ;;  %8212 = vmatpush3.bf16.msra.mxu1 %v8657_v60  ;;  %8261 = vmatprep.subr.bf16.mxu0 %v8658_v0 }
 0x1d8   : > { %3328 = vst [vmem:[#allocation3 + $0x3c] sm:$0xf] %v3327_v37  ;;  %v3055_v42 = vrot.slane %v3053_v48, 7  ;;  %v4618_v47 = vrot.slane %v4616_v16, 4  ;;  %v4619_v1 = vrot.slane %v10497_v14, 5  ;;  %v2872_v45 = vsel %vm10030_vm2, 0, %v2871_v3  ;;  %8213 = vmatprep.subr.bf16.mxu1 %v8659_v39 }
 0x1d9   : > { %v3076_v25 = vsel %vm8926_vm14, %v3068_v12, %v3075_v52  ;;  %v3338_v62 = vsel %vm10017_vm15, %v3077_v32, %v3337_v2  ;;  %v3051_v31 = vrot.slane %v3047_v34, 4  ;;  %2873 = vst [vmem:[#allocation3 + $0xb0] sm:$0x1] %v2872_v45  ;;  %v2869_v51 = vsel %vm10030_vm2, 0, %v2868_v53 }
 0x1da   : > { %3336 = vst [vmem:[#allocation3 + $0x4c] sm:$0xf] %v3076_v25  ;;  %3339 = vst [vmem:[#allocation3 + $0x50] sm:$0x1] %v3338_v62  ;;  %v3058_v23 = vor.u32 %v3056_v15, %v3055_v42  ;;  %v3060_v10 = vrot.slane %v3055_v42, 4  ;;  %v4620_v14 = vsel %vm8878_vm9, %v4618_v47, %v4619_v1  ;;  %8262 = vmatpush3.bf16.msra.mxu0 %v8658_v0 }
 0x1db   : > { %v10568_v11 = vcombine.low %v4617_v40, %v4620_v14  ;;  %2870 = vst [vmem:[#allocation3 + $0xa4] sm:$0x1] %v2869_v51  ;;  %8214 = vmatpush3.bf16.msra.mxu1 %v8659_v39 }
 0x1dc   : > { %v3059_v4 = vsel %vm8926_vm14, %v3051_v31, %v3058_v23  ;;  %v3331_v21 = vsel %vm10017_vm15, %v3060_v10, %v3330_v50 }
 0x1dd   : > { %3329 = vst [vmem:[#allocation3 + $0x40] sm:$0xf] %v3059_v4  ;;  %3332 = vst [vmem:[#allocation3 + $0x44] sm:$0x1] %v3331_v21  ;;  %v10574_v46 = vld [vmem:[#allocation3 + $0x48] sm:$0xf] }
 0x1de   : > { %v3753_v34 = vshrl.u32 %v10574_v46, 16  ;;  %v3756_v28 = vshll.u32 %v10574_v46, 16 }
 0x1df   : > { %v10590_v63 = vld [vmem:[#allocation3 + $0x3c] sm:$0xf] }
 0x1e0   : > { %v8097_v33 = vpop.f32.mrf.mxu0  ;;  %v3729_v5 = vshrl.u32 %v10590_v63, 16  ;;  %v3732_v16 = vshll.u32 %v10590_v63, 16  ;;  %v3755_v6 = vrot.slane %v3753_v34, 4  ;;  %v3758_v61 = vrot.slane %v3756_v28, 5 }
 0x1e1   : > { %v2519_v41 = vadd.f32 %v8097_v33, %v10264_v8  ;;  %v10595_v55 = vld [vmem:[#allocation3 + $0x4c] sm:$0xf]  ;;  %v10613_v31 = vld [vmem:[#allocation3 + $0x50] sm:$0x1] }
 0x1e2   : > { %v2510_v12 = vpop.f32.mrf.mxu0  ;;  %v3766_v2 = vshrl.u32 %v10595_v55, 16  ;;  %v3731_v48 = vrot.slane %v3729_v5, 4  ;;  %v3734_v20 = vrot.slane %v3732_v16, 5  ;;  %v10602_v52 = vcombine.low %v10574_v46, %v10595_v55 }
 0x1e3   : > { %v2608_v40 = vsub.f32 %v2519_v41, %v10271_v9  ;;  %v2511_v37 = vadd.f32 %v10264_v8, %v2510_v12  ;;  %v3759_v3 = vor.u32 %v3758_v61, %v3755_v6  ;;  %v3762_v47 = vshll.u32 %v10595_v55, 16  ;;  %v2828_v61 = vld [vmem:[#allocation3 + $0xc0] sm:$0x1] }
 0x1e4   : > { %v8098_v32 = vpop.f32.mrf.mxu0  ;;  %v10604_v19 = vld [vmem:[#allocation3 + $0x40] sm:$0xf]  ;;  %v10606_v42 = vld [vmem:[#allocation3 + $0x44] sm:$0x1]  ;;  %v3735_v15 = vor.u32 %v3734_v20, %v3731_v48  ;;  %v3768_v1 = vrot.slane %v3766_v2, 4  ;;  %v3772_v39 = vshll.u32 %v10613_v31, 16 }
 0x1e5   : > { %v2645_v25 = vmul.f32 %v10279_v30, %v2608_v40  ;;  %v2606_v62 = vsub.f32 %v2511_v37, %v10271_v9  ;;  %v2522_v50 = vadd.f32 %v8098_v32, %v10264_v8  ;;  %v3742_v45 = vshrl.u32 %v10604_v19, 16 }
 0x1e6   : > { %v2513_v23 = vpop.f32.mrf.mxu0  ;;  %v10617_v10 = vcombine.low %v10590_v63, %v10604_v19  ;;  %v3736_v53 = vrot.slane %v3735_v15, 4  ;;  %v3738_v14 = vshll.u32 %v10604_v19, 16  ;;  %v3748_v51 = vshll.u32 %v10606_v42, 16 }
 0x1e7   : > { %v2684_v4 = vmul.f32 %v10286_v17, %v2645_v25  ;;  %v2643_v21 = vmul.f32 %v10279_v30, %v2606_v62  ;;  %v2609_v59 = vsub.f32 %v2522_v50, %v10271_v9  ;;  %v2514_v60 = vadd.f32 %v10264_v8, %v2513_v23 }
 0x1e8   : > { %8188 = vmatmul.mubr.bf16.gmra.mxu0 %v10617_v10  ;;  %v3740_v34 = vrot.slane %v3738_v14, 5  ;;  %v3744_v28 = vrot.slane %v3742_v45, 4  ;;  %v3750_v0 = vrot.slane %v3748_v51, 5  ;;  %v3760_v12 = vrot.slane %v3759_v3, 4 }
 0x1e9   : > { %v2723_v33 = vadd.f32 %v10296_v7, %v2684_v4  ;;  %v2682_v5 = vmul.f32 %v10286_v17, %v2643_v21  ;;  %v2646_v16 = vmul.f32 %v10279_v30, %v2609_v59  ;;  %v2607_v6 = vsub.f32 %v2514_v60, %v10271_v9  ;;  %8191 = vmatprep.mubr.bf16.mxu0 %v10602_v52 }
 0x1ea   : > { %v3741_v8 = vsel %vm8919_vm13, %v3736_v53, %v3740_v34  ;;  %v3745_v41 = vor.u32 %v3744_v28, %v3740_v34  ;;  %v3764_v2 = vrot.slane %v3762_v47, 5  ;;  %v3774_v25 = vrot.slane %v3772_v39, 5 }
 0x1eb   : > { %v2755_v48 = vmax.f32 %v2723_v33, 0.0  ;;  %v2721_v20 = vadd.f32 %v10296_v7, %v2682_v5  ;;  %v2685_v40 = vmul.f32 %v10286_v17, %v2646_v16  ;;  %v2644_v37 = vmul.f32 %v10279_v30, %v2607_v6 }
 0x1ec   : > { %v3746_v32 = vrot.slane %v3745_v41, 4  ;;  %v3769_v15 = vor.u32 %v3768_v1, %v3764_v2  ;;  %v2829_v9 = vsel %vm10017_vm15, 0, %v2828_v61  ;;  %v7501_v53 = vrot.slane %v10590_v63, 9  ;;  %v2825_v41 = vld [vmem:[#allocation3 + $0xb4] sm:$0x1] }
 0x1ed   : > { %v7680_v62 = vpack.c.bf16 %v2755_v48, %v2755_v48  ;;  %v2753_v50 = vmax.f32 %v2721_v20, 0.0  ;;  %v2724_v45 = vadd.f32 %v10296_v7, %v2685_v40  ;;  %v2683_v3 = vmul.f32 %v10286_v17, %v2644_v37  ;;  %2830 = vst [vmem:[#allocation3 + $0xc0] sm:$0x1] %v2829_v9  ;;  %v2877_v9 = vld [vmem:[#allocation3 + $0xc8] sm:$0x1] }
 0x1ee   : > { %v3751_v47 = vsel %vm8919_vm13, %v3746_v32, %v3750_v0  ;;  %v3770_v23 = vrot.slane %v3769_v15, 4  ;;  %v4623_v30 = vrot.slane %v10604_v19, 5  ;;  %v3765_v4 = vsel %vm8919_vm13, %v3760_v12, %v3764_v2  ;;  %v3347_v0 = vld [vmem:[#allocation3 + $0x60] sm:$0xf]  ;;  %v3340_v12 = vld [vmem:[#allocation3 + $0x54] sm:$0xf] }
 0x1ef   : > { %v3096_v1 = vshrl.u32 %v7680_v62, 16  ;;  %v7678_v14 = vpack.c.bf16 %v2753_v50, %v2753_v50  ;;  %v2756_v51 = vmax.f32 %v2724_v45, 0.0  ;;  %v2722_v21 = vadd.f32 %v10296_v7, %v2683_v3  ;;  %v3351_v50 = vld [vmem:[#allocation3 + $0x68] sm:$0x1] }
 0x1f0   : > { %v10648_v59 = vcombine.low %v3741_v8, %v3751_v47  ;;  %v3775_v17 = vsel %vm8919_vm13, %v3770_v23, %v3774_v25  ;;  %v4624_v60 = vsel %vm8878_vm9, %v7501_v53, %v4623_v30  ;;  %v3099_v63 = vshll.u32 %v7680_v62, 16  ;;  %v8660_v25 = vld [vmem:[%s12155_s6 + $0xe8] sm:$0xff]  }
 0x1f1   : > { %v3098_v34 = vrot.slane %v3096_v1, 7  ;;  %v3079_v28 = vshrl.u32 %v7678_v14, 16  ;;  %v7681_v19 = vpack.c.bf16 %v2756_v51, %v2756_v51  ;;  %v2754_v39 = vmax.f32 %v2722_v21, 0.0  ;;  %8263 = vmatprep.subr.bf16.mxu0 %v8660_v25 }
 0x1f2   : > { %12219 = vst [vmem:[#allocation8_spill] sm:$0xff] %v10648_v59  ;;  %8140 = vmatmul.mubr.bf16.gmra.mxu1 %v10648_v59  ;;  %v10655_v33 = vcombine.low %v3765_v4, %v3775_v17  ;;  %v4625_v5 = vrot.slane %v4623_v30, 4  ;;  %v4626_v7 = vrot.slane %v10606_v42, 5  ;;  %v3082_v61 = vshll.u32 %v7678_v14, 16  ;;  %v2874_v30 = vld [vmem:[#allocation3 + $0xbc] sm:$0x1]  ;;  %8264 = vmatpush3.bf16.msra.mxu0 %v8660_v25 }
 0x1f3   : > { %v3101_v16 = vor.u32 %v3099_v63, %v3098_v34  ;;  %v3081_v6 = vrot.slane %v3079_v28, 7  ;;  %v3104_v8 = vshrl.u32 %v7681_v19, 16  ;;  %v7679_v2 = vpack.c.bf16 %v2754_v39, %v2754_v39  ;;  %v8665_v39 = vld [vmem:[%s12155_s6 + $0xa0] sm:$0xff]  }
 0x1f4   : > { %12220 = vst [vmem:[#allocation9_spill] sm:$0xff] %v10655_v33  ;;  %8143 = vmatprep.mubr.bf16.mxu1 %v10655_v33  ;;  %v2826_v48 = vsel %vm10017_vm15, 0, %v2825_v41  ;;  %v4627_v20 = vsel %vm8878_vm9, %v4625_v5, %v4626_v7  ;;  %v7502_v40 = vrot.slane %v10574_v46, 9  ;;  %v3107_v15 = vshll.u32 %v7681_v19, 16  ;;  %v8666_v5 = vld [vmem:[%s12155_s6 + $0xd8] sm:$0xff]  }
 0x1f5   : > { %v3348_v42 = vsel %vm10331_vm5, %v3101_v16, %v3347_v0  ;;  %v3084_v37 = vor.u32 %v3082_v61, %v3081_v6  ;;  %v3106_v32 = vrot.slane %v3104_v8, 7  ;;  %2827 = vst [vmem:[#allocation3 + $0xb4] sm:$0x1] %v2826_v48  ;;  %v3102_v62 = vrot.slane %v3098_v34, 4  ;;  %v3344_v34 = vld [vmem:[#allocation3 + $0x5c] sm:$0x1] }
 0x1f6   : > { %3349 = vst [vmem:[#allocation3 + $0x60] sm:$0xf] %v3348_v42  ;;  %v3087_v45 = vshrl.u32 %v7679_v2, 16  ;;  %v2878_v3 = vsel %vm10030_vm2, 0, %v2877_v9  ;;  %v10671_v46 = vcombine.low %v4624_v60, %v4627_v20  ;;  %v4630_v1 = vrot.slane %v10595_v55, 5  ;;  %v8664_v0 = vld [vmem:[%s12155_s6 + $0xe0] sm:$0xff]  }
 0x1f7   : > { %v3341_v47 = vsel %vm10331_vm5, %v3084_v37, %v3340_v12  ;;  %v3109_v23 = vor.u32 %v3107_v15, %v3106_v32  ;;  %v3111_v53 = vrot.slane %v3106_v32, 4  ;;  %2879 = vst [vmem:[#allocation3 + $0xc8] sm:$0x1] %v2878_v3  ;;  %v3090_v51 = vshll.u32 %v7679_v2, 16  ;;  %8265 = vmatprep.subr.bf16.mxu0 %v8664_v0  ;;  %v8667_v2 = vld [vmem:[%s12155_s6 + $0x98] sm:$0xff]   ;;  %v8668_v48 = vld [vmem:[%s12155_s6 + $0xd0] sm:$0xff]  }
 0x1f8   : > { %3342 = vst [vmem:[#allocation3 + $0x54] sm:$0xf] %v3341_v47  ;;  %v3089_v14 = vrot.slane %v3087_v45, 7  ;;  %v2875_v4 = vsel %vm10030_vm2, 0, %v2874_v30  ;;  %v4633_v21 = vrot.slane %v10613_v31, 5  ;;  %v4631_v55 = vsel %vm8878_vm9, %v7502_v40, %v4630_v1  ;;  %v8661_v31 = vld [vmem:[%s12155_s6 + $0xa8] sm:$0xff]   ;;  %8266 = vmatpush3.bf16.msra.mxu0 %v8664_v0 }
 0x1f9   : > { %v3110_v17 = vsel %vm8926_vm14, %v3102_v62, %v3109_v23  ;;  %v3352_v60 = vsel %vm10017_vm15, %v3111_v53, %v3351_v50  ;;  %2876 = vst [vmem:[#allocation3 + $0xbc] sm:$0x1] %v2875_v4  ;;  %v4632_v63 = vrot.slane %v4630_v1, 4  ;;  %v3085_v28 = vrot.slane %v3081_v6, 4  ;;  %8215 = vmatprep.subr.bf16.mxu1 %v8661_v31  ;;  %8267 = vmatprep.subr.bf16.mxu0 %v8666_v5  ;;  %v10724_v25 = vld [vmem:[%s12152_s3] ss:$0 sm:$0xff] }
 0x1fa   : > { %3350 = vst [vmem:[#allocation3 + $0x64] sm:$0xf] %v3110_v17  ;;  %3353 = vst [vmem:[#allocation3 + $0x68] sm:$0x1] %v3352_v60  ;;  %v3092_v19 = vor.u32 %v3090_v51, %v3089_v14  ;;  %v3094_v38 = vrot.slane %v3089_v14, 4  ;;  %8216 = vmatpush3.bf16.msra.mxu1 %v8661_v31  ;;  %v8669_v23 = vld [vmem:[%s12155_s6 + $0x90] sm:$0xff]  }
 0x1fb   : > { %v4634_v7 = vsel %vm8878_vm9, %v4632_v63, %v4633_v21  ;;  %8217 = vmatprep.subr.bf16.mxu1 %v8665_v39  ;;  %v8670_v53 = vld [vmem:[%s12155_s6 + $0xc8] sm:$0xff]   ;;  %v10740_v1 = vld [vmem:[%s12149_s0] ss:$0 sm:$0xff] }
 0x1fc   : > { %v3093_v16 = vsel %vm8926_vm14, %v3085_v28, %v3092_v19  ;;  %v3345_v6 = vsel %vm10017_vm15, %v3094_v38, %v3344_v34  ;;  %v10703_v61 = vcombine.low %v4631_v55, %v4634_v7  ;;  %8268 = vmatpush3.bf16.msra.mxu0 %v8666_v5  ;;  %v10758_v38 = vld [vmem:[%s12149_s0 + $0x1] ss:$0 sm:$0xff] }
 0x1fd   : > { %3343 = vst [vmem:[#allocation3 + $0x58] sm:$0xf] %v3093_v16  ;;  %3346 = vst [vmem:[#allocation3 + $0x5c] sm:$0x1] %v3345_v6  ;;  %v10705_v8 = vld [vmem:[#allocation3 + $0x60] sm:$0xf]  ;;  %8269 = vmatprep.subr.bf16.mxu0 %v8668_v48 }
 0x1fe   : > { %v3801_v41 = vshrl.u32 %v10705_v8, 16  ;;  %v3804_v12 = vshll.u32 %v10705_v8, 16  ;;  %8218 = vmatpush3.bf16.msra.mxu1 %v8665_v39 }
 0x1ff   : > { %v10715_v20 = vld [vmem:[#allocation3 + $0x54] sm:$0xf]  ;;  %8219 = vmatprep.subr.bf16.mxu1 %v8667_v2 }
 0x200   : > { %v8101_v40 = vpop.f32.mrf.mxu1  ;;  %v3777_v42 = vshrl.u32 %v10715_v20, 16  ;;  %v3780_v37 = vshll.u32 %v10715_v20, 16  ;;  %v10719_v32 = vrot.slane %v3801_v41, 4  ;;  %v3806_v15 = vrot.slane %v3804_v12, 5  ;;  %8270 = vmatpush3.bf16.msra.mxu0 %v8668_v48 }
 0x201   : > { %v2535_v9 = vadd.f32 %v10724_v25, %v8101_v40  ;;  %v10727_v62 = vld [vmem:[#allocation3 + $0x64] sm:$0xf]  ;;  %v7503_v21 = vrot.slane %v10715_v20, 9  ;;  %v10764_v7 = vld [vmem:[#allocation3 + $0x68] sm:$0x1]  ;;  %8271 = vmatprep.subr.bf16.mxu0 %v8670_v53 }
 0x202   : > { %v2526_v50 = vpop.f32.mrf.mxu1  ;;  %v3814_v45 = vshrl.u32 %v10727_v62, 16  ;;  %v3779_v3 = vrot.slane %v3777_v42, 4  ;;  %v3782_v47 = vrot.slane %v3780_v37, 5  ;;  %v10746_v4 = vcombine.low %v10705_v8, %v10727_v62  ;;  %8220 = vmatpush3.bf16.msra.mxu1 %v8667_v2  ;;  %v10775_v42 = vld [vmem:[%s12153_s4] ss:$0 sm:$0xff] }
 0x203   : > { %v2612_v14 = vsub.f32 %v2535_v9, %v10740_v1  ;;  %v2527_v51 = vadd.f32 %v10724_v25, %v2526_v50  ;;  %v3807_v63 = vor.u32 %v3806_v15, %v10719_v32  ;;  %v3810_v28 = vshll.u32 %v10727_v62, 16  ;;  %8221 = vmatprep.subr.bf16.mxu1 %v8669_v23  ;;  %v8672_v15 = vld [vmem:[%s12155_s6 + $0x88] sm:$0xff]  }
 0x204   : > { %v8102_v17 = vpop.f32.mrf.mxu1  ;;  %v10749_v60 = vld [vmem:[#allocation3 + $0x58] sm:$0xf]  ;;  %v10751_v34 = vld [vmem:[#allocation3 + $0x5c] sm:$0x1]  ;;  %v3783_v55 = vor.u32 %v3782_v47, %v3779_v3  ;;  %v3816_v19 = vrot.slane %v3814_v45, 4  ;;  %v3820_v3 = vshll.u32 %v10764_v7, 16  ;;  %8272 = vmatpush3.bf16.msra.mxu0 %v8670_v53 }
 0x205   : > { %v2649_v31 = vmul.f32 %v10758_v38, %v2612_v14  ;;  %v2610_v0 = vsub.f32 %v2527_v51, %v10740_v1  ;;  %v2538_v39 = vadd.f32 %v10724_v25, %v8102_v17  ;;  %v3790_v5 = vshrl.u32 %v10749_v60, 16  ;;  %v8673_v47 = vld [vmem:[%s12155_s6 + $0xc0] sm:$0xff]  }
 0x206   : > { %v2529_v16 = vpop.f32.mrf.mxu1  ;;  %v10768_v6 = vcombine.low %v10715_v20, %v10749_v60  ;;  %v3784_v41 = vrot.slane %v3783_v55, 4  ;;  %v3786_v12 = vshll.u32 %v10749_v60, 16  ;;  %v3796_v40 = vshll.u32 %v10751_v34, 16  ;;  %v10792_v14 = vld [vmem:[%s12154_s5] ss:$0 sm:$0xff]  ;;  %8222 = vmatpush3.bf16.msra.mxu1 %v8669_v23  ;;  %8273 = vmatprep.subr.bf16.mxu0 %v8673_v47 }
 0x207   : > { %v2688_v2 = vmul.f32 %v10775_v42, %v2649_v31  ;;  %v2647_v48 = vmul.f32 %v10758_v38, %v2610_v0  ;;  %v2613_v37 = vsub.f32 %v2538_v39, %v10740_v1  ;;  %v2530_v32 = vadd.f32 %v10724_v25, %v2529_v16  ;;  %8223 = vmatprep.subr.bf16.mxu1 %v8672_v15 }
 0x208   : > { %8192 = vmatmul.mubr.bf16.gmra.mxu0 %v10768_v6  ;;  %v3788_v9 = vrot.slane %v3786_v12, 5  ;;  %v3792_v50 = vrot.slane %v3790_v5, 4  ;;  %v3798_v45 = vrot.slane %v3796_v40, 5  ;;  %v3808_v5 = vrot.slane %v3807_v63, 4 }
 0x209   : > { %v2727_v51 = vadd.f32 %v10792_v14, %v2688_v2  ;;  %v2686_v17 = vmul.f32 %v10775_v42, %v2647_v48  ;;  %v2650_v55 = vmul.f32 %v10758_v38, %v2613_v37  ;;  %v2611_v31 = vsub.f32 %v2530_v32, %v10740_v1  ;;  %8195 = vmatprep.mubr.bf16.mxu0 %v10746_v4 }
 0x20a   : > { %v3789_v0 = vsel %vm8919_vm13, %v3784_v41, %v3788_v9  ;;  %v3793_v39 = vor.u32 %v3792_v50, %v3788_v9  ;;  %v3812_v16 = vrot.slane %v3810_v28, 5  ;;  %v3822_v30 = vrot.slane %v3820_v3, 5  ;;  %v8674_v41 = vld [vmem:[%s12155_s6 + $0x80] sm:$0xff]   ;;  %8224 = vmatpush3.bf16.msra.mxu1 %v8672_v15  ;;  %8274 = vmatpush3.bf16.msra.mxu0 %v8673_v47 }
 0x20b   : > { %v2759_v12 = vmax.f32 %v2727_v51, 0.0  ;;  %v2725_v40 = vadd.f32 %v10792_v14, %v2686_v17  ;;  %v2689_v2 = vmul.f32 %v10775_v42, %v2650_v55  ;;  %v2648_v48 = vmul.f32 %v10758_v38, %v2611_v31  ;;  %8225 = vmatprep.subr.bf16.mxu1 %v8674_v41 }
 0x20c   : > { %v3794_v37 = vrot.slane %v3793_v39, 4  ;;  %v3817_v32 = vor.u32 %v3816_v19, %v3812_v16  ;;  %v4637_v63 = vrot.slane %v10749_v60, 5  ;;  %v3813_v31 = vsel %vm8919_vm13, %v3808_v5, %v3812_v16 }
 0x20d   : > { %v7684_v23 = vpack.c.bf16 %v2759_v12, %v2759_v12  ;;  %v2757_v53 = vmax.f32 %v2725_v40, 0.0  ;;  %v2728_v28 = vadd.f32 %v10792_v14, %v2689_v2  ;;  %v2687_v9 = vmul.f32 %v10775_v42, %v2648_v48  ;;  %v3361_v2 = vld [vmem:[#allocation3 + $0x78] sm:$0xf] }
 0x20e   : > { %v3799_v50 = vsel %vm8919_vm13, %v3794_v37, %v3798_v45  ;;  %v3818_v51 = vrot.slane %v3817_v32, 4  ;;  %v4638_v19 = vsel %vm8878_vm9, %v7503_v21, %v4637_v63  ;;  %v4639_v3 = vrot.slane %v4637_v63, 4  ;;  %8226 = vmatpush3.bf16.msra.mxu1 %v8674_v41 }
 0x20f   : > { %v3130_v17 = vshrl.u32 %v7684_v23, 16  ;;  %v7682_v60 = vpack.c.bf16 %v2757_v53, %v2757_v53  ;;  %v2760_v55 = vmax.f32 %v2728_v28, 0.0  ;;  %v2726_v39 = vadd.f32 %v10792_v14, %v2687_v9 }
 0x210   : > { %v10819_v12 = vcombine.low %v3789_v0, %v3799_v50  ;;  %v3823_v15 = vsel %vm8919_vm13, %v3818_v51, %v3822_v30  ;;  %v4640_v20 = vrot.slane %v10751_v34, 5  ;;  %v3133_v47 = vshll.u32 %v7684_v23, 16  ;;  %v10833_v34 = vld [vmem:[%s12155_s6 + $0x178] sm:$0xff]   ;;  %v3354_v23 = vld [vmem:[#allocation3 + $0x6c] sm:$0xf] }
 0x211   : > { %v3132_v45 = vrot.slane %v3130_v17, 7  ;;  %v3113_v21 = vshrl.u32 %v7682_v60, 16  ;;  %v7685_v40 = vpack.c.bf16 %v2760_v55, %v2760_v55  ;;  %v2758_v48 = vmax.f32 %v2726_v39, 0.0  ;;  %8355 = vmatprep.subr.bf16.mxu0 %v10833_v34  ;;  %v3365_v17 = vld [vmem:[#allocation3 + $0x80] sm:$0x1] }
 0x212   : > { %12221 = vst [vmem:[#allocation10_spill] sm:$0xff] %v10819_v12  ;;  %8144 = vmatmul.mubr.bf16.gmra.mxu1 %v10819_v12  ;;  %v10825_v37 = vcombine.low %v3813_v31, %v3823_v15  ;;  %v4641_v5 = vsel %vm8878_vm9, %v4639_v3, %v4640_v20  ;;  %v4644_v0 = vrot.slane %v10727_v62, 5  ;;  %v3116_v30 = vshll.u32 %v7682_v60, 16  ;;  %v10850_v15 = vld [vmem:[%s12155_s6 + $0x138] sm:$0xff]  }
 0x213   : > { %v3135_v16 = vor.u32 %v3133_v47, %v3132_v45  ;;  %v3115_v32 = vrot.slane %v3113_v21, 7  ;;  %v3138_v63 = vshrl.u32 %v7685_v40, 16  ;;  %v7683_v53 = vpack.c.bf16 %v2758_v48, %v2758_v48  ;;  %8307 = vmatprep.subr.bf16.mxu1 %v10850_v15 }
 0x214   : > { %12222 = vst [vmem:[#allocation11_spill] sm:$0xff] %v10825_v37  ;;  %8147 = vmatprep.mubr.bf16.mxu1 %v10825_v37  ;;  %v10836_v28 = vcombine.low %v4638_v19, %v4641_v5  ;;  %v12224_v9 = vrot.slane %v10705_v8, 9  ;;  %v3141_v3 = vshll.u32 %v7685_v40, 16  ;;  %v4646_v55 = vrot.slane %v4644_v0, 4 }
 0x215   : > { %v3362_v50 = vsel %vm10331_vm5, %v3135_v16, %v3361_v2  ;;  %v3118_v41 = vor.u32 %v3116_v30, %v3115_v32  ;;  %v3140_v51 = vrot.slane %v3138_v63, 7  ;;  %v3121_v60 = vshrl.u32 %v7683_v53, 16  ;;  %v3358_v2 = vld [vmem:[#allocation3 + $0x74] sm:$0x1] }
 0x216   : > { %12223 = vst [vmem:[#allocation12_spill] sm:$0xff] %v10836_v28  ;;  %v4645_v62 = vsel %vm8878_vm9, %v12224_v9, %v4644_v0  ;;  %3363 = vst [vmem:[#allocation3 + $0x78] sm:$0xf] %v3362_v50  ;;  %v3136_v31 = vrot.slane %v3132_v45, 4  ;;  %v3124_v47 = vshll.u32 %v7683_v53, 16  ;;  %v4647_v21 = vrot.slane %v10764_v7, 5 }
 0x217   : > { %v3355_v19 = vsel %vm10331_vm5, %v3118_v41, %v3354_v23  ;;  %v3143_v8 = vor.u32 %v3141_v3, %v3140_v51  ;;  %v3145_v39 = vrot.slane %v3140_v51, 4  ;;  %v3123_v20 = vrot.slane %v3121_v60, 7 }
 0x218   : > { %3356 = vst [vmem:[#allocation3 + $0x6c] sm:$0xf] %v3355_v19  ;;  %v3119_v48 = vrot.slane %v3115_v32, 4  ;;  %v4648_v16 = vsel %vm8878_vm9, %v4646_v55, %v4647_v21 }
 0x219   : > { %v3144_v40 = vsel %vm8926_vm14, %v3136_v31, %v3143_v8  ;;  %v3366_v45 = vsel %vm10017_vm15, %v3145_v39, %v3365_v17  ;;  %v3126_v5 = vor.u32 %v3124_v47, %v3123_v20  ;;  %v3128_v0 = vrot.slane %v3123_v20, 4 }
 0x21a   : > { %3364 = vst [vmem:[#allocation3 + $0x7c] sm:$0xf] %v3144_v40  ;;  %3367 = vst [vmem:[#allocation3 + $0x80] sm:$0x1] %v3366_v45  ;;  %v10860_v30 = vcombine.low %v4645_v62, %v4648_v16 }
 0x21b   : > { %v3127_v7 = vsel %vm8926_vm14, %v3119_v48, %v3126_v5  ;;  %v3359_v63 = vsel %vm10017_vm15, %v3128_v0, %v3358_v2 }
 0x21c   : > { %12225 = vst [vmem:[#allocation13_spill] sm:$0xff] %v10860_v30  ;;  %3357 = vst [vmem:[#allocation3 + $0x70] sm:$0xf] %v3127_v7 }
 0x21d   : > { %3360 = vst [vmem:[#allocation3 + $0x74] sm:$0x1] %v3359_v63  ;;  %v10866_v23 = vld [vmem:[#allocation3 + $0x78] sm:$0xf] }
 0x21e   : > { %v3849_v32 = vshrl.u32 %v10866_v23, 16  ;;  %v3852_v53 = vshll.u32 %v10866_v23, 16 }
 0x21f   : > { %v10870_v9 = vld [vmem:[#allocation3 + $0x6c] sm:$0xf] }
 0x220   : > { %v8105_v50 = vpop.f32.mrf.mxu1  ;;  %v3825_v62 = vshrl.u32 %v10870_v9, 16  ;;  %v3828_v41 = vshll.u32 %v10870_v9, 16  ;;  %v3851_v51 = vrot.slane %v3849_v32, 4  ;;  %v3854_v3 = vrot.slane %v3852_v53, 5 }
 0x221   : > { %v2551_v17 = vadd.f32 %v10724_v25, %v8105_v50  ;;  %v10875_v60 = vld [vmem:[#allocation3 + $0x7c] sm:$0xf]  ;;  %v7505_v40 = vrot.slane %v10870_v9, 9 }
 0x222   : > { %v2542_v55 = vpop.f32.mrf.mxu1  ;;  %v3862_v31 = vshrl.u32 %v10875_v60, 16  ;;  %v3827_v19 = vrot.slane %v3825_v62, 4  ;;  %v3830_v8 = vrot.slane %v3828_v41, 5  ;;  %v10883_v21 = vcombine.low %v10866_v23, %v10875_v60  ;;  %v10892_v62 = vld [vmem:[#allocation3 + $0x80] sm:$0x1] }
 0x223   : > { %v2616_v20 = vsub.f32 %v2551_v17, %v10740_v1  ;;  %v2543_v47 = vadd.f32 %v10724_v25, %v2542_v55  ;;  %v3438_v2 = vld [vmem:[#allocation3 + $0x70] sm:$0xf]  ;;  %v3855_v0 = vor.u32 %v3854_v3, %v3851_v51  ;;  %v3858_v16 = vshll.u32 %v10875_v60, 16 }
 0x224   : > { %v8106_v45 = vpop.f32.mrf.mxu1  ;;  %v10886_v48 = vld [vmem:[#allocation3 + $0x74] sm:$0x1]  ;;  %v3831_v5 = vor.u32 %v3830_v8, %v3827_v19  ;;  %v3864_v7 = vrot.slane %v3862_v31, 4  ;;  %v3838_v50 = vshrl.u32 %v3438_v2, 16  ;;  %v10895_v17 = vcombine.low %v10870_v9, %v3438_v2 }
 0x225   : > { %v2653_v63 = vmul.f32 %v10758_v38, %v2616_v20  ;;  %v2614_v32 = vsub.f32 %v2543_v47, %v10740_v1  ;;  %v2554_v53 = vadd.f32 %v10724_v25, %v8106_v45  ;;  %v3834_v39 = vshll.u32 %v3438_v2, 16 }
 0x226   : > { %v2545_v41 = vpop.f32.mrf.mxu1  ;;  %v3832_v55 = vrot.slane %v3831_v5, 4  ;;  %v3844_v51 = vshll.u32 %v10886_v48, 16  ;;  %8196 = vmatmul.mubr.bf16.gmra.mxu0 %v10895_v17  ;;  %v3840_v47 = vrot.slane %v3838_v50, 4  ;;  %v3868_v9 = vshll.u32 %v10892_v62, 16 }
 0x227   : > { %v2692_v3 = vmul.f32 %v10775_v42, %v2653_v63  ;;  %v2651_v31 = vmul.f32 %v10758_v38, %v2614_v32  ;;  %v2617_v19 = vsub.f32 %v2554_v53, %v10740_v1  ;;  %v2546_v8 = vadd.f32 %v10724_v25, %v2545_v41  ;;  %8199 = vmatprep.mubr.bf16.mxu0 %v10883_v21 }
 0x228   : > { %v3836_v20 = vrot.slane %v3834_v39, 5  ;;  %v3846_v45 = vrot.slane %v3844_v51, 5  ;;  %v3856_v41 = vrot.slane %v3855_v0, 4  ;;  %v3860_v39 = vrot.slane %v3858_v16, 5 }
 0x229   : > { %v2731_v5 = vadd.f32 %v10792_v14, %v2692_v3  ;;  %v2690_v37 = vmul.f32 %v10775_v42, %v2651_v31  ;;  %v2654_v12 = vmul.f32 %v10758_v38, %v2617_v19  ;;  %v2615_v63 = vsub.f32 %v2546_v8, %v10740_v1 }
 0x22a   : > { %v3837_v32 = vsel %vm8919_vm13, %v3832_v55, %v3836_v20  ;;  %v3841_v53 = vor.u32 %v3840_v47, %v3836_v20  ;;  %v3865_v59 = vor.u32 %v3864_v7, %v3860_v39  ;;  %v3870_v19 = vrot.slane %v3868_v9, 5 }
 0x22b   : > { %v2763_v50 = vmax.f32 %v2731_v5, 0.0  ;;  %v2729_v51 = vadd.f32 %v10792_v14, %v2690_v37  ;;  %v2693_v33 = vmul.f32 %v10775_v42, %v2654_v12  ;;  %v2652_v3 = vmul.f32 %v10758_v38, %v2615_v63 }
 0x22c   : > { %v3842_v31 = vrot.slane %v3841_v53, 4  ;;  %v4651_v43 = vrot.slane %v3438_v2, 5  ;;  %v3866_v16 = vrot.slane %v3865_v59, 4  ;;  %v3861_v2 = vsel %vm8919_vm13, %v3856_v41, %v3860_v39 }
 0x22d   : > { %v7688_v8 = vpack.c.bf16 %v2763_v50, %v2763_v50  ;;  %v2761_v27 = vmax.f32 %v2729_v51, 0.0  ;;  %v2732_v58 = vadd.f32 %v10792_v14, %v2693_v33  ;;  %v2691_v55 = vmul.f32 %v10775_v42, %v2652_v3 }
 0x22e   : > { %v3847_v0 = vsel %vm8919_vm13, %v3842_v31, %v3846_v45  ;;  %v4652_v37 = vsel %vm8878_vm9, %v7505_v40, %v4651_v43  ;;  %v4653_v12 = vrot.slane %v4651_v43, 4  ;;  %v3871_v33 = vsel %vm8919_vm13, %v3866_v16, %v3870_v19  ;;  %v3375_v43 = vld [vmem:[#allocation3 + $0x90] sm:$0xf] }
 0x22f   : > { %v3164_v20 = vshrl.u32 %v7688_v8, 16  ;;  %v7686_v47 = vpack.c.bf16 %v2761_v27, %v2761_v27  ;;  %v2764_v5 = vmax.f32 %v2732_v58, 0.0  ;;  %v2730_v7 = vadd.f32 %v10792_v14, %v2691_v55 }
 0x230   : > { %v10923_v9 = vcombine.low %v3837_v32, %v3847_v0  ;;  %v4654_v45 = vrot.slane %v10886_v48, 5  ;;  %v3167_v63 = vshll.u32 %v7688_v8, 16  ;;  %v10929_v58 = vcombine.low %v3861_v2, %v3871_v33  ;;  %v3368_v48 = vld [vmem:[#allocation3 + $0x84] sm:$0xf] }
 0x231   : > { %v3166_v59 = vrot.slane %v3164_v20, 7  ;;  %v3147_v53 = vshrl.u32 %v7686_v47, 16  ;;  %v7689_v40 = vpack.c.bf16 %v2764_v5, %v2764_v5  ;;  %v2762_v50 = vmax.f32 %v2730_v7, 0.0  ;;  %v3379_v20 = vld [vmem:[#allocation3 + $0x98] sm:$0x1] }
 0x232   : > { %12226 = vst [vmem:[#allocation14_spill] sm:$0xff] %v10923_v9  ;;  %8148 = vmatmul.mubr.bf16.gmra.mxu1 %v10923_v9  ;;  %12227 = vst [vmem:[#allocation15_spill] sm:$0xff] %v10929_v58  ;;  %v4655_v27 = vsel %vm8878_vm9, %v4653_v12, %v4654_v45  ;;  %v4658_v32 = vrot.slane %v10875_v60, 5  ;;  %v3150_v51 = vshll.u32 %v7686_v47, 16  ;;  %v12229_v8 = vrot.slane %v10866_v23, 9 }
 0x233   : > { %v3169_v41 = vor.u32 %v3167_v63, %v3166_v59  ;;  %v3149_v39 = vrot.slane %v3147_v53, 7  ;;  %v3172_v3 = vshrl.u32 %v7689_v40, 16  ;;  %v7687_v31 = vpack.c.bf16 %v2762_v50, %v2762_v50  ;;  %8151 = vmatprep.mubr.bf16.mxu1 %v10929_v58  ;;  %v3372_v50 = vld [vmem:[#allocation3 + $0x8c] sm:$0x1] }
 0x234   : > { %v10935_v19 = vcombine.low %v4652_v37, %v4655_v27  ;;  %v4659_v55 = vsel %vm8878_vm9, %v12229_v8, %v4658_v32  ;;  %v3175_v12 = vshll.u32 %v7689_v40, 16  ;;  %v4660_v5 = vrot.slane %v4658_v32, 4 }
 0x235   : > { %v3376_v0 = vsel %vm10331_vm5, %v3169_v41, %v3375_v43  ;;  %v3152_v16 = vor.u32 %v3150_v51, %v3149_v39  ;;  %v3174_v60 = vrot.slane %v3172_v3, 7  ;;  %v3155_v47 = vshrl.u32 %v7687_v31, 16 }
 0x236   : > { %12228 = vst [vmem:[#allocation16_spill] sm:$0xff] %v10935_v19  ;;  %3377 = vst [vmem:[#allocation3 + $0x90] sm:$0xf] %v3376_v0  ;;  %v4661_v2 = vrot.slane %v10892_v62, 5  ;;  %v3170_v7 = vrot.slane %v3166_v59, 4  ;;  %v3158_v63 = vshll.u32 %v7687_v31, 16 }
 0x237   : > { %v3369_v37 = vsel %vm10331_vm5, %v3152_v16, %v3368_v48  ;;  %v3177_v23 = vor.u32 %v3175_v12, %v3174_v60  ;;  %v3179_v33 = vrot.slane %v3174_v60, 4  ;;  %v3157_v45 = vrot.slane %v3155_v47, 7 }
 0x238   : > { %3370 = vst [vmem:[#allocation3 + $0x84] sm:$0xf] %v3369_v37  ;;  %v4662_v53 = vsel %vm8878_vm9, %v4660_v5, %v4661_v2  ;;  %v3153_v59 = vrot.slane %v3149_v39, 4 }
 0x239   : > { %v3178_v40 = vsel %vm8926_vm14, %v3170_v7, %v3177_v23  ;;  %v3380_v43 = vsel %vm10017_vm15, %v3179_v33, %v3379_v20  ;;  %v10952_v62 = vcombine.low %v4659_v55, %v4662_v53  ;;  %v3160_v27 = vor.u32 %v3158_v63, %v3157_v45 }
 0x23a   : > { %3378 = vst [vmem:[#allocation3 + $0x94] sm:$0xf] %v3178_v40  ;;  %3381 = vst [vmem:[#allocation3 + $0x98] sm:$0x1] %v3380_v43  ;;  %v3162_v32 = vrot.slane %v3157_v45, 4 }
 0x23b   : > { %12230 = vst [vmem:[#allocation17_spill] sm:$0xff] %v10952_v62  ;;  %v3161_v41 = vsel %vm8926_vm14, %v3153_v59, %v3160_v27 }
 0x23c   : > { %v3373_v51 = vsel %vm10017_vm15, %v3162_v32, %v3372_v50  ;;  %3371 = vst [vmem:[#allocation3 + $0x88] sm:$0xf] %v3161_v41 }
 0x23d   : > { %3374 = vst [vmem:[#allocation3 + $0x8c] sm:$0x1] %v3373_v51  ;;  %v10958_v3 = vld [vmem:[#allocation3 + $0x90] sm:$0xf] }
 0x23e   : > { %v3897_v48 = vshrl.u32 %v10958_v3, 16  ;;  %v3900_v31 = vshll.u32 %v10958_v3, 16 }
 0x23f   : > { %v10962_v8 = vld [vmem:[#allocation3 + $0x84] sm:$0xf] }
 0x240   : > { %v8109_v39 = vpop.f32.mrf.mxu1  ;;  %v3873_v55 = vshrl.u32 %v10962_v8, 16  ;;  %v3876_v0 = vshll.u32 %v10962_v8, 16  ;;  %v3899_v16 = vrot.slane %v3897_v48, 4  ;;  %v3902_v60 = vrot.slane %v3900_v31, 5 }
 0x241   : > { %v2567_v12 = vadd.f32 %v10724_v25, %v8109_v39  ;;  %v10967_v20 = vld [vmem:[#allocation3 + $0x94] sm:$0xf]  ;;  %v7507_v63 = vrot.slane %v10962_v8, 9  ;;  %v10984_v39 = vld [vmem:[#allocation3 + $0x98] sm:$0x1] }
 0x242   : > { %v2558_v47 = vpop.f32.mrf.mxu1  ;;  %v3910_v5 = vshrl.u32 %v10967_v20, 16  ;;  %v3875_v2 = vrot.slane %v3873_v55, 4  ;;  %v3878_v7 = vrot.slane %v3876_v0, 5  ;;  %v10975_v45 = vcombine.low %v10958_v3, %v10967_v20 }
 0x243   : > { %v2620_v23 = vsub.f32 %v2567_v12, %v10740_v1  ;;  %v2559_v33 = vadd.f32 %v10724_v25, %v2558_v47  ;;  %v3444_v40 = vld [vmem:[#allocation3 + $0x88] sm:$0xf]  ;;  %v3903_v59 = vor.u32 %v3902_v60, %v3899_v16  ;;  %v3906_v27 = vshll.u32 %v10967_v20, 16 }
 0x244   : > { %12231 = vst [vmem:[#allocation18_spill] sm:$0xff] %v10975_v45  ;;  %v8110_v53 = vpop.f32.mrf.mxu1  ;;  %v10978_v43 = vld [vmem:[#allocation3 + $0x8c] sm:$0x1]  ;;  %v3879_v50 = vor.u32 %v3878_v7, %v3875_v2  ;;  %v3912_v32 = vrot.slane %v3910_v5, 4  ;;  %v3886_v31 = vshrl.u32 %v3444_v40, 16  ;;  %v10987_v0 = vcombine.low %v10962_v8, %v3444_v40 }
 0x245   : > { %v2657_v41 = vmul.f32 %v10758_v38, %v2620_v23  ;;  %v2618_v51 = vsub.f32 %v2559_v33, %v10740_v1  ;;  %v2570_v48 = vadd.f32 %v10724_v25, %v8110_v53  ;;  %v3882_v47 = vshll.u32 %v3444_v40, 16 }
 0x246   : > { %v2561_v55 = vpop.f32.mrf.mxu1  ;;  %v3880_v12 = vrot.slane %v3879_v50, 4  ;;  %v3892_v16 = vshll.u32 %v10978_v43, 16  ;;  %8200 = vmatmul.mubr.bf16.gmra.mxu0 %v10987_v0  ;;  %v3888_v33 = vrot.slane %v3886_v31, 4  ;;  %v3916_v8 = vshll.u32 %v10984_v39, 16 }
 0x247   : > { %v2696_v60 = vmul.f32 %v10775_v42, %v2657_v41  ;;  %v2655_v5 = vmul.f32 %v10758_v38, %v2618_v51  ;;  %v2621_v2 = vsub.f32 %v2570_v48, %v10740_v1  ;;  %v2562_v7 = vadd.f32 %v10724_v25, %v2561_v55  ;;  %8203 = vmatprep.mubr.bf16.mxu0 %v10975_v45 }
 0x248   : > { %v3884_v23 = vrot.slane %v3882_v47, 5  ;;  %v3894_v53 = vrot.slane %v3892_v16, 5  ;;  %v3904_v55 = vrot.slane %v3903_v59, 4  ;;  %v3908_v47 = vrot.slane %v3906_v27, 5 }
 0x249   : > { %v2735_v50 = vadd.f32 %v10792_v14, %v2696_v60  ;;  %v2694_v37 = vmul.f32 %v10775_v42, %v2655_v5  ;;  %v2658_v58 = vmul.f32 %v10758_v38, %v2621_v2  ;;  %v2619_v41 = vsub.f32 %v2562_v7, %v10740_v1 }
 0x24a   : > { %v3885_v51 = vsel %vm8919_vm13, %v3880_v12, %v3884_v23  ;;  %v3889_v48 = vor.u32 %v3888_v33, %v3884_v23  ;;  %v3913_v18 = vor.u32 %v3912_v32, %v3908_v47  ;;  %v3918_v2 = vrot.slane %v3916_v8, 5 }
 0x24b   : > { %v2767_v31 = vmax.f32 %v2735_v50, 0.0  ;;  %v2733_v16 = vadd.f32 %v10792_v14, %v2694_v37  ;;  %v2697_v9 = vmul.f32 %v10775_v42, %v2658_v58  ;;  %v2656_v60 = vmul.f32 %v10758_v38, %v2619_v41 }
 0x24c   : > { %v3890_v5 = vrot.slane %v3889_v48, 4  ;;  %v4665_v62 = vrot.slane %v3444_v40, 5  ;;  %v3914_v27 = vrot.slane %v3913_v18, 4  ;;  %v3909_v40 = vsel %vm8919_vm13, %v3904_v55, %v3908_v47 }
 0x24d   : > { %v7692_v7 = vpack.c.bf16 %v2767_v31, %v2767_v31  ;;  %v2765_v19 = vmax.f32 %v2733_v16, 0.0  ;;  %v2736_v45 = vadd.f32 %v10792_v14, %v2697_v9  ;;  %v2695_v12 = vmul.f32 %v10775_v42, %v2656_v60 }
 0x24e   : > { %v3895_v59 = vsel %vm8919_vm13, %v3890_v5, %v3894_v53  ;;  %v4666_v37 = vsel %vm8878_vm9, %v7507_v63, %v4665_v62  ;;  %v4667_v58 = vrot.slane %v4665_v62, 4  ;;  %v3919_v9 = vsel %vm8919_vm13, %v3914_v27, %v3918_v2  ;;  %v3389_v62 = vld [vmem:[#allocation3 + $0xa8] sm:$0xf] }
 0x24f   : > { %v3198_v23 = vshrl.u32 %v7692_v7, 16  ;;  %v7690_v33 = vpack.c.bf16 %v2765_v19, %v2765_v19  ;;  %v2768_v50 = vmax.f32 %v2736_v45, 0.0  ;;  %v2734_v32 = vadd.f32 %v10792_v14, %v2695_v12 }
 0x250   : > { %v11015_v8 = vcombine.low %v3885_v51, %v3895_v59  ;;  %v4668_v53 = vrot.slane %v10978_v43, 5  ;;  %v3201_v41 = vshll.u32 %v7692_v7, 16  ;;  %v11021_v19 = vcombine.low %v3909_v40, %v3919_v9  ;;  %v3382_v43 = vld [vmem:[#allocation3 + $0x9c] sm:$0xf] }
 0x251   : > { %v3200_v18 = vrot.slane %v3198_v23, 7  ;;  %v3181_v48 = vshrl.u32 %v7690_v33, 16  ;;  %v7693_v63 = vpack.c.bf16 %v2768_v50, %v2768_v50  ;;  %v2766_v31 = vmax.f32 %v2734_v32, 0.0  ;;  %v3393_v23 = vld [vmem:[#allocation3 + $0xb0] sm:$0x1] }
 0x252   : > { %12232 = vst [vmem:[#allocation19_spill] sm:$0xff] %v11015_v8  ;;  %8152 = vmatmul.mubr.bf16.gmra.mxu1 %v11015_v8  ;;  %12233 = vst [vmem:[#allocation20_spill] sm:$0xff] %v11021_v19  ;;  %v4669_v45 = vsel %vm8878_vm9, %v4667_v58, %v4668_v53  ;;  %v4672_v51 = vrot.slane %v10967_v20, 5  ;;  %v3184_v16 = vshll.u32 %v7690_v33, 16  ;;  %v12235_v7 = vrot.slane %v10958_v3, 9 }
 0x253   : > { %v3203_v55 = vor.u32 %v3201_v41, %v3200_v18  ;;  %v3183_v47 = vrot.slane %v3181_v48, 7  ;;  %v3206_v60 = vshrl.u32 %v7693_v63, 16  ;;  %v7691_v5 = vpack.c.bf16 %v2766_v31, %v2766_v31  ;;  %8155 = vmatprep.mubr.bf16.mxu1 %v11021_v19  ;;  %v3386_v31 = vld [vmem:[#allocation3 + $0xa4] sm:$0x1] }
 0x254   : > { %v11027_v2 = vcombine.low %v4666_v37, %v4669_v45  ;;  %v4673_v12 = vsel %vm8878_vm9, %v12235_v7, %v4672_v51  ;;  %v3209_v58 = vshll.u32 %v7693_v63, 16  ;;  %v4674_v50 = vrot.slane %v4672_v51, 4 }
 0x255   : > { %v3390_v59 = vsel %vm10331_vm5, %v3203_v55, %v3389_v62  ;;  %v3186_v27 = vor.u32 %v3184_v16, %v3183_v47  ;;  %v3208_v20 = vrot.slane %v3206_v60, 7  ;;  %v3189_v33 = vshrl.u32 %v7691_v5, 16 }
 0x256   : > { %12234 = vst [vmem:[#allocation21_spill] sm:$0xff] %v11027_v2  ;;  %3391 = vst [vmem:[#allocation3 + $0xa8] sm:$0xf] %v3390_v59  ;;  %v4675_v40 = vrot.slane %v10984_v39, 5  ;;  %v3204_v32 = vrot.slane %v3200_v18, 4  ;;  %v3192_v41 = vshll.u32 %v7691_v5, 16 }
 0x257   : > { %v3383_v37 = vsel %vm10331_vm5, %v3186_v27, %v3382_v43  ;;  %v3211_v3 = vor.u32 %v3209_v58, %v3208_v20  ;;  %v3213_v9 = vrot.slane %v3208_v20, 4  ;;  %v3191_v53 = vrot.slane %v3189_v33, 7 }
 0x258   : > { %3384 = vst [vmem:[#allocation3 + $0x9c] sm:$0xf] %v3383_v37  ;;  %v4676_v48 = vsel %vm8878_vm9, %v4674_v50, %v4675_v40  ;;  %v3187_v18 = vrot.slane %v3183_v47, 4 }
 0x259   : > { %v3212_v63 = vsel %vm8926_vm14, %v3204_v32, %v3211_v3  ;;  %v3394_v62 = vsel %vm10017_vm15, %v3213_v9, %v3393_v23  ;;  %v11044_v39 = vcombine.low %v4673_v12, %v4676_v48  ;;  %v3194_v45 = vor.u32 %v3192_v41, %v3191_v53 }
 0x25a   : > { %3392 = vst [vmem:[#allocation3 + $0xac] sm:$0xf] %v3212_v63  ;;  %3395 = vst [vmem:[#allocation3 + $0xb0] sm:$0x1] %v3394_v62  ;;  %v3196_v51 = vrot.slane %v3191_v53, 4 }
 0x25b   : > { %12236 = vst [vmem:[#allocation22_spill] sm:$0xff] %v11044_v39  ;;  %v3195_v55 = vsel %vm8926_vm14, %v3187_v18, %v3194_v45 }
 0x25c   : > { %v3387_v16 = vsel %vm10017_vm15, %v3196_v51, %v3386_v31  ;;  %3385 = vst [vmem:[#allocation3 + $0xa0] sm:$0xf] %v3195_v55 }
 0x25d   : > { %3388 = vst [vmem:[#allocation3 + $0xa4] sm:$0x1] %v3387_v16  ;;  %v8113_v60 = vpop.f32.mrf.mxu1  ;;  %v11050_v43 = vld [vmem:[#allocation3 + $0xa8] sm:$0xf] }
 0x25e   : > { %v2583_v5 = vadd.f32 %v10724_v25, %v8113_v60  ;;  %v3945_v7 = vshrl.u32 %v11050_v43, 16  ;;  %v3948_v47 = vshll.u32 %v11050_v43, 16 }
 0x25f   : > { %v2574_v12 = vpop.f32.mrf.mxu1  ;;  %v11055_v59 = vld [vmem:[#allocation3 + $0x9c] sm:$0xf] }
 0x260   : > { %v2624_v27 = vsub.f32 %v2583_v5, %v10740_v1  ;;  %v2575_v20 = vadd.f32 %v10724_v25, %v2574_v12  ;;  %v3921_v58 = vshrl.u32 %v11055_v59, 16  ;;  %v3924_v23 = vshll.u32 %v11055_v59, 16 }
 0x261   : > { %v8114_v33 = vpop.f32.mrf.mxu1  ;;  %v11061_v50 = vld [vmem:[#allocation3 + $0xac] sm:$0xf]  ;;  %v3947_v40 = vrot.slane %v3945_v7, 4  ;;  %v3950_v32 = vrot.slane %v3948_v47, 5 }
 0x262   : > { %v2661_v37 = vmul.f32 %v10758_v38, %v2624_v27  ;;  %v2622_v3 = vsub.f32 %v2575_v20, %v10740_v1  ;;  %v2586_v9 = vadd.f32 %v10724_v25, %v8114_v33  ;;  %v3958_v53 = vshrl.u32 %v11061_v50, 16 }
 0x263   : > { %v2577_v41 = vpop.f32.mrf.mxu1  ;;  %v11069_v48 = vcombine.low %v11050_v43, %v11061_v50  ;;  %v3923_v63 = vrot.slane %v3921_v58, 4  ;;  %v3926_v62 = vrot.slane %v3924_v23, 5  ;;  %v3951_v31 = vor.u32 %v3950_v32, %v3947_v40  ;;  %v11075_v16 = vld [vmem:[#allocation3 + $0xa0] sm:$0xf] }
 0x264   : > { %v2700_v18 = vmul.f32 %v10775_v42, %v2661_v37  ;;  %v2659_v45 = vmul.f32 %v10758_v38, %v2622_v3  ;;  %v2625_v51 = vsub.f32 %v2586_v9, %v10740_v1  ;;  %v2578_v55 = vadd.f32 %v10724_v25, %v2577_v41  ;;  %v11077_v60 = vld [vmem:[#allocation3 + $0xa4] sm:$0x1] }
 0x265   : > { %v3934_v5 = vshrl.u32 %v11075_v16, 16  ;;  %v11082_v7 = vcombine.low %v11055_v59, %v11075_v16  ;;  %v3927_v47 = vor.u32 %v3926_v62, %v3923_v63  ;;  %v3930_v12 = vshll.u32 %v11075_v16, 16  ;;  %v11095_v63 = vld [vmem:[#allocation3 + $0xb0] sm:$0x1] }
 0x266   : > { %v2739_v27 = vadd.f32 %v10792_v14, %v2700_v18  ;;  %v2698_v20 = vmul.f32 %v10775_v42, %v2659_v45  ;;  %v2662_v58 = vmul.f32 %v10758_v38, %v2625_v51  ;;  %v2623_v25 = vsub.f32 %v2578_v55, %v10740_v1 }
 0x267   : > { %8204 = vmatmul.mubr.bf16.gmra.mxu0 %v11082_v7  ;;  %v3928_v23 = vrot.slane %v3927_v47, 4  ;;  %v3932_v33 = vrot.slane %v3930_v12, 5  ;;  %v3936_v40 = vrot.slane %v3934_v5, 4  ;;  %v3940_v32 = vshll.u32 %v11077_v60, 16 }
 0x268   : > { %v2771_v37 = vmax.f32 %v2739_v27, 0.0  ;;  %v2737_v3 = vadd.f32 %v10792_v14, %v2698_v20  ;;  %v2701_v9 = vmul.f32 %v10775_v42, %v2662_v58  ;;  %v2660_v41 = vmul.f32 %v10758_v38, %v2623_v25  ;;  %8207 = vmatprep.mubr.bf16.mxu0 %v11069_v48 }
 0x269   : > { %v3933_v1 = vsel %vm8919_vm13, %v3928_v23, %v3932_v33  ;;  %v3937_v62 = vor.u32 %v3936_v40, %v3932_v33  ;;  %v3942_v18 = vrot.slane %v3940_v32, 5  ;;  %v3954_v38 = vshll.u32 %v11061_v50, 16 }
 0x26a   : > { %v7696_v51 = vpack.c.bf16 %v2771_v37, %v2771_v37  ;;  %v2769_v55 = vmax.f32 %v2737_v3, 0.0  ;;  %v2740_v5 = vadd.f32 %v10792_v14, %v2701_v9  ;;  %v2699_v47 = vmul.f32 %v10775_v42, %v2660_v41 }
 0x26b   : > { %v3938_v12 = vrot.slane %v3937_v62, 4  ;;  %v3960_v27 = vrot.slane %v3958_v53, 4  ;;  %v3964_v20 = vshll.u32 %v11095_v63, 16  ;;  %v3952_v23 = vrot.slane %v3951_v31, 4  ;;  %v3403_v62 = vld [vmem:[#allocation3 + $0xc0] sm:$0xf] }
 0x26c   : > { %v3232_v58 = vshrl.u32 %v7696_v51, 16  ;;  %v7694_v25 = vpack.c.bf16 %v2769_v55, %v2769_v55  ;;  %v2772_v19 = vmax.f32 %v2740_v5, 0.0  ;;  %v3235_v33 = vshll.u32 %v7696_v51, 16  ;;  %v8181_v51 = vpop.f32.mrf.mxu0 }
 0x26d   : > { %v2738_v40 = vadd.f32 %v10792_v14, %v2699_v47  ;;  %v3943_v32 = vsel %vm8919_vm13, %v3938_v12, %v3942_v18  ;;  %v3956_v37 = vrot.slane %v3954_v38, 5  ;;  %v3966_v41 = vrot.slane %v3964_v20, 5  ;;  %v3396_v18 = vld [vmem:[#allocation3 + $0xb4] sm:$0xf] }
 0x26e   : > { %v3234_v3 = vrot.slane %v3232_v58, 7  ;;  %v3215_v9 = vshrl.u32 %v7694_v25, 16  ;;  %v7697_v42 = vpack.c.bf16 %v2772_v19, %v2772_v19  ;;  %v3218_v45 = vshll.u32 %v7694_v25, 16  ;;  %v3407_v25 = vld [vmem:[#allocation3 + $0xc8] sm:$0x1] }
 0x26f   : > { %v2770_v53 = vmax.f32 %v2738_v40, 0.0  ;;  %v11107_v8 = vcombine.low %v3933_v1, %v3943_v32  ;;  %v3961_v39 = vor.u32 %v3960_v27, %v3956_v37  ;;  %v3957_v14 = vsel %vm8919_vm13, %v3952_v23, %v3956_v37 }
 0x270   : > { %v3237_v55 = vor.u32 %v3235_v33, %v3234_v3  ;;  %v3217_v5 = vrot.slane %v3215_v9, 7  ;;  %v3240_v31 = vshrl.u32 %v7697_v42, 16  ;;  %v3238_v47 = vrot.slane %v3234_v3, 4  ;;  %v4443_v9 = vpop.f32.mrf.mxu0 }
 0x271   : > { %v3243_v12 = vshll.u32 %v7697_v42, 16  ;;  %v7695_v38 = vpack.c.bf16 %v2770_v53, %v2770_v53  ;;  %8156 = vmatmul.mubr.bf16.gmra.mxu1 %v11107_v8  ;;  %v3962_v19 = vrot.slane %v3961_v39, 4  ;;  %v7509_v27 = vrot.slane %v11055_v59, 9 }
 0x272   : > { %v3404_v20 = vsel %vm10331_vm5, %v3237_v55, %v3403_v62  ;;  %v3220_v1 = vor.u32 %v3218_v45, %v3217_v5  ;;  %v3242_v58 = vrot.slane %v3240_v31, 7  ;;  %v4679_v32 = vrot.slane %v11075_v16, 5 }
 0x273   : > { %3405 = vst [vmem:[#allocation3 + $0xc0] sm:$0xf] %v3404_v20  ;;  %v3223_v33 = vshrl.u32 %v7695_v38, 16  ;;  %v3226_v40 = vshll.u32 %v7695_v38, 16  ;;  %v3967_v23 = vsel %vm8919_vm13, %v3962_v19, %v3966_v41  ;;  %v3400_v41 = vld [vmem:[#allocation3 + $0xbc] sm:$0x1]  ;;  %v8182_v20 = vpop.f32.mrf.mxu0 }
 0x274   : > { %v3397_v37 = vsel %vm10331_vm5, %v3220_v1, %v3396_v18  ;;  %v3245_v39 = vor.u32 %v3243_v12, %v3242_v58  ;;  %v3247_v3 = vrot.slane %v3242_v58, 4  ;;  %v11120_v42 = vcombine.low %v3957_v14, %v3967_v23  ;;  %v8133_v45 = vpop.f32.mrf.mxu1 }
 0x275   : > { %3398 = vst [vmem:[#allocation3 + $0xb4] sm:$0xf] %v3397_v37  ;;  %v3225_v59 = vrot.slane %v3223_v33, 7  ;;  %v11122_v62 = vadd.f32 %v8181_v51, %v8133_v45  ;;  %v4680_v53 = vsel %vm8878_vm9, %v7509_v27, %v4679_v32  ;;  %v4681_v55 = vrot.slane %v4679_v32, 4 }
 0x276   : > { %v3246_v16 = vsel %vm8926_vm14, %v3238_v47, %v3245_v39  ;;  %v3408_v22 = vsel %vm10017_vm15, %v3247_v3, %v3407_v25  ;;  %8159 = vmatprep.mubr.bf16.mxu1 %v11120_v42  ;;  %v4138_v31 = vpop.f32.mrf.mxu1  ;;  %v4682_v14 = vrot.slane %v11077_v60, 5  ;;  %v4686_v18 = vrot.slane %v11061_v50, 5 }
 0x277   : > { %v3221_v51 = vrot.slane %v3217_v5, 4  ;;  %3406 = vst [vmem:[#allocation3 + $0xc4] sm:$0xf] %v3246_v16  ;;  %3409 = vst [vmem:[#allocation3 + $0xc8] sm:$0x1] %v3408_v22  ;;  %v3228_v12 = vor.u32 %v3226_v40, %v3225_v59  ;;  %v3230_v38 = vrot.slane %v3225_v59, 4  ;;  %v11133_v19 = vadd.f32 %v4443_v9, %v4138_v31 }
 0x278   : > { %v8134_v47 = vpop.f32.mrf.mxu1  ;;  %v4683_v1 = vsel %vm8878_vm9, %v4681_v55, %v4682_v14  ;;  %v12237_v58 = vrot.slane %v11050_v43, 9  ;;  %v4688_v60 = vrot.slane %v4686_v18, 4  ;;  %v4689_v50 = vrot.slane %v11095_v63, 5 }
 0x279   : > { %v3229_v5 = vsel %vm8926_vm14, %v3221_v51, %v3228_v12  ;;  %v3401_v25 = vsel %vm10017_vm15, %v3230_v38, %v3400_v41  ;;  %v11146_v33 = vadd.f32 %v8182_v20, %v8134_v47  ;;  %v11148_v40 = vcombine.low %v4680_v53, %v4683_v1  ;;  %v8723_v41 = vld [vmem:[#allocation3] sm:$0xf]  ;;  %v8724_v38 = vld [vmem:[#allocation3 + $0x8] sm:$0x1]  ;;  %vm12267_vm14 = vmmov %vm12260_vm4 }
 0x27a   : > { %v4687_v27 = vsel %vm8878_vm9, %v12237_v58, %v4686_v18  ;;  %3399 = vst [vmem:[#allocation3 + $0xb8] sm:$0xf] %v3229_v5  ;;  %3402 = vst [vmem:[#allocation3 + $0xbc] sm:$0x1] %v3401_v25  ;;  %v11150_v23 = vld [vmem:[#allocation3 + $0xc0] sm:$0xf]  ;;  %v4690_v43 = vsel %vm8878_vm9, %v4688_v60, %v4689_v50 }
 0x27b   : > { %12238 = vst [vmem:[#allocation23_spill] sm:$0xff] %v11148_v40  ;;  %v5251_v32 = vshrl.u32 %v11150_v23, 16  ;;  %v5254_v63 = vshll.u32 %v11150_v23, 16  ;;  %v11156_v56 = vcombine.low %v4687_v27, %v4690_v43  ;;  %v4588_v39 = vrot.slane %v8722_v57, 5 }
 0x27c   : > { %v3455_v37 = vld [vmem:[#allocation3 + $0xb4] sm:$0xf]  ;;  %v7496_v31 = vrot.slane %v8723_v41, 9  ;;  %v4591_v20 = vrot.slane %v8724_v38, 5 }
 0x27d   : > { %v3969_v3 = vshrl.u32 %v3455_v37, 16  ;;  %v3972_v9 = vshll.u32 %v3455_v37, 16  ;;  %v5253_v45 = vrot.slane %v5251_v32, 4  ;;  %v5256_v53 = vrot.slane %v5254_v63, 5 }
 0x27e   : > { %v11158_v59 = vld [vmem:[#allocation3 + $0xc4] sm:$0xf]  ;;  %v4590_v14 = vrot.slane %v4588_v39, 4  ;;  %v11161_v18 = vld [vmem:[#allocation3 + $0xc8] sm:$0x1]  ;;  %v7511_v5 = vrot.slane %v3455_v37, 9 }
 0x27f   : > { %v3971_v55 = vrot.slane %v3969_v3, 4  ;;  %v3974_v16 = vrot.slane %v3972_v9, 5  ;;  %v5264_v22 = vshrl.u32 %v11158_v59, 16  ;;  %v5257_v47 = vor.u32 %v5256_v53, %v5253_v45 }
 0x280   : > { %v5260_v1 = vshll.u32 %v11158_v59, 16  ;;  %v5270_v32 = vshll.u32 %v11161_v18, 16 }
 0x281   : > { %v3456_v51 = vld [vmem:[#allocation3 + $0xb8] sm:$0xf]  ;;  %v3457_v12 = vld [vmem:[#allocation3 + $0xbc] sm:$0x1]  ;;  %v3975_v60 = vor.u32 %v3974_v16, %v3971_v55  ;;  %v5266_v43 = vrot.slane %v5264_v22, 4  ;;  %v5258_v41 = vrot.slane %v5257_v47, 4  ;;  %v4589_v22 = vsel %vm8878_vm9, %v7496_v31, %v4588_v39 }
 0x282   : > { %v3982_v58 = vshrl.u32 %v3456_v51, 16  ;;  %v11164_v27 = vcombine.low %v3455_v37, %v3456_v51  ;;  %v3978_v50 = vshll.u32 %v3456_v51, 16  ;;  %v4693_v25 = vrot.slane %v3456_v51, 5 }
 0x283   : > { %v3988_v3 = vshll.u32 %v3457_v12, 16  ;;  %v4696_v9 = vrot.slane %v3457_v12, 5  ;;  %v5262_v55 = vrot.slane %v5260_v1, 5  ;;  %v3976_v16 = vrot.slane %v3975_v60, 4 }
 0x284   : > { %8208 = vmatmul.mubr.bf16.gmra.mxu0 %v11164_v27  ;;  %v3980_v63 = vrot.slane %v3978_v50, 5  ;;  %v3984_v57 = vrot.slane %v3982_v58, 4  ;;  %v4694_v45 = vsel %vm8878_vm9, %v7511_v5, %v4693_v25  ;;  %v4695_v53 = vrot.slane %v4693_v25, 4 }
 0x285   : > { %8275 = vmatprep.mubr.bf16.mxu0 %v10397_v44  ;;  %v4592_v51 = vsel %vm8878_vm9, %v4590_v14, %v4591_v20  ;;  %v5263_v44 = vsel %vm8919_vm13, %v5258_v41, %v5262_v55  ;;  %v5267_v12 = vor.u32 %v5266_v43, %v5262_v55  ;;  %v3990_v50 = vrot.slane %v3988_v3, 5  ;;  %v8677_v20 = vld [vmem:[%s12155_s6 + $0x170] sm:$0xff]   ;;  %v11192_v43 = vpop.f32.mrf.mxu0  ;;  %v11203_v3 = vpop.f32.mrf.mxu1 }
 0x286   : > { %v3985_v37 = vor.u32 %v3984_v57, %v3980_v63  ;;  %v4697_v38 = vsel %vm8878_vm9, %v4695_v53, %v4696_v9  ;;  %v5272_v1 = vrot.slane %v5270_v32, 5  ;;  %v3981_v60 = vsel %vm8919_vm13, %v3976_v16, %v3980_v63  ;;  %v8679_v57 = vld [vmem:[%s12155_s6 + $0x168] sm:$0xff]   ;;  %v8678_v41 = vld [vmem:[%s12155_s6 + $0x130] sm:$0xff]  }
 0x287   : > { %v11179_v5 = vcombine.low %v4694_v45, %v4697_v38  ;;  %v5268_v47 = vrot.slane %v5267_v12, 4  ;;  %v7512_v31 = vcombine.low %v4589_v22, %v4592_v51  ;;  %v8680_v38 = vld [vmem:[%s12155_s6 + $0x128] sm:$0xff]   ;;  %v8685_v12 = vld [vmem:[%s12155_s6 + $0x150] sm:$0xff]  }
 0x288   : > { %v3986_v58 = vrot.slane %v3985_v37, 4  ;;  %v8185_v63 = vpop.f32.mrf.mxu0 }
 0x289   : > { %v5273_v25 = vsel %vm8919_vm13, %v5268_v47, %v5272_v1  ;;  %v8686_v47 = vld [vmem:[%s12155_s6 + $0x110] sm:$0xff]   ;;  %v8690_v1 = vld [vmem:[%s12155_s6 + $0x140] sm:$0xff]  }
 0x28a   : > { %v3991_v39 = vsel %vm8919_vm13, %v3986_v58, %v3990_v50  ;;  %v11195_v32 = vcombine.low %v5263_v44, %v5273_v25  ;;  %v4459_v9 = vpop.f32.mrf.mxu0  ;;  %v8683_v44 = vld [vmem:[%s12155_s6 + $0x158] sm:$0xff]   ;;  %v8687_v50 = vld [vmem:[%s12155_s6 + $0x148] sm:$0xff]  }
 0x28b   : > { %v11185_v14 = vcombine.low %v3981_v60, %v3991_v39  ;;  %v8684_v58 = vld [vmem:[%s12155_s6 + $0x118] sm:$0xff]   ;;  %v8689_v60 = vld [vmem:[%s12155_s6 + $0x108] sm:$0xff]  }
 0x28c   : > { %8276 = vmatmul.mubr.bf16.vlgmr.msra.gmra.mxu0 %v10383_v35  ;;  %v8186_v37 = vpop.f32.mrf.mxu0  ;;  %v8692_v39 = vld [vmem:[%s12155_s6 + $0x1f8] sm:$0xff]  }
 0x28d   : > { %8160 = vmatmul.mubr.bf16.gmra.mxu1 %v11185_v14  ;;  %8279 = vmatprep.mubr.bf16.mxu0 %v10501_v36 }
 0x28e   : > { %8356 = vmatpush3.bf16.msra.mxu0 %v10833_v34  ;;  %8227 = vmatprep.mubr.bf16.mxu1 %v7512_v31  ;;  %v8681_v34 = vld [vmem:[%s12155_s6 + $0x160] sm:$0xff]  }
 0x28f   : > { %8357 = vmatprep.subr.bf16.mxu0 %v8677_v20  ;;  %v8691_v31 = vld [vmem:[%s12155_s6 + $0x100] sm:$0xff]  }
 0x292   : > { %v8137_v45 = vpop.f32.mrf.mxu1  ;;  %8358 = vmatpush3.bf16.msra.mxu0 %v8677_v20  ;;  %v11263_v20 = vpop.f32.mrf.mxu0 }
 0x293   : > { %v11205_v53 = vadd.f32 %v8185_v63, %v8137_v45  ;;  %8359 = vmatprep.subr.bf16.mxu0 %v8679_v57  ;;  %v8693_v63 = vld [vmem:[%s12155_s6 + $0x1b8] sm:$0xff]  }
 0x294   : > { %v4154_v55 = vpop.f32.mrf.mxu1  ;;  %8280 = vmatmul.mubr.bf16.gmra.mxu0 %v10486_v26 }
 0x295   : > { %v11214_v16 = vadd.f32 %v4459_v9, %v4154_v55  ;;  %8228 = vmatmul.mubr.bf16.vlgmr.msra.gmra.mxu1 %v10459_v29  ;;  %8283 = vmatprep.mubr.bf16.mxu0 %v10617_v10 }
 0x296   : > { %v8138_v22 = vpop.f32.mrf.mxu1  ;;  %8308 = vmatpush3.bf16.msra.mxu1 %v10850_v15  ;;  %8231 = vmatprep.mubr.bf16.mxu1 %v10472_v54  ;;  %v8682_v15 = vld [vmem:[%s12155_s6 + $0x120] sm:$0xff]  }
 0x297   : > { %v11220_v51 = vadd.f32 %v8186_v37, %v8138_v22  ;;  %8309 = vmatprep.subr.bf16.mxu1 %v8678_v41  ;;  %8360 = vmatpush3.bf16.msra.mxu0 %v8679_v57  ;;  %v12243_v22 = vld [vmem:[#allocation16_spill] sm:$0xff] }
 0x298   : > { %8361 = vmatprep.subr.bf16.mxu0 %v8681_v34  ;;  %v11272_v57 = vpop.f32.mrf.mxu1 }
 0x299   : > { %12239 = vst [vmem:[#allocation24_spill] sm:$0xff] %v11220_v51  ;;  %v12265_v51 = vld [vmem:[#allocation19_spill] sm:$0xff] }
 0x29a   : > { %8310 = vmatpush3.bf16.msra.mxu1 %v8678_v41 }
 0x29b   : > { %8311 = vmatprep.subr.bf16.mxu1 %v8680_v38  ;;  %8362 = vmatpush3.bf16.msra.mxu0 %v8681_v34  ;;  %v12241_v34 = vld [vmem:[#allocation18_spill] sm:$0xff] }
 0x29c   : > { %8284 = vmatmul.mubr.bf16.gmra.mxu0 %v10602_v52  ;;  %8363 = vmatprep.subr.bf16.mxu0 %v8683_v44 }
 0x29d   : > { %8232 = vmatmul.mubr.bf16.gmra.mxu1 %v10549_v24  ;;  %8287 = vmatprep.mubr.bf16.mxu0 %v10768_v6 }
 0x29e   : > { %8235 = vmatprep.mubr.bf16.mxu1 %v10568_v11  ;;  %8312 = vmatpush3.bf16.msra.mxu1 %v8680_v38 }
 0x29f   : > { %8313 = vmatprep.subr.bf16.mxu1 %v8682_v15  ;;  %8364 = vmatpush3.bf16.msra.mxu0 %v8683_v44 }
 0x2a0   : > { %8365 = vmatprep.subr.bf16.mxu0 %v8685_v12 }
 0x2a2   : > { %8314 = vmatpush3.bf16.msra.mxu1 %v8682_v15  ;;  %v12244_v15 = vld [vmem:[#allocation17_spill] sm:$0xff] }
 0x2a3   : > { %8315 = vmatprep.subr.bf16.mxu1 %v8684_v58  ;;  %8366 = vmatpush3.bf16.msra.mxu0 %v8685_v12 }
 0x2a4   : > { %8288 = vmatmul.mubr.bf16.gmra.mxu0 %v10746_v4  ;;  %8367 = vmatprep.subr.bf16.mxu0 %v8687_v50 }
 0x2a5   : > { %8236 = vmatmul.mubr.bf16.gmra.mxu1 %v10671_v46  ;;  %8291 = vmatprep.mubr.bf16.mxu0 %v10895_v17 }
 0x2a6   : > { %8239 = vmatprep.mubr.bf16.mxu1 %v10703_v61  ;;  %8316 = vmatpush3.bf16.msra.mxu1 %v8684_v58  ;;  %v12246_v58 = vld [vmem:[#allocation22_spill] sm:$0xff] }
 0x2a7   : > { %8317 = vmatprep.subr.bf16.mxu1 %v8686_v47  ;;  %8368 = vmatpush3.bf16.msra.mxu0 %v8687_v50  ;;  %v11290_v50 = vcombine.low %v11150_v23, %v11158_v59 }
 0x2a8   : > { %8369 = vmatprep.subr.bf16.mxu0 %v8690_v1  ;;  %v8189_v25 = vpop.f32.mrf.mxu0 }
 0x2aa   : > { %8318 = vmatpush3.bf16.msra.mxu1 %v8686_v47  ;;  %v4475_v9 = vpop.f32.mrf.mxu0  ;;  %v8694_v47 = vld [vmem:[%s12155_s6 + $0x1f0] sm:$0xff]  }
 0x2ab   : > { %8319 = vmatprep.subr.bf16.mxu1 %v8689_v60  ;;  %8370 = vmatpush3.bf16.msra.mxu0 %v8690_v1 }
 0x2ac   : > { %8292 = vmatmul.mubr.bf16.gmra.mxu0 %v10883_v21  ;;  %8451 = vmatprep.subr.bf16.mxu0 %v8692_v39  ;;  %v8190_v38 = vpop.f32.mrf.mxu0 }
 0x2ad   : > { %8240 = vmatmul.mubr.bf16.gmra.mxu1 %v10836_v28  ;;  %8295 = vmatprep.mubr.bf16.mxu0 %v10987_v0 }
 0x2ae   : > { %8243 = vmatprep.mubr.bf16.mxu1 %v10860_v30  ;;  %8320 = vmatpush3.bf16.msra.mxu1 %v8689_v60  ;;  %v11299_v1 = vpop.f32.mrf.mxu0 }
 0x2af   : > { %8321 = vmatprep.subr.bf16.mxu1 %v8691_v31  ;;  %12247 = vst [vmem:[#allocation22_spill] sm:$0xff] %v11299_v1  ;;  %v8697_v1 = vld [vmem:[%s12155_s6 + $0x1a8] sm:$0xff]  }
 0x2b2   : > { %v8141_v45 = vpop.f32.mrf.mxu1  ;;  %8322 = vmatpush3.bf16.msra.mxu1 %v8691_v31  ;;  %v12248_v31 = vld [vmem:[#allocation4_spill] sm:$0xff] }
 0x2b3   : > { %v11274_v41 = vadd.f32 %v8189_v25, %v8141_v45  ;;  %8403 = vmatprep.subr.bf16.mxu1 %v8693_v63 }
 0x2b4   : > { %v4170_v55 = vpop.f32.mrf.mxu1  ;;  %8296 = vmatmul.mubr.bf16.gmra.mxu0 %v12241_v34 }
 0x2b5   : > { %12240 = vst [vmem:[#allocation25_spill] sm:$0xff] %v11274_v41  ;;  %v11277_v37 = vadd.f32 %v4475_v9, %v4170_v55  ;;  %8244 = vmatmul.mubr.bf16.gmra.mxu1 %v12243_v22  ;;  %8299 = vmatprep.mubr.bf16.mxu0 %v11082_v7  ;;  %v12264_v41 = vld [vmem:[#allocation15_spill] sm:$0xff] }
 0x2b6   : > { %v8142_v44 = vpop.f32.mrf.mxu1  ;;  %8247 = vmatprep.mubr.bf16.mxu1 %v12244_v15 }
 0x2b7   : > { %12242 = vst [vmem:[#allocation18_spill] sm:$0xff] %v11277_v37  ;;  %v11282_v12 = vadd.f32 %v8190_v38, %v8142_v44  ;;  %v8695_v38 = vld [vmem:[%s12155_s6 + $0x1b0] sm:$0xff]  }
 0x2b8   : > { %v11308_v25 = vpop.f32.mrf.mxu1 }
 0x2b9   : > { %12245 = vst [vmem:[#allocation26_spill] sm:$0xff] %v11282_v12  ;;  %12249 = vst [vmem:[#allocation4_spill] sm:$0xff] %v11308_v25  ;;  %v12252_v12 = vld [vmem:[#allocation5_spill] sm:$0xff]  ;;  %v12262_v25 = vld [vmem:[#allocation14_spill] sm:$0xff] }
 0x2bc   : > { %8300 = vmatmul.mubr.bf16.gmra.mxu0 %v11069_v48 }
 0x2bd   : > { %8248 = vmatmul.mubr.bf16.gmra.mxu1 %v11027_v2  ;;  %8303 = vmatprep.mubr.bf16.mxu0 %v11164_v27 }
 0x2be   : > { %8251 = vmatprep.mubr.bf16.mxu1 %v12246_v58 }
 0x2c4   : > { %8304 = vmatmul.mubr.bf16.gmra.mxu0 %v11290_v50 }
 0x2c5   : > { %8252 = vmatmul.mubr.bf16.gmra.mxu1 %v11148_v40  ;;  %8371 = vmatprep.mubr.bf16.mxu0 %v10459_v29  ;;  %v8696_v29 = vld [vmem:[%s12155_s6 + $0x1e8] sm:$0xff]  }
 0x2c6   : > { %8255 = vmatprep.mubr.bf16.mxu1 %v11156_v56 }
 0x2c8   : > { %v8193_v60 = vpop.f32.mrf.mxu0 }
 0x2ca   : > { %v4491_v9 = vpop.f32.mrf.mxu0 }
 0x2cc   : > { %8372 = vmatmul.mubr.bf16.vlgmr.msra.gmra.mxu0 %v10472_v54 }
 0x2cd   : > { %8256 = vmatmul.mubr.bf16.gmra.mxu1 %v11179_v5  ;;  %8375 = vmatprep.mubr.bf16.mxu0 %v10549_v24 }
 0x2ce   : > { %8323 = vmatprep.mubr.bf16.mxu1 %v12248_v31  ;;  %8452 = vmatpush3.bf16.msra.mxu0 %v8692_v39  ;;  %v8698_v39 = vld [vmem:[%s12155_s6 + $0x1e0] sm:$0xff]  }
 0x2cf   : > { %8453 = vmatprep.subr.bf16.mxu0 %v8694_v47 }
 0x2d2   : > { %v8145_v45 = vpop.f32.mrf.mxu1  ;;  %8454 = vmatpush3.bf16.msra.mxu0 %v8694_v47  ;;  %v8194_v47 = vpop.f32.mrf.mxu0 }
 0x2d3   : > { %v11310_v55 = vadd.f32 %v8193_v60, %v8145_v45  ;;  %8455 = vmatprep.subr.bf16.mxu0 %v8696_v29  ;;  %v12253_v45 = vld [vmem:[#allocation6_spill] sm:$0xff] }
 0x2d4   : > { %v4186_v44 = vpop.f32.mrf.mxu1  ;;  %8376 = vmatmul.mubr.bf16.gmra.mxu0 %v10568_v11 }
 0x2d5   : > { %12250 = vst [vmem:[#allocation27_spill] sm:$0xff] %v11310_v55  ;;  %v11319_v31 = vadd.f32 %v4491_v9, %v4186_v44  ;;  %8324 = vmatmul.mubr.bf16.vlgmr.msra.gmra.mxu1 %v12252_v12  ;;  %8379 = vmatprep.mubr.bf16.mxu0 %v10671_v46  ;;  %v8700_v9 = vld [vmem:[%s12155_s6 + $0x1d8] sm:$0xff]   ;;  %v12255_v44 = vld [vmem:[#allocation7_spill] sm:$0xff] }
 0x2d6   : > { %v8146_v60 = vpop.f32.mrf.mxu1  ;;  %8404 = vmatpush3.bf16.msra.mxu1 %v8693_v63  ;;  %8327 = vmatprep.mubr.bf16.mxu1 %v12253_v45  ;;  %v8699_v63 = vld [vmem:[%s12155_s6 + $0x1a0] sm:$0xff]  }
 0x2d7   : > { %12251 = vst [vmem:[#allocation28_spill] sm:$0xff] %v11319_v31  ;;  %v11324_v55 = vadd.f32 %v8194_v47, %v8146_v60  ;;  %8405 = vmatprep.subr.bf16.mxu1 %v8695_v38  ;;  %8456 = vmatpush3.bf16.msra.mxu0 %v8696_v29  ;;  %v8702_v29 = vld [vmem:[%s12155_s6 + $0x1d0] sm:$0xff]   ;;  %v8707_v31 = vld [vmem:[%s12155_s6 + $0x180] sm:$0xff]  }
 0x2d8   : > { %8457 = vmatprep.subr.bf16.mxu0 %v8698_v39  ;;  %v12256_v47 = vld [vmem:[#allocation8_spill] sm:$0xff] }
 0x2d9   : > { %12254 = vst [vmem:[#allocation5_spill] sm:$0xff] %v11324_v55  ;;  %v8703_v60 = vld [vmem:[%s12155_s6 + $0x190] sm:$0xff]   ;;  %v12258_v55 = vld [vmem:[#allocation10_spill] sm:$0xff] }
 0x2da   : > { %8406 = vmatpush3.bf16.msra.mxu1 %v8695_v38  ;;  %v8701_v38 = vld [vmem:[%s12155_s6 + $0x198] sm:$0xff]  }
 0x2db   : > { %8407 = vmatprep.subr.bf16.mxu1 %v8697_v1  ;;  %8458 = vmatpush3.bf16.msra.mxu0 %v8698_v39  ;;  %v8704_v39 = vld [vmem:[%s12155_s6 + $0x1c8] sm:$0xff]  }
 0x2dc   : > { %8380 = vmatmul.mubr.bf16.gmra.mxu0 %v10703_v61  ;;  %8459 = vmatprep.subr.bf16.mxu0 %v8700_v9 }
 0x2dd   : > { %8328 = vmatmul.mubr.bf16.gmra.mxu1 %v12255_v44  ;;  %8383 = vmatprep.mubr.bf16.mxu0 %v10836_v28 }
 0x2de   : > { %8331 = vmatprep.mubr.bf16.mxu1 %v12256_v47  ;;  %8408 = vmatpush3.bf16.msra.mxu1 %v8697_v1  ;;  %v8706_v1 = vld [vmem:[%s12155_s6 + $0x1c0] sm:$0xff]  }
 0x2df   : > { %8409 = vmatprep.subr.bf16.mxu1 %v8699_v63  ;;  %8460 = vmatpush3.bf16.msra.mxu0 %v8700_v9  ;;  %v12257_v9 = vld [vmem:[#allocation9_spill] sm:$0xff] }
 0x2e0   : > { %8461 = vmatprep.subr.bf16.mxu0 %v8702_v29 }
 0x2e2   : > { %8410 = vmatpush3.bf16.msra.mxu1 %v8699_v63  ;;  %v8705_v63 = vld [vmem:[%s12155_s6 + $0x188] sm:$0xff]  }
 0x2e3   : > { %8411 = vmatprep.subr.bf16.mxu1 %v8701_v38  ;;  %8462 = vmatpush3.bf16.msra.mxu0 %v8702_v29  ;;  %v6612_v29 = vld [vmem:[%s12157_s8] sm:$0x3] }
 0x2e4   : > { %8384 = vmatmul.mubr.bf16.gmra.mxu0 %v10860_v30  ;;  %8463 = vmatprep.subr.bf16.mxu0 %v8704_v39 }
 0x2e5   : > { %8332 = vmatmul.mubr.bf16.gmra.mxu1 %v12257_v9  ;;  %8387 = vmatprep.mubr.bf16.mxu0 %v12243_v22  ;;  %v11367_v22 = vpop.f32.mrf.mxu0 }
 0x2e6   : > { %8335 = vmatprep.mubr.bf16.mxu1 %v12258_v55  ;;  %8412 = vmatpush3.bf16.msra.mxu1 %v8701_v38  ;;  %12259 = vst [vmem:[#allocation6_spill] sm:$0xff] %v11367_v22  ;;  %v12261_v38 = vld [vmem:[#allocation11_spill] sm:$0xff] }
 0x2e7   : > { %8413 = vmatprep.subr.bf16.mxu1 %v8703_v60  ;;  %8464 = vmatpush3.bf16.msra.mxu0 %v8704_v39  ;;  %v8197_v39 = vpop.f32.mrf.mxu0 }
 0x2e8   : > { %8465 = vmatprep.subr.bf16.mxu0 %v8706_v1 }
 0x2e9   : > { %v4507_v22 = vpop.f32.mrf.mxu0 }
 0x2ea   : > { %8414 = vmatpush3.bf16.msra.mxu1 %v8703_v60  ;;  %v8708_v60 = vld [vmem:[%s12155_s6 + $0x238] sm:$0xff]  }
 0x2eb   : > { %8415 = vmatprep.subr.bf16.mxu1 %v8705_v63  ;;  %8466 = vmatpush3.bf16.msra.mxu0 %v8706_v1  ;;  %v11377_v1 = vpop.f32.mrf.mxu1 }
 0x2ec   : > { %8388 = vmatmul.mubr.bf16.gmra.mxu0 %v12244_v15  ;;  %8589 = vmatprep.subr.msk.bf16.mxu0 %vm12260_vm4, %v6612_v29  ;;  %12263 = vst [vmem:[#allocation7_spill] sm:$0xff] %v11377_v1 }
 0x2ed   : > { %8336 = vmatmul.mubr.bf16.gmra.mxu1 %v12261_v38  ;;  %8391 = vmatprep.mubr.bf16.mxu0 %v11027_v2 }
 0x2ee   : > { %8339 = vmatprep.mubr.bf16.mxu1 %v12262_v25  ;;  %8416 = vmatpush3.bf16.msra.mxu1 %v8705_v63  ;;  %v8198_v63 = vpop.f32.mrf.mxu0 }
 0x2ef   : > { %8417 = vmatprep.subr.bf16.mxu1 %v8707_v31 }
 0x2f2   : > { %v8149_v37 = vpop.f32.mrf.mxu1  ;;  %8418 = vmatpush3.bf16.msra.mxu1 %v8707_v31  ;;  %v5522_v31 = vrot.slane %v11158_v59, 5 }
 0x2f3   : > { %v11379_v15 = vadd.f32 %v8197_v39, %v8149_v37  ;;  %8499 = vmatprep.subr.bf16.mxu1 %v8708_v60  ;;  %v12266_v39 = vld [vmem:[#allocation20_spill] sm:$0xff] }
 0x2f4   : > { %v4202_v30 = vpop.f32.mrf.mxu1  ;;  %8392 = vmatmul.mubr.bf16.gmra.mxu0 %v12246_v58  ;;  %v5524_v37 = vrot.slane %v5522_v31, 4 }
 0x2f5   : > { %v11382_v2 = vadd.f32 %v4507_v22, %v4202_v30  ;;  %8340 = vmatmul.mubr.bf16.gmra.mxu1 %v12264_v41  ;;  %8395 = vmatprep.mubr.bf16.mxu0 %v11148_v40  ;;  %v5525_v30 = vrot.slane %v11161_v18, 5  ;;  %v7554_v22 = vrot.slane %v11150_v23, 9  ;;  %v6749_v18 = vsel %vm12267_vm14, %v6612_v29, 0  ;;  %v8709_v29 = vld [vmem:[%s12155_s6 + $0x230] sm:$0xff]  }
 0x2f6   : > { %v8150_v28 = vpop.f32.mrf.mxu1  ;;  %8343 = vmatprep.mubr.bf16.mxu1 %v12265_v51 }
 0x2f7   : > { %v11387_v1 = vadd.f32 %v8198_v63, %v8150_v28  ;;  %v5526_v40 = vsel %vm8878_vm9, %v5524_v37, %v5525_v30  ;;  %v5523_v28 = vsel %vm8878_vm9, %v7554_v22, %v5522_v31  ;;  %v11407_v63 = vpop.f32.mrf.mxu0 }
 0x2f8   : > { %v11400_v59 = vcombine.low %v5523_v28, %v5526_v40  ;;  %v11413_v23 = vpop.f32.mrf.mxu1  ;;  %v8710_v28 = vld [vmem:[%s12155_s6 + $0x228] sm:$0xff]  }
 0x2fc   : > { %8396 = vmatmul.mubr.bf16.gmra.mxu0 %v11156_v56 }
 0x2fd   : > { %8344 = vmatmul.mubr.bf16.gmra.mxu1 %v12266_v39  ;;  %8399 = vmatprep.mubr.bf16.mxu0 %v11179_v5 }
 0x2fe   : > { %8347 = vmatprep.mubr.bf16.mxu1 %v11107_v8 }
 0x304   : > { %8400 = vmatmul.mubr.bf16.gmra.mxu0 %v11400_v59 }
 0x305   : > { %8348 = vmatmul.mubr.bf16.gmra.mxu1 %v11120_v42  ;;  %8467 = vmatprep.mubr.bf16.mxu0 %v12252_v12 }
 0x306   : > { %8351 = vmatprep.mubr.bf16.mxu1 %v11185_v14  ;;  %v8201_v40 = vpop.f32.mrf.mxu0 }
 0x308   : > { %v4523_v31 = vpop.f32.mrf.mxu0 }
 0x30c   : > { %8468 = vmatmul.mubr.bf16.vlgmr.msra.gmra.mxu0 %v12253_v45 }
 0x30d   : > { %8352 = vmatmul.mubr.bf16.gmra.mxu1 %v11195_v32  ;;  %8471 = vmatprep.mubr.bf16.mxu0 %v12255_v44 }
 0x30e   : > { %8419 = vmatprep.mubr.bf16.mxu1 %v10383_v35  ;;  %8548 = vmatpush3.bf16.msra.mxu0 %v6749_v18  ;;  %v8202_v35 = vpop.f32.mrf.mxu0 }
 0x312   : > { %v8153_v12 = vpop.f32.mrf.mxu1 }
 0x313   : > { %v11415_v37 = vadd.f32 %v8201_v40, %v8153_v12 }
 0x314   : > { %v4218_v30 = vpop.f32.mrf.mxu1  ;;  %8472 = vmatmul.mubr.bf16.gmra.mxu0 %v12256_v47  ;;  %v8713_v47 = vld [vmem:[%s12155_s6 + $0x210] sm:$0xff]  }
 0x315   : > { %v11421_v45 = vadd.f32 %v4523_v31, %v4218_v30  ;;  %8420 = vmatmul.mubr.bf16.vlgmr.msra.gmra.mxu1 %v10501_v36  ;;  %8475 = vmatprep.mubr.bf16.mxu0 %v12257_v9  ;;  %v8711_v36 = vld [vmem:[%s12155_s6 + $0x220] sm:$0xff]   ;;  %v11455_v9 = vld [vmem:[#allocation3 + $0xd0] sm:$0xf]  ;;  %v11472_v30 = vld [vmem:[#allocation3 + $0xd4] sm:$0x1] }
 0x316   : > { %v8154_v44 = vpop.f32.mrf.mxu1  ;;  %8500 = vmatpush3.bf16.msra.mxu1 %v8708_v60  ;;  %8423 = vmatprep.mubr.bf16.mxu1 %v10486_v26  ;;  %v8712_v26 = vld [vmem:[%s12155_s6 + $0x218] sm:$0xff]   ;;  %v6033_v60 = vshrl.u32 %v11455_v9, 16 }
 0x317   : > { %v11426_v22 = vadd.f32 %v8202_v35, %v8154_v44  ;;  %8501 = vmatprep.subr.bf16.mxu1 %v8709_v29 }
 0x318   : > { %v11468_v18 = vpop.f32.mrf.mxu1 }
 0x31a   : > { %8502 = vmatpush3.bf16.msra.mxu1 %v8709_v29 }
 0x31b   : > { %8503 = vmatprep.subr.bf16.mxu1 %v8710_v28 }
 0x31c   : > { %8476 = vmatmul.mubr.bf16.gmra.mxu0 %v12258_v55  ;;  %v11453_v55 = vld [vmem:[#allocation3 + $0xcc] sm:$0xf] }
 0x31d   : > { %8424 = vmatmul.mubr.bf16.gmra.mxu1 %v10617_v10  ;;  %8479 = vmatprep.mubr.bf16.mxu0 %v12261_v38  ;;  %v11451_v10 = vpop.f32.mrf.mxu0  ;;  %v6029_v38 = vshll.u32 %v11455_v9, 16 }
 0x31e   : > { %8427 = vmatprep.mubr.bf16.mxu1 %v10602_v52  ;;  %8504 = vmatpush3.bf16.msra.mxu1 %v8710_v28  ;;  %v8714_v52 = vld [vmem:[%s12155_s6 + $0x208] sm:$0xff]  }
 0x31f   : > { %8505 = vmatprep.subr.bf16.mxu1 %v8711_v36  ;;  %v6031_v12 = vrot.slane %v6029_v38, 5 }
 0x322   : > { %8506 = vmatpush3.bf16.msra.mxu1 %v8711_v36 }
 0x323   : > { %8507 = vmatprep.subr.bf16.mxu1 %v8712_v26 }
 0x324   : > { %8480 = vmatmul.mubr.bf16.gmra.mxu0 %v12262_v25 }
 0x325   : > { %8428 = vmatmul.mubr.bf16.gmra.mxu1 %v10768_v6  ;;  %8483 = vmatprep.mubr.bf16.mxu0 %v12264_v41  ;;  %v8715_v6 = vld [vmem:[%s12155_s6 + $0x200] sm:$0xff]   ;;  %v6023_v41 = vshll.u32 %v11453_v55, 16 }
 0x326   : > { %8431 = vmatprep.mubr.bf16.mxu1 %v10746_v4  ;;  %8508 = vmatpush3.bf16.msra.mxu1 %v8712_v26  ;;  %v6020_v4 = vshrl.u32 %v11453_v55, 16 }
 0x327   : > { %8509 = vmatprep.subr.bf16.mxu1 %v8713_v47  ;;  %v8205_v25 = vpop.f32.mrf.mxu0 }
 0x328   : > { %v6022_v31 = vrot.slane %v6020_v4, 4 }
 0x329   : > { %v4539_v40 = vpop.f32.mrf.mxu0 }
 0x32a   : > { %8510 = vmatpush3.bf16.msra.mxu1 %v8713_v47  ;;  %v6039_v47 = vshll.u32 %v11472_v30, 16 }
 0x32b   : > { %8511 = vmatprep.subr.bf16.mxu1 %v8714_v52  ;;  %v8206_v35 = vpop.f32.mrf.mxu0 }
 0x32c   : > { %8484 = vmatmul.mubr.bf16.gmra.mxu0 %v12265_v51  ;;  %v6041_v38 = vrot.slane %v6039_v47, 5 }
 0x32d   : > { %8432 = vmatmul.mubr.bf16.gmra.mxu1 %v10895_v17  ;;  %8487 = vmatprep.mubr.bf16.mxu0 %v12266_v39  ;;  %v6025_v17 = vrot.slane %v6023_v41, 5  ;;  %v6035_v39 = vrot.slane %v6033_v60, 4  ;;  %v8725_v60 = vld [vmem:[%s8887_s26] sm:$0xf] }
 0x32e   : > { %8435 = vmatprep.mubr.bf16.mxu1 %v10883_v21  ;;  %8512 = vmatpush3.bf16.msra.mxu1 %v8714_v52 }
 0x32f   : > { %8513 = vmatprep.subr.bf16.mxu1 %v8715_v6  ;;  %v6026_v36 = vor.u32 %v6025_v17, %v6022_v31  ;;  %v6036_v26 = vor.u32 %v6035_v39, %v6031_v12  ;;  %v8728_v31 = vld [vmem:[%s8887_s26 + $0xc] sm:$0xf]  ;;  %v8730_v39 = vld [vmem:[%s8887_s26 + $0x14] sm:$0xf] }
 0x330   : > { %v7595_v17 = vcombine.low %v8727_v49, %v8728_v31 }
 0x331   : > { %v8157_v51 = vpop.f32.mrf.mxu1  ;;  %v6037_v41 = vrot.slane %v6036_v26, 4 }
 0x332   : > { %v11470_v29 = vadd.f32 %v8205_v25, %v8157_v51  ;;  %8514 = vmatpush3.bf16.msra.mxu1 %v8715_v6  ;;  %v4542_v25 = vpop.f32.mrf.mxu0 }
 0x333   : > { %v4234_v44 = vpop.f32.mrf.mxu1 }
 0x334   : > { %v11474_v28 = vadd.f32 %v4539_v40, %v4234_v44  ;;  %8488 = vmatmul.mubr.bf16.gmra.mxu0 %v11107_v8  ;;  %v6027_v8 = vrot.slane %v6026_v36, 4  ;;  %v8726_v40 = vld [vmem:[%s8887_s26 + $0x4] sm:$0xf] }
 0x335   : > { %v8158_v21 = vpop.f32.mrf.mxu1  ;;  %8436 = vmatmul.mubr.bf16.gmra.mxu1 %v10987_v0  ;;  %8491 = vmatprep.mubr.bf16.mxu0 %v11120_v42  ;;  %v6042_v42 = vsel %vm8919_vm13, %v6037_v41, %v6041_v38 }
 0x336   : > { %v11480_v52 = vadd.f32 %v8206_v35, %v8158_v21  ;;  %8439 = vmatprep.mubr.bf16.mxu1 %v12241_v34  ;;  %v6032_v0 = vsel %vm8919_vm13, %v6027_v8, %v6031_v12  ;;  %v8729_v12 = vld [vmem:[%s8887_s26 + $0x10] sm:$0xf]  ;;  %v8732_v8 = vld [vmem:[%s8887_s26 + $0x1c] sm:$0xf] }
 0x337   : > { %v4237_v6 = vpop.f32.mrf.mxu1  ;;  %v7573_v34 = vcombine.low %v6032_v0, %v6042_v42  ;;  %v7596_v35 = vcombine.low %v8729_v12, %v8730_v39  ;;  %v8733_v0 = vld [vmem:[%s8887_s26 + $0x20] sm:$0xf]  ;;  %v8734_v42 = vld [vmem:[%s8887_s26 + $0x24] sm:$0xf]  ;;  %v8735_v12 = vld [vmem:[%s8887_s26 + $0x28] sm:$0xf] }
 0x338   : > { %v11483_v4 = vadd.f32 %v4542_v25, %v4237_v6  ;;  %v8731_v6 = vld [vmem:[%s8887_s26 + $0x18] sm:$0xf]  ;;  %v8736_v39 = vld [vmem:[%s8887_s26 + $0x2c] sm:$0xf] }
 0x339   : > { %v7597_v41 = vcombine.low %v8731_v6, %v8732_v8  ;;  %v8738_v6 = vld [vmem:[%s8887_s26 + $0x34] sm:$0xf]  ;;  %v4447_v8 = vadd.f32 %v11192_v43, %v11203_v3 }
 0x33c   : > { %8492 = vmatmul.mubr.bf16.gmra.mxu0 %v11185_v14  ;;  %v7594_v14 = vcombine.low %v8725_v60, %v8726_v40 }
 0x33d   : > { %8440 = vmatmul.mubr.bf16.gmra.mxu1 %v11082_v7  ;;  %8495 = vmatprep.mubr.bf16.mxu0 %v11195_v32 }
 0x33e   : > { %8443 = vmatprep.mubr.bf16.mxu1 %v11069_v48  ;;  %v7564_v48 = vcombine.low %v11453_v55, %v11455_v9 }
 0x344   : > { %v8209_v51 = vpop.f32.mrf.mxu0  ;;  %8496 = vmatmul.mubr.bf16.gmra.mxu0 %v7573_v34  ;;  %v7598_v34 = vcombine.low %v8733_v0, %v8734_v42 }
 0x345   : > { %8444 = vmatmul.mubr.bf16.gmra.mxu1 %v11164_v27  ;;  %8549 = vmatprep.mubr.msk.bf16.mxu0 %vm2089_vm1, %v7594_v14 }
 0x346   : > { %v4555_v7 = vpop.f32.mrf.mxu0  ;;  %8447 = vmatprep.mubr.bf16.mxu1 %v11290_v50 }
 0x348   : > { %v8210_v32 = vpop.f32.mrf.mxu0 }
 0x34a   : > { %v4558_v44 = vpop.f32.mrf.mxu0 }
 0x34c   : > { %v8277_v27 = vpop.f32.mrf.mxu0  ;;  %8550 = vmatmul.mubr.msk.bf16.vlgmr.msra.gmra.mxu0 %vm2089_vm1, %v7595_v17 }
 0x34d   : > { %v8161_v21 = vpop.f32.mrf.mxu1  ;;  %8448 = vmatmul.mubr.bf16.gmra.mxu1 %v7564_v48  ;;  %8553 = vmatprep.mubr.msk.bf16.mxu0 %vm2089_vm1, %v7596_v35  ;;  %v7599_v35 = vcombine.low %v8735_v12, %v8736_v39  ;;  %v8742_v12 = vld [vmem:[%s8887_s26 + $0x44] sm:$0xf] }
 0x34e   : > { %v11506_v50 = vadd.f32 %v8209_v51, %v8161_v21  ;;  %v5091_v36 = vpop.f32.mrf.mxu0  ;;  %8515 = vmatprep.mubr.bf16.mxu1 %v10472_v54 }
 0x34f   : > { %v4250_v26 = vpop.f32.mrf.mxu1 }
 0x350   : > { %v11509_v47 = vadd.f32 %v4555_v7, %v4250_v26  ;;  %v8278_v25 = vpop.f32.mrf.mxu0  ;;  %v8737_v26 = vld [vmem:[%s8887_s26 + $0x30] sm:$0xf] }
 0x351   : > { %v8162_v38 = vpop.f32.mrf.mxu1 }
 0x352   : > { %v11515_v60 = vadd.f32 %v8210_v32, %v8162_v38  ;;  %v5094_v40 = vpop.f32.mrf.mxu0 }
 0x353   : > { %v4253_v14 = vpop.f32.mrf.mxu1 }
 0x354   : > { %v11517_v51 = vadd.f32 %v4558_v44, %v4253_v14  ;;  %v8281_v54 = vpop.f32.mrf.mxu0  ;;  %8554 = vmatmul.mubr.msk.bf16.gmra.mxu0 %vm2089_vm1, %v7597_v41 }
 0x355   : > { %v8229_v7 = vpop.f32.mrf.mxu1  ;;  %8516 = vmatmul.mubr.bf16.vlgmr.msra.gmra.mxu1 %v10549_v24  ;;  %8557 = vmatprep.mubr.msk.bf16.mxu0 %vm2089_vm1, %v7598_v34  ;;  %v7600_v24 = vcombine.low %v8737_v26, %v8738_v6 }
 0x356   : > { %v4973_v49 = vadd.f32 %v8229_v7, %v11122_v62  ;;  %v5107_v31 = vpop.f32.mrf.mxu0  ;;  %8519 = vmatprep.mubr.bf16.mxu1 %v10568_v11  ;;  %v8740_v7 = vld [vmem:[%s8887_s26 + $0x3c] sm:$0xf] }
 0x357   : > { %v4844_v32 = vpop.f32.mrf.mxu1 }
 0x358   : > { %v4971_v17 = vadd.f32 %v4844_v32, %v11133_v19  ;;  %v8282_v48 = vpop.f32.mrf.mxu0  ;;  %v11527_v44 = vadd.f32 %v8277_v27, %v4973_v49 }
 0x359   : > { %v8230_v21 = vpop.f32.mrf.mxu1 }
 0x35a   : > { %v4974_v62 = vadd.f32 %v8230_v21, %v11146_v33  ;;  %v5110_v41 = vpop.f32.mrf.mxu0  ;;  %v11534_v11 = vadd.f32 %v5091_v36, %v4971_v17 }
 0x35b   : > { %v4847_v19 = vpop.f32.mrf.mxu1 }
 0x35c   : > { %v4972_v38 = vadd.f32 %v4847_v19, %v4447_v8  ;;  %v8285_v0 = vpop.f32.mrf.mxu0  ;;  %8558 = vmatmul.mubr.msk.bf16.gmra.mxu0 %vm2089_vm1, %v7599_v35  ;;  %v11537_v27 = vadd.f32 %v8278_v25, %v4974_v62  ;;  %v8739_v25 = vld [vmem:[%s8887_s26 + $0x38] sm:$0xf]  ;;  %v12268_v35 = vld [vmem:[#allocation24_spill] sm:$0xff] }
 0x35d   : > { %v8233_v42 = vpop.f32.mrf.mxu1  ;;  %8520 = vmatmul.mubr.bf16.gmra.mxu1 %v10671_v46  ;;  %8561 = vmatprep.mubr.msk.bf16.mxu0 %vm2089_vm1, %v7600_v24  ;;  %v7601_v49 = vcombine.low %v8739_v25, %v8740_v7  ;;  %v8741_v46 = vld [vmem:[%s8887_s26 + $0x40] sm:$0xf]  ;;  %v12269_v8 = vld [vmem:[#allocation12_spill] sm:$0xff]  ;;  %v12271_v62 = vld [vmem:[#allocation13_spill] sm:$0xff] }
 0x35e   : > { %v4977_v33 = vadd.f32 %v8233_v42, %v11205_v53  ;;  %v5123_v43 = vpop.f32.mrf.mxu0  ;;  %8523 = vmatprep.mubr.bf16.mxu1 %v10703_v61  ;;  %v11543_v3 = vadd.f32 %v5094_v40, %v4972_v38  ;;  %v7602_v39 = vcombine.low %v8741_v46, %v8742_v12  ;;  %v4463_v53 = vadd.f32 %v11263_v20, %v11272_v57  ;;  %v12270_v20 = vld [vmem:[#allocation25_spill] sm:$0xff]  ;;  %v12272_v42 = vld [vmem:[#allocation18_spill] sm:$0xff]  ;;  %v8746_v46 = vld [vmem:[%s8887_s26 + $0x54] sm:$0xf] }
 0x35f   : > { %v4860_v36 = vpop.f32.mrf.mxu1 }
 0x360   : > { %v4975_v34 = vadd.f32 %v4860_v36, %v11214_v16  ;;  %v8286_v14 = vpop.f32.mrf.mxu0  ;;  %v11548_v32 = vadd.f32 %v8281_v54, %v4977_v33 }
 0x361   : > { %v8234_v17 = vpop.f32.mrf.mxu1 }
 0x362   : > { %v4978_v61 = vadd.f32 %v8234_v17, %v12268_v35  ;;  %v5126_v40 = vpop.f32.mrf.mxu0  ;;  %v11555_v21 = vadd.f32 %v5107_v31, %v4975_v34  ;;  %v8744_v34 = vld [vmem:[%s8887_s26 + $0x4c] sm:$0xf]  ;;  %v8745_v17 = vld [vmem:[%s8887_s26 + $0x50] sm:$0xf] }
 0x363   : > { %v4863_v16 = vpop.f32.mrf.mxu1  ;;  %v7604_v12 = vcombine.low %v8745_v17, %v8746_v46  ;;  %v8748_v46 = vld [vmem:[%s8887_s26 + $0x5c] sm:$0xf] }
 0x364   : > { %v4976_v26 = vadd.f32 %v4863_v16, %v4463_v53  ;;  %v8289_v6 = vpop.f32.mrf.mxu0  ;;  %8562 = vmatmul.mubr.msk.bf16.gmra.mxu0 %vm2089_vm1, %v7601_v49  ;;  %v11558_v54 = vadd.f32 %v8282_v48, %v4978_v61  ;;  %v8743_v48 = vld [vmem:[%s8887_s26 + $0x48] sm:$0xf]  ;;  %v12274_v53 = vld [vmem:[#allocation22_spill] sm:$0xff] }
 0x365   : > { %v8237_v24 = vpop.f32.mrf.mxu1  ;;  %8524 = vmatmul.mubr.bf16.gmra.mxu1 %v12269_v8  ;;  %8565 = vmatprep.mubr.msk.bf16.mxu0 %vm2089_vm1, %v7602_v39  ;;  %v7603_v25 = vcombine.low %v8743_v48, %v8744_v34  ;;  %v12273_v39 = vld [vmem:[#allocation4_spill] sm:$0xff]  ;;  %v12275_v61 = vld [vmem:[#allocation26_spill] sm:$0xff] }
 0x366   : > { %v4981_v57 = vadd.f32 %v8237_v24, %v12270_v20  ;;  %v5139_v31 = vpop.f32.mrf.mxu0  ;;  %8527 = vmatprep.mubr.bf16.mxu1 %v12271_v62  ;;  %v11564_v19 = vadd.f32 %v5110_v41, %v4976_v26  ;;  %v4479_v35 = vadd.f32 %v12274_v53, %v12273_v39  ;;  %v12276_v62 = vld [vmem:[#allocation16_spill] sm:$0xff] }
 0x367   : > { %v4876_v38 = vpop.f32.mrf.mxu1 }
 0x368   : > { %v4979_v33 = vadd.f32 %v4876_v38, %v12272_v42  ;;  %v8290_v36 = vpop.f32.mrf.mxu0  ;;  %v11569_v7 = vadd.f32 %v8285_v0, %v4981_v57  ;;  %v12277_v38 = vld [vmem:[#allocation27_spill] sm:$0xff] }
 0x369   : > { %v8238_v49 = vpop.f32.mrf.mxu1 }
 0x36a   : > { %v4982_v16 = vadd.f32 %v8238_v49, %v12275_v61  ;;  %v5142_v41 = vpop.f32.mrf.mxu0  ;;  %v11576_v26 = vadd.f32 %v5123_v43, %v4979_v33  ;;  %v12278_v33 = vld [vmem:[#allocation17_spill] sm:$0xff]  ;;  %v12280_v49 = vld [vmem:[#allocation28_spill] sm:$0xff]  ;;  %v8749_v61 = vld [vmem:[%s8887_s26 + $0x60] sm:$0xf] }
 0x36b   : > { %v4879_v24 = vpop.f32.mrf.mxu1 }
 0x36c   : > { %v4980_v8 = vadd.f32 %v4879_v24, %v4479_v35  ;;  %v8293_v20 = vpop.f32.mrf.mxu0  ;;  %8566 = vmatmul.mubr.msk.bf16.gmra.mxu0 %vm2089_vm1, %v7603_v25  ;;  %v11579_v0 = vadd.f32 %v8286_v14, %v4982_v16  ;;  %v8747_v14 = vld [vmem:[%s8887_s26 + $0x58] sm:$0xf]  ;;  %v8750_v16 = vld [vmem:[%s8887_s26 + $0x64] sm:$0xf]  ;;  %v12281_v24 = vld [vmem:[#allocation7_spill] sm:$0xff] }
 0x36d   : > { %v8241_v57 = vpop.f32.mrf.mxu1  ;;  %8528 = vmatmul.mubr.bf16.gmra.mxu1 %v12276_v62  ;;  %8569 = vmatprep.mubr.msk.bf16.mxu0 %vm2089_vm1, %v7604_v12  ;;  %v7605_v39 = vcombine.low %v8747_v14, %v8748_v46  ;;  %v7606_v12 = vcombine.low %v8749_v61, %v8750_v16  ;;  %v12284_v14 = vld [vmem:[#allocation21_spill] sm:$0xff]  ;;  %v8752_v16 = vld [vmem:[%s8887_s26 + $0x6c] sm:$0xf] }
 0x36e   : > { %v4985_v42 = vadd.f32 %v8241_v57, %v12277_v38  ;;  %v5155_v43 = vpop.f32.mrf.mxu0  ;;  %8531 = vmatprep.mubr.bf16.mxu1 %v12278_v33  ;;  %v11585_v48 = vadd.f32 %v5126_v40, %v4980_v8  ;;  %v12282_v57 = vld [vmem:[#allocation6_spill] sm:$0xff]  ;;  %v12283_v38 = vld [vmem:[#allocation5_spill] sm:$0xff] }
 0x36f   : > { %v4892_v34 = vpop.f32.mrf.mxu1  ;;  %v4495_v62 = vadd.f32 %v12282_v57, %v12281_v24 }
 0x370   : > { %12279 = vst [vmem:[#allocation8_spill] sm:$0xff] %v11585_v48  ;;  %v4983_v17 = vadd.f32 %v4892_v34, %v12280_v49  ;;  %v8294_v25 = vpop.f32.mrf.mxu0  ;;  %v11590_v53 = vadd.f32 %v8289_v6, %v4985_v42 }
 0x371   : > { %v8242_v35 = vpop.f32.mrf.mxu1 }
 0x372   : > { %v4986_v33 = vadd.f32 %v8242_v35, %v12283_v38  ;;  %v5158_v40 = vpop.f32.mrf.mxu0  ;;  %v11597_v8 = vadd.f32 %v5139_v31, %v4983_v17  ;;  %v8753_v38 = vld [vmem:[%s8887_s26 + $0x70] sm:$0xf] }
 0x373   : > { %v4895_v34 = vpop.f32.mrf.mxu1 }
 0x374   : > { %v4984_v49 = vadd.f32 %v4895_v34, %v4495_v62  ;;  %v8297_v48 = vpop.f32.mrf.mxu0  ;;  %8570 = vmatmul.mubr.msk.bf16.gmra.mxu0 %vm2089_vm1, %v7605_v39  ;;  %v11600_v6 = vadd.f32 %v8290_v36, %v4986_v33  ;;  %v8751_v36 = vld [vmem:[%s8887_s26 + $0x68] sm:$0xf]  ;;  %v8754_v33 = vld [vmem:[%s8887_s26 + $0x74] sm:$0xf] }
 0x375   : > { %v8245_v42 = vpop.f32.mrf.mxu1  ;;  %8532 = vmatmul.mubr.bf16.gmra.mxu1 %v12284_v14  ;;  %8573 = vmatprep.mubr.msk.bf16.mxu0 %vm2089_vm1, %v7606_v12  ;;  %v7607_v24 = vcombine.low %v8751_v36, %v8752_v16  ;;  %v7608_v12 = vcombine.low %v8753_v38, %v8754_v33  ;;  %v8756_v16 = vld [vmem:[%s8887_s26 + $0x7c] sm:$0xf]  ;;  %v7582_v33 = vrot.slane %v11453_v55, 9 }
 0x376   : > { %v4989_v46 = vadd.f32 %v8245_v42, %v11379_v15  ;;  %v5171_v31 = vpop.f32.mrf.mxu0  ;;  %8535 = vmatprep.mubr.bf16.mxu1 %v12246_v58  ;;  %v11606_v17 = vadd.f32 %v5142_v41, %v4984_v49  ;;  %v4511_v15 = vadd.f32 %v11407_v63, %v11413_v23  ;;  %v6291_v23 = vrot.slane %v11455_v9, 5 }
 0x377   : > { %v4908_v35 = vpop.f32.mrf.mxu1 }
 0x378   : > { %v4987_v61 = vadd.f32 %v4908_v35, %v11382_v2  ;;  %v8298_v39 = vpop.f32.mrf.mxu0  ;;  %v11611_v57 = vadd.f32 %v8293_v20, %v4989_v46  ;;  %v12285_v46 = vld [vmem:[#allocation23_spill] sm:$0xff] }
 0x379   : > { %v8246_v62 = vpop.f32.mrf.mxu1 }
 0x37a   : > { %v4990_v58 = vadd.f32 %v8246_v62, %v11387_v1  ;;  %v5174_v41 = vpop.f32.mrf.mxu0  ;;  %v11618_v34 = vadd.f32 %v5155_v43, %v4987_v61 }
 0x37b   : > { %v4911_v49 = vpop.f32.mrf.mxu1 }
 0x37c   : > { %v4988_v2 = vadd.f32 %v4911_v49, %v4511_v15  ;;  %v8301_v42 = vpop.f32.mrf.mxu0  ;;  %8574 = vmatmul.mubr.msk.bf16.gmra.mxu0 %vm2089_vm1, %v7607_v24  ;;  %v11621_v20 = vadd.f32 %v8294_v25, %v4990_v58  ;;  %v8755_v25 = vld [vmem:[%s8887_s26 + $0x78] sm:$0xf] }
 0x37d   : > { %v8249_v14 = vpop.f32.mrf.mxu1  ;;  %8536 = vmatmul.mubr.bf16.gmra.mxu1 %v12285_v46  ;;  %8577 = vmatprep.mubr.msk.bf16.mxu0 %vm2089_vm1, %v7608_v12  ;;  %v7609_v24 = vcombine.low %v8755_v25, %v8756_v16  ;;  %v6293_v12 = vrot.slane %v6291_v23, 4 }
 0x37e   : > { %v4993_v63 = vadd.f32 %v8249_v14, %v11415_v37  ;;  %v5187_v1 = vpop.f32.mrf.mxu0  ;;  %8539 = vmatprep.mubr.bf16.mxu1 %v11156_v56  ;;  %v11628_v43 = vadd.f32 %v5158_v40, %v4988_v2  ;;  %v6294_v37 = vrot.slane %v11472_v30, 5  ;;  %v4527_v56 = vadd.f32 %v11451_v10, %v11468_v18 }
 0x37f   : > { %v4924_v35 = vpop.f32.mrf.mxu1 }
 0x380   : > { %v4991_v61 = vadd.f32 %v4924_v35, %v11421_v45  ;;  %v8302_v36 = vpop.f32.mrf.mxu0  ;;  %v11633_v62 = vadd.f32 %v8297_v48, %v4993_v63  ;;  %v6295_v10 = vsel %vm8878_vm9, %v6293_v12, %v6294_v37 }
 0x381   : > { %v8250_v38 = vpop.f32.mrf.mxu1 }
 0x382   : > { %v4994_v9 = vadd.f32 %v8250_v38, %v11426_v22  ;;  %v5190_v40 = vpop.f32.mrf.mxu0  ;;  %v11640_v15 = vadd.f32 %v5171_v31, %v4991_v61  ;;  %v6292_v22 = vsel %vm8878_vm9, %v7582_v33, %v6291_v23 }
 0x383   : > { %v4927_v45 = vpop.f32.mrf.mxu1  ;;  %v7583_v63 = vcombine.low %v6292_v22, %v6295_v10 }
 0x384   : > { %v4992_v58 = vadd.f32 %v4927_v45, %v4527_v56  ;;  %v8305_v49 = vpop.f32.mrf.mxu0  ;;  %8578 = vmatmul.mubr.msk.bf16.gmra.mxu0 %vm2089_vm1, %v7609_v24  ;;  %v11643_v48 = vadd.f32 %v8298_v39, %v4994_v9 }
 0x385   : > { %v8253_v2 = vpop.f32.mrf.mxu1  ;;  %8540 = vmatmul.mubr.bf16.gmra.mxu1 %v11179_v5 }
 0x386   : > { %v4997_v55 = vadd.f32 %v8253_v2, %v11470_v29  ;;  %v5203_v30 = vpop.f32.mrf.mxu0  ;;  %8543 = vmatprep.mubr.bf16.mxu1 %v11400_v59  ;;  %v11652_v18 = vadd.f32 %v5174_v41, %v4992_v58 }
 0x387   : > { %v4940_v31 = vpop.f32.mrf.mxu1 }
 0x388   : > { %v4995_v39 = vadd.f32 %v4940_v31, %v11474_v28  ;;  %v8306_v14 = vpop.f32.mrf.mxu0  ;;  %v11655_v46 = vadd.f32 %v8301_v42, %v4997_v55 }
 0x389   : > { %v8254_v5 = vpop.f32.mrf.mxu1 }
 0x38a   : > { %v4998_v29 = vadd.f32 %v8254_v5, %v11480_v52  ;;  %v5206_v35 = vpop.f32.mrf.mxu0  ;;  %v11658_v59 = vadd.f32 %v5187_v1, %v4995_v39 }
 0x38b   : > { %v4943_v61 = vpop.f32.mrf.mxu1 }
 0x38c   : > { %v4996_v23 = vadd.f32 %v4943_v61, %v11483_v4  ;;  %v8373_v13 = vpop.f32.mrf.mxu0  ;;  %v11661_v25 = vadd.f32 %v8302_v36, %v4998_v29 }
 0x38d   : > { %v8257_v41 = vpop.f32.mrf.mxu1  ;;  %8544 = vmatmul.mubr.bf16.gmra.mxu1 %v7583_v63 }
 0x38e   : > { %v5001_v28 = vadd.f32 %v8257_v41, %v11506_v50  ;;  %v5613_v16 = vpop.f32.mrf.mxu0  ;;  %v11664_v42 = vadd.f32 %v5190_v40, %v4996_v23 }
 0x38f   : > { %v4956_v24 = vpop.f32.mrf.mxu1 }
 0x390   : > { %v4999_v38 = vadd.f32 %v4956_v24, %v11509_v47  ;;  %v8374_v52 = vpop.f32.mrf.mxu0  ;;  %v11667_v33 = vadd.f32 %v8305_v49, %v5001_v28 }
 0x391   : > { %v8258_v1 = vpop.f32.mrf.mxu1 }
 0x392   : > { %v5002_v37 = vadd.f32 %v8258_v1, %v11515_v60  ;;  %v5616_v4 = vpop.f32.mrf.mxu0  ;;  %v11670_v56 = vadd.f32 %v5203_v30, %v4999_v38 }
 0x393   : > { %v4959_v36 = vpop.f32.mrf.mxu1 }
 0x394   : > { %v5000_v9 = vadd.f32 %v4959_v36, %v11517_v51  ;;  %v8377_v12 = vpop.f32.mrf.mxu0  ;;  %v11673_v50 = vadd.f32 %v8306_v14, %v5002_v37 }
 0x395   : > { %v8325_v40 = vpop.f32.mrf.mxu1 }
 0x396   : > { %v5489_v45 = vadd.f32 %v8325_v40, %v11527_v44  ;;  %v5629_v58 = vpop.f32.mrf.mxu0  ;;  %v11676_v47 = vadd.f32 %v5206_v35, %v5000_v9 }
 0x397   : > { %v5360_v49 = vpop.f32.mrf.mxu1 }
 0x398   : > { %v5487_v2 = vadd.f32 %v5360_v49, %v11534_v11  ;;  %v8378_v55 = vpop.f32.mrf.mxu0  ;;  %v11679_v60 = vadd.f32 %v8373_v13, %v5489_v45  ;;  %v12286_v49 = vld [vmem:[#allocation8_spill] sm:$0xff] }
 0x399   : > { %v8326_v30 = vpop.f32.mrf.mxu1 }
 0x39a   : > { %v5490_v22 = vadd.f32 %v8326_v30, %v11537_v27  ;;  %v5632_v10 = vpop.f32.mrf.mxu0  ;;  %v11682_v51 = vadd.f32 %v5613_v16, %v5487_v2 }
 0x39b   : > { %v5363_v31 = vpop.f32.mrf.mxu1 }
 0x39c   : > { %v5488_v39 = vadd.f32 %v5363_v31, %v11543_v3  ;;  %v8381_v14 = vpop.f32.mrf.mxu0  ;;  %v11685_v44 = vadd.f32 %v8374_v52, %v5490_v22 }
 0x39d   : > { %v8329_v5 = vpop.f32.mrf.mxu1 }
 0x39e   : > { %v5493_v63 = vadd.f32 %v8329_v5, %v11548_v32  ;;  %v5645_v29 = vpop.f32.mrf.mxu0  ;;  %v11688_v11 = vadd.f32 %v5616_v4, %v5488_v39 }
 0x39f   : > { %v5376_v35 = vpop.f32.mrf.mxu1 }
 0x3a0   : > { %v5491_v61 = vadd.f32 %v5376_v35, %v11555_v21  ;;  %v8382_v23 = vpop.f32.mrf.mxu0  ;;  %v11691_v27 = vadd.f32 %v8377_v12, %v5493_v63 }
 0x3a1   : > { %v8330_v13 = vpop.f32.mrf.mxu1 }
 0x3a2   : > { %v5494_v41 = vadd.f32 %v8330_v13, %v11558_v54  ;;  %v5648_v28 = vpop.f32.mrf.mxu0  ;;  %v11694_v3 = vadd.f32 %v5629_v58, %v5491_v61 }
 0x3a3   : > { %v5379_v16 = vpop.f32.mrf.mxu1 }
 0x3a4   : > { %v5492_v24 = vadd.f32 %v5379_v16, %v11564_v19  ;;  %v8385_v38 = vpop.f32.mrf.mxu0  ;;  %v11697_v32 = vadd.f32 %v8378_v55, %v5494_v41 }
 0x3a5   : > { %v8333_v52 = vpop.f32.mrf.mxu1 }
 0x3a6   : > { %v5497_v1 = vadd.f32 %v8333_v52, %v11569_v7  ;;  %v5661_v37 = vpop.f32.mrf.mxu0  ;;  %v11700_v21 = vadd.f32 %v5632_v10, %v5492_v24 }
 0x3a7   : > { %v5392_v4 = vpop.f32.mrf.mxu1 }
 0x3a8   : > { %v5495_v36 = vadd.f32 %v5392_v4, %v11576_v26  ;;  %v8386_v9 = vpop.f32.mrf.mxu0  ;;  %v11703_v54 = vadd.f32 %v8381_v14, %v5497_v1 }
 0x3a9   : > { %v8334_v12 = vpop.f32.mrf.mxu1 }
 0x3aa   : > { %v5498_v40 = vadd.f32 %v8334_v12, %v11579_v0  ;;  %v5664_v45 = vpop.f32.mrf.mxu0  ;;  %v11706_v19 = vadd.f32 %v5645_v29, %v5495_v36 }
 0x3ab   : > { %v5395_v58 = vpop.f32.mrf.mxu1 }
 0x3ac   : > { %v5496_v2 = vadd.f32 %v5395_v58, %v12286_v49  ;;  %v8389_v55 = vpop.f32.mrf.mxu0  ;;  %v11709_v7 = vadd.f32 %v8382_v23, %v5498_v40 }
 0x3ad   : > { %v8337_v30 = vpop.f32.mrf.mxu1 }
 0x3ae   : > { %v5501_v22 = vadd.f32 %v8337_v30, %v11590_v53  ;;  %v5677_v10 = vpop.f32.mrf.mxu0  ;;  %v11712_v26 = vadd.f32 %v5648_v28, %v5496_v2 }
 0x3af   : > { %v5408_v31 = vpop.f32.mrf.mxu1 }
 0x3b0   : > { %v5499_v39 = vadd.f32 %v5408_v31, %v11597_v8  ;;  %v8390_v14 = vpop.f32.mrf.mxu0  ;;  %v11715_v0 = vadd.f32 %v8385_v38, %v5501_v22 }
 0x3b1   : > { %v8338_v5 = vpop.f32.mrf.mxu1 }
 0x3b2   : > { %v5502_v63 = vadd.f32 %v8338_v5, %v11600_v6  ;;  %v5680_v29 = vpop.f32.mrf.mxu0  ;;  %v11718_v35 = vadd.f32 %v5661_v37, %v5499_v39 }
 0x3b3   : > { %v5411_v61 = vpop.f32.mrf.mxu1 }
 0x3b4   : > { %v5500_v23 = vadd.f32 %v5411_v61, %v11606_v17  ;;  %v8393_v13 = vpop.f32.mrf.mxu0  ;;  %v11721_v53 = vadd.f32 %v8386_v9, %v5502_v63 }
 0x3b5   : > { %v8341_v41 = vpop.f32.mrf.mxu1 }
 0x3b6   : > { %v5505_v28 = vadd.f32 %v8341_v41, %v11611_v57  ;;  %v5693_v16 = vpop.f32.mrf.mxu0  ;;  %v11724_v8 = vadd.f32 %v5664_v45, %v5500_v23 }
 0x3b7   : > { %v5424_v24 = vpop.f32.mrf.mxu1 }
 0x3b8   : > { %v5503_v38 = vadd.f32 %v5424_v24, %v11618_v34  ;;  %v8394_v52 = vpop.f32.mrf.mxu0  ;;  %v11727_v6 = vadd.f32 %v8389_v55, %v5505_v28 }
 0x3b9   : > { %v8342_v1 = vpop.f32.mrf.mxu1 }
 0x3ba   : > { %v5506_v37 = vadd.f32 %v8342_v1, %v11621_v20  ;;  %v5696_v4 = vpop.f32.mrf.mxu0  ;;  %v11730_v17 = vadd.f32 %v5677_v10, %v5503_v38 }
 0x3bb   : > { %v5427_v36 = vpop.f32.mrf.mxu1 }
 0x3bc   : > { %v5504_v9 = vadd.f32 %v5427_v36, %v11628_v43  ;;  %v8397_v12 = vpop.f32.mrf.mxu0  ;;  %v11733_v57 = vadd.f32 %v8390_v14, %v5506_v37 }
 0x3bd   : > { %v8345_v40 = vpop.f32.mrf.mxu1 }
 0x3be   : > { %v5509_v45 = vadd.f32 %v8345_v40, %v11633_v62  ;;  %v5709_v58 = vpop.f32.mrf.mxu0  ;;  %v11736_v34 = vadd.f32 %v5680_v29, %v5504_v9 }
 0x3bf   : > { %v5440_v49 = vpop.f32.mrf.mxu1 }
 0x3c0   : > { %v5507_v2 = vadd.f32 %v5440_v49, %v11640_v15  ;;  %v8398_v55 = vpop.f32.mrf.mxu0  ;;  %v11739_v20 = vadd.f32 %v8393_v13, %v5509_v45 }
 0x3c1   : > { %v8346_v30 = vpop.f32.mrf.mxu1 }
 0x3c2   : > { %v5510_v22 = vadd.f32 %v8346_v30, %v11643_v48  ;;  %v5712_v10 = vpop.f32.mrf.mxu0  ;;  %v11742_v43 = vadd.f32 %v5693_v16, %v5507_v2 }
 0x3c3   : > { %v5443_v31 = vpop.f32.mrf.mxu1 }
 0x3c4   : > { %v5508_v39 = vadd.f32 %v5443_v31, %v11652_v18  ;;  %v8401_v14 = vpop.f32.mrf.mxu0  ;;  %v11745_v62 = vadd.f32 %v8394_v52, %v5510_v22 }
 0x3c5   : > { %v8349_v5 = vpop.f32.mrf.mxu1 }
 0x3c6   : > { %v5513_v63 = vadd.f32 %v8349_v5, %v11655_v46  ;;  %v5725_v29 = vpop.f32.mrf.mxu0  ;;  %v11748_v15 = vadd.f32 %v5696_v4, %v5508_v39 }
 0x3c7   : > { %v5456_v61 = vpop.f32.mrf.mxu1 }
 0x3c8   : > { %v5511_v23 = vadd.f32 %v5456_v61, %v11658_v59  ;;  %v8402_v13 = vpop.f32.mrf.mxu0  ;;  %v11751_v48 = vadd.f32 %v8397_v12, %v5513_v63 }
 0x3c9   : > { %v8350_v41 = vpop.f32.mrf.mxu1 }
 0x3ca   : > { %v5514_v28 = vadd.f32 %v8350_v41, %v11661_v25  ;;  %v5728_v16 = vpop.f32.mrf.mxu0  ;;  %v11754_v18 = vadd.f32 %v5709_v58, %v5511_v23 }
 0x3cb   : > { %v5459_v24 = vpop.f32.mrf.mxu1 }
 0x3cc   : > { %v5512_v38 = vadd.f32 %v5459_v24, %v11664_v42  ;;  %v8469_v52 = vpop.f32.mrf.mxu0  ;;  %v11757_v46 = vadd.f32 %v8398_v55, %v5514_v28 }
 0x3cd   : > { %v8353_v1 = vpop.f32.mrf.mxu1 }
 0x3ce   : > { %v5517_v37 = vadd.f32 %v8353_v1, %v11667_v33  ;;  %v6129_v4 = vpop.f32.mrf.mxu0  ;;  %v11760_v59 = vadd.f32 %v5712_v10, %v5512_v38 }
 0x3cf   : > { %v5472_v36 = vpop.f32.mrf.mxu1 }
 0x3d0   : > { %v5515_v9 = vadd.f32 %v5472_v36, %v11670_v56  ;;  %v8470_v12 = vpop.f32.mrf.mxu0  ;;  %v11763_v25 = vadd.f32 %v8401_v14, %v5517_v37 }
 0x3d1   : > { %v8354_v40 = vpop.f32.mrf.mxu1 }
 0x3d2   : > { %v5518_v45 = vadd.f32 %v8354_v40, %v11673_v50  ;;  %v6132_v58 = vpop.f32.mrf.mxu0  ;;  %v11766_v42 = vadd.f32 %v5725_v29, %v5515_v9 }
 0x3d3   : > { %v5475_v49 = vpop.f32.mrf.mxu1 }
 0x3d4   : > { %v5516_v2 = vadd.f32 %v5475_v49, %v11676_v47  ;;  %v8473_v55 = vpop.f32.mrf.mxu0  ;;  %v11769_v33 = vadd.f32 %v8402_v13, %v5518_v45 }
 0x3d5   : > { %v8421_v30 = vpop.f32.mrf.mxu1 }
 0x3d6   : > { %v5989_v22 = vadd.f32 %v8421_v30, %v11679_v60  ;;  %v6145_v10 = vpop.f32.mrf.mxu0  ;;  %v11772_v56 = vadd.f32 %v5728_v16, %v5516_v2 }
 0x3d7   : > { %v5860_v31 = vpop.f32.mrf.mxu1 }
 0x3d8   : > { %v5987_v39 = vadd.f32 %v5860_v31, %v11682_v51  ;;  %v8474_v14 = vpop.f32.mrf.mxu0  ;;  %v11775_v50 = vadd.f32 %v8469_v52, %v5989_v22 }
 0x3d9   : > { %v8422_v5 = vpop.f32.mrf.mxu1 }
 0x3da   : > { %v5990_v63 = vadd.f32 %v8422_v5, %v11685_v44  ;;  %v6148_v29 = vpop.f32.mrf.mxu0  ;;  %v11778_v47 = vadd.f32 %v6129_v4, %v5987_v39 }
 0x3db   : > { %v5863_v61 = vpop.f32.mrf.mxu1 }
 0x3dc   : > { %v5988_v23 = vadd.f32 %v5863_v61, %v11688_v11  ;;  %v8477_v13 = vpop.f32.mrf.mxu0  ;;  %v11781_v60 = vadd.f32 %v8470_v12, %v5990_v63 }
 0x3dd   : > { %v8425_v41 = vpop.f32.mrf.mxu1 }
 0x3de   : > { %v5993_v28 = vadd.f32 %v8425_v41, %v11691_v27  ;;  %v6161_v16 = vpop.f32.mrf.mxu0  ;;  %v11784_v51 = vadd.f32 %v6132_v58, %v5988_v23 }
 0x3df   : > { %v5876_v24 = vpop.f32.mrf.mxu1 }
 0x3e0   : > { %v5991_v38 = vadd.f32 %v5876_v24, %v11694_v3  ;;  %v8478_v52 = vpop.f32.mrf.mxu0  ;;  %v11787_v44 = vadd.f32 %v8473_v55, %v5993_v28 }
 0x3e1   : > { %v8426_v1 = vpop.f32.mrf.mxu1 }
 0x3e2   : > { %v5994_v37 = vadd.f32 %v8426_v1, %v11697_v32  ;;  %v6164_v4 = vpop.f32.mrf.mxu0  ;;  %v11790_v11 = vadd.f32 %v6145_v10, %v5991_v38 }
 0x3e3   : > { %v5879_v36 = vpop.f32.mrf.mxu1 }
 0x3e4   : > { %v5992_v9 = vadd.f32 %v5879_v36, %v11700_v21  ;;  %v8481_v12 = vpop.f32.mrf.mxu0  ;;  %v11793_v27 = vadd.f32 %v8474_v14, %v5994_v37 }
 0x3e5   : > { %v8429_v40 = vpop.f32.mrf.mxu1 }
 0x3e6   : > { %v5997_v45 = vadd.f32 %v8429_v40, %v11703_v54  ;;  %v6177_v58 = vpop.f32.mrf.mxu0  ;;  %v11796_v3 = vadd.f32 %v6148_v29, %v5992_v9 }
 0x3e7   : > { %v5892_v49 = vpop.f32.mrf.mxu1 }
 0x3e8   : > { %v5995_v2 = vadd.f32 %v5892_v49, %v11706_v19  ;;  %v8482_v55 = vpop.f32.mrf.mxu0  ;;  %v11799_v32 = vadd.f32 %v8477_v13, %v5997_v45 }
 0x3e9   : > { %v8430_v30 = vpop.f32.mrf.mxu1 }
 0x3ea   : > { %v5998_v22 = vadd.f32 %v8430_v30, %v11709_v7  ;;  %v6180_v10 = vpop.f32.mrf.mxu0  ;;  %v11802_v21 = vadd.f32 %v6161_v16, %v5995_v2 }
 0x3eb   : > { %v5895_v31 = vpop.f32.mrf.mxu1 }
 0x3ec   : > { %v5996_v39 = vadd.f32 %v5895_v31, %v11712_v26  ;;  %v8485_v14 = vpop.f32.mrf.mxu0  ;;  %v11805_v54 = vadd.f32 %v8478_v52, %v5998_v22 }
 0x3ed   : > { %v8433_v5 = vpop.f32.mrf.mxu1 }
 0x3ee   : > { %v6001_v63 = vadd.f32 %v8433_v5, %v11715_v0  ;;  %v6193_v29 = vpop.f32.mrf.mxu0  ;;  %v11808_v19 = vadd.f32 %v6164_v4, %v5996_v39 }
 0x3ef   : > { %v5908_v61 = vpop.f32.mrf.mxu1 }
 0x3f0   : > { %v5999_v23 = vadd.f32 %v5908_v61, %v11718_v35  ;;  %v8486_v13 = vpop.f32.mrf.mxu0  ;;  %v11811_v7 = vadd.f32 %v8481_v12, %v6001_v63 }
 0x3f1   : > { %v8434_v41 = vpop.f32.mrf.mxu1 }
 0x3f2   : > { %v6002_v28 = vadd.f32 %v8434_v41, %v11721_v53  ;;  %v6196_v16 = vpop.f32.mrf.mxu0  ;;  %v11814_v26 = vadd.f32 %v6177_v58, %v5999_v23 }
 0x3f3   : > { %v5911_v24 = vpop.f32.mrf.mxu1 }
 0x3f4   : > { %v6000_v38 = vadd.f32 %v5911_v24, %v11724_v8  ;;  %v8489_v52 = vpop.f32.mrf.mxu0  ;;  %v11817_v0 = vadd.f32 %v8482_v55, %v6002_v28 }
 0x3f5   : > { %v8437_v1 = vpop.f32.mrf.mxu1 }
 0x3f6   : > { %v6005_v37 = vadd.f32 %v8437_v1, %v11727_v6  ;;  %v6209_v4 = vpop.f32.mrf.mxu0  ;;  %v11820_v35 = vadd.f32 %v6180_v10, %v6000_v38 }
 0x3f7   : > { %v5924_v36 = vpop.f32.mrf.mxu1 }
 0x3f8   : > { %v6003_v9 = vadd.f32 %v5924_v36, %v11730_v17  ;;  %v8490_v12 = vpop.f32.mrf.mxu0  ;;  %v11823_v53 = vadd.f32 %v8485_v14, %v6005_v37 }
 0x3f9   : > { %v8438_v40 = vpop.f32.mrf.mxu1 }
 0x3fa   : > { %v6006_v45 = vadd.f32 %v8438_v40, %v11733_v57  ;;  %v6212_v58 = vpop.f32.mrf.mxu0  ;;  %v11826_v8 = vadd.f32 %v6193_v29, %v6003_v9 }
 0x3fb   : > { %v5927_v49 = vpop.f32.mrf.mxu1 }
 0x3fc   : > { %v6004_v2 = vadd.f32 %v5927_v49, %v11736_v34  ;;  %v8493_v55 = vpop.f32.mrf.mxu0  ;;  %v11829_v6 = vadd.f32 %v8486_v13, %v6006_v45 }
 0x3fd   : > { %v8441_v30 = vpop.f32.mrf.mxu1 }
 0x3fe   : > { %v6009_v22 = vadd.f32 %v8441_v30, %v11739_v20  ;;  %v6225_v10 = vpop.f32.mrf.mxu0  ;;  %v11832_v17 = vadd.f32 %v6196_v16, %v6004_v2 }
 0x3ff   : > { %v5940_v31 = vpop.f32.mrf.mxu1 }
 0x400   : > { %v6007_v39 = vadd.f32 %v5940_v31, %v11742_v43  ;;  %v8494_v14 = vpop.f32.mrf.mxu0  ;;  %v11835_v57 = vadd.f32 %v8489_v52, %v6009_v22 }
 0x401   : > { %v8442_v5 = vpop.f32.mrf.mxu1 }
 0x402   : > { %v6010_v63 = vadd.f32 %v8442_v5, %v11745_v62  ;;  %v6228_v29 = vpop.f32.mrf.mxu0  ;;  %v11838_v34 = vadd.f32 %v6209_v4, %v6007_v39  ;;  %v11883_v5 = vld [vmem:[%s12159_s10] ss:$0 sm:$0xff] }
 0x403   : > { %v5943_v61 = vpop.f32.mrf.mxu1 }
 0x404   : > { %v6008_v23 = vadd.f32 %v5943_v61, %v11748_v15  ;;  %v8497_v13 = vpop.f32.mrf.mxu0  ;;  %v11841_v20 = vadd.f32 %v8490_v12, %v6010_v63  ;;  %v11853_v15 = vld [vmem:[%s12158_s9] ss:$0 sm:$0xff] }
 0x405   : > { %v8445_v41 = vpop.f32.mrf.mxu1 }
 0x406   : > { %v6013_v28 = vadd.f32 %v8445_v41, %v11751_v48  ;;  %v6241_v16 = vpop.f32.mrf.mxu0  ;;  %v11844_v43 = vadd.f32 %v6212_v58, %v6008_v23  ;;  %v11869_v58 = vld [vmem:[%s12149_s0 + $0x3] ss:$0 sm:$0xff] }
 0x407   : > { %v5956_v24 = vpop.f32.mrf.mxu1 }
 0x408   : > { %v6011_v38 = vadd.f32 %v5956_v24, %v11754_v18  ;;  %v8498_v52 = vpop.f32.mrf.mxu0  ;;  %v11847_v62 = vadd.f32 %v8493_v55, %v6013_v28  ;;  %v11861_v18 = vld [vmem:[%s12149_s0 + $0x2] ss:$0 sm:$0xff] }
 0x409   : > { %v8446_v1 = vpop.f32.mrf.mxu1 }
 0x40a   : > { %v6014_v37 = vadd.f32 %v8446_v1, %v11757_v46  ;;  %v6244_v4 = vpop.f32.mrf.mxu0  ;;  %v11855_v36 = vadd.f32 %v6225_v10, %v6011_v38 }
 0x40b   : > { %v5959_v48 = vpop.f32.mrf.mxu1 }
 0x40c   : > { %v6012_v9 = vadd.f32 %v5959_v48, %v11760_v59  ;;  %v8551_v12 = vpop.f32.mrf.mxu0  ;;  %v11863_v40 = vadd.f32 %v8494_v14, %v6014_v37 }
 0x40d   : > { %v6794_v46 = vadd.f32 %v8551_v12, %v11853_v15  ;;  %v8449_v45 = vpop.f32.mrf.mxu1 }
 0x40e   : > { %v6017_v49 = vadd.f32 %v8449_v45, %v11763_v25  ;;  %v6785_v2 = vpop.f32.mrf.mxu0  ;;  %v11872_v59 = vadd.f32 %v6228_v29, %v6012_v9  ;;  %v11904_v45 = vld [vmem:[%s12156_s7] ss:$0 sm:$0xff] }
 0x40f   : > { %v6919_v55 = vsub.f32 %v6794_v46, %v11861_v18  ;;  %v6786_v30 = vadd.f32 %v11853_v15, %v6785_v2  ;;  %v5972_v22 = vpop.f32.mrf.mxu1 }
 0x410   : > { %v6015_v10 = vadd.f32 %v5972_v22, %v11766_v42  ;;  %v8552_v31 = vpop.f32.mrf.mxu0  ;;  %v11877_v39 = vadd.f32 %v8497_v13, %v6017_v49 }
 0x411   : > { %v6956_v14 = vmul.f32 %v11869_v58, %v6919_v55  ;;  %v6917_v25 = vsub.f32 %v6786_v30, %v11861_v18  ;;  %v6797_v63 = vadd.f32 %v8552_v31, %v11853_v15  ;;  %v8450_v29 = vpop.f32.mrf.mxu1 }
 0x412   : > { %v6018_v61 = vadd.f32 %v8450_v29, %v11769_v33  ;;  %v6788_v23 = vpop.f32.mrf.mxu0  ;;  %v11888_v41 = vadd.f32 %v6241_v16, %v6015_v10 }
 0x413   : > { %v6954_v42 = vmul.f32 %v11869_v58, %v6917_v25  ;;  %v6920_v13 = vsub.f32 %v6797_v63, %v11861_v18  ;;  %v6789_v28 = vadd.f32 %v11853_v15, %v6788_v23  ;;  %v5975_v24 = vpop.f32.mrf.mxu1  ;;  %v6995_v38 = vmul.f32 %v11883_v5, %v6956_v14 }
 0x414   : > { %v6016_v1 = vadd.f32 %v5975_v24, %v11772_v56  ;;  %v8555_v37 = vpop.f32.mrf.mxu0  ;;  %v11895_v48 = vadd.f32 %v8498_v52, %v6018_v61  ;;  %v11909_v56 = vld [vmem:[%s12160_s11] ss:$0 sm:$0xff] }
 0x415   : > { %v6993_v9 = vmul.f32 %v11883_v5, %v6954_v42  ;;  %v6957_v33 = vmul.f32 %v11869_v58, %v6920_v13  ;;  %v6918_v16 = vsub.f32 %v6789_v28, %v11861_v18  ;;  %v6810_v12 = vadd.f32 %v8555_v37, %v11853_v15  ;;  %v8517_v46 = vpop.f32.mrf.mxu1 }
 0x416   : > { %v6511_v52 = vadd.f32 %v8517_v46, %v11775_v50  ;;  %v6801_v49 = vpop.f32.mrf.mxu0  ;;  %v11912_v2 = vadd.f32 %v6244_v4, %v6016_v1  ;;  %v7034_v25 = vadd.f32 %v11909_v56, %v6995_v38 }
 0x417   : > { %v6996_v55 = vmul.f32 %v11883_v5, %v6957_v33  ;;  %v6955_v30 = vmul.f32 %v11869_v58, %v6918_v16  ;;  %v6923_v22 = vsub.f32 %v6810_v12, %v11861_v18  ;;  %v6802_v10 = vadd.f32 %v11853_v15, %v6801_v49  ;;  %v6382_v31 = vpop.f32.mrf.mxu1 }
 0x418   : > { %v6550_v14 = vadd.f32 %v11904_v45, %v6511_v52  ;;  %v6509_v63 = vadd.f32 %v6382_v31, %v11778_v47  ;;  %v8556_v29 = vpop.f32.mrf.mxu0  ;;  %v7032_v61 = vadd.f32 %v11909_v56, %v6993_v9 }
 0x419   : > { %v6960_v50 = vmul.f32 %v11869_v58, %v6923_v22  ;;  %v6921_v4 = vsub.f32 %v6802_v10, %v11861_v18  ;;  %v6813_v23 = vadd.f32 %v8556_v29, %v11853_v15  ;;  %v8518_v42 = vpop.f32.mrf.mxu1  ;;  %v6994_v13 = vmul.f32 %v11883_v5, %v6955_v30 }
 0x41a   : > { %v6582_v28 = vmax.f32 %v6550_v14, 0.0  ;;  %v6548_v24 = vadd.f32 %v11904_v45, %v6509_v63  ;;  %v6512_v1 = vadd.f32 %v8518_v42, %v11781_v60  ;;  %v6804_v38 = vpop.f32.mrf.mxu0  ;;  %v7035_v33 = vadd.f32 %v11909_v56, %v6996_v55 }
 0x41b   : > { %v6958_v47 = vmul.f32 %v11869_v58, %v6921_v4  ;;  %v6924_v37 = vsub.f32 %v6813_v23, %v11861_v18  ;;  %v6805_v16 = vadd.f32 %v11853_v15, %v6804_v38  ;;  %v6385_v9 = vpop.f32.mrf.mxu1  ;;  %v6999_v12 = vmul.f32 %v11883_v5, %v6960_v50 }
 0x41c   : > { %v6580_v46 = vmax.f32 %v6548_v24, 0.0  ;;  %v6551_v52 = vadd.f32 %v11904_v45, %v6512_v1  ;;  %v6510_v49 = vadd.f32 %v6385_v9, %v11784_v51  ;;  %v8559_v30 = vpop.f32.mrf.mxu0  ;;  %v7066_v22 = vadd.f32 %v7034_v25, %v6582_v28 }
 0x41d   : > { %v6997_v60 = vmul.f32 %v11883_v5, %v6958_v47  ;;  %v6961_v10 = vmul.f32 %v11869_v58, %v6924_v37  ;;  %v6922_v31 = vsub.f32 %v6805_v16, %v11861_v18  ;;  %v8521_v14 = vpop.f32.mrf.mxu1  ;;  %v7033_v29 = vadd.f32 %v11909_v56, %v6994_v13 }
 0x41e   : > { %v6583_v55 = vmax.f32 %v6551_v52, 0.0  ;;  %v6549_v63 = vadd.f32 %v11904_v45, %v6510_v49  ;;  %v6826_v50 = vadd.f32 %v8559_v30, %v11853_v15  ;;  %v6817_v4 = vpop.f32.mrf.mxu0  ;;  %v7064_v23 = vadd.f32 %v7032_v61, %v6580_v46 }
 0x41f   : > { %v7000_v51 = vmul.f32 %v11883_v5, %v6961_v10  ;;  %v6959_v25 = vmul.f32 %v11869_v58, %v6922_v31  ;;  %v6515_v42 = vadd.f32 %v8521_v14, %v11787_v44  ;;  %v6398_v28 = vpop.f32.mrf.mxu1  ;;  %v6818_v47 = vadd.f32 %v11853_v15, %v6817_v4 }
 0x420   : > { %v7067_v24 = vadd.f32 %v7035_v33, %v6583_v55  ;;  %v6581_v1 = vmax.f32 %v6549_v63, 0.0  ;;  %v6927_v38 = vsub.f32 %v6826_v50, %v11861_v18  ;;  %v8560_v37 = vpop.f32.mrf.mxu0  ;;  %v7038_v44 = vadd.f32 %v11909_v56, %v6999_v12 }
 0x421   : > { %v6998_v61 = vmul.f32 %v11883_v5, %v6959_v25  ;;  %v6554_v13 = vadd.f32 %v11904_v45, %v6515_v42  ;;  %v6513_v33 = vadd.f32 %v6398_v28, %v11790_v11  ;;  %v8522_v16 = vpop.f32.mrf.mxu1  ;;  %v6925_v49 = vsub.f32 %v6818_v47, %v11861_v18 }
 0x422   : > { %v7738_v9 = vpack.c.bf16 %v7067_v24, %v7066_v22  ;;  %v7065_v46 = vadd.f32 %v7033_v29, %v6581_v1  ;;  %v6964_v52 = vmul.f32 %v11869_v58, %v6927_v38  ;;  %v6820_v30 = vpop.f32.mrf.mxu0  ;;  %v6829_v14 = vadd.f32 %v8560_v37, %v11853_v15 }
 0x423   : > { %v6586_v10 = vmax.f32 %v6554_v13, 0.0  ;;  %v6552_v31 = vadd.f32 %v11904_v45, %v6513_v33  ;;  %v6516_v55 = vadd.f32 %v8522_v16, %v11793_v27  ;;  %v6401_v63 = vpop.f32.mrf.mxu1  ;;  %v6962_v22 = vmul.f32 %v11869_v58, %v6925_v49 }
 0x424   : > { %7810 = vst [vmem:[%s11951_s19 + $0x8] sm:$0xff] %v7738_v9   ;;  %v7733_v12 = vpack.c.bf16 %v7065_v46, %v7064_v23  ;;  %v7003_v11 = vmul.f32 %v11883_v5, %v6964_v52  ;;  %v7036_v29 = vadd.f32 %v11909_v56, %v6997_v60  ;;  %v8563_v50 = vpop.f32.mrf.mxu0  ;;  %v6928_v25 = vsub.f32 %v6829_v14, %v11861_v18 }
 0x425   : > { %v6584_v4 = vmax.f32 %v6552_v31, 0.0  ;;  %v6555_v42 = vadd.f32 %v11904_v45, %v6516_v55  ;;  %v7039_v28 = vadd.f32 %v11909_v56, %v7000_v51  ;;  %v8525_v24 = vpop.f32.mrf.mxu1  ;;  %v7070_v27 = vadd.f32 %v7038_v44, %v6586_v10 }
 0x426   : > { %7734 = vst [vmem:[%s11951_s19] sm:$0xff] %v7733_v12   ;;  %v7001_v1 = vmul.f32 %v11883_v5, %v6962_v22  ;;  %v6821_v23 = vadd.f32 %v11853_v15, %v6820_v30  ;;  %v6514_v38 = vadd.f32 %v6401_v63, %v11796_v3  ;;  %v6833_v47 = vpop.f32.mrf.mxu0  ;;  %v6965_v60 = vmul.f32 %v11869_v58, %v6928_v25 }
 0x427   : > { %v6587_v37 = vmax.f32 %v6555_v42, 0.0  ;;  %v7037_v13 = vadd.f32 %v11909_v56, %v6998_v61  ;;  %v6842_v33 = vadd.f32 %v8563_v50, %v11853_v15  ;;  %v6414_v16 = vpop.f32.mrf.mxu1  ;;  %v7068_v9 = vadd.f32 %v7036_v29, %v6584_v4 }
 0x428   : > { %v6926_v51 = vsub.f32 %v6821_v23, %v11861_v18  ;;  %v6553_v44 = vadd.f32 %v11904_v45, %v6514_v38  ;;  %v6519_v46 = vadd.f32 %v8525_v24, %v11799_v32  ;;  %v8564_v52 = vpop.f32.mrf.mxu0  ;;  %v7042_v30 = vadd.f32 %v11909_v56, %v7003_v11 }
 0x429   : > { %v7071_v49 = vadd.f32 %v7039_v28, %v6587_v37  ;;  %v6931_v3 = vsub.f32 %v6842_v33, %v11861_v18  ;;  %v6834_v10 = vadd.f32 %v11853_v15, %v6833_v47  ;;  %v8526_v31 = vpop.f32.mrf.mxu1  ;;  %v6517_v63 = vadd.f32 %v6414_v16, %v11802_v21 }
 0x42a   : > { %v6963_v61 = vmul.f32 %v11869_v58, %v6926_v51  ;;  %v6585_v14 = vmax.f32 %v6553_v44, 0.0  ;;  %v6558_v55 = vadd.f32 %v11904_v45, %v6519_v46  ;;  %v6836_v12 = vpop.f32.mrf.mxu0  ;;  %v7004_v32 = vmul.f32 %v11883_v5, %v6965_v60 }
 0x42b   : > { %v7748_v22 = vpack.c.bf16 %v7071_v49, %v7070_v27  ;;  %v6968_v29 = vmul.f32 %v11869_v58, %v6931_v3  ;;  %v6929_v50 = vsub.f32 %v6834_v10, %v11861_v18  ;;  %v6417_v11 = vpop.f32.mrf.mxu1  ;;  %v6556_v28 = vadd.f32 %v11904_v45, %v6517_v63 }
 0x42c   : > { %v7002_v4 = vmul.f32 %v11883_v5, %v6963_v61  ;;  %v7069_v25 = vadd.f32 %v7037_v13, %v6585_v14  ;;  %v6590_v42 = vmax.f32 %v6558_v55, 0.0  ;;  %v8567_v24 = vpop.f32.mrf.mxu0  ;;  %v7040_v23 = vadd.f32 %v11909_v56, %v7001_v1 }
 0x42d   : > { %7812 = vst [vmem:[%s11951_s19 + $0x18] sm:$0xff] %v7748_v22   ;;  %v6966_v21 = vmul.f32 %v11869_v58, %v6929_v50  ;;  %v6845_v27 = vadd.f32 %v8564_v52, %v11853_v15  ;;  %v6520_v38 = vadd.f32 %v8526_v31, %v11805_v54  ;;  %v8529_v47 = vpop.f32.mrf.mxu1  ;;  %v7007_v37 = vmul.f32 %v11883_v5, %v6968_v29 }
 0x42e   : > { %v7743_v60 = vpack.c.bf16 %v7069_v25, %v7068_v9  ;;  %v7074_v33 = vadd.f32 %v7042_v30, %v6590_v42  ;;  %v6588_v13 = vmax.f32 %v6556_v28, 0.0  ;;  %v6849_v16 = vpop.f32.mrf.mxu0  ;;  %v7043_v46 = vadd.f32 %v11909_v56, %v7004_v32 }
 0x42f   : > { %v6932_v51 = vsub.f32 %v6845_v27, %v11861_v18  ;;  %v6559_v44 = vadd.f32 %v11904_v45, %v6520_v38  ;;  %v6837_v49 = vadd.f32 %v11853_v15, %v6836_v12  ;;  %v6430_v1 = vpop.f32.mrf.mxu1  ;;  %v7005_v52 = vmul.f32 %v11883_v5, %v6966_v21 }
 0x430   : > { %7811 = vst [vmem:[%s11951_s19 + $0x10] sm:$0xff] %v7743_v60   ;;  %v6518_v54 = vadd.f32 %v6417_v11, %v11808_v19  ;;  %v7041_v9 = vadd.f32 %v11909_v56, %v7002_v4  ;;  %v6858_v3 = vadd.f32 %v8567_v24, %v11853_v15  ;;  %v8568_v30 = vpop.f32.mrf.mxu0  ;;  %v6523_v14 = vadd.f32 %v8529_v47, %v11811_v7 }
 0x431   : > { %v6969_v10 = vmul.f32 %v11869_v58, %v6932_v51  ;;  %v6591_v31 = vmax.f32 %v6559_v44, 0.0  ;;  %v6930_v61 = vsub.f32 %v6837_v49, %v11861_v18  ;;  %v8530_v55 = vpop.f32.mrf.mxu1  ;;  %v7046_v32 = vadd.f32 %v11909_v56, %v7007_v37 }
 0x432   : > { %v6557_v63 = vadd.f32 %v11904_v45, %v6518_v54  ;;  %v6935_v12 = vsub.f32 %v6858_v3, %v11861_v18  ;;  %v6850_v19 = vadd.f32 %v11853_v15, %v6849_v16  ;;  %v6852_v22 = vpop.f32.mrf.mxu0  ;;  %v6562_v4 = vadd.f32 %v11904_v45, %v6523_v14 }
 0x433   : > { %v7008_v29 = vmul.f32 %v11883_v5, %v6969_v10  ;;  %v7075_v50 = vadd.f32 %v7043_v46, %v6591_v31  ;;  %v6967_v11 = vmul.f32 %v11869_v58, %v6930_v61  ;;  %v6433_v25 = vpop.f32.mrf.mxu1  ;;  %v6521_v24 = vadd.f32 %v6430_v1, %v11814_v26 }
 0x434   : > { %v6589_v7 = vmax.f32 %v6557_v63, 0.0  ;;  %v6972_v42 = vmul.f32 %v11869_v58, %v6935_v12  ;;  %v6933_v28 = vsub.f32 %v6850_v19, %v11861_v18  ;;  %v8571_v21 = vpop.f32.mrf.mxu0  ;;  %v7072_v27 = vadd.f32 %v7040_v23, %v6588_v13 }
 0x435   : > { %v7758_v38 = vpack.c.bf16 %v7075_v50, %v7074_v33  ;;  %v7006_v47 = vmul.f32 %v11883_v5, %v6967_v11  ;;  %v6594_v60 = vmax.f32 %v6562_v4, 0.0  ;;  %v8533_v37 = vpop.f32.mrf.mxu1  ;;  %v6560_v44 = vadd.f32 %v11904_v45, %v6521_v24 }
 0x436   : > { %v7073_v16 = vadd.f32 %v7041_v9, %v6589_v7  ;;  %v6970_v51 = vmul.f32 %v11869_v58, %v6933_v28  ;;  %v7044_v46 = vadd.f32 %v11909_v56, %v7005_v52  ;;  %v6865_v49 = vpop.f32.mrf.mxu0  ;;  %v7011_v54 = vmul.f32 %v11883_v5, %v6972_v42 }
 0x437   : > { %7814 = vst [vmem:[%s11951_s19 + $0x28] sm:$0xff] %v7758_v38   ;;  %v7078_v26 = vadd.f32 %v7046_v32, %v6594_v60  ;;  %v6861_v23 = vadd.f32 %v8568_v30, %v11853_v15  ;;  %v6524_v33 = vadd.f32 %v8530_v55, %v11817_v0  ;;  %v6446_v13 = vpop.f32.mrf.mxu1  ;;  %v6592_v3 = vmax.f32 %v6560_v44, 0.0 }
 0x438   : > { %v7753_v1 = vpack.c.bf16 %v7073_v16, %v7072_v27  ;;  %v7047_v9 = vadd.f32 %v11909_v56, %v7008_v29  ;;  %v6853_v10 = vadd.f32 %v11853_v15, %v6852_v22  ;;  %v8572_v31 = vpop.f32.mrf.mxu0  ;;  %v7009_v52 = vmul.f32 %v11883_v5, %v6970_v51 }
 0x439   : > { %v6936_v61 = vsub.f32 %v6861_v23, %v11861_v18  ;;  %v6563_v14 = vadd.f32 %v11904_v45, %v6524_v33  ;;  %v6522_v63 = vadd.f32 %v6433_v25, %v11820_v35  ;;  %v8534_v12 = vpop.f32.mrf.mxu1  ;;  %v7045_v30 = vadd.f32 %v11909_v56, %v7006_v47 }
 0x43a   : > { %7813 = vst [vmem:[%s11951_s19 + $0x20] sm:$0xff] %v7753_v1   ;;  %v6934_v0 = vsub.f32 %v6853_v10, %v11861_v18  ;;  %v6874_v55 = vadd.f32 %v8571_v21, %v11853_v15  ;;  %v6527_v32 = vadd.f32 %v8533_v37, %v11823_v53  ;;  %v6868_v19 = vpop.f32.mrf.mxu0  ;;  %v7076_v22 = vadd.f32 %v7044_v46, %v6592_v3 }
 0x43b   : > { %v6973_v29 = vmul.f32 %v11869_v58, %v6936_v61  ;;  %v6595_v50 = vmax.f32 %v6563_v14, 0.0  ;;  %v6561_v11 = vadd.f32 %v11904_v45, %v6522_v63  ;;  %v6449_v4 = vpop.f32.mrf.mxu1  ;;  %v6866_v42 = vadd.f32 %v11853_v15, %v6865_v49 }
 0x43c   : > { %v6971_v35 = vmul.f32 %v11869_v58, %v6934_v0  ;;  %v6939_v25 = vsub.f32 %v6874_v55, %v11861_v18  ;;  %v6566_v7 = vadd.f32 %v11904_v45, %v6527_v32  ;;  %v8575_v28 = vpop.f32.mrf.mxu0  ;;  %v7050_v53 = vadd.f32 %v11909_v56, %v7011_v54 }
 0x43d   : > { %v7079_v24 = vadd.f32 %v7047_v9, %v6595_v50  ;;  %v6593_v21 = vmax.f32 %v6561_v11, 0.0  ;;  %v6525_v27 = vadd.f32 %v6446_v13, %v11826_v8  ;;  %v8537_v38 = vpop.f32.mrf.mxu1  ;;  %v7012_v47 = vmul.f32 %v11883_v5, %v6973_v29 }
 0x43e   : > { %v6976_v60 = vmul.f32 %v11869_v58, %v6939_v25  ;;  %v6598_v37 = vmax.f32 %v6566_v7, 0.0  ;;  %v6937_v16 = vsub.f32 %v6866_v42, %v11861_v18  ;;  %v6881_v51 = vpop.f32.mrf.mxu0  ;;  %v7010_v46 = vmul.f32 %v11883_v5, %v6971_v35 }
 0x43f   : > { %v7768_v44 = vpack.c.bf16 %v7079_v24, %v7078_v26  ;;  %v7077_v49 = vadd.f32 %v7045_v30, %v6593_v21  ;;  %v6564_v23 = vadd.f32 %v11904_v45, %v6525_v27  ;;  %v6462_v33 = vpop.f32.mrf.mxu1  ;;  %v7048_v13 = vadd.f32 %v11909_v56, %v7009_v52 }
 0x440   : > { %v7015_v54 = vmul.f32 %v11883_v5, %v6976_v60  ;;  %v6974_v8 = vmul.f32 %v11869_v58, %v6937_v16  ;;  %v6877_v1 = vadd.f32 %v8572_v31, %v11853_v15  ;;  %v8576_v3 = vpop.f32.mrf.mxu0  ;;  %v7082_v10 = vadd.f32 %v7050_v53, %v6598_v37 }
 0x441   : > { %7816 = vst [vmem:[%s11951_s19 + $0x38] sm:$0xff] %v7768_v44   ;;  %v7763_v9 = vpack.c.bf16 %v7077_v49, %v7076_v22  ;;  %v6596_v26 = vmax.f32 %v6564_v23, 0.0  ;;  %v6528_v61 = vadd.f32 %v8534_v12, %v11829_v6  ;;  %v8538_v14 = vpop.f32.mrf.mxu1  ;;  %v7051_v0 = vadd.f32 %v11909_v56, %v7012_v47 }
 0x442   : > { %v6940_v63 = vsub.f32 %v6877_v1, %v11861_v18  ;;  %v6869_v30 = vadd.f32 %v11853_v15, %v6868_v19  ;;  %v6526_v55 = vadd.f32 %v6449_v4, %v11832_v17  ;;  %v6884_v32 = vpop.f32.mrf.mxu0  ;;  %v7013_v31 = vmul.f32 %v11883_v5, %v6974_v8 }
 0x443   : > { %7815 = vst [vmem:[%s11951_s19 + $0x30] sm:$0xff] %v7763_v9   ;;  %v7080_v52 = vadd.f32 %v7048_v13, %v6596_v26  ;;  %v6567_v22 = vadd.f32 %v11904_v45, %v6528_v61  ;;  %v6890_v29 = vadd.f32 %v8575_v28, %v11853_v15  ;;  %v6465_v50 = vpop.f32.mrf.mxu1  ;;  %v6531_v19 = vadd.f32 %v8537_v38, %v11835_v57 }
 0x444   : > { %v6977_v6 = vmul.f32 %v11869_v58, %v6940_v63  ;;  %v6938_v12 = vsub.f32 %v6869_v30, %v11861_v18  ;;  %v6565_v11 = vadd.f32 %v11904_v45, %v6526_v55  ;;  %v7049_v17 = vadd.f32 %v11909_v56, %v7010_v46  ;;  %v8579_v53 = vpop.f32.mrf.mxu0 }
 0x445   : > { %v6599_v35 = vmax.f32 %v6567_v22, 0.0  ;;  %v6943_v4 = vsub.f32 %v6890_v29, %v11861_v18  ;;  %v6882_v25 = vadd.f32 %v11853_v15, %v6881_v51  ;;  %v8541_v7 = vpop.f32.mrf.mxu1  ;;  %v6570_v24 = vadd.f32 %v11904_v45, %v6531_v19 }
 0x446   : > { %v6975_v42 = vmul.f32 %v11869_v58, %v6938_v12  ;;  %v6597_v28 = vmax.f32 %v6565_v11, 0.0  ;;  %v7054_v21 = vadd.f32 %v11909_v56, %v7015_v54  ;;  %v6529_v38 = vadd.f32 %v6462_v33, %v11838_v34  ;;  %v6897_v9 = vpop.f32.mrf.mxu0 }
 0x447   : > { %v7083_v27 = vadd.f32 %v7051_v0, %v6599_v35  ;;  %v6980_v47 = vmul.f32 %v11869_v58, %v6943_v4  ;;  %v6941_v57 = vsub.f32 %v6882_v25, %v11861_v18  ;;  %v6478_v60 = vpop.f32.mrf.mxu1  ;;  %v7016_v37 = vmul.f32 %v11883_v5, %v6977_v6 }
 0x448   : > { %v7014_v16 = vmul.f32 %v11883_v5, %v6975_v42  ;;  %v7081_v51 = vadd.f32 %v7049_v17, %v6597_v28  ;;  %v6602_v44 = vmax.f32 %v6570_v24, 0.0  ;;  %v6568_v23 = vadd.f32 %v11904_v45, %v6529_v38  ;;  %v8580_v19 = vpop.f32.mrf.mxu0 }
 0x449   : > { %v7778_v46 = vpack.c.bf16 %v7083_v27, %v7082_v10  ;;  %v6978_v49 = vmul.f32 %v11869_v58, %v6941_v57  ;;  %v7052_v54 = vadd.f32 %v11909_v56, %v7013_v31  ;;  %v8542_v8 = vpop.f32.mrf.mxu1  ;;  %v7019_v34 = vmul.f32 %v11883_v5, %v6980_v47 }
 0x44a   : > { %v7773_v13 = vpack.c.bf16 %v7081_v51, %v7080_v52  ;;  %v6893_v33 = vadd.f32 %v8576_v3, %v11853_v15  ;;  %v6532_v1 = vadd.f32 %v8538_v14, %v11841_v20  ;;  %v7086_v26 = vadd.f32 %v7054_v21, %v6602_v44 }
 0x44b   : > { %7818 = vst [vmem:[%s11951_s19 + $0x48] sm:$0xff] %v7778_v46   ;;  %v7017_v10 = vmul.f32 %v11883_v5, %v6978_v49  ;;  %v6600_v61 = vmax.f32 %v6568_v23, 0.0  ;;  %v6885_v63 = vadd.f32 %v11853_v15, %v6884_v32  ;;  %v6481_v0 = vpop.f32.mrf.mxu1  ;;  %v7055_v31 = vadd.f32 %v11909_v56, %v7016_v37  ;;  %v6900_v37 = vpop.f32.mrf.mxu0 }
 0x44c   : > { %7817 = vst [vmem:[%s11951_s19 + $0x40] sm:$0xff] %v7773_v13   ;;  %v6944_v30 = vsub.f32 %v6893_v33, %v11861_v18  ;;  %v6571_v55 = vadd.f32 %v11904_v45, %v6532_v1  ;;  %v6530_v3 = vadd.f32 %v6465_v50, %v11844_v43  ;;  %v7053_v14 = vadd.f32 %v11909_v56, %v7014_v16 }
 0x44d   : > { %v6942_v20 = vsub.f32 %v6885_v63, %v11861_v18  ;;  %v6906_v52 = vadd.f32 %v8579_v53, %v11853_v15  ;;  %v6535_v22 = vadd.f32 %v8541_v7, %v11847_v62  ;;  %v8545_v29 = vpop.f32.mrf.mxu1  ;;  %v7084_v32 = vadd.f32 %v7052_v54, %v6600_v61 }
 0x44e   : > { %v6981_v6 = vmul.f32 %v11869_v58, %v6944_v30  ;;  %v6603_v12 = vmax.f32 %v6571_v55, 0.0  ;;  %v6569_v11 = vadd.f32 %v11904_v45, %v6530_v3  ;;  %v6898_v17 = vadd.f32 %v11853_v15, %v6897_v9 }
 0x44f   : > { %v6979_v35 = vmul.f32 %v11869_v58, %v6942_v20  ;;  %v6947_v43 = vsub.f32 %v6906_v52, %v11861_v18  ;;  %v6574_v50 = vadd.f32 %v11904_v45, %v6535_v22  ;;  %v6494_v4 = vpop.f32.mrf.mxu1  ;;  %v7058_v62 = vadd.f32 %v11909_v56, %v7019_v34 }
 0x450   : > { %v7087_v25 = vadd.f32 %v7055_v31, %v6603_v12  ;;  %v6601_v42 = vmax.f32 %v6569_v11, 0.0  ;;  %v6533_v7 = vadd.f32 %v6478_v60, %v11855_v36  ;;  %v7020_v28 = vmul.f32 %v11883_v5, %v6981_v6 }
 0x451   : > { %v6984_v24 = vmul.f32 %v11869_v58, %v6947_v43  ;;  %v6606_v21 = vmax.f32 %v6574_v50, 0.0  ;;  %v6945_v53 = vsub.f32 %v6898_v17, %v11861_v18  ;;  %v7018_v47 = vmul.f32 %v11883_v5, %v6979_v35  ;;  %v8546_v44 = vpop.f32.mrf.mxu1 }
 0x452   : > { %v7788_v27 = vpack.c.bf16 %v7087_v25, %v7086_v26  ;;  %v7085_v57 = vadd.f32 %v7053_v14, %v6601_v42  ;;  %v6572_v38 = vadd.f32 %v11904_v45, %v6533_v7  ;;  %v7056_v36 = vadd.f32 %v11909_v56, %v7017_v10 }
 0x453   : > { %v7023_v16 = vmul.f32 %v11883_v5, %v6984_v24  ;;  %v6982_v51 = vmul.f32 %v11869_v58, %v6945_v53  ;;  %v6909_v60 = vadd.f32 %v8580_v19, %v11853_v15  ;;  %v7090_v49 = vadd.f32 %v7058_v62, %v6606_v21  ;;  %v6497_v55 = vpop.f32.mrf.mxu1 }
 0x454   : > { %7820 = vst [vmem:[%s11951_s19 + $0x58] sm:$0xff] %v7788_v27   ;;  %v7783_v46 = vpack.c.bf16 %v7085_v57, %v7084_v32  ;;  %v6604_v23 = vmax.f32 %v6572_v38, 0.0  ;;  %v6536_v54 = vadd.f32 %v8542_v8, %v11863_v40  ;;  %v6901_v33 = vadd.f32 %v11853_v15, %v6900_v37 }
 0x455   : > { %v7021_v13 = vmul.f32 %v11883_v5, %v6982_v51  ;;  %v6948_v34 = vsub.f32 %v6909_v60, %v11861_v18  ;;  %v6534_v1 = vadd.f32 %v6481_v0, %v11872_v59  ;;  %v7059_v10 = vadd.f32 %v11909_v56, %v7020_v28 }
 0x456   : > { %7819 = vst [vmem:[%s11951_s19 + $0x50] sm:$0xff] %v7783_v46   ;;  %v7088_v9 = vadd.f32 %v7056_v36, %v6604_v23  ;;  %v6575_v26 = vadd.f32 %v11904_v45, %v6536_v54  ;;  %v6539_v61 = vadd.f32 %v8545_v29, %v11877_v39  ;;  %v6946_v40 = vsub.f32 %v6901_v33, %v11861_v18 }
 0x457   : > { %v6985_v63 = vmul.f32 %v11869_v58, %v6948_v34  ;;  %v6573_v8 = vadd.f32 %v11904_v45, %v6534_v1  ;;  %v7057_v30 = vadd.f32 %v11909_v56, %v7018_v47  ;;  %v6537_v0 = vadd.f32 %v6494_v4, %v11888_v41 }
 0x458   : > { %v6607_v15 = vmax.f32 %v6575_v26, 0.0  ;;  %v6578_v59 = vadd.f32 %v11904_v45, %v6539_v61  ;;  %v7060_v31 = vadd.f32 %v11909_v56, %v7021_v13  ;;  %v6983_v39 = vmul.f32 %v11869_v58, %v6946_v40 }
 0x459   : > { %v7024_v3 = vmul.f32 %v11883_v5, %v6985_v63  ;;  %v6605_v20 = vmax.f32 %v6573_v8, 0.0  ;;  %v6540_v14 = vadd.f32 %v8546_v44, %v11895_v48  ;;  %v7062_v52 = vadd.f32 %v11909_v56, %v7023_v16 }
 0x45a   : > { %v7091_v18 = vadd.f32 %v7059_v10, %v6607_v15  ;;  %v6576_v22 = vadd.f32 %v11904_v45, %v6537_v0  ;;  %v6538_v29 = vadd.f32 %v6497_v55, %v11912_v2  ;;  %v7022_v41 = vmul.f32 %v11883_v5, %v6983_v39 }
 0x45b   : > { %v7089_v32 = vadd.f32 %v7057_v30, %v6605_v20  ;;  %v6610_v6 = vmax.f32 %v6578_v59, 0.0  ;;  %v6579_v12 = vadd.f32 %v11904_v45, %v6540_v14  ;;  %v7063_v43 = vadd.f32 %v11909_v56, %v7024_v3 }
 0x45c   : > { %v7798_v11 = vpack.c.bf16 %v7091_v18, %v7090_v49  ;;  %v6608_v58 = vmax.f32 %v6576_v22, 0.0  ;;  %v6577_v48 = vadd.f32 %v11904_v45, %v6538_v29  ;;  %v7061_v50 = vadd.f32 %v11909_v56, %v7022_v41 }
 0x45d   : > { %v7793_v19 = vpack.c.bf16 %v7089_v32, %v7088_v9  ;;  %v6611_v35 = vmax.f32 %v6579_v12, 0.0  ;;  %v7094_v5 = vadd.f32 %v7062_v52, %v6610_v6 }
 0x45e   : > { %7822 = vst [vmem:[%s11951_s19 + $0x68] sm:$0xff] %v7798_v11   ;;  %v7092_v2 = vadd.f32 %v7060_v31, %v6608_v58  ;;  %v6609_v17 = vmax.f32 %v6577_v48, 0.0 }
 0x45f   : > { %7821 = vst [vmem:[%s11951_s19 + $0x60] sm:$0xff] %v7793_v19   ;;  %v7095_v4 = vadd.f32 %v7063_v43, %v6611_v35 }
 0x460   : > { %v7093_v25 = vadd.f32 %v7061_v50, %v6609_v17 }
 0x461   : > { %v7808_v42 = vpack.c.bf16 %v7095_v4, %v7094_v5 }
 0x462   : > { %v7803_v62 = vpack.c.bf16 %v7093_v25, %v7092_v2 }
 0x463   : > { %7824 = vst [vmem:[%s11951_s19 + $0x78] sm:$0xff] %v7808_v42  }
 0x464   : > { %7823 = vst [vmem:[%s11951_s19 + $0x70] sm:$0xff] %v7803_v62  }
 0x465 PF: > { %s22_s21 = sadd.s32 1, %s8763_s21  }
 0x466   : > { %p19_p4 = scmp.ge.s32.totalorder %s22_s21, 4  }
 0x468   :  { %21 = sbr.rel (!%p19_p4) target bundleno = 1 (0x1), region = 102 }

</bundles_post_ra>
